<compile_context>
chip_gen: v7x
topology: tpu7x:2x2x1
jax: 0.10.0
libtpu: 0.0.40
codegen_flags: <defaults>
</compile_context>

<pallas_src>
import math

import jax
import jax.numpy as jnp
from jax import lax
from jax.experimental import pallas as pl
from jax.experimental.pallas import tpu as pltpu

EPS = 1e-5  # PyTorch LayerNorm default eps

# Column indices of the stacked small-parameter matrix `vec` (features x cols).
_BQKV, _G1, _BE1, _BO, _G2, _BE2, _B1, _BA1, _WA2, _B2, _BA2 = range(11)
_NCOLS = 11


def _make_kernel(heads: int, head_dim: int, C: int, hidden: int, out_ch: int):
    scale = 1.0 / math.sqrt(head_dim)
    bf16 = jnp.bfloat16

    def kernel(x_ref,      # (Bblk, C, L)        f32   channel-major input
               wqkv_ref,   # (3C, C)             bf16  stacked [Wq; Wk; Wv]
               wo_ref,     # (C, C)              bf16  out_proj weight
               w1_ref,     # (hidden, C)         bf16  ffa.fc1 weight
               wa1_ref,    # (hidden, hidden)    bf16  ffa.attn[0] weight
               w2_ref,     # (out_ch, hidden)    bf16  ffa.fc2 weight
               vec_ref,    # (96, 11)            f32   stacked small vectors
               o_ref,      # (Bblk, C, L)        f32   channel-major output
               oh_ref):    # (C, Bblk*L)         f32   VMEM scratch (head outs)
        Bblk, _, L = x_ref.shape
        dh = head_dim

        # ---- unpack the stacked small parameters (static slices) ------------
        vec = vec_ref[...]
        bqkv = vec[:3 * C, _BQKV:_BQKV + 1]
        g1   = vec[:C, _G1:_G1 + 1]
        be1  = vec[:C, _BE1:_BE1 + 1]
        bo   = vec[:C, _BO:_BO + 1]
        g2   = vec[:C, _G2:_G2 + 1]
        be2  = vec[:C, _BE2:_BE2 + 1]
        b1   = vec[:hidden, _B1:_B1 + 1]
        ba1  = vec[:hidden, _BA1:_BA1 + 1]
        wa2  = vec[:hidden, _WA2:_WA2 + 1]
        b2   = vec[:out_ch, _B2:_B2 + 1]
        ba2  = vec[0:1, _BA2:_BA2 + 1]

        # ---- feature-major activations: (C, N), tokens on lanes --------------
        # Input is already channel-major, so this is just a lane-dim concat
        # (no transposes anywhere in the kernel for x or y).
        x = jnp.concatenate([x_ref[b] for b in range(Bblk)], axis=1)  # (C, N)

        def layernorm(v, g, b):
            mean = jnp.mean(v, axis=0, keepdims=True)                 # (1, N)
            var = jnp.mean(jnp.square(v - mean), axis=0, keepdims=True)
            return (v - mean) * lax.rsqrt(var + EPS) * g + b

        # ---- norm1 + fused QKV projection (one wide bf16 MXU matmul) ---------
        xn = layernorm(x, g1, be1)
        qkv = jnp.dot(wqkv_ref[...], xn.astype(bf16),
                      preferred_element_type=jnp.float32) + bqkv      # (3C, N)
        q = qkv[0 * C:1 * C] * scale                                  # (C, N)
        k = qkv[1 * C:2 * C]
        v = qkv[2 * C:3 * C]

        # ---- multi-head attention ---------------------------------------------
        # Each head's (dh, L) output goes straight into its sublane rows of the
        # scratch buffer; the out-projection is a single matmul afterwards.
        ones_row = jnp.ones((1, L), jnp.float32)
        for b in range(Bblk):
            ls = slice(b * L, (b + 1) * L)
            for h in range(heads):
                fs = slice(h * dh, (h + 1) * dh)
                qh_t = q[fs, ls].T.astype(bf16)                       # (L, dh)
                kh = k[fs, ls].astype(bf16)                           # (dh, L)
                s = jnp.dot(qh_t, kh,
                            preferred_element_type=jnp.float32)       # (L, L)
                s = s - jnp.max(s, axis=-1, keepdims=True)
                p = jnp.exp(s).astype(bf16)                           # bf16 now
                # Ones row appended to V: the PV matmul also yields the softmax
                # denominator, so only the (dh+1, L) result gets normalized.
                vh_aug = jnp.concatenate([v[fs, ls], ones_row],
                                         axis=0).astype(bf16)         # (dh+1, L)
                o_aug = lax.dot_general(
                    vh_aug, p, (((1,), (1,)), ((), ())),
                    preferred_element_type=jnp.float32)                # (dh+1, L)
                inv = pl.reciprocal(o_aug[dh:dh + 1, :], approx=True)  # (1, L)
                oh_ref[fs, ls] = o_aug[0:dh, :] * inv

        attn = jnp.dot(wo_ref[...], oh_ref[...].astype(bf16),
                       preferred_element_type=jnp.float32) + bo        # (C, N)
        x2 = x + attn                                                  # residual 1

        # ---- norm2 + FeedForwardAttention -------------------------------------
        xn2 = layernorm(x2, g2, be2)
        h1 = jnp.maximum(
            jnp.dot(w1_ref[...], xn2.astype(bf16),
                    preferred_element_type=jnp.float32) + b1, 0.0)     # (hid, N)
        a1 = jnp.maximum(
            jnp.dot(wa1_ref[...], h1.astype(bf16),
                    preferred_element_type=jnp.float32) + ba1, 0.0)    # (hid, N)
        # Width-1 gate projection -> VPU multiply + sublane reduce (no matmul).
        gate = jax.nn.sigmoid(
            jnp.sum(a1 * wa2, axis=0, keepdims=True) + ba2)            # (1, N)
        ffa = jnp.dot(w2_ref[...], (h1 * gate).astype(bf16),
                      preferred_element_type=jnp.float32) + b2         # (C, N)
        y = x2 + ffa                                                   # residual 2

        # ---- store: stays channel-major, last dim L is lane-dense -------------
        for b in range(Bblk):
            o_ref[b] = y[:, b * L:(b + 1) * L]

    return kernel


def self_attention_with_ffa(x_nchw, params, heads, *,
                            split_batch_across_cores=False):
    """x_nchw: (B, C, H, W) float32.  Returns (B, C, H, W)."""
    B, C, H, W = x_nchw.shape
    L = H * W
    assert C % heads == 0, "embed dim must be divisible by heads"
    head_dim = C // heads
    hidden = params["w1"].shape[0]
    out_ch = params["w2"].shape[0]
    assert out_ch == C, "residual x + ffa(x) requires out_channels == in_channels"

    # NCHW -> (B, C, L) is a pure reshape (no data movement, no transpose).
    x_bcl = x_nchw.reshape(B, C, L)

    # ---- one-time weight prep: fuse QKV, cast to bf16 (native (out,in) layout)
    bf16 = jnp.bfloat16
    wqkv = jnp.concatenate([params["wq"], params["wk"], params["wv"]],
                           axis=0).astype(bf16)                       # (3C, C)
    wo = params["wo"].astype(bf16)
    w1 = params["w1"].astype(bf16)
    wa1 = params["wa1"].astype(bf16)
    w2 = params["w2"].astype(bf16)

    # ---- stack the tiny vector parameters into one (pmax, 11) column matrix --
    pmax = max(3 * C, hidden, out_ch)

    def col(a):
        a = jnp.asarray(a, jnp.float32).reshape(-1)
        return jnp.pad(a, (0, pmax - a.shape[0]))[:, None]

    cols = [None] * _NCOLS
    cols[_BQKV] = col(jnp.concatenate([params["bq"].reshape(-1),
                                       params["bk"].reshape(-1),
                                       params["bv"].reshape(-1)]))
    cols[_G1], cols[_BE1] = col(params["g1"]), col(params["be1"])
    cols[_BO] = col(params["bo"])
    cols[_G2], cols[_BE2] = col(params["g2"]), col(params["be2"])
    cols[_B1], cols[_BA1] = col(params["b1"]), col(params["ba1"])
    cols[_WA2] = col(params["wa2"])
    cols[_B2] = col(params["b2"])
    cols[_BA2] = col(params["ba2"])
    vec = jnp.concatenate(cols, axis=1)                               # (pmax, 11)
    assert vec.shape == (pmax, _NCOLS)

    kernel = _make_kernel(heads, head_dim, C, hidden, out_ch)
    weights = [wqkv, wo, w1, wa1, w2, vec]

    def const_spec(a):
        n = a.ndim
        return pl.BlockSpec(a.shape, lambda b, n=n: (0,) * n)

    if split_batch_across_cores:
        # One batch element per grid step; "parallel" lets 2-TC chips (v7x)
        # run batches on different TensorCores.  Weights keep constant index
        # maps so they are not re-fetched.
        grid = (B,)
        x_spec = pl.BlockSpec((1, C, L), lambda b: (b, 0, 0))
        out_spec = pl.BlockSpec((1, C, L), lambda b: (b, 0, 0))
        semantics = ("parallel",)
        n_tok = L
    else:
        # Single invocation with batch folded into the matmul N dimension —
        # best for single-TensorCore v5e / v6e at these tiny shapes.
        grid = (1,)
        x_spec = pl.BlockSpec((B, C, L), lambda b: (0, 0, 0))
        out_spec = pl.BlockSpec((B, C, L), lambda b: (0, 0, 0))
        semantics = ("arbitrary",)
        n_tok = B * L

    out = pl.pallas_call(
        kernel,
        out_shape=jax.ShapeDtypeStruct((B, C, L), jnp.float32),
        grid_spec=pltpu.PrefetchScalarGridSpec(
            num_scalar_prefetch=0,
            grid=grid,
            in_specs=[x_spec] + [const_spec(a) for a in weights],
            out_specs=out_spec,
            scratch_shapes=[pltpu.VMEM((C, n_tok), jnp.float32)],
        ),
        compiler_params=pltpu.CompilerParams(dimension_semantics=semantics),
    )(x_bcl, *weights)

    # (B, C, L) -> NCHW is again a pure reshape.
    return out.reshape(B, C, H, W)


def init_params(key, C, hidden, out_ch):
    """Deterministic synthetic parameters matching the PyTorch module shapes."""
    ks = jax.random.split(key, 16)

    def w(k, shape, fan_in):
        bound = 1.0 / math.sqrt(fan_in)
        return jax.random.uniform(k, shape, jnp.float32, -bound, bound)

    p = {}
    p["g1"] = jnp.ones((1, C), jnp.float32)
    p["be1"] = jnp.zeros((1, C), jnp.float32)
    p["g2"] = jnp.ones((1, C), jnp.float32)
    p["be2"] = jnp.zeros((1, C), jnp.float32)
    p["wq"] = w(ks[0], (C, C), C)
    p["wk"] = w(ks[1], (C, C), C)
    p["wv"] = w(ks[2], (C, C), C)
    p["bq"] = w(ks[3], (1, C), C)
    p["bk"] = w(ks[4], (1, C), C)
    p["bv"] = w(ks[5], (1, C), C)
    p["wo"] = w(ks[6], (C, C), C)
    p["bo"] = w(ks[7], (1, C), C)
    p["w1"] = w(ks[8], (hidden, C), C)
    p["b1"] = w(ks[9], (1, hidden), C)
    p["wa1"] = w(ks[10], (hidden, hidden), hidden)
    p["ba1"] = w(ks[11], (1, hidden), hidden)
    p["wa2"] = w(ks[12], (1, hidden), hidden)
    p["ba2"] = w(ks[13], (1, 1), hidden)
    p["w2"] = w(ks[14], (out_ch, hidden), hidden)
    p["b2"] = w(ks[15], (1, out_ch), hidden)
    return p


def reference_forward(x_nchw, p, heads):
    """Pure-JAX reference mirroring the PyTorch forward (eval mode), with the
    same bf16-operand / f32-accumulate matmul quantization as the kernel."""
    B, C, H, W = x_nchw.shape
    L = H * W
    dh = C // heads
    x = jnp.transpose(x_nchw.reshape(B, C, L), (0, 2, 1))             # (B, L, C)

    def ln(v, g, b):
        m = jnp.mean(v, -1, keepdims=True)
        va = jnp.mean((v - m) ** 2, -1, keepdims=True)
        return (v - m) / jnp.sqrt(va + EPS) * g + b

    bf = lambda a: a.astype(jnp.bfloat16)

    def mm(a, w_t):
        return jnp.dot(bf(a), bf(w_t), preferred_element_type=jnp.float32)

    xn = ln(x, p["g1"], p["be1"])
    q = mm(xn, p["wq"].T) + p["bq"]
    k = mm(xn, p["wk"].T) + p["bk"]
    v = mm(xn, p["wv"].T) + p["bv"]
    qh = q.reshape(B, L, heads, dh).transpose(0, 2, 1, 3)
    kh = k.reshape(B, L, heads, dh).transpose(0, 2, 1, 3)
    vh = v.reshape(B, L, heads, dh).transpose(0, 2, 1, 3)
    s = jnp.einsum("bhqd,bhkd->bhqk", bf(qh), bf(kh),
                   preferred_element_type=jnp.float32) / math.sqrt(dh)
    a = jax.nn.softmax(s, axis=-1)
    o = jnp.einsum("bhqk,bhkd->bhqd", bf(a), bf(vh),
                   preferred_element_type=jnp.float32)
    o = o.transpose(0, 2, 1, 3).reshape(B, L, C)
    attn_out = mm(o, p["wo"].T) + p["bo"]
    x2 = x + attn_out
    xn2 = ln(x2, p["g2"], p["be2"])
    h1 = jax.nn.relu(mm(xn2, p["w1"].T) + p["b1"])
    a1 = jax.nn.relu(mm(h1, p["wa1"].T) + p["ba1"])
    gate = jax.nn.sigmoid(jnp.sum(a1 * p["wa2"], -1, keepdims=True) + p["ba2"])
    ffa = mm(h1 * gate, p["w2"].T) + p["b2"]
    out = x2 + ffa
    return jnp.transpose(out, (0, 2, 1)).reshape(B, C, H, W)


if __name__ == "__main__":
    # B=2, C=32, H=W=16 (L=256 -> lane-dense I/O), heads=4, hidden=32, out=32.
    # Note: the residual `x + ffa_out` in the PyTorch module requires
    # out_channels == in_channels.
    B, C, H, W = 2, 32, 16, 16
    heads = 4
    hidden = C
    out_ch = C

    key = jax.random.PRNGKey(0)
    kx, kp = jax.random.split(key)
    x = jax.random.normal(kx, (B, C, H, W), jnp.float32)
    params = init_params(kp, C, hidden, out_ch)

    y = jax.block_until_ready(self_attention_with_ffa(x, params, heads))
    y_ref = reference_forward(x, params, heads)

    assert y.shape == (B, C, H, W)
    assert jnp.allclose(y, y_ref, atol=2e-2, rtol=2e-2), "mismatch vs reference"

    print("KERNEL_OK")
</pallas_src>

<mosaic_0001>
module attributes {stable_mosaic.version = 11 : i64} {
  func.func @kernel(%arg0: i32, %arg1: memref<2x32x256xf32, #tpu.memory_space<vmem>>, %arg2: memref<96x32xbf16, #tpu.memory_space<vmem>>, %arg3: memref<32x32xbf16, #tpu.memory_space<vmem>>, %arg4: memref<32x32xbf16, #tpu.memory_space<vmem>>, %arg5: memref<32x32xbf16, #tpu.memory_space<vmem>>, %arg6: memref<32x32xbf16, #tpu.memory_space<vmem>>, %arg7: memref<96x11xf32, #tpu.memory_space<vmem>>, %arg8: memref<2x32x256xf32, #tpu.memory_space<vmem>>, %arg9: memref<32x512xf32, #tpu.memory_space<vmem>>) attributes {dimension_semantics = [#tpu.dimension_semantics<arbitrary>], iteration_bounds = array<i64: 1>, scalar_prefetch = 0 : i64, scratch_operands = 1 : i64, tpu.core_type = #tpu.core_type<tc>, window_params = [{pipeline_mode = #tpu.pipeline_mode<synchronous>, transform_indices = @transform_0, window_bounds = array<i64: 2, 32, 256>}, {pipeline_mode = #tpu.pipeline_mode<synchronous>, transform_indices = @transform_1, window_bounds = array<i64: 96, 32>}, {pipeline_mode = #tpu.pipeline_mode<synchronous>, transform_indices = @transform_2, window_bounds = array<i64: 32, 32>}, {pipeline_mode = #tpu.pipeline_mode<synchronous>, transform_indices = @transform_3, window_bounds = array<i64: 32, 32>}, {pipeline_mode = #tpu.pipeline_mode<synchronous>, transform_indices = @transform_4, window_bounds = array<i64: 32, 32>}, {pipeline_mode = #tpu.pipeline_mode<synchronous>, transform_indices = @transform_5, window_bounds = array<i64: 32, 32>}, {pipeline_mode = #tpu.pipeline_mode<synchronous>, transform_indices = @transform_6, window_bounds = array<i64: 96, 11>}, {pipeline_mode = #tpu.pipeline_mode<synchronous>, transform_indices = @transform_7, window_bounds = array<i64: 2, 32, 256>}]} {
    %c0 = arith.constant 0 : index
    %c0_0 = arith.constant 0 : index
    %0 = vector.load %arg7[%c0, %c0_0] : memref<96x11xf32, #tpu.memory_space<vmem>>, vector<96x11xf32>
    %1 = vector.extract_strided_slice %0 {offsets = [0, 0], sizes = [96, 1], strides = [1, 1]} : vector<96x11xf32> to vector<96x1xf32>
    %2 = vector.extract_strided_slice %0 {offsets = [0, 1], sizes = [32, 1], strides = [1, 1]} : vector<96x11xf32> to vector<32x1xf32>
    %3 = vector.extract_strided_slice %0 {offsets = [0, 2], sizes = [32, 1], strides = [1, 1]} : vector<96x11xf32> to vector<32x1xf32>
    %4 = vector.extract_strided_slice %0 {offsets = [0, 3], sizes = [32, 1], strides = [1, 1]} : vector<96x11xf32> to vector<32x1xf32>
    %5 = vector.extract_strided_slice %0 {offsets = [0, 4], sizes = [32, 1], strides = [1, 1]} : vector<96x11xf32> to vector<32x1xf32>
    %6 = vector.extract_strided_slice %0 {offsets = [0, 5], sizes = [32, 1], strides = [1, 1]} : vector<96x11xf32> to vector<32x1xf32>
    %7 = vector.extract_strided_slice %0 {offsets = [0, 6], sizes = [32, 1], strides = [1, 1]} : vector<96x11xf32> to vector<32x1xf32>
    %8 = vector.extract_strided_slice %0 {offsets = [0, 7], sizes = [32, 1], strides = [1, 1]} : vector<96x11xf32> to vector<32x1xf32>
    %9 = vector.extract_strided_slice %0 {offsets = [0, 8], sizes = [32, 1], strides = [1, 1]} : vector<96x11xf32> to vector<32x1xf32>
    %10 = vector.extract_strided_slice %0 {offsets = [0, 9], sizes = [32, 1], strides = [1, 1]} : vector<96x11xf32> to vector<32x1xf32>
    %11 = vector.extract_strided_slice %0 {offsets = [0, 10], sizes = [1, 1], strides = [1, 1]} : vector<96x11xf32> to vector<1x1xf32>
    %c0_1 = arith.constant 0 : index
    %c0_2 = arith.constant 0 : index
    %c0_3 = arith.constant 0 : index
    %12 = vector.load %arg1[%c0_1, %c0_2, %c0_3] : memref<2x32x256xf32, #tpu.memory_space<vmem>>, vector<1x32x256xf32>
    %13 = vector.shape_cast %12 : vector<1x32x256xf32> to vector<32x256xf32>
    %c1 = arith.constant 1 : index
    %c0_4 = arith.constant 0 : index
    %c0_5 = arith.constant 0 : index
    %14 = vector.load %arg1[%c1, %c0_4, %c0_5] : memref<2x32x256xf32, #tpu.memory_space<vmem>>, vector<1x32x256xf32>
    %15 = vector.shape_cast %14 : vector<1x32x256xf32> to vector<32x256xf32>
    %16 = tpu.concatenate %13, %15 in 1 : vector<32x256xf32>, vector<32x256xf32> -> vector<32x512xf32>
    %cst = arith.constant dense<0.000000e+00> : vector<512xf32>
    %17 = vector.multi_reduction <add>, %16, %cst [0] : vector<32x512xf32> to vector<512xf32>
    %18 = vector.shape_cast %17 : vector<512xf32> to vector<1x512xf32>
    %cst_6 = arith.constant 3.200000e+01 : f32
    %19 = vector.broadcast %cst_6 : f32 to vector<1x512xf32>
    %20 = arith.divf %18, %19 : vector<1x512xf32>
    %21 = vector.broadcast %20 : vector<1x512xf32> to vector<32x512xf32>
    %22 = arith.subf %16, %21 : vector<32x512xf32>
    %23 = arith.mulf %22, %22 : vector<32x512xf32>
    %cst_7 = arith.constant dense<0.000000e+00> : vector<512xf32>
    %24 = vector.multi_reduction <add>, %23, %cst_7 [0] : vector<32x512xf32> to vector<512xf32>
    %25 = vector.shape_cast %24 : vector<512xf32> to vector<1x512xf32>
    %cst_8 = arith.constant 3.200000e+01 : f32
    %26 = vector.broadcast %cst_8 : f32 to vector<1x512xf32>
    %27 = arith.divf %25, %26 : vector<1x512xf32>
    %28 = vector.broadcast %20 : vector<1x512xf32> to vector<32x512xf32>
    %29 = arith.subf %16, %28 : vector<32x512xf32>
    %cst_9 = arith.constant 9.99999974E-6 : f32
    %30 = vector.broadcast %cst_9 : f32 to vector<1x512xf32>
    %31 = arith.addf %27, %30 : vector<1x512xf32>
    %32 = math.rsqrt %31 : vector<1x512xf32>
    %33 = vector.broadcast %32 : vector<1x512xf32> to vector<32x512xf32>
    %34 = arith.mulf %29, %33 : vector<32x512xf32>
    %35 = vector.broadcast %2 : vector<32x1xf32> to vector<32x512xf32>
    %36 = arith.mulf %34, %35 : vector<32x512xf32>
    %37 = vector.broadcast %3 : vector<32x1xf32> to vector<32x512xf32>
    %38 = arith.addf %36, %37 : vector<32x512xf32>
    %c0_10 = arith.constant 0 : index
    %c0_11 = arith.constant 0 : index
    %39 = vector.load %arg2[%c0_10, %c0_11] : memref<96x32xbf16, #tpu.memory_space<vmem>>, vector<96x32xbf16>
    %40 = arith.truncf %38 : vector<32x512xf32> to vector<32x512xbf16>
    %cst_12 = arith.constant dense<0.000000e+00> : vector<96x512xf32>
    %41 = tpu.matmul %39, %40, %cst_12 {dimension_numbers = #tpu.dot_dimension_numbers<[1], [0], [0], [1], [0, 0, 1, 1], [], []>} : vector<96x32xbf16>, vector<32x512xbf16>, vector<96x512xf32> -> vector<96x512xf32>
    %42 = vector.broadcast %1 : vector<96x1xf32> to vector<96x512xf32>
    %43 = arith.addf %41, %42 : vector<96x512xf32>
    %44 = vector.extract_strided_slice %43 {offsets = [0, 0], sizes = [32, 512], strides = [1, 1]} : vector<96x512xf32> to vector<32x512xf32>
    %cst_13 = arith.constant 0.353553385 : f32
    %45 = vector.broadcast %cst_13 : f32 to vector<32x512xf32>
    %46 = arith.mulf %44, %45 : vector<32x512xf32>
    %47 = vector.extract_strided_slice %43 {offsets = [32, 0], sizes = [32, 512], strides = [1, 1]} : vector<96x512xf32> to vector<32x512xf32>
    %48 = vector.extract_strided_slice %43 {offsets = [64, 0], sizes = [32, 512], strides = [1, 1]} : vector<96x512xf32> to vector<32x512xf32>
    %cst_14 = arith.constant 1.000000e+00 : f32
    %49 = vector.broadcast %cst_14 : f32 to vector<1x256xf32>
    %50 = vector.extract_strided_slice %46 {offsets = [0, 0], sizes = [8, 256], strides = [1, 1]} : vector<32x512xf32> to vector<8x256xf32>
    %51 = tpu.transpose %50, [1, 0] : vector<8x256xf32> -> vector<256x8xf32>
    %52 = arith.truncf %51 : vector<256x8xf32> to vector<256x8xbf16>
    %53 = vector.extract_strided_slice %47 {offsets = [0, 0], sizes = [8, 256], strides = [1, 1]} : vector<32x512xf32> to vector<8x256xf32>
    %54 = arith.truncf %53 : vector<8x256xf32> to vector<8x256xbf16>
    %cst_15 = arith.constant dense<0.000000e+00> : vector<256x256xf32>
    %55 = tpu.matmul %52, %54, %cst_15 {dimension_numbers = #tpu.dot_dimension_numbers<[1], [0], [0], [1], [0, 0, 1, 1], [], []>} : vector<256x8xbf16>, vector<8x256xbf16>, vector<256x256xf32> -> vector<256x256xf32>
    %cst_16 = arith.constant dense<0xFF800000> : vector<256xf32>
    %56 = vector.multi_reduction <maximumf>, %55, %cst_16 [1] : vector<256x256xf32> to vector<256xf32>
    %57 = vector.shape_cast %56 : vector<256xf32> to vector<256x1xf32>
    %58 = vector.broadcast %57 : vector<256x1xf32> to vector<256x256xf32>
    %59 = arith.subf %55, %58 : vector<256x256xf32>
    %60 = math.exp %59 : vector<256x256xf32>
    %61 = arith.truncf %60 : vector<256x256xf32> to vector<256x256xbf16>
    %62 = vector.extract_strided_slice %48 {offsets = [0, 0], sizes = [8, 256], strides = [1, 1]} : vector<32x512xf32> to vector<8x256xf32>
    %63 = tpu.concatenate %62, %49 in 0 : vector<8x256xf32>, vector<1x256xf32> -> vector<9x256xf32>
    %64 = arith.truncf %63 : vector<9x256xf32> to vector<9x256xbf16>
    %cst_17 = arith.constant dense<0.000000e+00> : vector<9x256xf32>
    %65 = tpu.matmul %64, %61, %cst_17 {dimension_numbers = #tpu.dot_dimension_numbers<[1], [1], [0], [0], [0, 0, 1, 0], [], []>} : vector<9x256xbf16>, vector<256x256xbf16>, vector<9x256xf32> -> vector<9x256xf32>
    %66 = vector.extract_strided_slice %65 {offsets = [8, 0], sizes = [1, 256], strides = [1, 1]} : vector<9x256xf32> to vector<1x256xf32>
    %67 = tpu.reciprocal %66 {approx = true} : vector<1x256xf32> -> vector<1x256xf32>
    %68 = vector.extract_strided_slice %65 {offsets = [0, 0], sizes = [8, 256], strides = [1, 1]} : vector<9x256xf32> to vector<8x256xf32>
    %69 = vector.broadcast %67 : vector<1x256xf32> to vector<8x256xf32>
    %70 = arith.mulf %68, %69 : vector<8x256xf32>
    %c0_18 = arith.constant 0 : index
    %c0_19 = arith.constant 0 : index
    %71 = vector.load %arg9[%c0_18, %c0_19] : memref<32x512xf32, #tpu.memory_space<vmem>>, vector<8x256xf32>
    tpu.vector_store %arg9[%c0_18, %c0_19], %70 {strides = array<i32>} : memref<32x512xf32, #tpu.memory_space<vmem>>, vector<8x256xf32>,
    %72 = vector.extract_strided_slice %46 {offsets = [8, 0], sizes = [8, 256], strides = [1, 1]} : vector<32x512xf32> to vector<8x256xf32>
    %73 = tpu.transpose %72, [1, 0] : vector<8x256xf32> -> vector<256x8xf32>
    %74 = arith.truncf %73 : vector<256x8xf32> to vector<256x8xbf16>
    %75 = vector.extract_strided_slice %47 {offsets = [8, 0], sizes = [8, 256], strides = [1, 1]} : vector<32x512xf32> to vector<8x256xf32>
    %76 = arith.truncf %75 : vector<8x256xf32> to vector<8x256xbf16>
    %cst_20 = arith.constant dense<0.000000e+00> : vector<256x256xf32>
    %77 = tpu.matmul %74, %76, %cst_20 {dimension_numbers = #tpu.dot_dimension_numbers<[1], [0], [0], [1], [0, 0, 1, 1], [], []>} : vector<256x8xbf16>, vector<8x256xbf16>, vector<256x256xf32> -> vector<256x256xf32>
    %cst_21 = arith.constant dense<0xFF800000> : vector<256xf32>
    %78 = vector.multi_reduction <maximumf>, %77, %cst_21 [1] : vector<256x256xf32> to vector<256xf32>
    %79 = vector.shape_cast %78 : vector<256xf32> to vector<256x1xf32>
    %80 = vector.broadcast %79 : vector<256x1xf32> to vector<256x256xf32>
    %81 = arith.subf %77, %80 : vector<256x256xf32>
    %82 = math.exp %81 : vector<256x256xf32>
    %83 = arith.truncf %82 : vector<256x256xf32> to vector<256x256xbf16>
    %84 = vector.extract_strided_slice %48 {offsets = [8, 0], sizes = [8, 256], strides = [1, 1]} : vector<32x512xf32> to vector<8x256xf32>
    %85 = tpu.concatenate %84, %49 in 0 : vector<8x256xf32>, vector<1x256xf32> -> vector<9x256xf32>
    %86 = arith.truncf %85 : vector<9x256xf32> to vector<9x256xbf16>
    %cst_22 = arith.constant dense<0.000000e+00> : vector<9x256xf32>
    %87 = tpu.matmul %86, %83, %cst_22 {dimension_numbers = #tpu.dot_dimension_numbers<[1], [1], [0], [0], [0, 0, 1, 0], [], []>} : vector<9x256xbf16>, vector<256x256xbf16>, vector<9x256xf32> -> vector<9x256xf32>
    %88 = vector.extract_strided_slice %87 {offsets = [8, 0], sizes = [1, 256], strides = [1, 1]} : vector<9x256xf32> to vector<1x256xf32>
    %89 = tpu.reciprocal %88 {approx = true} : vector<1x256xf32> -> vector<1x256xf32>
    %90 = vector.extract_strided_slice %87 {offsets = [0, 0], sizes = [8, 256], strides = [1, 1]} : vector<9x256xf32> to vector<8x256xf32>
    %91 = vector.broadcast %89 : vector<1x256xf32> to vector<8x256xf32>
    %92 = arith.mulf %90, %91 : vector<8x256xf32>
    %c8 = arith.constant 8 : index
    %c0_23 = arith.constant 0 : index
    %93 = vector.load %arg9[%c8, %c0_23] : memref<32x512xf32, #tpu.memory_space<vmem>>, vector<8x256xf32>
    tpu.vector_store %arg9[%c8, %c0_23], %92 {strides = array<i32>} : memref<32x512xf32, #tpu.memory_space<vmem>>, vector<8x256xf32>,
    %94 = vector.extract_strided_slice %46 {offsets = [16, 0], sizes = [8, 256], strides = [1, 1]} : vector<32x512xf32> to vector<8x256xf32>
    %95 = tpu.transpose %94, [1, 0] : vector<8x256xf32> -> vector<256x8xf32>
    %96 = arith.truncf %95 : vector<256x8xf32> to vector<256x8xbf16>
    %97 = vector.extract_strided_slice %47 {offsets = [16, 0], sizes = [8, 256], strides = [1, 1]} : vector<32x512xf32> to vector<8x256xf32>
    %98 = arith.truncf %97 : vector<8x256xf32> to vector<8x256xbf16>
    %cst_24 = arith.constant dense<0.000000e+00> : vector<256x256xf32>
    %99 = tpu.matmul %96, %98, %cst_24 {dimension_numbers = #tpu.dot_dimension_numbers<[1], [0], [0], [1], [0, 0, 1, 1], [], []>} : vector<256x8xbf16>, vector<8x256xbf16>, vector<256x256xf32> -> vector<256x256xf32>
    %cst_25 = arith.constant dense<0xFF800000> : vector<256xf32>
    %100 = vector.multi_reduction <maximumf>, %99, %cst_25 [1] : vector<256x256xf32> to vector<256xf32>
    %101 = vector.shape_cast %100 : vector<256xf32> to vector<256x1xf32>
    %102 = vector.broadcast %101 : vector<256x1xf32> to vector<256x256xf32>
    %103 = arith.subf %99, %102 : vector<256x256xf32>
    %104 = math.exp %103 : vector<256x256xf32>
    %105 = arith.truncf %104 : vector<256x256xf32> to vector<256x256xbf16>
    %106 = vector.extract_strided_slice %48 {offsets = [16, 0], sizes = [8, 256], strides = [1, 1]} : vector<32x512xf32> to vector<8x256xf32>
    %107 = tpu.concatenate %106, %49 in 0 : vector<8x256xf32>, vector<1x256xf32> -> vector<9x256xf32>
    %108 = arith.truncf %107 : vector<9x256xf32> to vector<9x256xbf16>
    %cst_26 = arith.constant dense<0.000000e+00> : vector<9x256xf32>
    %109 = tpu.matmul %108, %105, %cst_26 {dimension_numbers = #tpu.dot_dimension_numbers<[1], [1], [0], [0], [0, 0, 1, 0], [], []>} : vector<9x256xbf16>, vector<256x256xbf16>, vector<9x256xf32> -> vector<9x256xf32>
    %110 = vector.extract_strided_slice %109 {offsets = [8, 0], sizes = [1, 256], strides = [1, 1]} : vector<9x256xf32> to vector<1x256xf32>
    %111 = tpu.reciprocal %110 {approx = true} : vector<1x256xf32> -> vector<1x256xf32>
    %112 = vector.extract_strided_slice %109 {offsets = [0, 0], sizes = [8, 256], strides = [1, 1]} : vector<9x256xf32> to vector<8x256xf32>
    %113 = vector.broadcast %111 : vector<1x256xf32> to vector<8x256xf32>
    %114 = arith.mulf %112, %113 : vector<8x256xf32>
    %c16 = arith.constant 16 : index
    %c0_27 = arith.constant 0 : index
    %115 = vector.load %arg9[%c16, %c0_27] : memref<32x512xf32, #tpu.memory_space<vmem>>, vector<8x256xf32>
    tpu.vector_store %arg9[%c16, %c0_27], %114 {strides = array<i32>} : memref<32x512xf32, #tpu.memory_space<vmem>>, vector<8x256xf32>,
    %116 = vector.extract_strided_slice %46 {offsets = [24, 0], sizes = [8, 256], strides = [1, 1]} : vector<32x512xf32> to vector<8x256xf32>
    %117 = tpu.transpose %116, [1, 0] : vector<8x256xf32> -> vector<256x8xf32>
    %118 = arith.truncf %117 : vector<256x8xf32> to vector<256x8xbf16>
    %119 = vector.extract_strided_slice %47 {offsets = [24, 0], sizes = [8, 256], strides = [1, 1]} : vector<32x512xf32> to vector<8x256xf32>
    %120 = arith.truncf %119 : vector<8x256xf32> to vector<8x256xbf16>
    %cst_28 = arith.constant dense<0.000000e+00> : vector<256x256xf32>
    %121 = tpu.matmul %118, %120, %cst_28 {dimension_numbers = #tpu.dot_dimension_numbers<[1], [0], [0], [1], [0, 0, 1, 1], [], []>} : vector<256x8xbf16>, vector<8x256xbf16>, vector<256x256xf32> -> vector<256x256xf32>
    %cst_29 = arith.constant dense<0xFF800000> : vector<256xf32>
    %122 = vector.multi_reduction <maximumf>, %121, %cst_29 [1] : vector<256x256xf32> to vector<256xf32>
    %123 = vector.shape_cast %122 : vector<256xf32> to vector<256x1xf32>
    %124 = vector.broadcast %123 : vector<256x1xf32> to vector<256x256xf32>
    %125 = arith.subf %121, %124 : vector<256x256xf32>
    %126 = math.exp %125 : vector<256x256xf32>
    %127 = arith.truncf %126 : vector<256x256xf32> to vector<256x256xbf16>
    %128 = vector.extract_strided_slice %48 {offsets = [24, 0], sizes = [8, 256], strides = [1, 1]} : vector<32x512xf32> to vector<8x256xf32>
    %129 = tpu.concatenate %128, %49 in 0 : vector<8x256xf32>, vector<1x256xf32> -> vector<9x256xf32>
    %130 = arith.truncf %129 : vector<9x256xf32> to vector<9x256xbf16>
    %cst_30 = arith.constant dense<0.000000e+00> : vector<9x256xf32>
    %131 = tpu.matmul %130, %127, %cst_30 {dimension_numbers = #tpu.dot_dimension_numbers<[1], [1], [0], [0], [0, 0, 1, 0], [], []>} : vector<9x256xbf16>, vector<256x256xbf16>, vector<9x256xf32> -> vector<9x256xf32>
    %132 = vector.extract_strided_slice %131 {offsets = [8, 0], sizes = [1, 256], strides = [1, 1]} : vector<9x256xf32> to vector<1x256xf32>
    %133 = tpu.reciprocal %132 {approx = true} : vector<1x256xf32> -> vector<1x256xf32>
    %134 = vector.extract_strided_slice %131 {offsets = [0, 0], sizes = [8, 256], strides = [1, 1]} : vector<9x256xf32> to vector<8x256xf32>
    %135 = vector.broadcast %133 : vector<1x256xf32> to vector<8x256xf32>
    %136 = arith.mulf %134, %135 : vector<8x256xf32>
    %c24 = arith.constant 24 : index
    %c0_31 = arith.constant 0 : index
    %137 = vector.load %arg9[%c24, %c0_31] : memref<32x512xf32, #tpu.memory_space<vmem>>, vector<8x256xf32>
    tpu.vector_store %arg9[%c24, %c0_31], %136 {strides = array<i32>} : memref<32x512xf32, #tpu.memory_space<vmem>>, vector<8x256xf32>,
    %138 = vector.extract_strided_slice %46 {offsets = [0, 256], sizes = [8, 256], strides = [1, 1]} : vector<32x512xf32> to vector<8x256xf32>
    %139 = tpu.transpose %138, [1, 0] : vector<8x256xf32> -> vector<256x8xf32>
    %140 = arith.truncf %139 : vector<256x8xf32> to vector<256x8xbf16>
    %141 = vector.extract_strided_slice %47 {offsets = [0, 256], sizes = [8, 256], strides = [1, 1]} : vector<32x512xf32> to vector<8x256xf32>
    %142 = arith.truncf %141 : vector<8x256xf32> to vector<8x256xbf16>
    %cst_32 = arith.constant dense<0.000000e+00> : vector<256x256xf32>
    %143 = tpu.matmul %140, %142, %cst_32 {dimension_numbers = #tpu.dot_dimension_numbers<[1], [0], [0], [1], [0, 0, 1, 1], [], []>} : vector<256x8xbf16>, vector<8x256xbf16>, vector<256x256xf32> -> vector<256x256xf32>
    %cst_33 = arith.constant dense<0xFF800000> : vector<256xf32>
    %144 = vector.multi_reduction <maximumf>, %143, %cst_33 [1] : vector<256x256xf32> to vector<256xf32>
    %145 = vector.shape_cast %144 : vector<256xf32> to vector<256x1xf32>
    %146 = vector.broadcast %145 : vector<256x1xf32> to vector<256x256xf32>
    %147 = arith.subf %143, %146 : vector<256x256xf32>
    %148 = math.exp %147 : vector<256x256xf32>
    %149 = arith.truncf %148 : vector<256x256xf32> to vector<256x256xbf16>
    %150 = vector.extract_strided_slice %48 {offsets = [0, 256], sizes = [8, 256], strides = [1, 1]} : vector<32x512xf32> to vector<8x256xf32>
    %151 = tpu.concatenate %150, %49 in 0 : vector<8x256xf32>, vector<1x256xf32> -> vector<9x256xf32>
    %152 = arith.truncf %151 : vector<9x256xf32> to vector<9x256xbf16>
    %cst_34 = arith.constant dense<0.000000e+00> : vector<9x256xf32>
    %153 = tpu.matmul %152, %149, %cst_34 {dimension_numbers = #tpu.dot_dimension_numbers<[1], [1], [0], [0], [0, 0, 1, 0], [], []>} : vector<9x256xbf16>, vector<256x256xbf16>, vector<9x256xf32> -> vector<9x256xf32>
    %154 = vector.extract_strided_slice %153 {offsets = [8, 0], sizes = [1, 256], strides = [1, 1]} : vector<9x256xf32> to vector<1x256xf32>
    %155 = tpu.reciprocal %154 {approx = true} : vector<1x256xf32> -> vector<1x256xf32>
    %156 = vector.extract_strided_slice %153 {offsets = [0, 0], sizes = [8, 256], strides = [1, 1]} : vector<9x256xf32> to vector<8x256xf32>
    %157 = vector.broadcast %155 : vector<1x256xf32> to vector<8x256xf32>
    %158 = arith.mulf %156, %157 : vector<8x256xf32>
    %c0_35 = arith.constant 0 : index
    %c256 = arith.constant 256 : index
    %159 = vector.load %arg9[%c0_35, %c256] : memref<32x512xf32, #tpu.memory_space<vmem>>, vector<8x256xf32>
    tpu.vector_store %arg9[%c0_35, %c256], %158 {strides = array<i32>} : memref<32x512xf32, #tpu.memory_space<vmem>>, vector<8x256xf32>,
    %160 = vector.extract_strided_slice %46 {offsets = [8, 256], sizes = [8, 256], strides = [1, 1]} : vector<32x512xf32> to vector<8x256xf32>
    %161 = tpu.transpose %160, [1, 0] : vector<8x256xf32> -> vector<256x8xf32>
    %162 = arith.truncf %161 : vector<256x8xf32> to vector<256x8xbf16>
    %163 = vector.extract_strided_slice %47 {offsets = [8, 256], sizes = [8, 256], strides = [1, 1]} : vector<32x512xf32> to vector<8x256xf32>
    %164 = arith.truncf %163 : vector<8x256xf32> to vector<8x256xbf16>
    %cst_36 = arith.constant dense<0.000000e+00> : vector<256x256xf32>
    %165 = tpu.matmul %162, %164, %cst_36 {dimension_numbers = #tpu.dot_dimension_numbers<[1], [0], [0], [1], [0, 0, 1, 1], [], []>} : vector<256x8xbf16>, vector<8x256xbf16>, vector<256x256xf32> -> vector<256x256xf32>
    %cst_37 = arith.constant dense<0xFF800000> : vector<256xf32>
    %166 = vector.multi_reduction <maximumf>, %165, %cst_37 [1] : vector<256x256xf32> to vector<256xf32>
    %167 = vector.shape_cast %166 : vector<256xf32> to vector<256x1xf32>
    %168 = vector.broadcast %167 : vector<256x1xf32> to vector<256x256xf32>
    %169 = arith.subf %165, %168 : vector<256x256xf32>
    %170 = math.exp %169 : vector<256x256xf32>
    %171 = arith.truncf %170 : vector<256x256xf32> to vector<256x256xbf16>
    %172 = vector.extract_strided_slice %48 {offsets = [8, 256], sizes = [8, 256], strides = [1, 1]} : vector<32x512xf32> to vector<8x256xf32>
    %173 = tpu.concatenate %172, %49 in 0 : vector<8x256xf32>, vector<1x256xf32> -> vector<9x256xf32>
    %174 = arith.truncf %173 : vector<9x256xf32> to vector<9x256xbf16>
    %cst_38 = arith.constant dense<0.000000e+00> : vector<9x256xf32>
    %175 = tpu.matmul %174, %171, %cst_38 {dimension_numbers = #tpu.dot_dimension_numbers<[1], [1], [0], [0], [0, 0, 1, 0], [], []>} : vector<9x256xbf16>, vector<256x256xbf16>, vector<9x256xf32> -> vector<9x256xf32>
    %176 = vector.extract_strided_slice %175 {offsets = [8, 0], sizes = [1, 256], strides = [1, 1]} : vector<9x256xf32> to vector<1x256xf32>
    %177 = tpu.reciprocal %176 {approx = true} : vector<1x256xf32> -> vector<1x256xf32>
    %178 = vector.extract_strided_slice %175 {offsets = [0, 0], sizes = [8, 256], strides = [1, 1]} : vector<9x256xf32> to vector<8x256xf32>
    %179 = vector.broadcast %177 : vector<1x256xf32> to vector<8x256xf32>
    %180 = arith.mulf %178, %179 : vector<8x256xf32>
    %c8_39 = arith.constant 8 : index
    %c256_40 = arith.constant 256 : index
    %181 = vector.load %arg9[%c8_39, %c256_40] : memref<32x512xf32, #tpu.memory_space<vmem>>, vector<8x256xf32>
    tpu.vector_store %arg9[%c8_39, %c256_40], %180 {strides = array<i32>} : memref<32x512xf32, #tpu.memory_space<vmem>>, vector<8x256xf32>,
    %182 = vector.extract_strided_slice %46 {offsets = [16, 256], sizes = [8, 256], strides = [1, 1]} : vector<32x512xf32> to vector<8x256xf32>
    %183 = tpu.transpose %182, [1, 0] : vector<8x256xf32> -> vector<256x8xf32>
    %184 = arith.truncf %183 : vector<256x8xf32> to vector<256x8xbf16>
    %185 = vector.extract_strided_slice %47 {offsets = [16, 256], sizes = [8, 256], strides = [1, 1]} : vector<32x512xf32> to vector<8x256xf32>
    %186 = arith.truncf %185 : vector<8x256xf32> to vector<8x256xbf16>
    %cst_41 = arith.constant dense<0.000000e+00> : vector<256x256xf32>
    %187 = tpu.matmul %184, %186, %cst_41 {dimension_numbers = #tpu.dot_dimension_numbers<[1], [0], [0], [1], [0, 0, 1, 1], [], []>} : vector<256x8xbf16>, vector<8x256xbf16>, vector<256x256xf32> -> vector<256x256xf32>
    %cst_42 = arith.constant dense<0xFF800000> : vector<256xf32>
    %188 = vector.multi_reduction <maximumf>, %187, %cst_42 [1] : vector<256x256xf32> to vector<256xf32>
    %189 = vector.shape_cast %188 : vector<256xf32> to vector<256x1xf32>
    %190 = vector.broadcast %189 : vector<256x1xf32> to vector<256x256xf32>
    %191 = arith.subf %187, %190 : vector<256x256xf32>
    %192 = math.exp %191 : vector<256x256xf32>
    %193 = arith.truncf %192 : vector<256x256xf32> to vector<256x256xbf16>
    %194 = vector.extract_strided_slice %48 {offsets = [16, 256], sizes = [8, 256], strides = [1, 1]} : vector<32x512xf32> to vector<8x256xf32>
    %195 = tpu.concatenate %194, %49 in 0 : vector<8x256xf32>, vector<1x256xf32> -> vector<9x256xf32>
    %196 = arith.truncf %195 : vector<9x256xf32> to vector<9x256xbf16>
    %cst_43 = arith.constant dense<0.000000e+00> : vector<9x256xf32>
    %197 = tpu.matmul %196, %193, %cst_43 {dimension_numbers = #tpu.dot_dimension_numbers<[1], [1], [0], [0], [0, 0, 1, 0], [], []>} : vector<9x256xbf16>, vector<256x256xbf16>, vector<9x256xf32> -> vector<9x256xf32>
    %198 = vector.extract_strided_slice %197 {offsets = [8, 0], sizes = [1, 256], strides = [1, 1]} : vector<9x256xf32> to vector<1x256xf32>
    %199 = tpu.reciprocal %198 {approx = true} : vector<1x256xf32> -> vector<1x256xf32>
    %200 = vector.extract_strided_slice %197 {offsets = [0, 0], sizes = [8, 256], strides = [1, 1]} : vector<9x256xf32> to vector<8x256xf32>
    %201 = vector.broadcast %199 : vector<1x256xf32> to vector<8x256xf32>
    %202 = arith.mulf %200, %201 : vector<8x256xf32>
    %c16_44 = arith.constant 16 : index
    %c256_45 = arith.constant 256 : index
    %203 = vector.load %arg9[%c16_44, %c256_45] : memref<32x512xf32, #tpu.memory_space<vmem>>, vector<8x256xf32>
    tpu.vector_store %arg9[%c16_44, %c256_45], %202 {strides = array<i32>} : memref<32x512xf32, #tpu.memory_space<vmem>>, vector<8x256xf32>,
    %204 = vector.extract_strided_slice %46 {offsets = [24, 256], sizes = [8, 256], strides = [1, 1]} : vector<32x512xf32> to vector<8x256xf32>
    %205 = tpu.transpose %204, [1, 0] : vector<8x256xf32> -> vector<256x8xf32>
    %206 = arith.truncf %205 : vector<256x8xf32> to vector<256x8xbf16>
    %207 = vector.extract_strided_slice %47 {offsets = [24, 256], sizes = [8, 256], strides = [1, 1]} : vector<32x512xf32> to vector<8x256xf32>
    %208 = arith.truncf %207 : vector<8x256xf32> to vector<8x256xbf16>
    %cst_46 = arith.constant dense<0.000000e+00> : vector<256x256xf32>
    %209 = tpu.matmul %206, %208, %cst_46 {dimension_numbers = #tpu.dot_dimension_numbers<[1], [0], [0], [1], [0, 0, 1, 1], [], []>} : vector<256x8xbf16>, vector<8x256xbf16>, vector<256x256xf32> -> vector<256x256xf32>
    %cst_47 = arith.constant dense<0xFF800000> : vector<256xf32>
    %210 = vector.multi_reduction <maximumf>, %209, %cst_47 [1] : vector<256x256xf32> to vector<256xf32>
    %211 = vector.shape_cast %210 : vector<256xf32> to vector<256x1xf32>
    %212 = vector.broadcast %211 : vector<256x1xf32> to vector<256x256xf32>
    %213 = arith.subf %209, %212 : vector<256x256xf32>
    %214 = math.exp %213 : vector<256x256xf32>
    %215 = arith.truncf %214 : vector<256x256xf32> to vector<256x256xbf16>
    %216 = vector.extract_strided_slice %48 {offsets = [24, 256], sizes = [8, 256], strides = [1, 1]} : vector<32x512xf32> to vector<8x256xf32>
    %217 = tpu.concatenate %216, %49 in 0 : vector<8x256xf32>, vector<1x256xf32> -> vector<9x256xf32>
    %218 = arith.truncf %217 : vector<9x256xf32> to vector<9x256xbf16>
    %cst_48 = arith.constant dense<0.000000e+00> : vector<9x256xf32>
    %219 = tpu.matmul %218, %215, %cst_48 {dimension_numbers = #tpu.dot_dimension_numbers<[1], [1], [0], [0], [0, 0, 1, 0], [], []>} : vector<9x256xbf16>, vector<256x256xbf16>, vector<9x256xf32> -> vector<9x256xf32>
    %220 = vector.extract_strided_slice %219 {offsets = [8, 0], sizes = [1, 256], strides = [1, 1]} : vector<9x256xf32> to vector<1x256xf32>
    %221 = tpu.reciprocal %220 {approx = true} : vector<1x256xf32> -> vector<1x256xf32>
    %222 = vector.extract_strided_slice %219 {offsets = [0, 0], sizes = [8, 256], strides = [1, 1]} : vector<9x256xf32> to vector<8x256xf32>
    %223 = vector.broadcast %221 : vector<1x256xf32> to vector<8x256xf32>
    %224 = arith.mulf %222, %223 : vector<8x256xf32>
    %c24_49 = arith.constant 24 : index
    %c256_50 = arith.constant 256 : index
    %225 = vector.load %arg9[%c24_49, %c256_50] : memref<32x512xf32, #tpu.memory_space<vmem>>, vector<8x256xf32>
    tpu.vector_store %arg9[%c24_49, %c256_50], %224 {strides = array<i32>} : memref<32x512xf32, #tpu.memory_space<vmem>>, vector<8x256xf32>,
    %c0_51 = arith.constant 0 : index
    %c0_52 = arith.constant 0 : index
    %226 = vector.load %arg3[%c0_51, %c0_52] : memref<32x32xbf16, #tpu.memory_space<vmem>>, vector<32x32xbf16>
    %c0_53 = arith.constant 0 : index
    %c0_54 = arith.constant 0 : index
    %227 = vector.load %arg9[%c0_53, %c0_54] : memref<32x512xf32, #tpu.memory_space<vmem>>, vector<32x512xf32>
    %228 = arith.truncf %227 : vector<32x512xf32> to vector<32x512xbf16>
    %cst_55 = arith.constant dense<0.000000e+00> : vector<32x512xf32>
    %229 = tpu.matmul %226, %228, %cst_55 {dimension_numbers = #tpu.dot_dimension_numbers<[1], [0], [0], [1], [0, 0, 1, 1], [], []>} : vector<32x32xbf16>, vector<32x512xbf16>, vector<32x512xf32> -> vector<32x512xf32>
    %230 = vector.broadcast %4 : vector<32x1xf32> to vector<32x512xf32>
    %231 = arith.addf %229, %230 : vector<32x512xf32>
    %232 = arith.addf %16, %231 : vector<32x512xf32>
    %cst_56 = arith.constant dense<0.000000e+00> : vector<512xf32>
    %233 = vector.multi_reduction <add>, %232, %cst_56 [0] : vector<32x512xf32> to vector<512xf32>
    %234 = vector.shape_cast %233 : vector<512xf32> to vector<1x512xf32>
    %cst_57 = arith.constant 3.200000e+01 : f32
    %235 = vector.broadcast %cst_57 : f32 to vector<1x512xf32>
    %236 = arith.divf %234, %235 : vector<1x512xf32>
    %237 = vector.broadcast %236 : vector<1x512xf32> to vector<32x512xf32>
    %238 = arith.subf %232, %237 : vector<32x512xf32>
    %239 = arith.mulf %238, %238 : vector<32x512xf32>
    %cst_58 = arith.constant dense<0.000000e+00> : vector<512xf32>
    %240 = vector.multi_reduction <add>, %239, %cst_58 [0] : vector<32x512xf32> to vector<512xf32>
    %241 = vector.shape_cast %240 : vector<512xf32> to vector<1x512xf32>
    %cst_59 = arith.constant 3.200000e+01 : f32
    %242 = vector.broadcast %cst_59 : f32 to vector<1x512xf32>
    %243 = arith.divf %241, %242 : vector<1x512xf32>
    %244 = vector.broadcast %236 : vector<1x512xf32> to vector<32x512xf32>
    %245 = arith.subf %232, %244 : vector<32x512xf32>
    %cst_60 = arith.constant 9.99999974E-6 : f32
    %246 = vector.broadcast %cst_60 : f32 to vector<1x512xf32>
    %247 = arith.addf %243, %246 : vector<1x512xf32>
    %248 = math.rsqrt %247 : vector<1x512xf32>
    %249 = vector.broadcast %248 : vector<1x512xf32> to vector<32x512xf32>
    %250 = arith.mulf %245, %249 : vector<32x512xf32>
    %251 = vector.broadcast %5 : vector<32x1xf32> to vector<32x512xf32>
    %252 = arith.mulf %250, %251 : vector<32x512xf32>
    %253 = vector.broadcast %6 : vector<32x1xf32> to vector<32x512xf32>
    %254 = arith.addf %252, %253 : vector<32x512xf32>
    %c0_61 = arith.constant 0 : index
    %c0_62 = arith.constant 0 : index
    %255 = vector.load %arg4[%c0_61, %c0_62] : memref<32x32xbf16, #tpu.memory_space<vmem>>, vector<32x32xbf16>
    %256 = arith.truncf %254 : vector<32x512xf32> to vector<32x512xbf16>
    %cst_63 = arith.constant dense<0.000000e+00> : vector<32x512xf32>
    %257 = tpu.matmul %255, %256, %cst_63 {dimension_numbers = #tpu.dot_dimension_numbers<[1], [0], [0], [1], [0, 0, 1, 1], [], []>} : vector<32x32xbf16>, vector<32x512xbf16>, vector<32x512xf32> -> vector<32x512xf32>
    %258 = vector.broadcast %7 : vector<32x1xf32> to vector<32x512xf32>
    %259 = arith.addf %257, %258 : vector<32x512xf32>
    %cst_64 = arith.constant 0.000000e+00 : f32
    %260 = vector.broadcast %cst_64 : f32 to vector<32x512xf32>
    %261 = arith.maximumf %259, %260 : vector<32x512xf32>
    %c0_65 = arith.constant 0 : index
    %c0_66 = arith.constant 0 : index
    %262 = vector.load %arg5[%c0_65, %c0_66] : memref<32x32xbf16, #tpu.memory_space<vmem>>, vector<32x32xbf16>
    %263 = arith.truncf %261 : vector<32x512xf32> to vector<32x512xbf16>
    %cst_67 = arith.constant dense<0.000000e+00> : vector<32x512xf32>
    %264 = tpu.matmul %262, %263, %cst_67 {dimension_numbers = #tpu.dot_dimension_numbers<[1], [0], [0], [1], [0, 0, 1, 1], [], []>} : vector<32x32xbf16>, vector<32x512xbf16>, vector<32x512xf32> -> vector<32x512xf32>
    %265 = vector.broadcast %8 : vector<32x1xf32> to vector<32x512xf32>
    %266 = arith.addf %264, %265 : vector<32x512xf32>
    %cst_68 = arith.constant 0.000000e+00 : f32
    %267 = vector.broadcast %cst_68 : f32 to vector<32x512xf32>
    %268 = arith.maximumf %266, %267 : vector<32x512xf32>
    %269 = vector.broadcast %9 : vector<32x1xf32> to vector<32x512xf32>
    %270 = arith.mulf %268, %269 : vector<32x512xf32>
    %cst_69 = arith.constant dense<0.000000e+00> : vector<512xf32>
    %271 = vector.multi_reduction <add>, %270, %cst_69 [0] : vector<32x512xf32> to vector<512xf32>
    %272 = vector.shape_cast %271 : vector<512xf32> to vector<1x512xf32>
    %273 = vector.broadcast %11 : vector<1x1xf32> to vector<1x512xf32>
    %274 = arith.addf %272, %273 : vector<1x512xf32>
    %275 = arith.negf %274 : vector<1x512xf32>
    %276 = math.exp %275 : vector<1x512xf32>
    %cst_70 = arith.constant 1.000000e+00 : f32
    %277 = vector.broadcast %cst_70 : f32 to vector<1x512xf32>
    %278 = arith.addf %277, %276 : vector<1x512xf32>
    %279 = arith.divf %277, %278 : vector<1x512xf32>
    %c0_71 = arith.constant 0 : index
    %c0_72 = arith.constant 0 : index
    %280 = vector.load %arg6[%c0_71, %c0_72] : memref<32x32xbf16, #tpu.memory_space<vmem>>, vector<32x32xbf16>
    %281 = vector.broadcast %279 : vector<1x512xf32> to vector<32x512xf32>
    %282 = arith.mulf %261, %281 : vector<32x512xf32>
    %283 = arith.truncf %282 : vector<32x512xf32> to vector<32x512xbf16>
    %cst_73 = arith.constant dense<0.000000e+00> : vector<32x512xf32>
    %284 = tpu.matmul %280, %283, %cst_73 {dimension_numbers = #tpu.dot_dimension_numbers<[1], [0], [0], [1], [0, 0, 1, 1], [], []>} : vector<32x32xbf16>, vector<32x512xbf16>, vector<32x512xf32> -> vector<32x512xf32>
    %285 = vector.broadcast %10 : vector<32x1xf32> to vector<32x512xf32>
    %286 = arith.addf %284, %285 : vector<32x512xf32>
    %287 = arith.addf %232, %286 : vector<32x512xf32>
    %288 = vector.extract_strided_slice %287 {offsets = [0, 0], sizes = [32, 256], strides = [1, 1]} : vector<32x512xf32> to vector<32x256xf32>
    %c0_74 = arith.constant 0 : index
    %c0_75 = arith.constant 0 : index
    %c0_76 = arith.constant 0 : index
    %289 = vector.load %arg8[%c0_74, %c0_75, %c0_76] : memref<2x32x256xf32, #tpu.memory_space<vmem>>, vector<1x32x256xf32>
    %290 = vector.shape_cast %289 : vector<1x32x256xf32> to vector<32x256xf32>
    %291 = vector.shape_cast %288 : vector<32x256xf32> to vector<1x32x256xf32>
    tpu.vector_store %arg8[%c0_74, %c0_75, %c0_76], %291 {strides = array<i32>} : memref<2x32x256xf32, #tpu.memory_space<vmem>>, vector<1x32x256xf32>,
    %292 = vector.extract_strided_slice %287 {offsets = [0, 256], sizes = [32, 256], strides = [1, 1]} : vector<32x512xf32> to vector<32x256xf32>
    %c1_77 = arith.constant 1 : index
    %c0_78 = arith.constant 0 : index
    %c0_79 = arith.constant 0 : index
    %293 = vector.load %arg8[%c1_77, %c0_78, %c0_79] : memref<2x32x256xf32, #tpu.memory_space<vmem>>, vector<1x32x256xf32>
    %294 = vector.shape_cast %293 : vector<1x32x256xf32> to vector<32x256xf32>
    %295 = vector.shape_cast %292 : vector<32x256xf32> to vector<1x32x256xf32>
    tpu.vector_store %arg8[%c1_77, %c0_78, %c0_79], %295 {strides = array<i32>} : memref<2x32x256xf32, #tpu.memory_space<vmem>>, vector<1x32x256xf32>,
    return
  }
  func.func @transform_0(%arg0: i32) -> (i32, i32, i32) {
    %c0_i32 = arith.constant 0 : i32
    %c0_i32_0 = arith.constant 0 : i32
    %c0_i32_1 = arith.constant 0 : i32
    %c0_i32_2 = arith.constant 0 : i32
    return %c0_i32, %c0_i32_0, %c0_i32_1 : i32, i32, i32
  }
  func.func @transform_1(%arg0: i32) -> (i32, i32) {
    %c0_i32 = arith.constant 0 : i32
    %c0_i32_0 = arith.constant 0 : i32
    %c0_i32_1 = arith.constant 0 : i32
    return %c0_i32, %c0_i32_0 : i32, i32
  }
  func.func @transform_2(%arg0: i32) -> (i32, i32) {
    %c0_i32 = arith.constant 0 : i32
    %c0_i32_0 = arith.constant 0 : i32
    %c0_i32_1 = arith.constant 0 : i32
    return %c0_i32, %c0_i32_0 : i32, i32
  }
  func.func @transform_3(%arg0: i32) -> (i32, i32) {
    %c0_i32 = arith.constant 0 : i32
    %c0_i32_0 = arith.constant 0 : i32
    %c0_i32_1 = arith.constant 0 : i32
    return %c0_i32, %c0_i32_0 : i32, i32
  }
  func.func @transform_4(%arg0: i32) -> (i32, i32) {
    %c0_i32 = arith.constant 0 : i32
    %c0_i32_0 = arith.constant 0 : i32
    %c0_i32_1 = arith.constant 0 : i32
    return %c0_i32, %c0_i32_0 : i32, i32
  }
  func.func @transform_5(%arg0: i32) -> (i32, i32) {
    %c0_i32 = arith.constant 0 : i32
    %c0_i32_0 = arith.constant 0 : i32
    %c0_i32_1 = arith.constant 0 : i32
    return %c0_i32, %c0_i32_0 : i32, i32
  }
  func.func @transform_6(%arg0: i32) -> (i32, i32) {
    %c0_i32 = arith.constant 0 : i32
    %c0_i32_0 = arith.constant 0 : i32
    %c0_i32_1 = arith.constant 0 : i32
    return %c0_i32, %c0_i32_0 : i32, i32
  }
  func.func @transform_7(%arg0: i32) -> (i32, i32, i32) {
    %c0_i32 = arith.constant 0 : i32
    %c0_i32_0 = arith.constant 0 : i32
    %c0_i32_1 = arith.constant 0 : i32
    %c0_i32_2 = arith.constant 0 : i32
    return %c0_i32, %c0_i32_0, %c0_i32_1 : i32, i32, i32
  }
}

</mosaic_0001>

<bundles_post_ra>
// kernel: tpu_custom_call.1
= control target key start
LH: loop header
LB: loop body
LE: loop exit
PB: predicated region body
PF: predicated region fallthrough
CT: control target
= control target key end

     0   :  { %12 = vsyncpa [#allocation4], 0  ;;  %s12199_s0 = inlined_call_operand.vmem [shape: f32[2,32,256], index: 0, kind: input, shape index: {}]   ;;  %s12200_s1 = inlined_call_operand.vmem [shape: bf16[96,32], index: 1, kind: input, shape index: {}]   ;;  %s12201_s2 = inlined_call_operand.vmem [shape: bf16[32,32], index: 2, kind: input, shape index: {}]   ;;  %s12202_s3 = inlined_call_operand.vmem [shape: bf16[32,32], index: 3, kind: input, shape index: {}]   ;;  %s12203_s4 = inlined_call_operand.hbm [shape: bf16[32,32], index: 4, kind: input, shape index: {}]   ;;  %s12204_s5 = inlined_call_operand.vmem [shape: bf16[32,32], index: 5, kind: input, shape index: {}]   ;;  %s12205_s6 = inlined_call_operand.vmem [shape: f32[96,11], index: 6, kind: input, shape index: {}]   ;;  %s12206_s7 = inlined_call_operand.hbm [shape: f32[2,32,256], index: 7, kind: output, shape index: {}]  }
   0x1   :  { %13 = vsyncpa [#allocation5], 0  ;;  %s8728_s24 = smov [#allocation3]   ;;  %s8680_s28 = scalar_lea.hbm %s12203_s4, 256 }
   0x2   :  { %s27_s25 = sshll.u32 %s8728_s24, 4  ;;  %p8681_p0 = scmp.ne.s32.totalorder %s12203_s4, %s8680_s28  ;;  %s28_s25 = int_to_ptr.vmem [resolvable:$true] %s27_s25 }
   0x3   :  { %p8684_p1 = scmp.lt.u32.totalorder %s8680_s28, %s12203_s4 }
   0x5   :  { %p8686_p2 = pnand %p8684_p1, %p8681_p0 }
   0x7   :  { %8689 = shalt.err (!%p8686_p2)
}
   0x8   :  { %s8690_s10 = scalar_lea.vmem %s28_s25, 256  ;;  %p8695_p4 = scmp.lt.s32.totalorder %s28_s25, %s28_s25 }
   0x9   :  { %p8691_p3 = scmp.ne.s32.totalorder %s28_s25, %s8690_s10  ;;  %p8696_p5 = scmp.lt.s32.totalorder %s8690_s10, %s8690_s10 }
   0xb   :  { %p8697_p6 = por %p8696_p5, %p8695_p4 }
   0xd   :  { %p8698_p7 = pnand %p8697_p6, %p8691_p3 }
   0xf   :  { %8701 = shalt.err (!%p8698_p7)
}
  0x10   :  { %s8729_s11 = smov 64   ;;  %s8730_s12 = smov 4  }
  0x11   :  { %33 = dma.hbm_to_vmem [thread:$0]  %s12203_s4, 256, %s28_s25, [#allocation4], %s8729_s11, %s8729_s11, %s8730_s12  }
  0x12   :  { %8724 = dma.done.wait [#allocation4], 256  }
  0x13   :  { %8725 = vsyncadd [#allocation4], 4294967040  ;;  %v8731_v0 = vmov 2   ;;  %v8732_v1 = vmov 1   ;;  %v42_v2 = vld [vmem:[%s12205_s6] sm:$0xff]  ;;  %v43_v3 = vld [vmem:[%s12205_s6 + $0x8] sm:$0xff] }
  0x14   :  { %7529 = vset.pattern.permute.xlu1 %v8731_v0  ;;  %7528 = vset.pattern.permute.xlu0 %v8732_v1  ;;  %v44_v4 = vld [vmem:[%s12205_s6 + $0x10] sm:$0xff]  ;;  %v45_v5 = vld [vmem:[%s12205_s6 + $0x18] sm:$0xff]  ;;  %v54_v6 = vld [vmem:[%s12199_s0] sm:$0xff]  ;;  %v12207_v10 = vmov 0   ;;  %vm382_vm0 = vcmask 261120   ;;  %vm734_vm1 = vcmask 1043456  }
  0x15   :  { %245 = vperm.xlu1 %7529, %v42_v2   ;;  %210 = vperm.xlu0 %7528, %v42_v2   ;;  %v56_v7 = vld [vmem:[%s12199_s0 + $0x10] sm:$0xff]  ;;  %v55_v8 = vld [vmem:[%s12199_s0 + $0x8] sm:$0xff]  ;;  %v57_v9 = vld [vmem:[%s12199_s0 + $0x18] sm:$0xff]  ;;  %vm685_vm2 = vcmask 64512  }
  0x16   :  { %433 = vmatprep.mubr.bf16.mxu0 %v12207_v10  ;;  %483 = vmatprep.mubr.bf16.mxu1 %v12207_v10  ;;  %v71_v11 = vadd.f32 %v56_v7, %v54_v6  ;;  %v58_v12 = vld [vmem:[%s12199_s0 + $0x20] sm:$0xff]  ;;  %v80_v13 = vadd.f32 %v57_v9, %v55_v8  ;;  %v59_v14 = vld [vmem:[%s12199_s0 + $0x28] sm:$0xff]  ;;  %v7318_v16 = vld [vmem:[%s12199_s0 + $0x58] sm:$0xff] }
  0x17   :  { %v7316_v15 = vld [vmem:[%s12199_s0 + $0x48] sm:$0xff]  ;;  %v60_v18 = vld [vmem:[%s12199_s0 + $0x30] sm:$0xff]  ;;  %v61_v20 = vld [vmem:[%s12199_s0 + $0x38] sm:$0xff] }
  0x18   :  { %v72_v17 = vadd.f32 %v71_v11, %v58_v12  ;;  %v81_v19 = vadd.f32 %v80_v13, %v59_v14  ;;  %v98_v21 = vadd.f32 %v7318_v16, %v7316_v15  ;;  %v7315_v22 = vld [vmem:[%s12199_s0 + $0x40] sm:$0xff]  ;;  %v7317_v23 = vld [vmem:[%s12199_s0 + $0x50] sm:$0xff]  ;;  %v7320_v24 = vld [vmem:[%s12199_s0 + $0x68] sm:$0xff] }
  0x19   :  { %249 = vperm.xlu1 %7529, %v43_v3   ;;  %215 = vperm.xlu0 %7528, %v43_v3   ;;  %v89_v27 = vadd.f32 %v7317_v23, %v7315_v22  ;;  %v8856_v29 = vld [vmem:[%s12199_s0 + $0x60] sm:$0xff]  ;;  %v8861_v30 = vld [vmem:[%s12199_s0 + $0x78] sm:$0xff]  ;;  %v8868_v35 = vld [vmem:[%s12199_s0 + $0x70] sm:$0xff] }
  0x1a   :  { %v73_v25 = vadd.f32 %v72_v17, %v60_v18  ;;  %v82_v26 = vadd.f32 %v81_v19, %v61_v20  ;;  %v99_v28 = vadd.f32 %v7320_v24, %v98_v21  ;;  %v46_v45 = vld [vmem:[%s12205_s6 + $0x20] sm:$0xff] }
  0x1b   :  { %v90_v33 = vadd.f32 %v8856_v29, %v89_v27 }
  0x1c   :  { %v74_v31 = vrot.slane %v73_v25, 4  ;;  %v83_v32 = vrot.slane %v82_v26, 4  ;;  %v100_v34 = vadd.f32 %v8861_v30, %v99_v28 }
  0x1d   :  { %7530 = vset.pattern.permute.xlu1 %v8732_v1  ;;  %220 = vperm.xlu0 %7528, %v44_v4   ;;  %v91_v38 = vadd.f32 %v8868_v35, %v90_v33 }
  0x1e   :  { %225 = vperm.xlu1 %7530, %v45_v5   ;;  %v75_v36 = vadd.f32 %v74_v31, %v73_v25  ;;  %v84_v37 = vadd.f32 %v83_v32, %v82_v26  ;;  %v101_v39 = vrot.slane %v100_v34, 4 }
  0x1f   :  { %v92_v42 = vrot.slane %v91_v38, 4 }
  0x20   :  { %v76_v40 = vrot.slane %v75_v36, 2  ;;  %v85_v41 = vrot.slane %v84_v37, 2  ;;  %v102_v43 = vadd.f32 %v101_v39, %v100_v34 }
  0x21   :  { %7531 = vset.pattern.permute.xlu0 %v8731_v0  ;;  %v93_v47 = vadd.f32 %v92_v42, %v91_v38 }
  0x22   :  { %7532 = vset.pattern.permute.xlu1 %v8731_v0  ;;  %253 = vperm.xlu0 %7531, %v44_v4   ;;  %v77_v44 = vadd.f32 %v76_v40, %v75_v36  ;;  %v86_v46 = vadd.f32 %v85_v41, %v84_v37  ;;  %v103_v48 = vrot.slane %v102_v43, 2 }
  0x23   :  { %257 = vperm.xlu1 %7532, %v45_v5   ;;  %v94_v51 = vrot.slane %v93_v47, 2 }
  0x24   :  { %v78_v49 = vrot.slane %v77_v44, 1  ;;  %v87_v50 = vrot.slane %v86_v46, 1  ;;  %v104_v52 = vadd.f32 %v103_v48, %v102_v43 }
  0x25   :  { %v95_v55 = vadd.f32 %v94_v51, %v93_v47 }
  0x26   :  { %7534 = vset.pattern.permute.xlu0 %v12207_v10  ;;  %v79_v53 = vadd.f32 %v78_v49, %v77_v44  ;;  %v88_v54 = vadd.f32 %v87_v50, %v86_v46  ;;  %v105_v56 = vrot.slane %v104_v52, 1 }
  0x27   :  { %7533 = vset.pattern.permute.xlu1 %v12207_v10  ;;  %314 = vperm.xlu0 %7534, %v46_v45   ;;  %v96_v59 = vrot.slane %v95_v55, 1 }
  0x28   :  { %297 = vperm.xlu1 %7533, %v42_v2   ;;  %v108_v57 = vmul.f32 0.03125, %v79_v53  ;;  %v109_v58 = vmul.f32 0.03125, %v88_v54  ;;  %v106_v60 = vadd.f32 %v105_v56, %v104_v52 }
  0x29   :  { %v97_v1 = vadd.f32 %v96_v59, %v95_v55 }
  0x2a   :  { %v8874_v61 = vsub.f32 %v54_v6, %v108_v57  ;;  %v8876_v62 = vsub.f32 %v56_v7, %v108_v57  ;;  %v8878_v63 = vsub.f32 %v55_v8, %v109_v58  ;;  %v8880_v0 = vsub.f32 %v57_v9, %v109_v58 }
  0x2b   :  { %v111_v2 = vmul.f32 0.03125, %v106_v60  ;;  %v8882_v3 = vsub.f32 %v58_v12, %v108_v57  ;;  %v8888_v11 = vsub.f32 %v59_v14, %v109_v58  ;;  %v110_v8 = vmul.f32 0.03125, %v97_v1 }
  0x2c   :  { %v128_v4 = vmul.f32 %v8874_v61, %v8874_v61  ;;  %v132_v5 = vmul.f32 %v8876_v62, %v8876_v62  ;;  %v129_v6 = vmul.f32 %v8878_v63, %v8878_v63  ;;  %v133_v7 = vmul.f32 %v8880_v0, %v8880_v0 }
  0x2d   :  { %v8894_v9 = vsub.f32 %v7316_v15, %v111_v2  ;;  %v8896_v13 = vsub.f32 %v7318_v16, %v111_v2  ;;  %v8898_v12 = vsub.f32 %v60_v18, %v108_v57  ;;  %v136_v17 = vmul.f32 %v8882_v3, %v8882_v3 }
  0x2e   :  { %v144_v19 = vadd.f32 %v132_v5, %v128_v4  ;;  %v8902_v21 = vsub.f32 %v61_v20, %v109_v58  ;;  %v137_v14 = vmul.f32 %v8888_v11, %v8888_v11  ;;  %v153_v25 = vadd.f32 %v133_v7, %v129_v6 }
  0x2f   :  { %v8906_v26 = vsub.f32 %v7315_v22, %v110_v8  ;;  %v8908_v27 = vsub.f32 %v7317_v23, %v110_v8  ;;  %v8910_v15 = vsub.f32 %v7320_v24, %v111_v2  ;;  %v131_v16 = vmul.f32 %v8894_v9, %v8894_v9 }
  0x30   :  { %v135_v18 = vmul.f32 %v8896_v13, %v8896_v13  ;;  %v140_v20 = vmul.f32 %v8898_v12, %v8898_v12  ;;  %v145_v28 = vadd.f32 %v144_v19, %v136_v17  ;;  %v141_v31 = vmul.f32 %v8902_v21, %v8902_v21 }
  0x31   :  { %v154_v32 = vadd.f32 %v153_v25, %v137_v14  ;;  %v8921_v22 = vsub.f32 %v8856_v29, %v110_v8  ;;  %v130_v23 = vmul.f32 %v8906_v26, %v8906_v26  ;;  %v134_v24 = vmul.f32 %v8908_v27, %v8908_v27 }
  0x32   :  { %v8928_v33 = vsub.f32 %v8861_v30, %v111_v2  ;;  %v139_v34 = vmul.f32 %v8910_v15, %v8910_v15  ;;  %v171_v36 = vadd.f32 %v135_v18, %v131_v16  ;;  %v146_v37 = vadd.f32 %v145_v28, %v140_v20 }
  0x33   :  { %v155_v38 = vadd.f32 %v154_v32, %v141_v31  ;;  %v8933_v39 = vsub.f32 %v8868_v35, %v110_v8  ;;  %v138_v29 = vmul.f32 %v8921_v22, %v8921_v22  ;;  %v162_v40 = vadd.f32 %v134_v24, %v130_v23 }
  0x34   :  { %v143_v41 = vmul.f32 %v8928_v33, %v8928_v33  ;;  %v172_v42 = vadd.f32 %v171_v36, %v139_v34  ;;  %v147_v43 = vrot.slane %v146_v37, 4 }
  0x35   :  { %v156_v30 = vrot.slane %v155_v38, 4  ;;  %v142_v44 = vmul.f32 %v8933_v39, %v8933_v39  ;;  %v163_v45 = vadd.f32 %v162_v40, %v138_v29 }
  0x36   :  { %v173_v46 = vadd.f32 %v172_v42, %v143_v41  ;;  %v148_v47 = vadd.f32 %v147_v43, %v146_v37 }
  0x37   :  { %v157_v48 = vadd.f32 %v156_v30, %v155_v38  ;;  %v164_v49 = vadd.f32 %v163_v45, %v142_v44 }
  0x38   :  { %v174_v35 = vrot.slane %v173_v46, 4  ;;  %v149_v50 = vrot.slane %v148_v47, 2 }
  0x39   :  { %v158_v51 = vrot.slane %v157_v48, 2  ;;  %v165_v52 = vrot.slane %v164_v49, 4 }
  0x3a   :  { %v175_v53 = vadd.f32 %v174_v35, %v173_v46  ;;  %v150_v54 = vadd.f32 %v149_v50, %v148_v47 }
  0x3b   :  { %v159_v55 = vadd.f32 %v158_v51, %v157_v48  ;;  %v166_v56 = vadd.f32 %v165_v52, %v164_v49 }
  0x3c   :  { %v176_v57 = vrot.slane %v175_v53, 2  ;;  %v151_v58 = vrot.slane %v150_v54, 1 }
  0x3d   :  { %v160_v59 = vrot.slane %v159_v55, 1  ;;  %v167_v60 = vrot.slane %v166_v56, 2 }
  0x3e   :  { %v177_v1 = vadd.f32 %v176_v57, %v175_v53  ;;  %v152_v2 = vadd.f32 %v151_v58, %v150_v54 }
  0x3f   :  { %v161_v4 = vadd.f32 %v160_v59, %v159_v55  ;;  %v168_v5 = vadd.f32 %v167_v60, %v166_v56 }
  0x40   :  { %v178_v6 = vrot.slane %v177_v1, 1  ;;  %v180_v7 = vmul.f32 0.03125, %v152_v2 }
  0x41   :  { %v181_v8 = vmul.f32 0.03125, %v161_v4  ;;  %v169_v17 = vrot.slane %v168_v5, 1 }
  0x42   :  { %v179_v19 = vadd.f32 %v178_v6, %v177_v1  ;;  %v184_v14 = vadd.f32 1e-05, %v180_v7 }
  0x43   :  { %v185_v25 = vadd.f32 1e-05, %v181_v8  ;;  %v170_v16 = vadd.f32 %v169_v17, %v168_v5 }
  0x44   :  { %v183_v18 = vmul.f32 0.03125, %v179_v19  ;;  %7565 = vrsqrt.f32 %v184_v14 }
  0x45   :  { %7567 = vrsqrt.f32 %v185_v25  ;;  %v182_v20 = vmul.f32 0.03125, %v170_v16 }
  0x46   :  { %v187_v28 = vadd.f32 1e-05, %v183_v18 }
  0x47   :  { %v186_v31 = vadd.f32 1e-05, %v182_v20 }
  0x48   :  { %7569 = vrsqrt.f32 %v187_v28 }
  0x49   :  { %7571 = vrsqrt.f32 %v186_v31  ;;  %v7551_v31 = vld [vmem:[%s12200_s1] sm:$0xff]  }
  0x4e   :  { %v7566_v32 = vpop.eup %7565 }
  0x4f   :  { %v7568_v23 = vpop.eup %7567  ;;  %v192_v38 = vmul.f32 %v7566_v32, %v8874_v61  ;;  %v196_v29 = vmul.f32 %v7566_v32, %v8876_v62  ;;  %v204_v62 = vmul.f32 %v7566_v32, %v8898_v12 }
  0x50   :  { %v193_v36 = vmul.f32 %v7568_v23, %v8878_v63  ;;  %v197_v37 = vmul.f32 %v7568_v23, %v8880_v0  ;;  %v200_v0 = vmul.f32 %v7566_v32, %v8882_v3  ;;  %v201_v61 = vmul.f32 %v7568_v23, %v8888_v11 }
  0x51   :  { %v205_v50 = vmul.f32 %v7568_v23, %v8902_v21 }
  0x52   :  { %v7570_v42 = vpop.eup %7569 }
  0x53   :  { %v199_v46 = vmul.f32 %v7570_v42, %v8896_v13  ;;  %v7572_v49 = vpop.eup %7571  ;;  %v195_v63 = vmul.f32 %v7570_v42, %v8894_v9  ;;  %v203_v11 = vmul.f32 %v7570_v42, %v8910_v15  ;;  %v207_v12 = vmul.f32 %v7570_v42, %v8928_v33  ;;  %v7556_v42 = vld [vmem:[%s12200_s1 + $0x20] sm:$0xff]  }
  0x54   :  { %v198_v13 = vmul.f32 %v7572_v49, %v8908_v27  ;;  %v194_v54 = vmul.f32 %v7572_v49, %v8906_v26  ;;  %v202_v15 = vmul.f32 %v7572_v49, %v8921_v22  ;;  %v206_v8 = vmul.f32 %v7572_v49, %v8933_v39  ;;  %v7552_v22 = vld [vmem:[%s12200_s1 + $0x28] sm:$0xff]  }
  0x94   :  { %v8941_v24 = vpop.permute.xlu1 %245  ;;  %v211_v34 = vpop.permute.xlu0 %210 }
  0x95   :  { %v229_v43 = vmul.f32 %v211_v34, %v193_v36  ;;  %v228_v44 = vmul.f32 %v211_v34, %v192_v38  ;;  %v231_v3 = vmul.f32 %v211_v34, %v195_v63  ;;  %v230_v7 = vmul.f32 %v211_v34, %v194_v54 }
  0x97   :  { %v261_v52 = vadd.f32 %v8941_v24, %v229_v43  ;;  %v260_v53 = vadd.f32 %v8941_v24, %v228_v44  ;;  %v263_v33 = vadd.f32 %v8941_v24, %v231_v3  ;;  %v262_v39 = vadd.f32 %v8941_v24, %v230_v7 }
  0x98   :  { %v250_v40 = vpop.permute.xlu1 %249  ;;  %v216_v41 = vpop.permute.xlu0 %215 }
  0x99   :  { %v233_v30 = vmul.f32 %v216_v41, %v197_v37  ;;  %v232_v45 = vmul.f32 %v216_v41, %v196_v29  ;;  %v235_v55 = vmul.f32 %v216_v41, %v199_v46  ;;  %v234_v1 = vmul.f32 %v216_v41, %v198_v13  ;;  %v7553_v29 = vld [vmem:[%s12200_s1 + $0x8] sm:$0xff]   ;;  %v7555_v41 = vld [vmem:[%s12200_s1 + $0x18] sm:$0xff]  }
  0x9b   :  { %v265_v47 = vadd.f32 %v250_v40, %v233_v30  ;;  %v264_v48 = vadd.f32 %v250_v40, %v232_v45  ;;  %v267_v6 = vadd.f32 %v250_v40, %v235_v55  ;;  %v266_v16 = vadd.f32 %v250_v40, %v234_v1  ;;  %v7554_v40 = vld [vmem:[%s12200_s1 + $0x10] sm:$0xff]  }
  0x9c   :  { %v221_v35 = vpop.permute.xlu0 %220 }
  0x9d   :  { %v226_v51 = vpop.permute.xlu1 %225  ;;  %v289_v9 = vpack.c.bf16 %v265_v47, %v261_v52  ;;  %v288_v56 = vpack.c.bf16 %v264_v48, %v260_v53  ;;  %v236_v57 = vmul.f32 %v221_v35, %v200_v0  ;;  %v237_v58 = vmul.f32 %v221_v35, %v201_v61 }
  0x9e   :  { %v240_v21 = vmul.f32 %v226_v51, %v204_v62  ;;  %v241_v59 = vmul.f32 %v226_v51, %v205_v50  ;;  %v239_v17 = vmul.f32 %v221_v35, %v203_v11  ;;  %v243_v19 = vmul.f32 %v226_v51, %v207_v12 }
  0x9f   :  { %401 = vmatprep.subr.bf16.mxu0 %v289_v9  ;;  %7505 = vmatprep.subr.bf16.mxu1 %v289_v9  ;;  %v291_v28 = vpack.c.bf16 %v267_v6, %v263_v33  ;;  %v238_v32 = vmul.f32 %v221_v35, %v202_v15  ;;  %v242_v23 = vmul.f32 %v226_v51, %v206_v8 }
  0xa0   :  { %402 = vmatpush1.bf16.msra.mxu0 %v288_v56  ;;  %7507 = vmatpush1.bf16.msra.mxu1 %v288_v56  ;;  %v290_v37 = vpack.c.bf16 %v266_v16, %v262_v39 }
  0xa1   :  { %v254_v60 = vpop.permute.xlu0 %253 }
  0xa2   :  { %v268_v27 = vadd.f32 %v254_v60, %v236_v57  ;;  %v269_v26 = vadd.f32 %v254_v60, %v237_v58  ;;  %v258_v2 = vpop.permute.xlu1 %257  ;;  %v271_v18 = vadd.f32 %v254_v60, %v239_v17  ;;  %v270_v34 = vadd.f32 %v254_v60, %v238_v32 }
  0xa3   :  { %v272_v4 = vadd.f32 %v258_v2, %v240_v21  ;;  %v273_v5 = vadd.f32 %v258_v2, %v241_v59  ;;  %v275_v20 = vadd.f32 %v258_v2, %v243_v19  ;;  %v274_v36 = vadd.f32 %v258_v2, %v242_v23 }
  0xa5   :  { %v293_v14 = vpack.c.bf16 %v273_v5, %v269_v26  ;;  %v292_v25 = vpack.c.bf16 %v272_v4, %v268_v27  ;;  %v295_v38 = vpack.c.bf16 %v275_v20, %v271_v18  ;;  %v294_v24 = vpack.c.bf16 %v274_v36, %v270_v34 }
  0xa6   :  { %v9036_v56 = vpop.permute.xlu0 %314 }
  0xa7   :  { %403 = vmatprep.subr.bf16.mxu0 %v293_v14  ;;  %7506 = vmatprep.subr.bf16.mxu1 %v293_v14  ;;  %v9004_v43 = vpop.permute.xlu1 %297  ;;  %12398 = vst [vmem:[#allocation24_spill] sm:$0xff] %v9036_v56 }
  0xa8   :  { %404 = vmatpush1.bf16.msra.mxu0 %v292_v25  ;;  %7508 = vmatpush1.bf16.msra.mxu1 %v292_v25  ;;  %12383 = vst [vmem:[#allocation9_spill] sm:$0xff] %v9004_v43 }
  0xa9   :  { %494 = vmatprep.subr.bf16.mxu1 %v291_v28 }
  0xab   :  { %7329 = vmatmul.mubr.msk.bf16.vlgmr.msra.gmra.mrb[0].mxu0 %vm382_vm0, %v7551_v31  ;;  %7334 = vmatmul.mubr.msk.bf16.vlgmr.msra.gmra.mrb[0].mxu1 %vm382_vm0, %v7552_v22 }
  0xac   :  { %495 = vmatpush1.bf16.msra.mxu1 %v290_v37  ;;  %526 = vmatprep.mubr.bf16.mxu1 %v12207_v10 }
  0xad   :  { %496 = vmatprep.subr.bf16.mxu1 %v295_v38  ;;  %443 = vmatprep.mubr.bf16.mxu0 %v12207_v10 }
  0xb0   :  { %497 = vmatpush1.bf16.msra.mxu1 %v294_v24 }
  0xb3   :  { %7335 = vmatmul.mubr.msk.bf16.vlgmr.msra.gmra.mrb[4].mxu1 %vm382_vm0, %v7551_v31  ;;  %7330 = vmatmul.mubr.msk.bf16.gmra.mrb[4].mxu0 %vm382_vm0, %v7553_v29 }
  0xb4   :  { %536 = vmatprep.mubr.bf16.mxu1 %v12207_v10  ;;  %453 = vmatprep.mubr.bf16.mxu0 %v12207_v10 }
  0xbb   :  { %7336 = vmatmul.mubr.msk.bf16.gmra.mrb[8].mxu1 %vm382_vm0, %v7553_v29  ;;  %7331 = vmatmul.mubr.msk.bf16.gmra.mrb[8].mxu0 %vm382_vm0, %v7554_v40 }
  0xbc   :  { %546 = vmatprep.mubr.bf16.mxu1 %v12207_v10  ;;  %463 = vmatprep.mubr.bf16.mxu0 %v12207_v10 }
  0xc3   :  { %7337 = vmatmul.mubr.msk.bf16.gmra.mrb[12].mxu1 %vm382_vm0, %v7554_v40  ;;  %7332 = vmatmul.mubr.msk.bf16.gmra.mrb[12].mxu0 %vm382_vm0, %v7555_v41 }
  0xc4   :  { %556 = vmatprep.mubr.bf16.mxu1 %v12207_v10  ;;  %473 = vmatprep.mubr.bf16.mxu0 %v12207_v10 }
  0xcb   :  { %7338 = vmatmul.mubr.msk.bf16.gmra.mrb[16].mxu1 %vm382_vm0, %v7555_v41  ;;  %7333 = vmatmul.mubr.msk.bf16.gmra.mrb[16].mxu0 %vm382_vm0, %v7556_v42 }
  0xcc   :  { %566 = vmatprep.mubr.bf16.mxu1 %v12207_v10  ;;  %773 = vmatprep.mubr.bf16.mxu0 %v12207_v10 }
  0xd3   :  { %7339 = vmatmul.mubr.msk.bf16.gmra.mrb[20].mxu1 %vm382_vm0, %v7556_v42 }
  0xd4   :  { %576 = vmatprep.mubr.bf16.mxu1 %v12207_v10 }
  0xdb   :  { %7340 = vmatmul.mubr.msk.bf16.gmra.mrb[24].mxu1 %vm382_vm0, %v7552_v22 }
 0x17e   :  { %v435_v30 = vpop.f32.mrb[0].mxu0  ;;  %v9006_v44 = vpop.f32.mrb[0].mxu1 }
 0x17f   :  { %12384 = vst [vmem:[#allocation10_spill] sm:$0xff] %v9006_v44  ;;  %v436_v45 = vadd.f32 %v435_v30, %v9004_v43  ;;  %v437_v46 = vpop.f32.mrb[1].mxu0  ;;  %v9009_v47 = vpop.f32.mrb[1].mxu1 }
 0x180   :  { %12385 = vst [vmem:[#allocation11_spill] sm:$0xff] %v9009_v47  ;;  %v438_v48 = vadd.f32 %v437_v46, %v9004_v43  ;;  %v9012_v49 = vpop.f32.mrb[2].mxu0  ;;  %v9014_v63 = vpop.f32.mrb[2].mxu1 }
 0x181   :  { %12386 = vst [vmem:[#allocation12_spill] sm:$0xff] %v9012_v49  ;;  %12387 = vst [vmem:[#allocation13_spill] sm:$0xff] %v9014_v63  ;;  %v9016_v0 = vpop.f32.mrb[3].mxu0  ;;  %v587_v61 = vmul.f32 0.35355338, %v436_v45  ;;  %v9018_v35 = vpop.f32.mrb[3].mxu1 }
 0x182   :  { %12388 = vst [vmem:[#allocation14_spill] sm:$0xff] %v9016_v0  ;;  %12389 = vst [vmem:[#allocation15_spill] sm:$0xff] %v9018_v35  ;;  %v588_v62 = vmul.f32 0.35355338, %v438_v48 }
 0x183   :  { %603 = vxpose.xlu1.b32.start.end [1/1] (short) %v587_v61, 128 }
 0x184   :  { %635 = vxpose.xlu0.b32.start.end [1/1] (short) %v588_v62, 128 }
 0x186   :  { %v9020_v50 = vpop.f32.mrb[4].mxu1  ;;  %v9022_v51 = vpop.f32.mrb[4].mxu0 }
 0x187   :  { %12390 = vst [vmem:[#allocation16_spill] sm:$0xff] %v9020_v50  ;;  %12391 = vst [vmem:[#allocation17_spill] sm:$0xff] %v9022_v51  ;;  %v9024_v52 = vpop.f32.mrb[5].mxu1  ;;  %v9026_v53 = vpop.f32.mrb[5].mxu0 }
 0x188   :  { %12392 = vst [vmem:[#allocation18_spill] sm:$0xff] %v9024_v52  ;;  %12393 = vst [vmem:[#allocation19_spill] sm:$0xff] %v9026_v53  ;;  %v9028_v13 = vpop.f32.mrb[6].mxu0  ;;  %v9030_v54 = vpop.f32.mrb[6].mxu1 }
 0x189   :  { %12394 = vst [vmem:[#allocation20_spill] sm:$0xff] %v9028_v13  ;;  %12395 = vst [vmem:[#allocation21_spill] sm:$0xff] %v9030_v54  ;;  %v9032_v55 = vpop.f32.mrb[7].mxu0  ;;  %v9034_v9 = vpop.f32.mrb[7].mxu1 }
 0x18a   :  { %12396 = vst [vmem:[#allocation22_spill] sm:$0xff] %v9032_v55  ;;  %12397 = vst [vmem:[#allocation23_spill] sm:$0xff] %v9034_v9 }
 0x18e   :  { %v9038_v3 = vpop.f32.mrb[8].mxu1  ;;  %v455_v11 = vpop.f32.mrb[8].mxu0 }
 0x18f   :  { %12399 = vst [vmem:[#allocation25_spill] sm:$0xff] %v9038_v3  ;;  %v9040_v57 = vpop.f32.mrb[9].mxu1  ;;  %v457_v58 = vpop.f32.mrb[9].mxu0  ;;  %v456_v12 = vadd.f32 %v455_v11, %v9036_v56 }
 0x190   :  { %12400 = vst [vmem:[#allocation26_spill] sm:$0xff] %v9040_v57  ;;  %v9043_v21 = vpop.f32.mrb[10].mxu1  ;;  %v9045_v59 = vpop.f32.mrb[10].mxu0  ;;  %v458_v60 = vadd.f32 %v457_v58, %v9036_v56 }
 0x191   :  { %12401 = vst [vmem:[#allocation27_spill] sm:$0xff] %v9043_v21  ;;  %12402 = vst [vmem:[#allocation28_spill] sm:$0xff] %v9045_v59  ;;  %v9048_v1 = vpop.f32.mrb[11].mxu1  ;;  %v9050_v27 = vpop.f32.mrb[11].mxu0  ;;  %v683_v26 = vpack.c.bf16 %v456_v12, %v456_v12 }
 0x192   :  { %12403 = vst [vmem:[#allocation29_spill] sm:$0xff] %v9048_v1  ;;  %12404 = vst [vmem:[#allocation30_spill] sm:$0xff] %v9050_v27  ;;  %v684_v2 = vpack.c.bf16 %v458_v60, %v458_v60 }
 0x193   :  { %v736_v4 = vsel %vm734_vm1, %v683_v26, 0 }
 0x194   :  { %7341 = vmatprep.subr.msk.bf16.mxu0 %vm734_vm1, %v684_v2 }
 0x195   :  { %742 = vmatpush1.bf16.msra.mxu0 %v736_v4 }
 0x196   :  { %v9054_v5 = vpop.f32.mrb[12].mxu1  ;;  %v9058_v7 = vpop.f32.mrb[12].mxu0 }
 0x197   :  { %12405 = vst [vmem:[#allocation31_spill] sm:$0xff] %v9054_v5  ;;  %v9056_v6 = vpop.f32.mrb[13].mxu1  ;;  %12407 = vst [vmem:[#allocation33_spill] sm:$0xff] %v9058_v7  ;;  %v9060_v8 = vpop.f32.mrb[13].mxu0 }
 0x198   :  { %12406 = vst [vmem:[#allocation32_spill] sm:$0xff] %v9056_v6  ;;  %12408 = vst [vmem:[#allocation34_spill] sm:$0xff] %v9060_v8  ;;  %v9062_v33 = vpop.f32.mrb[14].mxu0 }
 0x199   :  { %12409 = vst [vmem:[#allocation35_spill] sm:$0xff] %v9062_v33  ;;  %v9064_v17 = vpop.f32.mrb[15].mxu0 }
 0x19a   :  { %12410 = vst [vmem:[#allocation36_spill] sm:$0xff] %v9064_v17 }
 0x19e   :  { %v9066_v19 = vpop.f32.mrb[16].mxu0 }
 0x19f   :  { %12411 = vst [vmem:[#allocation37_spill] sm:$0xff] %v9066_v19  ;;  %v9068_v25 = vpop.f32.mrb[17].mxu0 }
 0x1a0   :  { %12412 = vst [vmem:[#allocation38_spill] sm:$0xff] %v9068_v25  ;;  %v9070_v18 = vpop.f32.mrb[18].mxu0 }
 0x1a1   :  { %12413 = vst [vmem:[#allocation39_spill] sm:$0xff] %v9070_v18  ;;  %v9072_v20 = vpop.f32.mrb[19].mxu0 }
 0x1a2   :  { %12414 = vst [vmem:[#allocation40_spill] sm:$0xff] %v9072_v20 }
 0x203   :  { %v619_v15 = vpop.trf.xlu1 }
 0x204   :  { %v651_v24 = vpop.trf.xlu0 }
 0x207   :  { %v620_v14 = vpop.trf.xlu1 }
 0x208   :  { %v667_v16 = vpack.c.bf16 %v620_v14, %v619_v15  ;;  %v652_v41 = vpop.trf.xlu0 }
 0x209   :  { %v675_v15 = vpack.c.bf16 %v652_v41, %v651_v24 }
 0x20a   :  { %7342 = vmatmul.mubr.msk.bf16.vlgmr.msra.gmra.mrb[20].mxu0 %vm685_vm2, %v667_v16 }
 0x20b   :  { %v621_v28 = vpop.trf.xlu1  ;;  %783 = vmatprep.mubr.bf16.mxu0 %v12207_v10 }
 0x20c   :  { %v653_v45 = vpop.trf.xlu0 }
 0x20f   :  { %v622_v31 = vpop.trf.xlu1 }
 0x210   :  { %v668_v22 = vpack.c.bf16 %v622_v31, %v621_v28  ;;  %v654_v61 = vpop.trf.xlu0 }
 0x211   :  { %v676_v16 = vpack.c.bf16 %v654_v61, %v653_v45 }
 0x212   :  { %7343 = vmatmul.mubr.msk.bf16.gmra.mrb[24].mxu0 %vm685_vm2, %v668_v22 }
 0x213   :  { %v623_v39 = vpop.trf.xlu1  ;;  %793 = vmatprep.mubr.bf16.mxu0 %v12207_v10 }
 0x214   :  { %v655_v12 = vpop.trf.xlu0 }
 0x217   :  { %v624_v32 = vpop.trf.xlu1 }
 0x218   :  { %v669_v23 = vpack.c.bf16 %v624_v32, %v623_v39  ;;  %v656_v2 = vpop.trf.xlu0 }
 0x219   :  { %v677_v31 = vpack.c.bf16 %v656_v2, %v655_v12 }
 0x21a   :  { %7344 = vmatmul.mubr.msk.bf16.gmra.mrb[28].mxu0 %vm685_vm2, %v669_v23 }
 0x21b   :  { %v625_v34 = vpop.trf.xlu1  ;;  %803 = vmatprep.mubr.bf16.mxu0 %v12207_v10 }
 0x21c   :  { %v657_v4 = vpop.trf.xlu0 }
 0x21f   :  { %v626_v36 = vpop.trf.xlu1 }
 0x220   :  { %v670_v37 = vpack.c.bf16 %v626_v36, %v625_v34  ;;  %v658_v14 = vpop.trf.xlu0 }
 0x221   :  { %v678_v32 = vpack.c.bf16 %v658_v14, %v657_v4 }
 0x222   :  { %7345 = vmatmul.mubr.msk.bf16.gmra.mrb[32].mxu0 %vm685_vm2, %v670_v37 }
 0x223   :  { %v627_v38 = vpop.trf.xlu1  ;;  %813 = vmatprep.mubr.bf16.mxu0 %v12207_v10 }
 0x224   :  { %v659_v28 = vpop.trf.xlu0 }
 0x227   :  { %v628_v29 = vpop.trf.xlu1 }
 0x228   :  { %v671_v40 = vpack.c.bf16 %v628_v29, %v627_v38  ;;  %v660_v22 = vpop.trf.xlu0 }
 0x229   :  { %v679_v34 = vpack.c.bf16 %v660_v22, %v659_v28 }
 0x22a   :  { %7346 = vmatmul.mubr.msk.bf16.gmra.mrb[36].mxu0 %vm685_vm2, %v671_v40 }
 0x22b   :  { %v629_v42 = vpop.trf.xlu1  ;;  %823 = vmatprep.mubr.bf16.mxu0 %v12207_v10 }
 0x22c   :  { %v661_v39 = vpop.trf.xlu0 }
 0x22f   :  { %v630_v30 = vpop.trf.xlu1 }
 0x230   :  { %v672_v46 = vpack.c.bf16 %v630_v30, %v629_v42  ;;  %v662_v23 = vpop.trf.xlu0 }
 0x231   :  { %v680_v38 = vpack.c.bf16 %v662_v23, %v661_v39 }
 0x232   :  { %7347 = vmatmul.mubr.msk.bf16.gmra.mrb[40].mxu0 %vm685_vm2, %v672_v46 }
 0x233   :  { %v631_v48 = vpop.trf.xlu1  ;;  %833 = vmatprep.mubr.bf16.mxu0 %v12207_v10 }
 0x234   :  { %v663_v36 = vpop.trf.xlu0 }
 0x237   :  { %v632_v62 = vpop.trf.xlu1 }
 0x238   :  { %v673_v11 = vpack.c.bf16 %v632_v62, %v631_v48  ;;  %v664_v37 = vpop.trf.xlu0 }
 0x239   :  { %v681_v29 = vpack.c.bf16 %v664_v37, %v663_v36 }
 0x23a   :  { %7348 = vmatmul.mubr.msk.bf16.gmra.mrb[44].mxu0 %vm685_vm2, %v673_v11 }
 0x23b   :  { %v633_v58 = vpop.trf.xlu1  ;;  %843 = vmatprep.mubr.bf16.mxu0 %v12207_v10 }
 0x23c   :  { %v665_v24 = vpop.trf.xlu0 }
 0x23f   :  { %v634_v60 = vpop.trf.xlu1 }
 0x240   :  { %v674_v26 = vpack.c.bf16 %v634_v60, %v633_v58  ;;  %v666_v40 = vpop.trf.xlu0 }
 0x241   :  { %v682_v41 = vpack.c.bf16 %v666_v40, %v665_v24 }
 0x242   :  { %7349 = vmatmul.mubr.msk.bf16.gmra.mrb[48].mxu0 %vm685_vm2, %v674_v26 }
 0x243   :  { %853 = vmatprep.mubr.bf16.mxu0 %v12207_v10 }
 0x24a   :  { %7350 = vmatmul.mubr.msk.bf16.gmra.mrb[52].mxu0 %vm685_vm2, %v675_v15 }
 0x24b   :  { %863 = vmatprep.mubr.bf16.mxu0 %v12207_v10 }
 0x252   :  { %7351 = vmatmul.mubr.msk.bf16.gmra.mrb[56].mxu0 %vm685_vm2, %v676_v16 }
 0x253   :  { %873 = vmatprep.mubr.bf16.mxu0 %v12207_v10 }
 0x25a   :  { %7352 = vmatmul.mubr.msk.bf16.gmra.mrb[60].mxu0 %vm685_vm2, %v677_v31 }
 0x25b   :  { %883 = vmatprep.mubr.bf16.mxu0 %v12207_v10 }
 0x262   :  { %7353 = vmatmul.mubr.msk.bf16.gmra.mrb[64].mxu0 %vm685_vm2, %v678_v32 }
 0x263   :  { %893 = vmatprep.mubr.bf16.mxu0 %v12207_v10 }
 0x26a   :  { %7354 = vmatmul.mubr.msk.bf16.gmra.mrb[68].mxu0 %vm685_vm2, %v679_v34 }
 0x26b   :  { %903 = vmatprep.mubr.bf16.mxu0 %v12207_v10 }
 0x272   :  { %7355 = vmatmul.mubr.msk.bf16.gmra.mrb[72].mxu0 %vm685_vm2, %v680_v38 }
 0x273   :  { %913 = vmatprep.mubr.bf16.mxu0 %v12207_v10 }
 0x27a   :  { %7356 = vmatmul.mubr.msk.bf16.gmra.mrb[76].mxu0 %vm685_vm2, %v681_v29 }
 0x27b   :  { %923 = vmatprep.mubr.bf16.mxu0 %v12207_v10 }
 0x282   :  { %7357 = vmatmul.mubr.msk.bf16.gmra.mrb[80].mxu0 %vm685_vm2, %v682_v41 }
 0x2dd   :  { %v9105_v42 = vpop.f32.mrb[20].mxu0 }
 0x2de   :  { %v9107_v30 = vpop.f32.mrb[21].mxu0 }
 0x2df   :  { %v9109_v45 = vpop.f32.mrb[22].mxu0  ;;  %v934_v46 = vmax.f32 %v9105_v42, %v9107_v30 }
 0x2e0   :  { %v9113_v48 = vpop.f32.mrb[23].mxu0 }
 0x2e1   :  { %935 = vmax.xlane.f32.xlu0 %v934_v46  ;;  %v937_v61 = vmax.f32 %v9109_v45, %v9113_v48 }
 0x2e3   :  { %938 = vmax.xlane.f32.xlu1 %v937_v61 }
 0x2e5   :  { %v9117_v62 = vpop.f32.mrb[24].mxu0 }
 0x2e6   :  { %v9119_v11 = vpop.f32.mrb[25].mxu0 }
 0x2e7   :  { %v9121_v58 = vpop.f32.mrb[26].mxu0  ;;  %v940_v12 = vmax.f32 %v9117_v62, %v9119_v11 }
 0x2e8   :  { %v9125_v60 = vpop.f32.mrb[27].mxu0 }
 0x2e9   :  { %941 = vmax.xlane.f32.xlu1 %v940_v12  ;;  %v943_v26 = vmax.f32 %v9121_v58, %v9125_v60 }
 0x2eb   :  { %944 = vmax.xlane.f32.xlu0 %v943_v26 }
 0x2ed   :  { %v9129_v2 = vpop.f32.mrb[28].mxu0 }
 0x2ee   :  { %v9131_v4 = vpop.f32.mrb[29].mxu0 }
 0x2ef   :  { %v9133_v15 = vpop.f32.mrb[30].mxu0  ;;  %v946_v14 = vmax.f32 %v9129_v2, %v9131_v4 }
 0x2f0   :  { %v9137_v16 = vpop.f32.mrb[31].mxu0 }
 0x2f1   :  { %947 = vmax.xlane.f32.xlu1 %v946_v14  ;;  %v949_v28 = vmax.f32 %v9133_v15, %v9137_v16 }
 0x2f3   :  { %950 = vmax.xlane.f32.xlu0 %v949_v28 }
 0x2f5   :  { %v9141_v31 = vpop.f32.mrb[32].mxu0 }
 0x2f6   :  { %v9143_v22 = vpop.f32.mrb[33].mxu0 }
 0x2f7   :  { %v9145_v39 = vpop.f32.mrb[34].mxu0  ;;  %v952_v32 = vmax.f32 %v9141_v31, %v9143_v22 }
 0x2f8   :  { %v9149_v23 = vpop.f32.mrb[35].mxu0 }
 0x2f9   :  { %953 = vmax.xlane.f32.xlu1 %v952_v32  ;;  %v955_v34 = vmax.f32 %v9145_v39, %v9149_v23 }
 0x2fb   :  { %956 = vmax.xlane.f32.xlu0 %v955_v34 }
 0x2fd   :  { %v9153_v36 = vpop.f32.mrb[36].mxu0 }
 0x2fe   :  { %v9155_v37 = vpop.f32.mrb[37].mxu0 }
 0x2ff   :  { %v9157_v38 = vpop.f32.mrb[38].mxu0  ;;  %v958_v24 = vmax.f32 %v9153_v36, %v9155_v37 }
 0x300   :  { %v9161_v29 = vpop.f32.mrb[39].mxu0 }
 0x301   :  { %959 = vmax.xlane.f32.xlu1 %v958_v24  ;;  %v961_v40 = vmax.f32 %v9157_v38, %v9161_v29 }
 0x303   :  { %962 = vmax.xlane.f32.xlu0 %v961_v40 }
 0x305   :  { %v9165_v41 = vpop.f32.mrb[40].mxu0 }
 0x306   :  { %v9167_v46 = vpop.f32.mrb[41].mxu0 }
 0x307   :  { %v9169_v61 = vpop.f32.mrb[42].mxu0  ;;  %v964_v12 = vmax.f32 %v9165_v41, %v9167_v46 }
 0x308   :  { %v9173_v26 = vpop.f32.mrb[43].mxu0 }
 0x309   :  { %965 = vmax.xlane.f32.xlu1 %v964_v12  ;;  %v967_v14 = vmax.f32 %v9169_v61, %v9173_v26 }
 0x30b   :  { %968 = vmax.xlane.f32.xlu0 %v967_v14 }
 0x30d   :  { %v9177_v28 = vpop.f32.mrb[44].mxu0 }
 0x30e   :  { %v9179_v32 = vpop.f32.mrb[45].mxu0 }
 0x30f   :  { %v9181_v34 = vpop.f32.mrb[46].mxu0  ;;  %v970_v24 = vmax.f32 %v9177_v28, %v9179_v32 }
 0x310   :  { %v9185_v40 = vpop.f32.mrb[47].mxu0 }
 0x311   :  { %971 = vmax.xlane.f32.xlu1 %v970_v24  ;;  %v973_v10 = vmax.f32 %v9181_v34, %v9185_v40 }
 0x313   :  { %974 = vmax.xlane.f32.xlu0 %v973_v10 }
 0x315   :  { %v9189_v12 = vpop.f32.mrb[48].mxu0 }
 0x316   :  { %v9191_v63 = vpop.f32.mrb[49].mxu0 }
 0x317   :  { %v9193_v14 = vpop.f32.mrb[50].mxu0  ;;  %v976_v5 = vmax.f32 %v9189_v12, %v9191_v63 }
 0x318   :  { %v9197_v6 = vpop.f32.mrb[51].mxu0 }
 0x319   :  { %977 = vmax.xlane.f32.xlu1 %v976_v5  ;;  %v979_v56 = vmax.f32 %v9193_v14, %v9197_v6 }
 0x31b   :  { %980 = vmax.xlane.f32.xlu0 %v979_v56 }
 0x31d   :  { %v9201_v24 = vpop.f32.mrb[52].mxu0 }
 0x31e   :  { %v9203_v35 = vpop.f32.mrb[53].mxu0 }
 0x31f   :  { %v9205_v10 = vpop.f32.mrb[54].mxu0  ;;  %v982_v50 = vmax.f32 %v9201_v24, %v9203_v35 }
 0x320   :  { %v9209_v52 = vpop.f32.mrb[55].mxu0 }
 0x321   :  { %983 = vmax.xlane.f32.xlu1 %v982_v50  ;;  %v985_v43 = vmax.f32 %v9205_v10, %v9209_v52 }
 0x323   :  { %986 = vmax.xlane.f32.xlu0 %v985_v43 }
 0x325   :  { %v9213_v5 = vpop.f32.mrb[56].mxu0 }
 0x326   :  { %v9215_v44 = vpop.f32.mrb[57].mxu0 }
 0x327   :  { %v9217_v56 = vpop.f32.mrb[58].mxu0  ;;  %v988_v33 = vmax.f32 %v9213_v5, %v9215_v44 }
 0x328   :  { %v9221_v17 = vpop.f32.mrb[59].mxu0 }
 0x329   :  { %989 = vmax.xlane.f32.xlu1 %v988_v33  ;;  %v991_v47 = vmax.f32 %v9217_v56, %v9221_v17 }
 0x32b   :  { %992 = vmax.xlane.f32.xlu0 %v991_v47 }
 0x32d   :  { %v9225_v50 = vpop.f32.mrb[60].mxu0 }
 0x32e   :  { %v9227_v1 = vpop.f32.mrb[61].mxu0 }
 0x32f   :  { %v9229_v43 = vpop.f32.mrb[62].mxu0  ;;  %v994_v21 = vmax.f32 %v9225_v50, %v9227_v1 }
 0x330   :  { %v9233_v55 = vpop.f32.mrb[63].mxu0 }
 0x331   :  { %995 = vmax.xlane.f32.xlu1 %v994_v21  ;;  %v997_v13 = vmax.f32 %v9229_v43, %v9233_v55 }
 0x333   :  { %998 = vmax.xlane.f32.xlu0 %v997_v13 }
 0x335   :  { %v9237_v33 = vpop.f32.mrb[64].mxu0 }
 0x336   :  { %v9239_v18 = vpop.f32.mrb[65].mxu0 }
 0x337   :  { %v9241_v47 = vpop.f32.mrb[66].mxu0  ;;  %v1000_v7 = vmax.f32 %v9237_v33, %v9239_v18 }
 0x338   :  { %v9245_v8 = vpop.f32.mrb[67].mxu0 }
 0x339   :  { %1001 = vmax.xlane.f32.xlu1 %v1000_v7  ;;  %v1003_v20 = vmax.f32 %v9241_v47, %v9245_v8 }
 0x33b   :  { %1004 = vmax.xlane.f32.xlu0 %v1003_v20 }
 0x33d   :  { %v9249_v21 = vpop.f32.mrb[68].mxu0 }
 0x33e   :  { %v9251_v57 = vpop.f32.mrb[69].mxu0 }
 0x33f   :  { %v9253_v13 = vpop.f32.mrb[70].mxu0  ;;  %v1006_v3 = vmax.f32 %v9249_v21, %v9251_v57 }
 0x340   :  { %12415 = vst [vmem:[#allocation41_spill] sm:$0xff] %v9253_v13  ;;  %v9257_v53 = vpop.f32.mrb[71].mxu0 }
 0x341   :  { %12416 = vst [vmem:[#allocation42_spill] sm:$0xff] %v9257_v53  ;;  %1007 = vmax.xlane.f32.xlu1 %v1006_v3  ;;  %v1009_v51 = vmax.f32 %v9253_v13, %v9257_v53 }
 0x343   :  { %1010 = vmax.xlane.f32.xlu0 %v1009_v51 }
 0x345   :  { %v9261_v7 = vpop.f32.mrb[72].mxu0 }
 0x346   :  { %12417 = vst [vmem:[#allocation43_spill] sm:$0xff] %v9261_v7  ;;  %v9263_v19 = vpop.f32.mrb[73].mxu0 }
 0x347   :  { %12418 = vst [vmem:[#allocation44_spill] sm:$0xff] %v9263_v19  ;;  %v9265_v20 = vpop.f32.mrb[74].mxu0  ;;  %v1012_v59 = vmax.f32 %v9261_v7, %v9263_v19 }
 0x348   :  { %12419 = vst [vmem:[#allocation45_spill] sm:$0xff] %v9265_v20  ;;  %v9269_v27 = vpop.f32.mrb[75].mxu0 }
 0x349   :  { %12420 = vst [vmem:[#allocation46_spill] sm:$0xff] %v9269_v27  ;;  %1013 = vmax.xlane.f32.xlu1 %v1012_v59  ;;  %v1015_v25 = vmax.f32 %v9265_v20, %v9269_v27 }
 0x34b   :  { %1016 = vmax.xlane.f32.xlu0 %v1015_v25 }
 0x34d   :  { %v9273_v3 = vpop.f32.mrb[76].mxu0 }
 0x34e   :  { %12421 = vst [vmem:[#allocation47_spill] sm:$0xff] %v9273_v3  ;;  %v9275_v9 = vpop.f32.mrb[77].mxu0 }
 0x34f   :  { %12422 = vst [vmem:[#allocation48_spill] sm:$0xff] %v9275_v9  ;;  %v9277_v51 = vpop.f32.mrb[78].mxu0  ;;  %v1018_v54 = vmax.f32 %v9273_v3, %v9275_v9  ;;  %v8653_v3 = vld [vmem:[%s12205_s6 + $0x8] sm:$0xff] }
 0x350   :  { %12423 = vst [vmem:[#allocation49_spill] sm:$0xff] %v9277_v51  ;;  %v9281_v0 = vpop.f32.mrb[79].mxu0 }
 0x351   :  { %12424 = vst [vmem:[#allocation50_spill] sm:$0xff] %v9281_v0  ;;  %v1021_v49 = vmax.f32 %v9277_v51, %v9281_v0 }
 0x353   :  { %1022 = vmax.xlane.f32.xlu0 %v1021_v49  ;;  %v9300_v49 = vpop.f32.mrb[14].mxu1 }
 0x354   :  { %12429 = vst [vmem:[#allocation55_spill] sm:$0xff] %v9300_v49  ;;  %v9302_v51 = vpop.f32.mrb[15].mxu1 }
 0x355   :  { %v9285_v59 = vpop.f32.mrb[80].mxu0  ;;  %12430 = vst [vmem:[#allocation56_spill] sm:$0xff] %v9302_v51  ;;  %v9306_v7 = vpop.f32.mrb[16].mxu1 }
 0x356   :  { %12425 = vst [vmem:[#allocation51_spill] sm:$0xff] %v9285_v59  ;;  %v9287_v19 = vpop.f32.mrb[81].mxu0  ;;  %12431 = vst [vmem:[#allocation57_spill] sm:$0xff] %v9306_v7 }
 0x357   :  { %12426 = vst [vmem:[#allocation52_spill] sm:$0xff] %v9287_v19  ;;  %v1024_v25 = vmax.f32 %v9285_v59, %v9287_v19  ;;  %v9291_v27 = vpop.f32.mrb[82].mxu0 }
 0x358   :  { %12427 = vst [vmem:[#allocation53_spill] sm:$0xff] %v9291_v27  ;;  %v9293_v20 = vpop.f32.mrb[83].mxu0 }
 0x359   :  { %12428 = vst [vmem:[#allocation54_spill] sm:$0xff] %v9293_v20  ;;  %1025 = vmax.xlane.f32.xlu0 %v1024_v25  ;;  %v1027_v9 = vmax.f32 %v9291_v27, %v9293_v20  ;;  %v50_v20 = vld [vmem:[%s12205_s6 + $0x40] sm:$0xff]  ;;  %v9311_v27 = vpop.f32.mrb[17].mxu1 }
 0x35a   :  { %301 = vperm.xlu1 %7533, %v8653_v3   ;;  %12432 = vst [vmem:[#allocation58_spill] sm:$0xff] %v9311_v27  ;;  %v9315_v53 = vpop.f32.mrb[18].mxu1 }
 0x35b   :  { %12433 = vst [vmem:[#allocation59_spill] sm:$0xff] %v9315_v53 }
 0x35d   :  { %1028 = vmax.xlane.f32.xlu0 %v1027_v9 }
 0x36e   :  { %v936_v0 = vpop.xlane.xlu0 %935 }
 0x36f   :  { %v1030_v19 = vsub.f32 %v9105_v42, %v936_v0  ;;  %v1031_v59 = vsub.f32 %v9107_v30, %v936_v0  ;;  %v9317_v42 = vpop.f32.mrb[19].mxu1 }
 0x370   :  { %v939_v25 = vpop.xlane.xlu1 %938  ;;  %12434 = vst [vmem:[#allocation60_spill] sm:$0xff] %v9317_v42  ;;  %v9319_v7 = vpop.f32.mrb[20].mxu1 }
 0x371   :  { %v1094_v3 = vmul.f32 1.442695, %v1030_v19  ;;  %v1032_v9 = vsub.f32 %v9109_v45, %v939_v25  ;;  %v1033_v49 = vsub.f32 %v9113_v48, %v939_v25  ;;  %v1096_v51 = vmul.f32 1.442695, %v1031_v59  ;;  %12435 = vst [vmem:[#allocation61_spill] sm:$0xff] %v9319_v7  ;;  %v9321_v13 = vpop.f32.mrb[21].mxu1 }
 0x372   :  { %12436 = vst [vmem:[#allocation62_spill] sm:$0xff] %v9321_v13 }
 0x373   :  { %v1098_v0 = vmul.f32 1.442695, %v1032_v9  ;;  %v1100_v30 = vmul.f32 1.442695, %v1033_v49  ;;  %334 = vperm.xlu0 %7534, %v50_v20   ;;  %7573 = vpow2.f32 %v1094_v3 }
 0x375   :  { %7575 = vpow2.f32 %v1098_v0 }
 0x376   :  { %7577 = vpow2.f32 %v1100_v30  ;;  %v942_v19 = vpop.xlane.xlu1 %941 }
 0x377   :  { %7579 = vpow2.f32 %v1096_v51  ;;  %v1034_v45 = vsub.f32 %v9117_v62, %v942_v19  ;;  %v1035_v48 = vsub.f32 %v9119_v11, %v942_v19 }
 0x378   :  { %v945_v25 = vpop.xlane.xlu0 %944 }
 0x379   :  { %v1102_v59 = vmul.f32 1.442695, %v1034_v45  ;;  %v1036_v53 = vsub.f32 %v9121_v58, %v945_v25  ;;  %v1037_v49 = vsub.f32 %v9125_v60, %v945_v25  ;;  %v1104_v20 = vmul.f32 1.442695, %v1035_v48 }
 0x37b   :  { %v1106_v9 = vmul.f32 1.442695, %v1036_v53  ;;  %v1108_v42 = vmul.f32 1.442695, %v1037_v49  ;;  %7581 = vpow2.f32 %v1102_v59 }
 0x37d   :  { %7583 = vpow2.f32 %v1106_v9  ;;  %v7574_v3 = vpop.eup %7573 }
 0x37e   :  { %7585 = vpow2.f32 %v1108_v42  ;;  %v948_v0 = vpop.xlane.xlu1 %947  ;;  %1019 = vmax.xlane.f32.xlu1 %v1018_v54 }
 0x37f   :  { %v7576_v51 = vpop.eup %7575  ;;  %7587 = vpow2.f32 %v1104_v20  ;;  %v1038_v62 = vsub.f32 %v9129_v2, %v948_v0  ;;  %v1039_v11 = vsub.f32 %v9131_v4, %v948_v0 }
 0x380   :  { %v7578_v30 = vpop.eup %7577  ;;  %v951_v19 = vpop.xlane.xlu0 %950  ;;  %v1222_v58 = vpack.c.bf16 %v7576_v51, %v7574_v3 }
 0x381   :  { %v7580_v45 = vpop.eup %7579  ;;  %v1110_v60 = vmul.f32 1.442695, %v1038_v62  ;;  %v1040_v53 = vsub.f32 %v9133_v15, %v951_v19  ;;  %v1041_v48 = vsub.f32 %v9137_v16, %v951_v19  ;;  %v1112_v59 = vmul.f32 1.442695, %v1039_v11 }
 0x382   :  { %v1223_v25 = vpack.c.bf16 %v7578_v30, %v7580_v45 }
 0x383   :  { %v1114_v42 = vmul.f32 1.442695, %v1040_v53  ;;  %v1116_v49 = vmul.f32 1.442695, %v1041_v48  ;;  %7589 = vpow2.f32 %v1110_v60 }
 0x384   :  { %1256 = vmatprep.subr.bf16.mxu1 %v1223_v25 }
 0x385   :  { %7591 = vpow2.f32 %v1114_v42  ;;  %1257 = vmatpush1.bf16.xpose.msra.mxu1 %v1222_v58  ;;  %v7582_v54 = vpop.eup %7581 }
 0x386   :  { %7593 = vpow2.f32 %v1116_v49  ;;  %v954_v2 = vpop.xlane.xlu1 %953 }
 0x387   :  { %v7584_v4 = vpop.eup %7583  ;;  %7595 = vpow2.f32 %v1112_v59  ;;  %v1042_v20 = vsub.f32 %v9141_v31, %v954_v2  ;;  %v1043_v9 = vsub.f32 %v9143_v22, %v954_v2  ;;  %v47_v31 = vld [vmem:[%s12205_s6 + $0x28] sm:$0xff] }
 0x388   :  { %v7586_v15 = vpop.eup %7585  ;;  %v957_v3 = vpop.xlane.xlu0 %956  ;;  %v1224_v16 = vpack.c.bf16 %v7584_v4, %v7582_v54 }
 0x389   :  { %v7588_v0 = vpop.eup %7587  ;;  %v1118_v51 = vmul.f32 1.442695, %v1042_v20  ;;  %v1044_v62 = vsub.f32 %v9145_v39, %v957_v3  ;;  %v1045_v11 = vsub.f32 %v9149_v23, %v957_v3  ;;  %v1120_v19 = vmul.f32 1.442695, %v1043_v9 }
 0x38a   :  { %v1225_v30 = vpack.c.bf16 %v7586_v15, %v7588_v0 }
 0x38b   :  { %v1122_v58 = vmul.f32 1.442695, %v1044_v62  ;;  %v1124_v45 = vmul.f32 1.442695, %v1045_v11  ;;  %7597 = vpow2.f32 %v1118_v51 }
 0x38c   :  { %1258 = vmatprep.subr.bf16.mxu1 %v1225_v30 }
 0x38d   :  { %7599 = vpow2.f32 %v1122_v58  ;;  %1259 = vmatpush1.bf16.xpose.msra.mxu1 %v1224_v16  ;;  %v7590_v22 = vpop.eup %7589 }
 0x38e   :  { %7601 = vpow2.f32 %v1124_v45  ;;  %v960_v60 = vpop.xlane.xlu1 %959 }
 0x38f   :  { %v7592_v53 = vpop.eup %7591  ;;  %7603 = vpow2.f32 %v1120_v19  ;;  %v1046_v39 = vsub.f32 %v9153_v36, %v960_v60  ;;  %v1047_v23 = vsub.f32 %v9155_v37, %v960_v60  ;;  %319 = vperm.xlu1 %7533, %v47_v31  }
 0x390   :  { %v7594_v48 = vpop.eup %7593  ;;  %v963_v25 = vpop.xlane.xlu0 %962  ;;  %v1226_v59 = vpack.c.bf16 %v7592_v53, %v7590_v22 }
 0x391   :  { %v7596_v42 = vpop.eup %7595  ;;  %v1126_v49 = vmul.f32 1.442695, %v1046_v39  ;;  %v1048_v54 = vsub.f32 %v9157_v38, %v963_v25  ;;  %v1049_v2 = vsub.f32 %v9161_v29, %v963_v25  ;;  %v1128_v20 = vmul.f32 1.442695, %v1047_v23 }
 0x392   :  { %v1227_v4 = vpack.c.bf16 %v7594_v48, %v7596_v42 }
 0x393   :  { %v1130_v9 = vmul.f32 1.442695, %v1048_v54  ;;  %v1132_v15 = vmul.f32 1.442695, %v1049_v2  ;;  %7605 = vpow2.f32 %v1126_v49 }
 0x394   :  { %1260 = vmatprep.subr.bf16.mxu1 %v1227_v4 }
 0x395   :  { %7607 = vpow2.f32 %v1130_v9  ;;  %1261 = vmatpush1.bf16.xpose.msra.mxu1 %v1226_v59  ;;  %v7598_v36 = vpop.eup %7597 }
 0x396   :  { %7609 = vpow2.f32 %v1132_v15  ;;  %v966_v37 = vpop.xlane.xlu1 %965 }
 0x397   :  { %v7600_v3 = vpop.eup %7599  ;;  %7611 = vpow2.f32 %v1128_v20  ;;  %v1050_v16 = vsub.f32 %v9165_v41, %v966_v37  ;;  %v1051_v0 = vsub.f32 %v9167_v46, %v966_v37 }
 0x398   :  { %v7602_v38 = vpop.eup %7601  ;;  %v969_v51 = vpop.xlane.xlu0 %968  ;;  %v1228_v29 = vpack.c.bf16 %v7600_v3, %v7598_v36 }
 0x399   :  { %v7604_v62 = vpop.eup %7603  ;;  %v1134_v11 = vmul.f32 1.442695, %v1050_v16  ;;  %v1052_v30 = vsub.f32 %v9169_v61, %v969_v51  ;;  %v1053_v19 = vsub.f32 %v9173_v26, %v969_v51  ;;  %v1136_v45 = vmul.f32 1.442695, %v1051_v0 }
 0x39a   :  { %v1229_v58 = vpack.c.bf16 %v7602_v38, %v7604_v62 }
 0x39b   :  { %v1138_v31 = vmul.f32 1.442695, %v1052_v30  ;;  %v1140_v22 = vmul.f32 1.442695, %v1053_v19  ;;  %7613 = vpow2.f32 %v1134_v11 }
 0x39c   :  { %1262 = vmatprep.subr.bf16.mxu1 %v1229_v58 }
 0x39d   :  { %7615 = vpow2.f32 %v1138_v31  ;;  %1263 = vmatpush1.bf16.xpose.msra.mxu1 %v1228_v29  ;;  %v7606_v41 = vpop.eup %7605 }
 0x39e   :  { %7617 = vpow2.f32 %v1140_v22  ;;  %v972_v46 = vpop.xlane.xlu1 %971 }
 0x39f   :  { %v7608_v60 = vpop.eup %7607  ;;  %7619 = vpow2.f32 %v1136_v45  ;;  %v1054_v53 = vsub.f32 %v9177_v28, %v972_v46  ;;  %v1055_v39 = vsub.f32 %v9179_v32, %v972_v46 }
 0x3a0   :  { %v7610_v61 = vpop.eup %7609  ;;  %v975_v23 = vpop.xlane.xlu0 %974  ;;  %v1230_v26 = vpack.c.bf16 %v7608_v60, %v7606_v41 }
 0x3a1   :  { %v7612_v48 = vpop.eup %7611  ;;  %v1142_v25 = vmul.f32 1.442695, %v1054_v53  ;;  %v1056_v59 = vsub.f32 %v9181_v34, %v975_v23  ;;  %v1057_v42 = vsub.f32 %v9185_v40, %v975_v23  ;;  %v1144_v54 = vmul.f32 1.442695, %v1055_v39 }
 0x3a2   :  { %v1231_v49 = vpack.c.bf16 %v7610_v61, %v7612_v48 }
 0x3a3   :  { %v1146_v2 = vmul.f32 1.442695, %v1056_v59  ;;  %v1148_v4 = vmul.f32 1.442695, %v1057_v42  ;;  %7621 = vpow2.f32 %v1142_v25 }
 0x3a4   :  { %1264 = vmatprep.subr.bf16.mxu1 %v1231_v49 }
 0x3a5   :  { %7623 = vpow2.f32 %v1146_v2  ;;  %1265 = vmatpush1.bf16.xpose.msra.mxu1 %v1230_v26  ;;  %v7614_v28 = vpop.eup %7613 }
 0x3a6   :  { %7625 = vpow2.f32 %v1148_v4  ;;  %v978_v32 = vpop.xlane.xlu1 %977 }
 0x3a7   :  { %v7616_v20 = vpop.eup %7615  ;;  %7627 = vpow2.f32 %v1144_v54  ;;  %v1058_v9 = vsub.f32 %v9189_v12, %v978_v32  ;;  %v1059_v15 = vsub.f32 %v9191_v63, %v978_v32 }
 0x3a8   :  { %v7618_v34 = vpop.eup %7617  ;;  %v981_v36 = vpop.xlane.xlu0 %980  ;;  %v1232_v40 = vpack.c.bf16 %v7616_v20, %v7614_v28 }
 0x3a9   :  { %v7620_v37 = vpop.eup %7619  ;;  %v1150_v3 = vmul.f32 1.442695, %v1058_v9  ;;  %v1060_v16 = vsub.f32 %v9193_v14, %v981_v36  ;;  %v1061_v0 = vsub.f32 %v9197_v6, %v981_v36  ;;  %v1152_v51 = vmul.f32 1.442695, %v1059_v15 }
 0x3aa   :  { %v1233_v38 = vpack.c.bf16 %v7618_v34, %v7620_v37 }
 0x3ab   :  { %v1154_v29 = vmul.f32 1.442695, %v1060_v16  ;;  %v1156_v62 = vmul.f32 1.442695, %v1061_v0  ;;  %7629 = vpow2.f32 %v1150_v3 }
 0x3ac   :  { %1266 = vmatprep.subr.bf16.mxu1 %v1233_v38 }
 0x3ad   :  { %7631 = vpow2.f32 %v1154_v29  ;;  %1267 = vmatpush1.bf16.xpose.msra.mxu1 %v1232_v40  ;;  %v7622_v12 = vpop.eup %7621 }
 0x3ae   :  { %7633 = vpow2.f32 %v1156_v62  ;;  %v984_v63 = vpop.xlane.xlu1 %983 }
 0x3af   :  { %v7624_v11 = vpop.eup %7623  ;;  %7635 = vpow2.f32 %v1152_v51  ;;  %v1062_v30 = vsub.f32 %v9201_v24, %v984_v63  ;;  %v1063_v19 = vsub.f32 %v9203_v35, %v984_v63 }
 0x3b0   :  { %v7626_v14 = vpop.eup %7625  ;;  %v987_v58 = vpop.xlane.xlu0 %986  ;;  %v1234_v6 = vpack.c.bf16 %v7624_v11, %v7622_v12 }
 0x3b1   :  { %v7628_v45 = vpop.eup %7627  ;;  %v1158_v31 = vmul.f32 1.442695, %v1062_v30  ;;  %v1064_v22 = vsub.f32 %v9205_v10, %v987_v58  ;;  %v1065_v41 = vsub.f32 %v9209_v52, %v987_v58  ;;  %v1160_v60 = vmul.f32 1.442695, %v1063_v19 }
 0x3b2   :  { %v1235_v46 = vpack.c.bf16 %v7626_v14, %v7628_v45 }
 0x3b3   :  { %v1162_v53 = vmul.f32 1.442695, %v1064_v22  ;;  %v1164_v39 = vmul.f32 1.442695, %v1065_v41  ;;  %7637 = vpow2.f32 %v1158_v31 }
 0x3b4   :  { %1268 = vmatprep.subr.bf16.mxu1 %v1235_v46 }
 0x3b5   :  { %7639 = vpow2.f32 %v1162_v53  ;;  %1269 = vmatpush1.bf16.xpose.msra.mxu1 %v1234_v6  ;;  %v7630_v24 = vpop.eup %7629 }
 0x3b6   :  { %7641 = vpow2.f32 %v1164_v39  ;;  %v990_v35 = vpop.xlane.xlu1 %989 }
 0x3b7   :  { %v7632_v61 = vpop.eup %7631  ;;  %7643 = vpow2.f32 %v1160_v60  ;;  %v1066_v23 = vsub.f32 %v9213_v5, %v990_v35  ;;  %v1067_v26 = vsub.f32 %v9215_v44, %v990_v35 }
 0x3b8   :  { %v7634_v10 = vpop.eup %7633  ;;  %v993_v48 = vpop.xlane.xlu0 %992  ;;  %v1236_v52 = vpack.c.bf16 %v7632_v61, %v7630_v24  ;;  %v12437_v24 = vld [vmem:[#allocation41_spill] sm:$0xff]  ;;  %v12438_v61 = vld [vmem:[#allocation42_spill] sm:$0xff] }
 0x3b9   :  { %v7636_v25 = vpop.eup %7635  ;;  %v1166_v59 = vmul.f32 1.442695, %v1066_v23  ;;  %v1068_v42 = vsub.f32 %v9217_v56, %v993_v48  ;;  %v1069_v49 = vsub.f32 %v9221_v17, %v993_v48  ;;  %v1168_v2 = vmul.f32 1.442695, %v1067_v26 }
 0x3ba   :  { %v1237_v54 = vpack.c.bf16 %v7634_v10, %v7636_v25  ;;  %v12439_v25 = vld [vmem:[#allocation43_spill] sm:$0xff] }
 0x3bb   :  { %v1170_v4 = vmul.f32 1.442695, %v1068_v42  ;;  %v1172_v28 = vmul.f32 1.442695, %v1069_v49  ;;  %7645 = vpow2.f32 %v1166_v59  ;;  %v12440_v42 = vld [vmem:[#allocation44_spill] sm:$0xff] }
 0x3bc   :  { %1270 = vmatprep.subr.bf16.mxu1 %v1237_v54 }
 0x3bd   :  { %7647 = vpow2.f32 %v1170_v4  ;;  %1271 = vmatpush1.bf16.xpose.msra.mxu1 %v1236_v52  ;;  %v7638_v5 = vpop.eup %7637 }
 0x3be   :  { %7649 = vpow2.f32 %v1172_v28  ;;  %v996_v44 = vpop.xlane.xlu1 %995 }
 0x3bf   :  { %v7640_v32 = vpop.eup %7639  ;;  %7651 = vpow2.f32 %v1168_v2  ;;  %v1070_v20 = vsub.f32 %v9225_v50, %v996_v44  ;;  %v1071_v9 = vsub.f32 %v9227_v1, %v996_v44 }
 0x3c0   :  { %v7642_v56 = vpop.eup %7641  ;;  %v999_v15 = vpop.xlane.xlu0 %998  ;;  %v1238_v17 = vpack.c.bf16 %v7640_v32, %v7638_v5  ;;  %v12441_v32 = vld [vmem:[#allocation45_spill] sm:$0xff] }
 0x3c1   :  { %v7644_v34 = vpop.eup %7643  ;;  %v1174_v36 = vmul.f32 1.442695, %v1070_v20  ;;  %v1072_v40 = vsub.f32 %v9229_v43, %v999_v15  ;;  %v1073_v37 = vsub.f32 %v9233_v55, %v999_v15  ;;  %v1176_v16 = vmul.f32 1.442695, %v1071_v9  ;;  %v12442_v9 = vld [vmem:[#allocation46_spill] sm:$0xff] }
 0x3c2   :  { %v1239_v3 = vpack.c.bf16 %v7642_v56, %v7644_v34 }
 0x3c3   :  { %v1178_v0 = vmul.f32 1.442695, %v1072_v40  ;;  %v1180_v38 = vmul.f32 1.442695, %v1073_v37  ;;  %7653 = vpow2.f32 %v1174_v36  ;;  %v12443_v40 = vld [vmem:[#allocation12_spill] sm:$0xff] }
 0x3c4   :  { %1272 = vmatprep.subr.bf16.mxu1 %v1239_v3  ;;  %v12444_v3 = vld [vmem:[#allocation14_spill] sm:$0xff] }
 0x3c5   :  { %7655 = vpow2.f32 %v1178_v0  ;;  %1273 = vmatpush1.bf16.xpose.msra.mxu1 %v1238_v17  ;;  %v7646_v50 = vpop.eup %7645  ;;  %v12445_v0 = vld [vmem:[#allocation21_spill] sm:$0xff] }
 0x3c6   :  { %7657 = vpow2.f32 %v1180_v38  ;;  %v1002_v1 = vpop.xlane.xlu1 %1001 }
 0x3c7   :  { %v7648_v51 = vpop.eup %7647  ;;  %7659 = vpow2.f32 %v1176_v16  ;;  %v1074_v29 = vsub.f32 %v9237_v33, %v1002_v1  ;;  %v1075_v62 = vsub.f32 %v9239_v18, %v1002_v1 }
 0x3c8   :  { %v7650_v43 = vpop.eup %7649  ;;  %v1005_v12 = vpop.xlane.xlu0 %1004  ;;  %v1240_v55 = vpack.c.bf16 %v7648_v51, %v7646_v50  ;;  %v12447_v50 = vld [vmem:[#allocation23_spill] sm:$0xff] }
 0x3c9   :  { %v7652_v63 = vpop.eup %7651  ;;  %v1182_v11 = vmul.f32 1.442695, %v1074_v29  ;;  %v1076_v30 = vsub.f32 %v9241_v47, %v1005_v12  ;;  %v1077_v19 = vsub.f32 %v9245_v8, %v1005_v12  ;;  %v1184_v58 = vmul.f32 1.442695, %v1075_v62 }
 0x3ca   :  { %v1241_v14 = vpack.c.bf16 %v7650_v43, %v7652_v63 }
 0x3cb   :  { %v1186_v6 = vmul.f32 1.442695, %v1076_v30  ;;  %v1188_v45 = vmul.f32 1.442695, %v1077_v19  ;;  %7661 = vpow2.f32 %v1182_v11 }
 0x3cc   :  { %1274 = vmatprep.subr.bf16.mxu1 %v1241_v14 }
 0x3cd   :  { %7663 = vpow2.f32 %v1186_v6  ;;  %1275 = vmatpush1.bf16.xpose.msra.mxu1 %v1240_v55  ;;  %v7654_v33 = vpop.eup %7653 }
 0x3ce   :  { %7665 = vpow2.f32 %v1188_v45  ;;  %v1008_v18 = vpop.xlane.xlu1 %1007  ;;  %v12449_v45 = vld [vmem:[#allocation51_spill] sm:$0xff] }
 0x3cf   :  { %v7656_v31 = vpop.eup %7655  ;;  %7667 = vpow2.f32 %v1184_v58  ;;  %v1078_v22 = vsub.f32 %v9249_v21, %v1008_v18  ;;  %v1079_v41 = vsub.f32 %v9251_v57, %v1008_v18  ;;  %v12450_v18 = vld [vmem:[#allocation52_spill] sm:$0xff] }
 0x3d0   :  { %v7658_v47 = vpop.eup %7657  ;;  %v1011_v46 = vpop.xlane.xlu0 %1010  ;;  %v1242_v8 = vpack.c.bf16 %v7656_v31, %v7654_v33 }
 0x3d1   :  { %v7660_v60 = vpop.eup %7659  ;;  %v1190_v53 = vmul.f32 1.442695, %v1078_v22  ;;  %v1192_v39 = vmul.f32 1.442695, %v1079_v41  ;;  %v1080_v35 = vsub.f32 %v12437_v24, %v1011_v46  ;;  %v1081_v23 = vsub.f32 %v12438_v61, %v1011_v46  ;;  %v12452_v24 = vld [vmem:[#allocation54_spill] sm:$0xff] }
 0x3d2   :  { %v1243_v26 = vpack.c.bf16 %v7658_v47, %v7660_v60 }
 0x3d3   :  { %7669 = vpow2.f32 %v1190_v53  ;;  %v1194_v10 = vmul.f32 1.442695, %v1080_v35  ;;  %v1196_v48 = vmul.f32 1.442695, %v1081_v23  ;;  %v12451_v53 = vld [vmem:[#allocation53_spill] sm:$0xff] }
 0x3d4   :  { %7671 = vpow2.f32 %v1192_v39  ;;  %1276 = vmatprep.subr.bf16.mxu1 %v1243_v26 }
 0x3d5   :  { %7673 = vpow2.f32 %v1194_v10  ;;  %1277 = vmatpush1.bf16.xpose.msra.mxu1 %v1242_v8  ;;  %v7662_v21 = vpop.eup %7661  ;;  %v12454_v10 = vld [vmem:[#allocation38_spill] sm:$0xff] }
 0x3d6   :  { %7675 = vpow2.f32 %v1196_v48  ;;  %v1014_v57 = vpop.xlane.xlu1 %1013 }
 0x3d7   :  { %v7664_v52 = vpop.eup %7663  ;;  %v1082_v59 = vsub.f32 %v12439_v25, %v1014_v57  ;;  %v1083_v49 = vsub.f32 %v12440_v42, %v1014_v57 }
 0x3d8   :  { %v7666_v54 = vpop.eup %7665  ;;  %v1017_v2 = vpop.xlane.xlu0 %1016  ;;  %v1244_v4 = vpack.c.bf16 %v7664_v52, %v7662_v21  ;;  %v12227_v21 = vmov 1.0  }
 0x3d9   :  { %v7668_v28 = vpop.eup %7667  ;;  %v1198_v5 = vmul.f32 1.442695, %v1082_v59  ;;  %v1200_v44 = vmul.f32 1.442695, %v1083_v49  ;;  %v1084_v20 = vsub.f32 %v12441_v32, %v1017_v2  ;;  %v1085_v56 = vsub.f32 %v12442_v9, %v1017_v2  ;;  %v12455_v2 = vld [vmem:[#allocation49_spill] sm:$0xff]  ;;  %v12457_v9 = vld [vmem:[#allocation47_spill] sm:$0xff] }
 0x3da   :  { %v302_v15 = vpop.permute.xlu1 %301  ;;  %v1245_v17 = vpack.c.bf16 %v7666_v54, %v7668_v28  ;;  %v12456_v28 = vld [vmem:[#allocation50_spill] sm:$0xff] }
 0x3db   :  { %7677 = vpow2.f32 %v1198_v5  ;;  %v1202_v34 = vmul.f32 1.442695, %v1084_v20  ;;  %v1204_v36 = vmul.f32 1.442695, %v1085_v56  ;;  %v440_v37 = vadd.f32 %v12443_v40, %v302_v15 }
 0x3dc   :  { %7679 = vpow2.f32 %v1200_v44  ;;  %v442_v16 = vadd.f32 %v12444_v3, %v302_v15  ;;  %v9381_v38 = vadd.f32 %v12445_v0, %v302_v15  ;;  %v9384_v1 = vadd.f32 %v12447_v50, %v302_v15  ;;  %1278 = vmatprep.subr.bf16.mxu1 %v1245_v17  ;;  %v12458_v15 = vld [vmem:[#allocation48_spill] sm:$0xff] }
 0x3dd   :  { %v7670_v51 = vpop.eup %7669  ;;  %7681 = vpow2.f32 %v1202_v34  ;;  %v591_v29 = vmul.f32 0.35355338, %v440_v37  ;;  %1279 = vmatpush1.bf16.xpose.msra.mxu1 %v1244_v4 }
 0x3de   :  { %12446 = vst [vmem:[#allocation41_spill] sm:$0xff] %v9381_v38  ;;  %12448 = vst [vmem:[#allocation42_spill] sm:$0xff] %v9384_v1  ;;  %v7672_v62 = vpop.eup %7671  ;;  %7683 = vpow2.f32 %v1204_v36  ;;  %v592_v43 = vmul.f32 0.35355338, %v442_v16 }
 0x3df   :  { %v7674_v12 = vpop.eup %7673  ;;  %1313 = vxpose.xlu1.b32.start.end [1/1] (short) %v591_v29, 128  ;;  %v12460_v29 = vld [vmem:[#allocation30_spill] sm:$0xff] }
 0x3e0   :  { %v7676_v55 = vpop.eup %7675  ;;  %1345 = vxpose.xlu0.b32.start.end [1/1] (short) %v592_v43, 128  ;;  %v1246_v63 = vpack.c.bf16 %v7674_v12, %v7670_v51  ;;  %v1023_v30 = vpop.xlane.xlu0 %1022  ;;  %v12461_v43 = vld [vmem:[#allocation28_spill] sm:$0xff] }
 0x3e1   :  { %v1247_v11 = vpack.c.bf16 %v7676_v55, %v7672_v62  ;;  %v1088_v4 = vsub.f32 %v12455_v2, %v1023_v30  ;;  %v1089_v5 = vsub.f32 %v12456_v28, %v1023_v30 }
 0x3e3   :  { %1280 = vmatprep.subr.bf16.mxu1 %v1247_v11  ;;  %v1210_v44 = vmul.f32 1.442695, %v1088_v4  ;;  %v1212_v32 = vmul.f32 1.442695, %v1089_v5 }
 0x3e5   :  { %v7678_v19 = vpop.eup %7677  ;;  %1281 = vmatpush1.bf16.xpose.msra.mxu1 %v1246_v63  ;;  %v12462_v63 = vld [vmem:[#allocation37_spill] sm:$0xff] }
 0x3e6   :  { %v7680_v14 = vpop.eup %7679  ;;  %v1026_v58 = vpop.xlane.xlu0 %1025 }
 0x3e7   :  { %v7682_v6 = vpop.eup %7681  ;;  %v1090_v33 = vsub.f32 %v12449_v45, %v1026_v58  ;;  %v1091_v31 = vsub.f32 %v12450_v18, %v1026_v58  ;;  %v12463_v58 = vmov 0  }
 0x3e8   :  { %v7684_v22 = vpop.eup %7683  ;;  %v1248_v41 = vpack.c.bf16 %v7682_v6, %v7678_v19  ;;  %v9411_v6 = vpop.f32.mrb[22].mxu1 }
 0x3e9   :  { %v1214_v47 = vmul.f32 1.442695, %v1090_v33  ;;  %v1249_v46 = vpack.c.bf16 %v7684_v22, %v7680_v14  ;;  %v1216_v8 = vmul.f32 1.442695, %v1091_v31  ;;  %12464 = vst [vmem:[#allocation45_spill] sm:$0xff] %v9411_v6  ;;  %v9413_v33 = vpop.f32.mrb[23].mxu1 }
 0x3ea   :  { %v1029_v60 = vpop.xlane.xlu0 %1028  ;;  %12465 = vst [vmem:[#allocation46_spill] sm:$0xff] %v9413_v33  ;;  %v9415_v18 = vpop.f32.mrb[24].mxu1 }
 0x3eb   :  { %1282 = vmatprep.subr.bf16.mxu1 %v1249_v46  ;;  %v1092_v39 = vsub.f32 %v12451_v53, %v1029_v60  ;;  %v1093_v35 = vsub.f32 %v12452_v24, %v1029_v60  ;;  %7685 = vpow2.f32 %v1214_v47  ;;  %12466 = vst [vmem:[#allocation12_spill] sm:$0xff] %v9415_v18  ;;  %v9417_v31 = vpop.f32.mrb[25].mxu1 }
 0x3ec   :  { %7687 = vpow2.f32 %v1216_v8  ;;  %12467 = vst [vmem:[#allocation14_spill] sm:$0xff] %v9417_v31  ;;  %v9419_v22 = vpop.f32.mrb[26].mxu1 }
 0x3ed   :  { %v1218_v61 = vmul.f32 1.442695, %v1092_v39  ;;  %v1220_v23 = vmul.f32 1.442695, %v1093_v35  ;;  %1283 = vmatpush1.bf16.xpose.msra.mxu1 %v1248_v41  ;;  %12468 = vst [vmem:[#allocation21_spill] sm:$0xff] %v9419_v22  ;;  %v9421_v47 = vpop.f32.mrb[27].mxu1 }
 0x3ee   :  { %12469 = vst [vmem:[#allocation23_spill] sm:$0xff] %v9421_v47 }
 0x3ef   :  { %7689 = vpow2.f32 %v1218_v61 }
 0x3f0   :  { %7691 = vpow2.f32 %v1220_v23 }
 0x3f1   :  { %7693 = vpow2.f32 %v1210_v44 }
 0x3f2   :  { %v9390_v26 = vpop.permute.xlu0 %334  ;;  %7695 = vpow2.f32 %v1212_v32 }
 0x3f3   :  { %12453 = vst [vmem:[#allocation43_spill] sm:$0xff] %v9390_v26  ;;  %v478_v48 = vadd.f32 %v12454_v10, %v9390_v26  ;;  %v476_v11 = vadd.f32 %v12462_v63, %v9390_v26 }
 0x3f5   :  { %v1255_v57 = vpack.c.bf16 %v12227_v21, %v478_v48  ;;  %v7686_v52 = vpop.eup %7685  ;;  %v1254_v19 = vpack.c.bf16 %v12227_v21, %v476_v11 }
 0x3f6   :  { %v7688_v25 = vpop.eup %7687 }
 0x3f7   :  { %1288 = vmatprep.mubr.bf16.mxu1 %v1255_v57 }
 0x3f9   :  { %v7690_v59 = vpop.eup %7689 }
 0x3fa   :  { %v7692_v42 = vpop.eup %7691  ;;  %v1252_v49 = vpack.c.bf16 %v7690_v59, %v7686_v52 }
 0x3fb   :  { %v1253_v54 = vpack.c.bf16 %v7692_v42, %v7688_v25  ;;  %v7694_v40 = vpop.eup %7693 }
 0x3fc   :  { %v7696_v37 = vpop.eup %7695 }
 0x40b   :  { %v1020_v20 = vpop.xlane.xlu1 %1019 }
 0x40c   :  { %v1086_v56 = vsub.f32 %v12457_v9, %v1020_v20  ;;  %v1087_v17 = vsub.f32 %v12458_v15, %v1020_v20 }
 0x40e   :  { %v1206_v34 = vmul.f32 1.442695, %v1086_v56  ;;  %v1208_v36 = vmul.f32 1.442695, %v1087_v17 }
 0x40f   :  { %v9399_v51 = vpop.permute.xlu1 %319 }
 0x410   :  { %7697 = vpow2.f32 %v1206_v34  ;;  %12459 = vst [vmem:[#allocation44_spill] sm:$0xff] %v9399_v51  ;;  %v462_v62 = vadd.f32 %v12460_v29, %v9399_v51  ;;  %v460_v12 = vadd.f32 %v12461_v43, %v9399_v51 }
 0x411   :  { %7699 = vpow2.f32 %v1208_v36 }
 0x412   :  { %v1394_v55 = vpack.c.bf16 %v462_v62, %v462_v62  ;;  %v1393_v30 = vpack.c.bf16 %v460_v12, %v460_v12 }
 0x414   :  { %v1444_v14 = vsel %vm734_vm1, %v1393_v30, 0 }
 0x41a   :  { %v7698_v3 = vpop.eup %7697 }
 0x41b   :  { %v7700_v16 = vpop.eup %7699  ;;  %v1250_v0 = vpack.c.bf16 %v7694_v40, %v7698_v3 }
 0x41c   :  { %v1251_v50 = vpack.c.bf16 %v7696_v37, %v7700_v16 }
 0x41e   :  { %1284 = vmatprep.subr.bf16.mxu1 %v1251_v50 }
 0x41f   :  { %1285 = vmatpush1.bf16.xpose.msra.mxu1 %v1250_v0 }
 0x420   :  { %1286 = vmatprep.subr.bf16.mxu1 %v1253_v54 }
 0x427   :  { %1287 = vmatpush1.bf16.xpose.msra.mxu1 %v1252_v49 }
 0x428   :  { %7358 = vmatprep.subr.msk.bf16.mxu1 %vm734_vm1, %v1394_v55 }
 0x42e   :  { %1289 = vmatmul.mubr.bf16.vlgmr.msra.gmra.mrb[28].mxu1 %v1254_v19 }
 0x42f   :  { %1450 = vmatpush1.bf16.msra.mxu1 %v1444_v14  ;;  %1481 = vmatprep.mubr.bf16.mxu1 %v12463_v58 }
 0x45f   :  { %v1329_v45 = vpop.trf.xlu1 }
 0x460   :  { %v1361_v57 = vpop.trf.xlu0 }
 0x463   :  { %v1330_v41 = vpop.trf.xlu1 }
 0x464   :  { %v1377_v46 = vpack.c.bf16 %v1330_v41, %v1329_v45  ;;  %v1362_v59 = vpop.trf.xlu0 }
 0x465   :  { %v1385_v34 = vpack.c.bf16 %v1362_v59, %v1361_v57 }
 0x466   :  { %7359 = vmatmul.mubr.msk.bf16.vlgmr.msra.gmra.mrb[32].mxu1 %vm685_vm2, %v1377_v46  ;;  %v1301_v46 = vlaneseq }
 0x467   :  { %v1331_v8 = vpop.trf.xlu1  ;;  %1491 = vmatprep.mubr.bf16.mxu1 %v12463_v58 }
 0x468   :  { %v1363_v54 = vpop.trf.xlu0 }
 0x46b   :  { %v1332_v60 = vpop.trf.xlu1 }
 0x46c   :  { %v1378_v53 = vpack.c.bf16 %v1332_v60, %v1331_v8  ;;  %v1364_v28 = vpop.trf.xlu0  ;;  %v1302_v60 = vshrl.u32 %v1301_v46, 7 }
 0x46d   :  { %v1386_v40 = vpack.c.bf16 %v1364_v28, %v1363_v54 }
 0x46e   :  { %7360 = vmatmul.mubr.msk.bf16.gmra.mrb[36].mxu1 %vm685_vm2, %v1378_v53  ;;  %v9454_v53 = vsub.s32 0, %v1302_v60 }
 0x46f   :  { %v1333_v39 = vpop.trf.xlu1  ;;  %1501 = vmatprep.mubr.bf16.mxu1 %v12463_v58 }
 0x470   :  { %v1365_v20 = vpop.trf.xlu0  ;;  %12470 = vst [vmem:[#allocation51_spill] sm:$0xff] %v9454_v53 }
 0x473   :  { %v1334_v24 = vpop.trf.xlu1 }
 0x474   :  { %v1379_v35 = vpack.c.bf16 %v1334_v24, %v1333_v39  ;;  %v1366_v15 = vpop.trf.xlu0 }
 0x475   :  { %v1387_v3 = vpack.c.bf16 %v1366_v15, %v1365_v20 }
 0x476   :  { %7361 = vmatmul.mubr.msk.bf16.gmra.mrb[40].mxu1 %vm685_vm2, %v1379_v35 }
 0x477   :  { %v1335_v61 = vpop.trf.xlu1  ;;  %1511 = vmatprep.mubr.bf16.mxu1 %v12463_v58 }
 0x478   :  { %v1367_v17 = vpop.trf.xlu0 }
 0x47b   :  { %v1336_v23 = vpop.trf.xlu1 }
 0x47c   :  { %v1380_v10 = vpack.c.bf16 %v1336_v23, %v1335_v61  ;;  %v1368_v36 = vpop.trf.xlu0 }
 0x47d   :  { %v1388_v50 = vpack.c.bf16 %v1368_v36, %v1367_v17 }
 0x47e   :  { %7362 = vmatmul.mubr.msk.bf16.gmra.mrb[44].mxu1 %vm685_vm2, %v1380_v10 }
 0x47f   :  { %v1337_v48 = vpop.trf.xlu1  ;;  %1521 = vmatprep.mubr.bf16.mxu1 %v12463_v58 }
 0x480   :  { %v1369_v37 = vpop.trf.xlu0 }
 0x483   :  { %v1338_v52 = vpop.trf.xlu1 }
 0x484   :  { %v1381_v25 = vpack.c.bf16 %v1338_v52, %v1337_v48  ;;  %v1370_v16 = vpop.trf.xlu0 }
 0x485   :  { %v1389_v62 = vpack.c.bf16 %v1370_v16, %v1369_v37 }
 0x486   :  { %7363 = vmatmul.mubr.msk.bf16.gmra.mrb[48].mxu1 %vm685_vm2, %v1381_v25 }
 0x487   :  { %v1339_v42 = vpop.trf.xlu1  ;;  %1531 = vmatprep.mubr.bf16.mxu1 %v12463_v58 }
 0x488   :  { %v1371_v0 = vpop.trf.xlu0 }
 0x48b   :  { %v1340_v49 = vpop.trf.xlu1 }
 0x48c   :  { %v1382_v2 = vpack.c.bf16 %v1340_v49, %v1339_v42  ;;  %v1372_v29 = vpop.trf.xlu0 }
 0x48d   :  { %v1390_v12 = vpack.c.bf16 %v1372_v29, %v1371_v0 }
 0x48e   :  { %7364 = vmatmul.mubr.msk.bf16.gmra.mrb[52].mxu1 %vm685_vm2, %v1382_v2 }
 0x48f   :  { %v1341_v4 = vpop.trf.xlu1  ;;  %1541 = vmatprep.mubr.bf16.mxu1 %v12463_v58 }
 0x490   :  { %v1373_v43 = vpop.trf.xlu0 }
 0x493   :  { %v1342_v5 = vpop.trf.xlu1 }
 0x494   :  { %v1383_v44 = vpack.c.bf16 %v1342_v5, %v1341_v4  ;;  %v1374_v55 = vpop.trf.xlu0 }
 0x495   :  { %v1391_v11 = vpack.c.bf16 %v1374_v55, %v1373_v43 }
 0x496   :  { %7365 = vmatmul.mubr.msk.bf16.gmra.mrb[56].mxu1 %vm685_vm2, %v1383_v44 }
 0x497   :  { %v1343_v32 = vpop.trf.xlu1  ;;  %1551 = vmatprep.mubr.bf16.mxu1 %v12463_v58 }
 0x498   :  { %v1375_v63 = vpop.trf.xlu0 }
 0x49b   :  { %v1344_v9 = vpop.trf.xlu1 }
 0x49c   :  { %v1384_v56 = vpack.c.bf16 %v1344_v9, %v1343_v32  ;;  %v1376_v30 = vpop.trf.xlu0 }
 0x49d   :  { %v1392_v19 = vpack.c.bf16 %v1376_v30, %v1375_v63 }
 0x49e   :  { %7366 = vmatmul.mubr.msk.bf16.gmra.mrb[60].mxu1 %vm685_vm2, %v1384_v56 }
 0x49f   :  { %1561 = vmatprep.mubr.bf16.mxu1 %v12463_v58 }
 0x4a6   :  { %7367 = vmatmul.mubr.msk.bf16.gmra.mrb[64].mxu1 %vm685_vm2, %v1385_v34 }
 0x4a7   :  { %1571 = vmatprep.mubr.bf16.mxu1 %v12463_v58 }
 0x4ae   :  { %7368 = vmatmul.mubr.msk.bf16.gmra.mrb[68].mxu1 %vm685_vm2, %v1386_v40 }
 0x4af   :  { %1581 = vmatprep.mubr.bf16.mxu1 %v12463_v58 }
 0x4b6   :  { %7369 = vmatmul.mubr.msk.bf16.gmra.mrb[72].mxu1 %vm685_vm2, %v1387_v3 }
 0x4b7   :  { %1591 = vmatprep.mubr.bf16.mxu1 %v12463_v58 }
 0x4be   :  { %7370 = vmatmul.mubr.msk.bf16.gmra.mrb[76].mxu1 %vm685_vm2, %v1388_v50 }
 0x4bf   :  { %1601 = vmatprep.mubr.bf16.mxu1 %v12463_v58 }
 0x4c6   :  { %7371 = vmatmul.mubr.msk.bf16.gmra.mrb[80].mxu1 %vm685_vm2, %v1389_v62 }
 0x4c7   :  { %1611 = vmatprep.mubr.bf16.mxu1 %v12463_v58 }
 0x4ce   :  { %7372 = vmatmul.mubr.msk.bf16.gmra.mrb[84].mxu1 %vm685_vm2, %v1390_v12 }
 0x4cf   :  { %1621 = vmatprep.mubr.bf16.mxu1 %v12463_v58 }
 0x4d6   :  { %7373 = vmatmul.mubr.msk.bf16.gmra.mrb[88].mxu1 %vm685_vm2, %v1391_v11 }
 0x4d7   :  { %1631 = vmatprep.mubr.bf16.mxu1 %v12463_v58 }
 0x4de   :  { %7374 = vmatmul.mubr.msk.bf16.gmra.mrb[92].mxu1 %vm685_vm2, %v1392_v19 }
 0x501   :  { %v1290_v14 = vpop.f32.mrb[28].mxu1 }
 0x502   :  { %v1292_v45 = vpop.f32.mrb[29].mxu1 }
 0x503   :  { %v1294_v41 = vpop.f32.mrb[30].mxu1 }
 0x504   :  { %7701 = vrcp.f32 %v1294_v41  ;;  %v1296_v8 = vpop.f32.mrb[31].mxu1 }
 0x505   :  { %7703 = vrcp.f32 %v1296_v8 }
 0x50e   :  { %v7702_v39 = vpop.eup %7701 }
 0x50f   :  { %v7704_v24 = vpop.eup %7703  ;;  %v1304_v35 = vrot.slane %v7702_v39, %v9454_v53 }
 0x510   :  { %v1308_v61 = vrot.slane %v7704_v24, %v9454_v53 }
 0x511   :  { %v9458_v23 = vmul.f32 %v1304_v35, %v1290_v14 }
 0x512   :  { %v9460_v10 = vmul.f32 %v1308_v61, %v1292_v45 }
 0x513   :  { %12471 = vst [vmem:[#allocation52_spill] sm:$0xff] %v9458_v23 }
 0x514   :  { %12472 = vst [vmem:[#allocation53_spill] sm:$0xff] %v9460_v10 }
 0x539   :  { %v9462_v48 = vpop.f32.mrb[32].mxu1 }
 0x53a   :  { %v9464_v57 = vpop.f32.mrb[33].mxu1 }
 0x53b   :  { %v9466_v52 = vpop.f32.mrb[34].mxu1  ;;  %v1642_v25 = vmax.f32 %v9462_v48, %v9464_v57 }
 0x53c   :  { %v9470_v59 = vpop.f32.mrb[35].mxu1 }
 0x53d   :  { %1643 = vmax.xlane.f32.xlu1 %v1642_v25  ;;  %v1645_v42 = vmax.f32 %v9466_v52, %v9470_v59 }
 0x53f   :  { %1646 = vmax.xlane.f32.xlu0 %v1645_v42 }
 0x541   :  { %v9474_v49 = vpop.f32.mrb[36].mxu1 }
 0x542   :  { %v9476_v54 = vpop.f32.mrb[37].mxu1 }
 0x543   :  { %v9478_v2 = vpop.f32.mrb[38].mxu1  ;;  %v1648_v4 = vmax.f32 %v9474_v49, %v9476_v54 }
 0x544   :  { %v9482_v28 = vpop.f32.mrb[39].mxu1 }
 0x545   :  { %1649 = vmax.xlane.f32.xlu1 %v1648_v4  ;;  %v1651_v5 = vmax.f32 %v9478_v2, %v9482_v28 }
 0x549   :  { %1652 = vmax.xlane.f32.xlu1 %v1651_v5  ;;  %v9486_v44 = vpop.f32.mrb[40].mxu1 }
 0x54a   :  { %v9488_v32 = vpop.f32.mrb[41].mxu1 }
 0x54b   :  { %v9490_v20 = vpop.f32.mrb[42].mxu1  ;;  %v1654_v9 = vmax.f32 %v9486_v44, %v9488_v32 }
 0x54c   :  { %v9494_v56 = vpop.f32.mrb[43].mxu1 }
 0x54d   :  { %1655 = vmax.xlane.f32.xlu0 %v1654_v9  ;;  %v1657_v15 = vmax.f32 %v9490_v20, %v9494_v56 }
 0x54f   :  { %1658 = vmax.xlane.f32.xlu1 %v1657_v15 }
 0x551   :  { %v9498_v17 = vpop.f32.mrb[44].mxu1 }
 0x552   :  { %v9500_v34 = vpop.f32.mrb[45].mxu1 }
 0x553   :  { %v9502_v36 = vpop.f32.mrb[46].mxu1  ;;  %v1660_v40 = vmax.f32 %v9498_v17, %v9500_v34 }
 0x554   :  { %v9506_v37 = vpop.f32.mrb[47].mxu1 }
 0x555   :  { %1661 = vmax.xlane.f32.xlu0 %v1660_v40  ;;  %v1663_v3 = vmax.f32 %v9502_v36, %v9506_v37 }
 0x557   :  { %1664 = vmax.xlane.f32.xlu1 %v1663_v3 }
 0x559   :  { %v9510_v16 = vpop.f32.mrb[48].mxu1 }
 0x55a   :  { %v9512_v0 = vpop.f32.mrb[49].mxu1 }
 0x55b   :  { %v9514_v50 = vpop.f32.mrb[50].mxu1  ;;  %v1666_v29 = vmax.f32 %v9510_v16, %v9512_v0 }
 0x55c   :  { %v9518_v62 = vpop.f32.mrb[51].mxu1 }
 0x55d   :  { %1667 = vmax.xlane.f32.xlu0 %v1666_v29  ;;  %v1669_v43 = vmax.f32 %v9514_v50, %v9518_v62 }
 0x55f   :  { %1670 = vmax.xlane.f32.xlu1 %v1669_v43 }
 0x561   :  { %v9522_v12 = vpop.f32.mrb[52].mxu1 }
 0x562   :  { %v9524_v55 = vpop.f32.mrb[53].mxu1 }
 0x563   :  { %v1672_v63 = vmax.f32 %v9522_v12, %v9524_v55  ;;  %v9528_v11 = vpop.f32.mrb[54].mxu1 }
 0x564   :  { %v9530_v30 = vpop.f32.mrb[55].mxu1 }
 0x565   :  { %v1675_v19 = vmax.f32 %v9528_v11, %v9530_v30  ;;  %1673 = vmax.xlane.f32.xlu0 %v1672_v63 }
 0x567   :  { %1676 = vmax.xlane.f32.xlu1 %v1675_v19 }
 0x569   :  { %v9534_v14 = vpop.f32.mrb[56].mxu1 }
 0x56a   :  { %v9536_v45 = vpop.f32.mrb[57].mxu1 }
 0x56b   :  { %v1678_v41 = vmax.f32 %v9534_v14, %v9536_v45  ;;  %v9540_v46 = vpop.f32.mrb[58].mxu1 }
 0x56c   :  { %v9542_v8 = vpop.f32.mrb[59].mxu1 }
 0x56d   :  { %v1681_v60 = vmax.f32 %v9540_v46, %v9542_v8  ;;  %1679 = vmax.xlane.f32.xlu0 %v1678_v41 }
 0x56f   :  { %1682 = vmax.xlane.f32.xlu1 %v1681_v60 }
 0x571   :  { %v9546_v39 = vpop.f32.mrb[60].mxu1 }
 0x572   :  { %v9548_v24 = vpop.f32.mrb[61].mxu1 }
 0x573   :  { %v1684_v35 = vmax.f32 %v9546_v39, %v9548_v24  ;;  %v9552_v61 = vpop.f32.mrb[62].mxu1 }
 0x574   :  { %v9554_v25 = vpop.f32.mrb[63].mxu1 }
 0x575   :  { %v1687_v42 = vmax.f32 %v9552_v61, %v9554_v25  ;;  %1685 = vmax.xlane.f32.xlu0 %v1684_v35 }
 0x577   :  { %1688 = vmax.xlane.f32.xlu1 %v1687_v42 }
 0x579   :  { %v9558_v4 = vpop.f32.mrb[64].mxu1 }
 0x57a   :  { %v9560_v5 = vpop.f32.mrb[65].mxu1 }
 0x57b   :  { %v1690_v9 = vmax.f32 %v9558_v4, %v9560_v5  ;;  %v9564_v15 = vpop.f32.mrb[66].mxu1 }
 0x57c   :  { %v9566_v40 = vpop.f32.mrb[67].mxu1 }
 0x57d   :  { %v1693_v3 = vmax.f32 %v9564_v15, %v9566_v40  ;;  %1691 = vmax.xlane.f32.xlu0 %v1690_v9 }
 0x57f   :  { %1694 = vmax.xlane.f32.xlu1 %v1693_v3 }
 0x581   :  { %v9570_v29 = vpop.f32.mrb[68].mxu1 }
 0x582   :  { %v9572_v43 = vpop.f32.mrb[69].mxu1 }
 0x583   :  { %v1696_v63 = vmax.f32 %v9570_v29, %v9572_v43  ;;  %v9576_v19 = vpop.f32.mrb[70].mxu1 }
 0x584   :  { %v9578_v41 = vpop.f32.mrb[71].mxu1 }
 0x585   :  { %v1699_v60 = vmax.f32 %v9576_v19, %v9578_v41  ;;  %1697 = vmax.xlane.f32.xlu0 %v1696_v63 }
 0x587   :  { %1700 = vmax.xlane.f32.xlu1 %v1699_v60 }
 0x589   :  { %v9582_v35 = vpop.f32.mrb[72].mxu1 }
 0x58a   :  { %v9584_v42 = vpop.f32.mrb[73].mxu1 }
 0x58b   :  { %v1702_v9 = vmax.f32 %v9582_v35, %v9584_v42  ;;  %v9588_v3 = vpop.f32.mrb[74].mxu1 }
 0x58c   :  { %v9590_v21 = vpop.f32.mrb[75].mxu1 }
 0x58d   :  { %v1705_v22 = vmax.f32 %v9588_v3, %v9590_v21  ;;  %1703 = vmax.xlane.f32.xlu0 %v1702_v9 }
 0x58f   :  { %1706 = vmax.xlane.f32.xlu1 %v1705_v22 }
 0x591   :  { %v9594_v18 = vpop.f32.mrb[76].mxu1 }
 0x592   :  { %v9596_v63 = vpop.f32.mrb[77].mxu1 }
 0x593   :  { %v1708_v60 = vmax.f32 %v9594_v18, %v9596_v63  ;;  %v9600_v47 = vpop.f32.mrb[78].mxu1 }
 0x594   :  { %v9602_v6 = vpop.f32.mrb[79].mxu1 }
 0x595   :  { %v1711_v27 = vmax.f32 %v9600_v47, %v9602_v6  ;;  %1709 = vmax.xlane.f32.xlu0 %v1708_v60 }
 0x597   :  { %1712 = vmax.xlane.f32.xlu1 %v1711_v27 }
 0x599   :  { %v9606_v31 = vpop.f32.mrb[80].mxu1 }
 0x59a   :  { %v9608_v9 = vpop.f32.mrb[81].mxu1 }
 0x59b   :  { %v1714_v22 = vmax.f32 %v9606_v31, %v9608_v9  ;;  %v9612_v7 = vpop.f32.mrb[82].mxu1 }
 0x59c   :  { %v9614_v51 = vpop.f32.mrb[83].mxu1 }
 0x59d   :  { %12473 = vst [vmem:[#allocation54_spill] sm:$0xff] %v9614_v51  ;;  %v1717_v1 = vmax.f32 %v9612_v7, %v9614_v51  ;;  %1715 = vmax.xlane.f32.xlu0 %v1714_v22 }
 0x59f   :  { %1718 = vmax.xlane.f32.xlu1 %v1717_v1 }
 0x5a1   :  { %v9618_v38 = vpop.f32.mrb[84].mxu1 }
 0x5a2   :  { %12474 = vst [vmem:[#allocation38_spill] sm:$0xff] %v9618_v38  ;;  %v9620_v60 = vpop.f32.mrb[85].mxu1 }
 0x5a3   :  { %12475 = vst [vmem:[#allocation49_spill] sm:$0xff] %v9620_v60  ;;  %v1720_v27 = vmax.f32 %v9618_v38, %v9620_v60  ;;  %v9624_v33 = vpop.f32.mrb[86].mxu1 }
 0x5a4   :  { %12476 = vst [vmem:[#allocation50_spill] sm:$0xff] %v9624_v33  ;;  %v9626_v13 = vpop.f32.mrb[87].mxu1 }
 0x5a5   :  { %12477 = vst [vmem:[#allocation47_spill] sm:$0xff] %v9626_v13  ;;  %v1723_v26 = vmax.f32 %v9624_v33, %v9626_v13  ;;  %1721 = vmax.xlane.f32.xlu0 %v1720_v27 }
 0x5a7   :  { %1724 = vmax.xlane.f32.xlu1 %v1723_v26 }
 0x5a9   :  { %v9630_v10 = vpop.f32.mrb[88].mxu1 }
 0x5aa   :  { %12478 = vst [vmem:[#allocation48_spill] sm:$0xff] %v9630_v10  ;;  %v9632_v22 = vpop.f32.mrb[89].mxu1 }
 0x5ab   :  { %12479 = vst [vmem:[#allocation30_spill] sm:$0xff] %v9632_v22  ;;  %v1726_v1 = vmax.f32 %v9630_v10, %v9632_v22  ;;  %v9636_v23 = vpop.f32.mrb[90].mxu1 }
 0x5ac   :  { %12480 = vst [vmem:[#allocation28_spill] sm:$0xff] %v9636_v23  ;;  %v9638_v53 = vpop.f32.mrb[91].mxu1 }
 0x5ad   :  { %12481 = vst [vmem:[#allocation37_spill] sm:$0xff] %v9638_v53  ;;  %v1729_v58 = vmax.f32 %v9636_v23, %v9638_v53  ;;  %1727 = vmax.xlane.f32.xlu0 %v1726_v1  ;;  %v48_v1 = vld [vmem:[%s12205_s6 + $0x30] sm:$0xff] }
 0x5af   :  { %1730 = vmax.xlane.f32.xlu1 %v1729_v58  ;;  %v8654_v58 = vld [vmem:[%s12205_s6 + $0x10] sm:$0xff] }
 0x5b1   :  { %v9642_v60 = vpop.f32.mrb[92].mxu1 }
 0x5b2   :  { %12482 = vst [vmem:[#allocation63_spill] sm:$0xff] %v9642_v60  ;;  %v9644_v27 = vpop.f32.mrb[93].mxu1 }
 0x5b3   :  { %12483 = vst [vmem:[#allocation64_spill] sm:$0xff] %v9644_v27  ;;  %v1732_v26 = vmax.f32 %v9642_v60, %v9644_v27  ;;  %v9648_v13 = vpop.f32.mrb[94].mxu1  ;;  %v51_v27 = vld [vmem:[%s12205_s6 + $0x48] sm:$0xff] }
 0x5b4   :  { %12484 = vst [vmem:[#allocation65_spill] sm:$0xff] %v9648_v13  ;;  %v9650_v33 = vpop.f32.mrb[95].mxu1 }
 0x5b5   :  { %12485 = vst [vmem:[#allocation66_spill] sm:$0xff] %v9650_v33  ;;  %1733 = vmax.xlane.f32.xlu1 %v1732_v26  ;;  %v1735_v22 = vmax.f32 %v9648_v13, %v9650_v33 }
 0x5b9   :  { %1736 = vmax.xlane.f32.xlu1 %v1735_v22 }
 0x5c3   :  { %305 = vperm.xlu0 %7534, %v8654_v58  }
 0x5c7   :  { %324 = vperm.xlu0 %7534, %v48_v1  }
 0x5ca   :  { %v1644_v60 = vpop.xlane.xlu1 %1643  ;;  %339 = vperm.xlu1 %7533, %v51_v27  }
 0x5cb   :  { %v1738_v26 = vsub.f32 %v9462_v48, %v1644_v60  ;;  %v1739_v22 = vsub.f32 %v9464_v57, %v1644_v60 }
 0x5cc   :  { %v1647_v33 = vpop.xlane.xlu0 %1646 }
 0x5cd   :  { %v1802_v13 = vmul.f32 1.442695, %v1738_v26  ;;  %v1740_v53 = vsub.f32 %v9466_v52, %v1647_v33  ;;  %v1741_v58 = vsub.f32 %v9470_v59, %v1647_v33  ;;  %v1804_v23 = vmul.f32 1.442695, %v1739_v22 }
 0x5cf   :  { %v1806_v10 = vmul.f32 1.442695, %v1740_v53  ;;  %v1808_v38 = vmul.f32 1.442695, %v1741_v58  ;;  %7705 = vpow2.f32 %v1802_v13 }
 0x5d1   :  { %7707 = vpow2.f32 %v1806_v10 }
 0x5d2   :  { %7709 = vpow2.f32 %v1808_v38  ;;  %v1650_v1 = vpop.xlane.xlu1 %1649 }
 0x5d3   :  { %7711 = vpow2.f32 %v1804_v23  ;;  %v1742_v27 = vsub.f32 %v9474_v49, %v1650_v1  ;;  %v1743_v48 = vsub.f32 %v9476_v54, %v1650_v1 }
 0x5d5   :  { %v1810_v51 = vmul.f32 1.442695, %v1742_v27  ;;  %v1812_v57 = vmul.f32 1.442695, %v1743_v48 }
 0x5d6   :  { %v1653_v60 = vpop.xlane.xlu1 %1652 }
 0x5d7   :  { %v1744_v26 = vsub.f32 %v9478_v2, %v1653_v60  ;;  %v1745_v52 = vsub.f32 %v9482_v28, %v1653_v60  ;;  %7713 = vpow2.f32 %v1810_v51 }
 0x5d8   :  { %7715 = vpow2.f32 %v1812_v57 }
 0x5d9   :  { %v1814_v33 = vmul.f32 1.442695, %v1744_v26  ;;  %v1816_v53 = vmul.f32 1.442695, %v1745_v52  ;;  %v7706_v59 = vpop.eup %7705 }
 0x5da   :  { %v1656_v13 = vpop.xlane.xlu0 %1655 }
 0x5db   :  { %v7708_v38 = vpop.eup %7707  ;;  %7717 = vpow2.f32 %v1814_v33  ;;  %v1746_v23 = vsub.f32 %v9486_v44, %v1656_v13  ;;  %v1747_v10 = vsub.f32 %v9488_v32, %v1656_v13 }
 0x5dc   :  { %v7710_v49 = vpop.eup %7709  ;;  %7719 = vpow2.f32 %v1816_v53  ;;  %v1659_v54 = vpop.xlane.xlu1 %1658  ;;  %v1930_v22 = vpack.c.bf16 %v7708_v38, %v7706_v59 }
 0x5dd   :  { %v7712_v58 = vpop.eup %7711  ;;  %v1818_v2 = vmul.f32 1.442695, %v1746_v23  ;;  %v1748_v28 = vsub.f32 %v9490_v20, %v1659_v54  ;;  %v1749_v51 = vsub.f32 %v9494_v56, %v1659_v54  ;;  %v1820_v27 = vmul.f32 1.442695, %v1747_v10 }
 0x5de   :  { %v1931_v1 = vpack.c.bf16 %v7710_v49, %v7712_v58 }
 0x5df   :  { %v1822_v48 = vmul.f32 1.442695, %v1748_v28  ;;  %v1824_v57 = vmul.f32 1.442695, %v1749_v51  ;;  %7721 = vpow2.f32 %v1818_v2 }
 0x5e0   :  { %1964 = vmatprep.subr.bf16.mxu0 %v1931_v1 }
 0x5e1   :  { %7723 = vpow2.f32 %v1822_v48  ;;  %1965 = vmatpush1.bf16.xpose.msra.mxu0 %v1930_v22  ;;  %v7714_v32 = vpop.eup %7713 }
 0x5e2   :  { %7725 = vpow2.f32 %v1824_v57  ;;  %v1662_v44 = vpop.xlane.xlu0 %1661  ;;  %v7716_v52 = vpop.eup %7715 }
 0x5e3   :  { %7727 = vpow2.f32 %v1820_v27  ;;  %v1750_v60 = vsub.f32 %v9498_v17, %v1662_v44  ;;  %v1751_v26 = vsub.f32 %v9500_v34, %v1662_v44 }
 0x5e4   :  { %v1665_v20 = vpop.xlane.xlu1 %1664 }
 0x5e5   :  { %v7718_v33 = vpop.eup %7717  ;;  %v1826_v56 = vmul.f32 1.442695, %v1750_v60  ;;  %v1752_v53 = vsub.f32 %v9502_v36, %v1665_v20  ;;  %v1753_v59 = vsub.f32 %v9506_v37, %v1665_v20  ;;  %v1828_v23 = vmul.f32 1.442695, %v1751_v26 }
 0x5e6   :  { %v7720_v13 = vpop.eup %7719  ;;  %v1932_v38 = vpack.c.bf16 %v7718_v33, %v7714_v32 }
 0x5e7   :  { %v1830_v10 = vmul.f32 1.442695, %v1752_v53  ;;  %v1832_v49 = vmul.f32 1.442695, %v1753_v59  ;;  %v1933_v54 = vpack.c.bf16 %v7720_v13, %v7716_v52  ;;  %7729 = vpow2.f32 %v1826_v56 }
 0x5e9   :  { %7731 = vpow2.f32 %v1830_v10  ;;  %1966 = vmatprep.subr.bf16.mxu0 %v1933_v54  ;;  %v7722_v17 = vpop.eup %7721 }
 0x5ea   :  { %7733 = vpow2.f32 %v1832_v49  ;;  %1967 = vmatpush1.bf16.xpose.msra.mxu0 %v1932_v38  ;;  %v1668_v34 = vpop.xlane.xlu0 %1667 }
 0x5eb   :  { %v7724_v22 = vpop.eup %7723  ;;  %7735 = vpow2.f32 %v1828_v23  ;;  %v1754_v58 = vsub.f32 %v9510_v16, %v1668_v34  ;;  %v1755_v36 = vsub.f32 %v9512_v0, %v1668_v34 }
 0x5ec   :  { %v7726_v37 = vpop.eup %7725  ;;  %v1671_v2 = vpop.xlane.xlu1 %1670  ;;  %v1934_v28 = vpack.c.bf16 %v7724_v22, %v7722_v17 }
 0x5ed   :  { %v7728_v51 = vpop.eup %7727  ;;  %v1834_v1 = vmul.f32 1.442695, %v1754_v58  ;;  %v1756_v27 = vsub.f32 %v9514_v50, %v1671_v2  ;;  %v1757_v48 = vsub.f32 %v9518_v62, %v1671_v2  ;;  %v1836_v44 = vmul.f32 1.442695, %v1755_v36 }
 0x5ee   :  { %v1935_v57 = vpack.c.bf16 %v7726_v37, %v7728_v51 }
 0x5ef   :  { %v1838_v32 = vmul.f32 1.442695, %v1756_v27  ;;  %v1840_v60 = vmul.f32 1.442695, %v1757_v48  ;;  %7737 = vpow2.f32 %v1834_v1 }
 0x5f0   :  { %1968 = vmatprep.subr.bf16.mxu0 %v1935_v57 }
 0x5f1   :  { %7739 = vpow2.f32 %v1838_v32  ;;  %v7730_v26 = vpop.eup %7729 }
 0x5f2   :  { %7741 = vpow2.f32 %v1840_v60  ;;  %1969 = vmatpush1.bf16.xpose.msra.mxu0 %v1934_v28  ;;  %v1674_v16 = vpop.xlane.xlu0 %1673 }
 0x5f3   :  { %v7732_v0 = vpop.eup %7731  ;;  %7743 = vpow2.f32 %v1836_v44  ;;  %v1758_v52 = vsub.f32 %v9522_v12, %v1674_v16  ;;  %v1759_v20 = vsub.f32 %v9524_v55, %v1674_v16 }
 0x5f4   :  { %v7734_v50 = vpop.eup %7733  ;;  %v1677_v33 = vpop.xlane.xlu1 %1676  ;;  %v1936_v62 = vpack.c.bf16 %v7732_v0, %v7730_v26 }
 0x5f5   :  { %v7736_v56 = vpop.eup %7735  ;;  %v1842_v53 = vmul.f32 1.442695, %v1758_v52  ;;  %v1760_v59 = vsub.f32 %v9528_v11, %v1677_v33  ;;  %v1761_v13 = vsub.f32 %v9530_v30, %v1677_v33  ;;  %v1844_v23 = vmul.f32 1.442695, %v1759_v20 }
 0x5f6   :  { %v1937_v38 = vpack.c.bf16 %v7734_v50, %v7736_v56 }
 0x5f7   :  { %v1846_v10 = vmul.f32 1.442695, %v1760_v59  ;;  %v1848_v49 = vmul.f32 1.442695, %v1761_v13  ;;  %7745 = vpow2.f32 %v1842_v53 }
 0x5f8   :  { %1970 = vmatprep.subr.bf16.mxu0 %v1937_v38 }
 0x5f9   :  { %7747 = vpow2.f32 %v1846_v10  ;;  %v7738_v54 = vpop.eup %7737 }
 0x5fa   :  { %7749 = vpow2.f32 %v1848_v49  ;;  %1971 = vmatpush1.bf16.xpose.msra.mxu0 %v1936_v62  ;;  %v1680_v12 = vpop.xlane.xlu0 %1679 }
 0x5fb   :  { %v7740_v55 = vpop.eup %7739  ;;  %7751 = vpow2.f32 %v1844_v23  ;;  %v1762_v17 = vsub.f32 %v9534_v14, %v1680_v12  ;;  %v1763_v34 = vsub.f32 %v9536_v45, %v1680_v12 }
 0x5fc   :  { %v7742_v11 = vpop.eup %7741  ;;  %v1683_v22 = vpop.xlane.xlu1 %1682  ;;  %v1938_v30 = vpack.c.bf16 %v7740_v55, %v7738_v54 }
 0x5fd   :  { %v7744_v58 = vpop.eup %7743  ;;  %v1850_v36 = vmul.f32 1.442695, %v1762_v17  ;;  %v1764_v37 = vsub.f32 %v9540_v46, %v1683_v22  ;;  %v1765_v2 = vsub.f32 %v9542_v8, %v1683_v22  ;;  %v1852_v51 = vmul.f32 1.442695, %v1763_v34 }
 0x5fe   :  { %v1939_v28 = vpack.c.bf16 %v7742_v11, %v7744_v58 }
 0x5ff   :  { %v1854_v1 = vmul.f32 1.442695, %v1764_v37  ;;  %v1856_v27 = vmul.f32 1.442695, %v1765_v2  ;;  %7753 = vpow2.f32 %v1850_v36 }
 0x600   :  { %1972 = vmatprep.subr.bf16.mxu0 %v1939_v28 }
 0x601   :  { %7755 = vpow2.f32 %v1854_v1  ;;  %v7746_v48 = vpop.eup %7745 }
 0x602   :  { %7757 = vpow2.f32 %v1856_v27  ;;  %1973 = vmatpush1.bf16.xpose.msra.mxu0 %v1938_v30  ;;  %v1686_v14 = vpop.xlane.xlu0 %1685 }
 0x603   :  { %v7748_v45 = vpop.eup %7747  ;;  %7759 = vpow2.f32 %v1852_v51  ;;  %v1766_v57 = vsub.f32 %v9546_v39, %v1686_v14  ;;  %v1767_v44 = vsub.f32 %v9548_v24, %v1686_v14 }
 0x604   :  { %v7750_v46 = vpop.eup %7749  ;;  %v1689_v32 = vpop.xlane.xlu1 %1688  ;;  %v1940_v8 = vpack.c.bf16 %v7748_v45, %v7746_v48 }
 0x605   :  { %v7752_v60 = vpop.eup %7751  ;;  %v1858_v26 = vmul.f32 1.442695, %v1766_v57  ;;  %v1768_v16 = vsub.f32 %v9552_v61, %v1689_v32  ;;  %v1769_v0 = vsub.f32 %v9554_v25, %v1689_v32  ;;  %v1860_v20 = vmul.f32 1.442695, %v1767_v44 }
 0x606   :  { %v1941_v52 = vpack.c.bf16 %v7750_v46, %v7752_v60 }
 0x607   :  { %v1862_v50 = vmul.f32 1.442695, %v1768_v16  ;;  %v1864_v33 = vmul.f32 1.442695, %v1769_v0  ;;  %7761 = vpow2.f32 %v1858_v26 }
 0x608   :  { %1974 = vmatprep.subr.bf16.mxu0 %v1941_v52 }
 0x609   :  { %7763 = vpow2.f32 %v1862_v50  ;;  %v7754_v62 = vpop.eup %7753 }
 0x60a   :  { %7765 = vpow2.f32 %v1864_v33  ;;  %1975 = vmatpush1.bf16.xpose.msra.mxu0 %v1940_v8  ;;  %v1692_v39 = vpop.xlane.xlu0 %1691 }
 0x60b   :  { %v7756_v24 = vpop.eup %7755  ;;  %7767 = vpow2.f32 %v1860_v20  ;;  %v1770_v56 = vsub.f32 %v9558_v4, %v1692_v39  ;;  %v1771_v53 = vsub.f32 %v9560_v5, %v1692_v39 }
 0x60c   :  { %v7758_v61 = vpop.eup %7757  ;;  %v1695_v59 = vpop.xlane.xlu1 %1694  ;;  %v1942_v25 = vpack.c.bf16 %v7756_v24, %v7754_v62 }
 0x60d   :  { %v7760_v13 = vpop.eup %7759  ;;  %v1866_v38 = vmul.f32 1.442695, %v1770_v56  ;;  %v1772_v23 = vsub.f32 %v9564_v15, %v1695_v59  ;;  %v1773_v10 = vsub.f32 %v9566_v40, %v1695_v59  ;;  %v1868_v54 = vmul.f32 1.442695, %v1771_v53 }
 0x60e   :  { %v1943_v49 = vpack.c.bf16 %v7758_v61, %v7760_v13 }
 0x60f   :  { %v1870_v12 = vmul.f32 1.442695, %v1772_v23  ;;  %v1872_v55 = vmul.f32 1.442695, %v1773_v10  ;;  %7769 = vpow2.f32 %v1866_v38 }
 0x610   :  { %1976 = vmatprep.subr.bf16.mxu0 %v1943_v49 }
 0x611   :  { %7771 = vpow2.f32 %v1870_v12  ;;  %v7762_v17 = vpop.eup %7761  ;;  %v12486_v12 = vld [vmem:[#allocation54_spill] sm:$0xff] }
 0x612   :  { %7773 = vpow2.f32 %v1872_v55  ;;  %1977 = vmatpush1.bf16.xpose.msra.mxu0 %v1942_v25  ;;  %v1698_v4 = vpop.xlane.xlu0 %1697 }
 0x613   :  { %v7764_v5 = vpop.eup %7763  ;;  %7775 = vpow2.f32 %v1868_v54  ;;  %v1774_v34 = vsub.f32 %v9570_v29, %v1698_v4  ;;  %v1775_v11 = vsub.f32 %v9572_v43, %v1698_v4 }
 0x614   :  { %v7766_v15 = vpop.eup %7765  ;;  %v1701_v22 = vpop.xlane.xlu1 %1700  ;;  %v1944_v40 = vpack.c.bf16 %v7764_v5, %v7762_v17 }
 0x615   :  { %v7768_v30 = vpop.eup %7767  ;;  %v1874_v58 = vmul.f32 1.442695, %v1774_v34  ;;  %v1776_v36 = vsub.f32 %v9576_v19, %v1701_v22  ;;  %v1777_v37 = vsub.f32 %v9578_v41, %v1701_v22  ;;  %v1876_v28 = vmul.f32 1.442695, %v1775_v11 }
 0x616   :  { %v1945_v2 = vpack.c.bf16 %v7766_v15, %v7768_v30  ;;  %v12487_v15 = vld [vmem:[#allocation38_spill] sm:$0xff] }
 0x617   :  { %v1878_v51 = vmul.f32 1.442695, %v1776_v36  ;;  %v1880_v1 = vmul.f32 1.442695, %v1777_v37  ;;  %7777 = vpow2.f32 %v1874_v58 }
 0x618   :  { %1978 = vmatprep.subr.bf16.mxu0 %v1945_v2 }
 0x619   :  { %7779 = vpow2.f32 %v1878_v51  ;;  %v7770_v27 = vpop.eup %7769  ;;  %v12489_v51 = vld [vmem:[#allocation50_spill] sm:$0xff] }
 0x61a   :  { %7781 = vpow2.f32 %v1880_v1  ;;  %1979 = vmatpush1.bf16.xpose.msra.mxu0 %v1944_v40  ;;  %v1704_v29 = vpop.xlane.xlu0 %1703  ;;  %v12488_v40 = vld [vmem:[#allocation49_spill] sm:$0xff] }
 0x61b   :  { %v7772_v43 = vpop.eup %7771  ;;  %7783 = vpow2.f32 %v1876_v28  ;;  %v1778_v48 = vsub.f32 %v9582_v35, %v1704_v29  ;;  %v1779_v14 = vsub.f32 %v9584_v42, %v1704_v29 }
 0x61c   :  { %v7774_v19 = vpop.eup %7773  ;;  %v1707_v45 = vpop.xlane.xlu1 %1706  ;;  %v1946_v41 = vpack.c.bf16 %v7772_v43, %v7770_v27  ;;  %v12490_v27 = vld [vmem:[#allocation47_spill] sm:$0xff] }
 0x61d   :  { %v7776_v57 = vpop.eup %7775  ;;  %v1882_v44 = vmul.f32 1.442695, %v1778_v48  ;;  %v1780_v46 = vsub.f32 %v9588_v3, %v1707_v45  ;;  %v1781_v32 = vsub.f32 %v9590_v21, %v1707_v45  ;;  %v1884_v60 = vmul.f32 1.442695, %v1779_v14 }
 0x61e   :  { %v1947_v8 = vpack.c.bf16 %v7774_v19, %v7776_v57  ;;  %v12491_v57 = vld [vmem:[#allocation48_spill] sm:$0xff] }
 0x61f   :  { %v1886_v26 = vmul.f32 1.442695, %v1780_v46  ;;  %v1888_v16 = vmul.f32 1.442695, %v1781_v32  ;;  %7785 = vpow2.f32 %v1882_v44  ;;  %v12492_v46 = vld [vmem:[#allocation30_spill] sm:$0xff] }
 0x620   :  { %1980 = vmatprep.subr.bf16.mxu0 %v1947_v8 }
 0x621   :  { %7787 = vpow2.f32 %v1886_v26  ;;  %v7778_v0 = vpop.eup %7777 }
 0x622   :  { %7789 = vpow2.f32 %v1888_v16  ;;  %1981 = vmatpush1.bf16.xpose.msra.mxu0 %v1946_v41  ;;  %v1710_v35 = vpop.xlane.xlu0 %1709 }
 0x623   :  { %v7780_v42 = vpop.eup %7779  ;;  %7791 = vpow2.f32 %v1884_v60  ;;  %v1782_v52 = vsub.f32 %v9594_v18, %v1710_v35  ;;  %v1783_v20 = vsub.f32 %v9596_v63, %v1710_v35 }
 0x624   :  { %v7782_v3 = vpop.eup %7781  ;;  %v1713_v50 = vpop.xlane.xlu1 %1712  ;;  %v1948_v21 = vpack.c.bf16 %v7780_v42, %v7778_v0  ;;  %v12493_v42 = vld [vmem:[#allocation28_spill] sm:$0xff] }
 0x625   :  { %v7784_v33 = vpop.eup %7783  ;;  %v1890_v62 = vmul.f32 1.442695, %v1782_v52  ;;  %v1784_v39 = vsub.f32 %v9600_v47, %v1713_v50  ;;  %v1785_v24 = vsub.f32 %v9602_v6, %v1713_v50  ;;  %v1892_v53 = vmul.f32 1.442695, %v1783_v20  ;;  %v12494_v20 = vld [vmem:[#allocation37_spill] sm:$0xff] }
 0x626   :  { %v1949_v56 = vpack.c.bf16 %v7782_v3, %v7784_v33 }
 0x627   :  { %v1894_v61 = vmul.f32 1.442695, %v1784_v39  ;;  %v1896_v59 = vmul.f32 1.442695, %v1785_v24  ;;  %7793 = vpow2.f32 %v1890_v62 }
 0x628   :  { %1982 = vmatprep.subr.bf16.mxu0 %v1949_v56 }
 0x629   :  { %7795 = vpow2.f32 %v1894_v61  ;;  %v7786_v25 = vpop.eup %7785  ;;  %v12495_v61 = vld [vmem:[#allocation63_spill] sm:$0xff] }
 0x62a   :  { %7797 = vpow2.f32 %v1896_v59  ;;  %1983 = vmatpush1.bf16.xpose.msra.mxu0 %v1948_v21  ;;  %v1716_v18 = vpop.xlane.xlu0 %1715 }
 0x62b   :  { %v7788_v63 = vpop.eup %7787  ;;  %7799 = vpow2.f32 %v1892_v53  ;;  %v1786_v13 = vsub.f32 %v9606_v31, %v1716_v18  ;;  %v1787_v38 = vsub.f32 %v9608_v9, %v1716_v18 }
 0x62c   :  { %v7790_v47 = vpop.eup %7789  ;;  %v1719_v23 = vpop.xlane.xlu1 %1718  ;;  %v1950_v6 = vpack.c.bf16 %v7788_v63, %v7786_v25  ;;  %v12496_v25 = vld [vmem:[#allocation64_spill] sm:$0xff]  ;;  %v12497_v63 = vld [vmem:[#allocation17_spill] sm:$0xff] }
 0x62d   :  { %v7792_v10 = vpop.eup %7791  ;;  %v1898_v49 = vmul.f32 1.442695, %v1786_v13  ;;  %v1788_v54 = vsub.f32 %v9612_v7, %v1719_v23  ;;  %v1789_v55 = vsub.f32 %v12486_v12, %v1719_v23  ;;  %v1900_v4 = vmul.f32 1.442695, %v1787_v38  ;;  %v12498_v38 = vld [vmem:[#allocation19_spill] sm:$0xff] }
 0x62e   :  { %v1951_v17 = vpack.c.bf16 %v7790_v47, %v7792_v10 }
 0x62f   :  { %v1902_v5 = vmul.f32 1.442695, %v1788_v54  ;;  %v1904_v34 = vmul.f32 1.442695, %v1789_v55  ;;  %7801 = vpow2.f32 %v1898_v49  ;;  %v12501_v49 = vld [vmem:[#allocation26_spill] sm:$0xff] }
 0x630   :  { %1984 = vmatprep.subr.bf16.mxu0 %v1951_v17 }
 0x631   :  { %7803 = vpow2.f32 %v1902_v5  ;;  %v7794_v11 = vpop.eup %7793 }
 0x632   :  { %7805 = vpow2.f32 %v1904_v34  ;;  %1985 = vmatpush1.bf16.xpose.msra.mxu0 %v1950_v6  ;;  %v1722_v31 = vpop.xlane.xlu0 %1721  ;;  %v12499_v6 = vld [vmem:[#allocation25_spill] sm:$0xff] }
 0x633   :  { %v7796_v9 = vpop.eup %7795  ;;  %7807 = vpow2.f32 %v1900_v4  ;;  %v1790_v22 = vsub.f32 %v12487_v15, %v1722_v31  ;;  %v1791_v30 = vsub.f32 %v12488_v40, %v1722_v31  ;;  %v12503_v31 = vld [vmem:[#allocation65_spill] sm:$0xff]  ;;  %v12504_v15 = vld [vmem:[#allocation66_spill] sm:$0xff] }
 0x634   :  { %v7798_v7 = vpop.eup %7797  ;;  %v1725_v58 = vpop.xlane.xlu1 %1724  ;;  %v1952_v36 = vpack.c.bf16 %v7796_v9, %v7794_v11 }
 0x635   :  { %v7800_v37 = vpop.eup %7799  ;;  %v1906_v2 = vmul.f32 1.442695, %v1790_v22  ;;  %v1908_v28 = vmul.f32 1.442695, %v1791_v30  ;;  %v1792_v1 = vsub.f32 %v12489_v51, %v1725_v58  ;;  %v1793_v29 = vsub.f32 %v12490_v27, %v1725_v58 }
 0x636   :  { %v1953_v43 = vpack.c.bf16 %v7798_v7, %v7800_v37 }
 0x637   :  { %7809 = vpow2.f32 %v1906_v2  ;;  %v1910_v48 = vmul.f32 1.442695, %v1792_v1  ;;  %v1912_v14 = vmul.f32 1.442695, %v1793_v29  ;;  %v12506_v2 = vld [vmem:[#allocation40_spill] sm:$0xff]  ;;  %v12507_v29 = vmov 1.0  }
 0x638   :  { %7811 = vpow2.f32 %v1908_v28  ;;  %1986 = vmatprep.subr.bf16.mxu0 %v1953_v43 }
 0x639   :  { %7813 = vpow2.f32 %v1910_v48  ;;  %v7802_v19 = vpop.eup %7801 }
 0x63a   :  { %7815 = vpow2.f32 %v1912_v14  ;;  %1987 = vmatpush1.bf16.xpose.msra.mxu0 %v1952_v36  ;;  %v1728_v45 = vpop.xlane.xlu0 %1727 }
 0x63b   :  { %v7804_v41 = vpop.eup %7803  ;;  %v1794_v44 = vsub.f32 %v12491_v57, %v1728_v45  ;;  %v1795_v32 = vsub.f32 %v12492_v46, %v1728_v45 }
 0x63c   :  { %v7806_v8 = vpop.eup %7805  ;;  %v1731_v60 = vpop.xlane.xlu1 %1730  ;;  %v1954_v26 = vpack.c.bf16 %v7804_v41, %v7802_v19  ;;  %v12509_v41 = vld [vmem:[#allocation34_spill] sm:$0xff] }
 0x63d   :  { %v7808_v16 = vpop.eup %7807  ;;  %v1914_v0 = vmul.f32 1.442695, %v1794_v44  ;;  %v1916_v35 = vmul.f32 1.442695, %v1795_v32  ;;  %v1796_v52 = vsub.f32 %v12493_v42, %v1731_v60  ;;  %v1797_v3 = vsub.f32 %v12494_v20, %v1731_v60 }
 0x63e   :  { %v1955_v50 = vpack.c.bf16 %v7806_v8, %v7808_v16  ;;  %v12510_v8 = vld [vmem:[#allocation33_spill] sm:$0xff]  ;;  %v12511_v16 = vld [vmem:[#allocation39_spill] sm:$0xff]  ;;  %v12512_v20 = vmov 0  }
 0x63f   :  { %7817 = vpow2.f32 %v1914_v0  ;;  %v1918_v21 = vmul.f32 1.442695, %v1796_v52  ;;  %v1920_v33 = vmul.f32 1.442695, %v1797_v3 }
 0x640   :  { %7819 = vpow2.f32 %v1916_v35  ;;  %1988 = vmatprep.subr.bf16.mxu0 %v1955_v50 }
 0x641   :  { %v7810_v62 = vpop.eup %7809  ;;  %7821 = vpow2.f32 %v1918_v21 }
 0x642   :  { %v7812_v39 = vpop.eup %7811  ;;  %7823 = vpow2.f32 %v1920_v33  ;;  %1989 = vmatpush1.bf16.xpose.msra.mxu0 %v1954_v26  ;;  %v1734_v24 = vpop.xlane.xlu1 %1733 }
 0x643   :  { %v306_v56 = vpop.permute.xlu0 %305  ;;  %v7814_v53 = vpop.eup %7813  ;;  %v1798_v59 = vsub.f32 %v12495_v61, %v1734_v24  ;;  %v1799_v18 = vsub.f32 %v12496_v25, %v1734_v24 }
 0x644   :  { %v446_v13 = vadd.f32 %v12497_v63, %v306_v56  ;;  %v448_v47 = vadd.f32 %v12498_v38, %v306_v56  ;;  %v7816_v23 = vpop.eup %7815  ;;  %v9728_v10 = vadd.f32 %v12499_v6, %v306_v56  ;;  %v9731_v54 = vadd.f32 %v12501_v49, %v306_v56 }
 0x645   :  { %v1956_v12 = vpack.c.bf16 %v7814_v53, %v7810_v62  ;;  %v1922_v55 = vmul.f32 1.442695, %v1798_v59  ;;  %v1957_v4 = vpack.c.bf16 %v7816_v23, %v7812_v39  ;;  %v1924_v5 = vmul.f32 1.442695, %v1799_v18 }
 0x646   :  { %12500 = vst [vmem:[#allocation54_spill] sm:$0xff] %v9728_v10  ;;  %12502 = vst [vmem:[#allocation38_spill] sm:$0xff] %v9731_v54  ;;  %v595_v17 = vmul.f32 0.35355338, %v446_v13  ;;  %v596_v34 = vmul.f32 0.35355338, %v448_v47  ;;  %v1737_v11 = vpop.xlane.xlu1 %1736 }
 0x647   :  { %v1800_v9 = vsub.f32 %v12503_v31, %v1737_v11  ;;  %v1801_v22 = vsub.f32 %v12504_v15, %v1737_v11  ;;  %1990 = vmatprep.subr.bf16.mxu0 %v1957_v4  ;;  %7825 = vpow2.f32 %v1922_v55  ;;  %v9740_v48 = vpop.permute.xlu0 %324 }
 0x648   :  { %2021 = vxpose.xlu0.b32.start.end [1/1] (short) %v595_v17, 128  ;;  %2053 = vxpose.xlu1.b32.start.end [1/1] (short) %v596_v34, 128  ;;  %7827 = vpow2.f32 %v1924_v5  ;;  %12508 = vst [vmem:[#allocation50_spill] sm:$0xff] %v9740_v48  ;;  %v468_v57 = vadd.f32 %v12509_v41, %v9740_v48  ;;  %v466_v60 = vadd.f32 %v12510_v8, %v9740_v48 }
 0x649   :  { %v7818_v40 = vpop.eup %7817  ;;  %v1926_v30 = vmul.f32 1.442695, %v1800_v9  ;;  %v1928_v7 = vmul.f32 1.442695, %v1801_v22 }
 0x64a   :  { %v7820_v58 = vpop.eup %7819  ;;  %1991 = vmatpush1.bf16.xpose.msra.mxu0 %v1956_v12  ;;  %v9735_v36 = vpop.permute.xlu1 %339  ;;  %v2102_v26 = vpack.c.bf16 %v468_v57, %v468_v57  ;;  %v2101_v35 = vpack.c.bf16 %v466_v60, %v466_v60 }
 0x64b   :  { %12505 = vst [vmem:[#allocation49_spill] sm:$0xff] %v9735_v36  ;;  %v7822_v37 = vpop.eup %7821  ;;  %7829 = vpow2.f32 %v1926_v30  ;;  %v482_v28 = vadd.f32 %v12506_v2, %v9735_v36  ;;  %v480_v0 = vadd.f32 %v12511_v16, %v9735_v36 }
 0x64c   :  { %v7824_v51 = vpop.eup %7823  ;;  %7831 = vpow2.f32 %v1928_v7  ;;  %v1958_v1 = vpack.c.bf16 %v7822_v37, %v7818_v40  ;;  %v2152_v52 = vsel %vm734_vm1, %v2101_v35, 0 }
 0x64d   :  { %v1959_v27 = vpack.c.bf16 %v7824_v51, %v7820_v58  ;;  %v1963_v43 = vpack.c.bf16 %v12507_v29, %v482_v28  ;;  %v1962_v42 = vpack.c.bf16 %v12507_v29, %v480_v0  ;;  %v12513_v0 = vld [vmem:[#allocation51_spill] sm:$0xff] }
 0x64f   :  { %1992 = vmatprep.subr.bf16.mxu0 %v1959_v27  ;;  %1996 = vmatprep.mubr.bf16.mxu0 %v1963_v43 }
 0x651   :  { %v7826_v14 = vpop.eup %7825 }
 0x652   :  { %1993 = vmatpush1.bf16.xpose.msra.mxu0 %v1958_v1  ;;  %v7828_v19 = vpop.eup %7827 }
 0x655   :  { %v7830_v45 = vpop.eup %7829 }
 0x656   :  { %v7832_v44 = vpop.eup %7831  ;;  %v1960_v46 = vpack.c.bf16 %v7830_v45, %v7826_v14 }
 0x657   :  { %v1961_v32 = vpack.c.bf16 %v7832_v44, %v7828_v19 }
 0x659   :  { %1994 = vmatprep.subr.bf16.mxu0 %v1961_v32 }
 0x65a   :  { %1995 = vmatpush1.bf16.xpose.msra.mxu0 %v1960_v46 }
 0x65b   :  { %7375 = vmatprep.subr.msk.bf16.mxu0 %vm734_vm1, %v2102_v26 }
 0x661   :  { %1997 = vmatmul.mubr.bf16.vlgmr.msra.gmra.mrb[84].mxu0 %v1962_v42 }
 0x662   :  { %2158 = vmatpush1.bf16.msra.mxu0 %v2152_v52  ;;  %2189 = vmatprep.mubr.bf16.mxu0 %v12512_v20 }
 0x6c8   :  { %v2037_v3 = vpop.trf.xlu0  ;;  %v2069_v63 = vpop.trf.xlu1 }
 0x6cc   :  { %v2038_v50 = vpop.trf.xlu0  ;;  %v2070_v47 = vpop.trf.xlu1 }
 0x6cd   :  { %v2085_v21 = vpack.c.bf16 %v2038_v50, %v2037_v3  ;;  %v2093_v40 = vpack.c.bf16 %v2070_v47, %v2069_v63 }
 0x6cf   :  { %7376 = vmatmul.mubr.msk.bf16.vlgmr.msra.gmra.mrb[88].mxu0 %vm685_vm2, %v2085_v21 }
 0x6d0   :  { %v2039_v33 = vpop.trf.xlu0  ;;  %2199 = vmatprep.mubr.bf16.mxu0 %v12512_v20  ;;  %v2071_v49 = vpop.trf.xlu1 }
 0x6d4   :  { %v2040_v62 = vpop.trf.xlu0  ;;  %v2072_v17 = vpop.trf.xlu1 }
 0x6d5   :  { %v2086_v39 = vpack.c.bf16 %v2040_v62, %v2039_v33  ;;  %v2094_v7 = vpack.c.bf16 %v2072_v17, %v2071_v49 }
 0x6d7   :  { %7377 = vmatmul.mubr.msk.bf16.gmra.mrb[92].mxu0 %vm685_vm2, %v2086_v39 }
 0x6d8   :  { %v2041_v24 = vpop.trf.xlu0  ;;  %2209 = vmatprep.mubr.bf16.mxu0 %v12512_v20  ;;  %v2073_v11 = vpop.trf.xlu1 }
 0x6dc   :  { %v2042_v56 = vpop.trf.xlu0  ;;  %v2074_v15 = vpop.trf.xlu1 }
 0x6dd   :  { %v2087_v53 = vpack.c.bf16 %v2042_v56, %v2041_v24  ;;  %v2095_v37 = vpack.c.bf16 %v2074_v15, %v2073_v11 }
 0x6df   :  { %7378 = vmatmul.mubr.msk.bf16.gmra.mrb[96].mxu0 %vm685_vm2, %v2087_v53 }
 0x6e0   :  { %v2043_v61 = vpop.trf.xlu0  ;;  %2219 = vmatprep.mubr.bf16.mxu0 %v12512_v20  ;;  %v2075_v22 = vpop.trf.xlu1 }
 0x6e4   :  { %v2044_v59 = vpop.trf.xlu0  ;;  %v2076_v30 = vpop.trf.xlu1 }
 0x6e5   :  { %v2088_v25 = vpack.c.bf16 %v2044_v59, %v2043_v61  ;;  %v2096_v51 = vpack.c.bf16 %v2076_v30, %v2075_v22 }
 0x6e7   :  { %7379 = vmatmul.mubr.msk.bf16.gmra.mrb[100].mxu0 %vm685_vm2, %v2088_v25 }
 0x6e8   :  { %v2045_v18 = vpop.trf.xlu0  ;;  %2229 = vmatprep.mubr.bf16.mxu0 %v12512_v20  ;;  %v2077_v58 = vpop.trf.xlu1 }
 0x6ec   :  { %v2046_v13 = vpop.trf.xlu0  ;;  %v2078_v2 = vpop.trf.xlu1 }
 0x6ed   :  { %v2089_v38 = vpack.c.bf16 %v2046_v13, %v2045_v18  ;;  %v2097_v27 = vpack.c.bf16 %v2078_v2, %v2077_v58 }
 0x6ef   :  { %7380 = vmatmul.mubr.msk.bf16.gmra.mrb[104].mxu0 %vm685_vm2, %v2089_v38 }
 0x6f0   :  { %v2047_v23 = vpop.trf.xlu0  ;;  %2239 = vmatprep.mubr.bf16.mxu0 %v12512_v20  ;;  %v2079_v28 = vpop.trf.xlu1 }
 0x6f4   :  { %v2048_v6 = vpop.trf.xlu0  ;;  %v2080_v1 = vpop.trf.xlu1 }
 0x6f5   :  { %v2090_v12 = vpack.c.bf16 %v2048_v6, %v2047_v23  ;;  %v2098_v19 = vpack.c.bf16 %v2080_v1, %v2079_v28 }
 0x6f7   :  { %7381 = vmatmul.mubr.msk.bf16.gmra.mrb[108].mxu0 %vm685_vm2, %v2090_v12 }
 0x6f8   :  { %v2049_v55 = vpop.trf.xlu0  ;;  %2249 = vmatprep.mubr.bf16.mxu0 %v12512_v20  ;;  %v2081_v43 = vpop.trf.xlu1 }
 0x6fc   :  { %v2050_v4 = vpop.trf.xlu0  ;;  %v2082_v14 = vpop.trf.xlu1 }
 0x6fd   :  { %v2091_v5 = vpack.c.bf16 %v2050_v4, %v2049_v55  ;;  %v2099_v32 = vpack.c.bf16 %v2082_v14, %v2081_v43 }
 0x6ff   :  { %7382 = vmatmul.mubr.msk.bf16.gmra.mrb[112].mxu0 %vm685_vm2, %v2091_v5 }
 0x700   :  { %v2051_v34 = vpop.trf.xlu0  ;;  %2259 = vmatprep.mubr.bf16.mxu0 %v12512_v20  ;;  %v2083_v46 = vpop.trf.xlu1 }
 0x704   :  { %v2052_v31 = vpop.trf.xlu0  ;;  %v2084_v8 = vpop.trf.xlu1 }
 0x705   :  { %v2092_v9 = vpack.c.bf16 %v2052_v31, %v2051_v34  ;;  %v2100_v16 = vpack.c.bf16 %v2084_v8, %v2083_v46 }
 0x707   :  { %7383 = vmatmul.mubr.msk.bf16.gmra.mrb[116].mxu0 %vm685_vm2, %v2092_v9 }
 0x708   :  { %2269 = vmatprep.mubr.bf16.mxu0 %v12512_v20 }
 0x70f   :  { %7384 = vmatmul.mubr.msk.bf16.gmra.mrb[120].mxu0 %vm685_vm2, %v2093_v40 }
 0x710   :  { %2279 = vmatprep.mubr.bf16.mxu0 %v12512_v20 }
 0x717   :  { %7385 = vmatmul.mubr.msk.bf16.gmra.mrb[124].mxu0 %vm685_vm2, %v2094_v7 }
 0x718   :  { %2289 = vmatprep.mubr.bf16.mxu0 %v12512_v20 }
 0x71f   :  { %7386 = vmatmul.mubr.msk.bf16.gmra.mrb[128].mxu0 %vm685_vm2, %v2095_v37 }
 0x720   :  { %2299 = vmatprep.mubr.bf16.mxu0 %v12512_v20 }
 0x727   :  { %7387 = vmatmul.mubr.msk.bf16.gmra.mrb[132].mxu0 %vm685_vm2, %v2096_v51 }
 0x728   :  { %2309 = vmatprep.mubr.bf16.mxu0 %v12512_v20 }
 0x72f   :  { %7388 = vmatmul.mubr.msk.bf16.gmra.mrb[136].mxu0 %vm685_vm2, %v2097_v27 }
 0x730   :  { %2319 = vmatprep.mubr.bf16.mxu0 %v12512_v20 }
 0x734   :  { %v1998_v45 = vpop.f32.mrb[84].mxu0 }
 0x735   :  { %v2000_v41 = vpop.f32.mrb[85].mxu0 }
 0x736   :  { %v2002_v57 = vpop.f32.mrb[86].mxu0 }
 0x737   :  { %7389 = vmatmul.mubr.msk.bf16.gmra.mrb[140].mxu0 %vm685_vm2, %v2098_v19  ;;  %7833 = vrcp.f32 %v2002_v57  ;;  %v2004_v44 = vpop.f32.mrb[87].mxu0 }
 0x738   :  { %2329 = vmatprep.mubr.bf16.mxu0 %v12512_v20  ;;  %7835 = vrcp.f32 %v2004_v44 }
 0x73f   :  { %7390 = vmatmul.mubr.msk.bf16.gmra.mrb[144].mxu0 %vm685_vm2, %v2099_v32 }
 0x740   :  { %2339 = vmatprep.mubr.bf16.mxu0 %v12512_v20 }
 0x741   :  { %v7834_v60 = vpop.eup %7833 }
 0x742   :  { %v7836_v26 = vpop.eup %7835  ;;  %v2012_v35 = vrot.slane %v7834_v60, %v12513_v0 }
 0x743   :  { %v2016_v42 = vrot.slane %v7836_v26, %v12513_v0 }
 0x744   :  { %v9784_v52 = vmul.f32 %v2012_v35, %v1998_v45 }
 0x745   :  { %v9786_v3 = vmul.f32 %v2016_v42, %v2000_v41 }
 0x746   :  { %12514 = vst [vmem:[#allocation47_spill] sm:$0xff] %v9784_v52 }
 0x747   :  { %12515 = vst [vmem:[#allocation48_spill] sm:$0xff] %v9786_v3  ;;  %7391 = vmatmul.mubr.msk.bf16.gmra.mrb[148].mxu0 %vm685_vm2, %v2100_v16 }
 0x7a2   :  { %v9793_v39 = vpop.f32.mrb[88].mxu0 }
 0x7a3   :  { %v9795_v24 = vpop.f32.mrb[89].mxu0 }
 0x7a4   :  { %v9797_v56 = vpop.f32.mrb[90].mxu0  ;;  %v2350_v53 = vmax.f32 %v9793_v39, %v9795_v24 }
 0x7a5   :  { %v9801_v61 = vpop.f32.mrb[91].mxu0 }
 0x7a6   :  { %2351 = vmax.xlane.f32.xlu0 %v2350_v53  ;;  %v2353_v59 = vmax.f32 %v9797_v56, %v9801_v61 }
 0x7a8   :  { %2354 = vmax.xlane.f32.xlu1 %v2353_v59 }
 0x7aa   :  { %v9805_v25 = vpop.f32.mrb[92].mxu0 }
 0x7ab   :  { %v9807_v18 = vpop.f32.mrb[93].mxu0 }
 0x7ac   :  { %v2356_v63 = vmax.f32 %v9805_v25, %v9807_v18  ;;  %v9811_v13 = vpop.f32.mrb[94].mxu0 }
 0x7ad   :  { %v9813_v38 = vpop.f32.mrb[95].mxu0 }
 0x7ae   :  { %v2359_v47 = vmax.f32 %v9811_v13, %v9813_v38  ;;  %2357 = vmax.xlane.f32.xlu0 %v2356_v63 }
 0x7b2   :  { %2360 = vmax.xlane.f32.xlu0 %v2359_v47  ;;  %v9817_v23 = vpop.f32.mrb[96].mxu0 }
 0x7b3   :  { %v9819_v6 = vpop.f32.mrb[97].mxu0 }
 0x7b4   :  { %v2362_v49 = vmax.f32 %v9817_v23, %v9819_v6  ;;  %v9823_v12 = vpop.f32.mrb[98].mxu0 }
 0x7b5   :  { %v9825_v55 = vpop.f32.mrb[99].mxu0 }
 0x7b6   :  { %v2365_v17 = vmax.f32 %v9823_v12, %v9825_v55  ;;  %2363 = vmax.xlane.f32.xlu1 %v2362_v49 }
 0x7b8   :  { %2366 = vmax.xlane.f32.xlu0 %v2365_v17 }
 0x7ba   :  { %v9829_v4 = vpop.f32.mrb[100].mxu0 }
 0x7bb   :  { %v9831_v5 = vpop.f32.mrb[101].mxu0 }
 0x7bc   :  { %v2368_v34 = vmax.f32 %v9829_v4, %v9831_v5  ;;  %v9835_v11 = vpop.f32.mrb[102].mxu0 }
 0x7bd   :  { %v9837_v31 = vpop.f32.mrb[103].mxu0 }
 0x7be   :  { %v2371_v9 = vmax.f32 %v9835_v11, %v9837_v31  ;;  %2369 = vmax.xlane.f32.xlu1 %v2368_v34 }
 0x7c0   :  { %2372 = vmax.xlane.f32.xlu0 %v2371_v9 }
 0x7c2   :  { %v9841_v15 = vpop.f32.mrb[104].mxu0 }
 0x7c3   :  { %v9843_v22 = vpop.f32.mrb[105].mxu0 }
 0x7c4   :  { %v2374_v40 = vmax.f32 %v9841_v15, %v9843_v22  ;;  %v9847_v30 = vpop.f32.mrb[106].mxu0 }
 0x7c5   :  { %v9849_v7 = vpop.f32.mrb[107].mxu0 }
 0x7c6   :  { %v2377_v58 = vmax.f32 %v9847_v30, %v9849_v7  ;;  %2375 = vmax.xlane.f32.xlu1 %v2374_v40 }
 0x7c8   :  { %2378 = vmax.xlane.f32.xlu0 %v2377_v58 }
 0x7ca   :  { %v9853_v37 = vpop.f32.mrb[108].mxu0 }
 0x7cb   :  { %v9855_v2 = vpop.f32.mrb[109].mxu0 }
 0x7cc   :  { %v2380_v28 = vmax.f32 %v9853_v37, %v9855_v2  ;;  %v9859_v51 = vpop.f32.mrb[110].mxu0 }
 0x7cd   :  { %v9861_v1 = vpop.f32.mrb[111].mxu0 }
 0x7ce   :  { %v2383_v27 = vmax.f32 %v9859_v51, %v9861_v1  ;;  %2381 = vmax.xlane.f32.xlu1 %v2380_v28 }
 0x7d0   :  { %2384 = vmax.xlane.f32.xlu0 %v2383_v27 }
 0x7d2   :  { %v9865_v43 = vpop.f32.mrb[112].mxu0 }
 0x7d3   :  { %v9867_v14 = vpop.f32.mrb[113].mxu0 }
 0x7d4   :  { %v2386_v19 = vmax.f32 %v9865_v43, %v9867_v14  ;;  %v9871_v45 = vpop.f32.mrb[114].mxu0 }
 0x7d5   :  { %v9873_v41 = vpop.f32.mrb[115].mxu0 }
 0x7d6   :  { %v2389_v57 = vmax.f32 %v9871_v45, %v9873_v41  ;;  %2387 = vmax.xlane.f32.xlu1 %v2386_v19 }
 0x7d8   :  { %2390 = vmax.xlane.f32.xlu0 %v2389_v57 }
 0x7da   :  { %v9877_v44 = vpop.f32.mrb[116].mxu0 }
 0x7db   :  { %v9879_v46 = vpop.f32.mrb[117].mxu0 }
 0x7dc   :  { %v2392_v32 = vmax.f32 %v9877_v44, %v9879_v46  ;;  %v9883_v8 = vpop.f32.mrb[118].mxu0 }
 0x7dd   :  { %v9885_v60 = vpop.f32.mrb[119].mxu0 }
 0x7de   :  { %v2395_v26 = vmax.f32 %v9883_v8, %v9885_v60  ;;  %2393 = vmax.xlane.f32.xlu1 %v2392_v32 }
 0x7e0   :  { %2396 = vmax.xlane.f32.xlu0 %v2395_v26 }
 0x7e2   :  { %v9889_v16 = vpop.f32.mrb[120].mxu0 }
 0x7e3   :  { %v9891_v35 = vpop.f32.mrb[121].mxu0 }
 0x7e4   :  { %v2398_v42 = vmax.f32 %v9889_v16, %v9891_v35  ;;  %v9895_v53 = vpop.f32.mrb[122].mxu0 }
 0x7e5   :  { %v9897_v59 = vpop.f32.mrb[123].mxu0 }
 0x7e6   :  { %v2401_v63 = vmax.f32 %v9895_v53, %v9897_v59  ;;  %2399 = vmax.xlane.f32.xlu1 %v2398_v42 }
 0x7e8   :  { %2402 = vmax.xlane.f32.xlu0 %v2401_v63 }
 0x7ea   :  { %v9901_v47 = vpop.f32.mrb[124].mxu0 }
 0x7eb   :  { %v9903_v49 = vpop.f32.mrb[125].mxu0 }
 0x7ec   :  { %v2404_v17 = vmax.f32 %v9901_v47, %v9903_v49  ;;  %v9907_v34 = vpop.f32.mrb[126].mxu0 }
 0x7ed   :  { %v9909_v9 = vpop.f32.mrb[127].mxu0 }
 0x7ee   :  { %v2407_v40 = vmax.f32 %v9907_v34, %v9909_v9  ;;  %2405 = vmax.xlane.f32.xlu1 %v2404_v17 }
 0x7f0   :  { %2408 = vmax.xlane.f32.xlu0 %v2407_v40 }
 0x7f2   :  { %v9913_v58 = vpop.f32.mrb[128].mxu0 }
 0x7f3   :  { %v9915_v28 = vpop.f32.mrb[129].mxu0 }
 0x7f4   :  { %v2410_v27 = vmax.f32 %v9913_v58, %v9915_v28  ;;  %v9919_v19 = vpop.f32.mrb[130].mxu0 }
 0x7f5   :  { %v9921_v57 = vpop.f32.mrb[131].mxu0 }
 0x7f6   :  { %v2413_v32 = vmax.f32 %v9919_v19, %v9921_v57  ;;  %2411 = vmax.xlane.f32.xlu1 %v2410_v27 }
 0x7f8   :  { %2414 = vmax.xlane.f32.xlu0 %v2413_v32 }
 0x7fa   :  { %v9925_v26 = vpop.f32.mrb[132].mxu0 }
 0x7fb   :  { %v9927_v42 = vpop.f32.mrb[133].mxu0 }
 0x7fc   :  { %v2416_v63 = vmax.f32 %v9925_v26, %v9927_v42  ;;  %v9931_v17 = vpop.f32.mrb[134].mxu0 }
 0x7fd   :  { %v9933_v40 = vpop.f32.mrb[135].mxu0 }
 0x7fe   :  { %v2419_v21 = vmax.f32 %v9931_v17, %v9933_v40  ;;  %2417 = vmax.xlane.f32.xlu1 %v2416_v63 }
 0x800   :  { %2420 = vmax.xlane.f32.xlu0 %v2419_v21 }
 0x802   :  { %v9937_v62 = vpop.f32.mrb[136].mxu0 }
 0x803   :  { %v9939_v27 = vpop.f32.mrb[137].mxu0 }
 0x804   :  { %v2422_v32 = vmax.f32 %v9937_v62, %v9939_v27  ;;  %v9943_v50 = vpop.f32.mrb[138].mxu0 }
 0x805   :  { %12518 = vst [vmem:[#allocation30_spill] sm:$0xff] %v9943_v50  ;;  %v9945_v52 = vpop.f32.mrb[139].mxu0 }
 0x806   :  { %12519 = vst [vmem:[#allocation28_spill] sm:$0xff] %v9945_v52  ;;  %v2425_v33 = vmax.f32 %v9943_v50, %v9945_v52  ;;  %2423 = vmax.xlane.f32.xlu1 %v2422_v32 }
 0x808   :  { %2426 = vmax.xlane.f32.xlu0 %v2425_v33 }
 0x80a   :  { %v9949_v3 = vpop.f32.mrb[140].mxu0 }
 0x80b   :  { %12520 = vst [vmem:[#allocation37_spill] sm:$0xff] %v9949_v3  ;;  %v9951_v63 = vpop.f32.mrb[141].mxu0 }
 0x80c   :  { %12521 = vst [vmem:[#allocation63_spill] sm:$0xff] %v9951_v63  ;;  %v2428_v21 = vmax.f32 %v9949_v3, %v9951_v63  ;;  %v9955_v48 = vpop.f32.mrb[142].mxu0 }
 0x80d   :  { %12522 = vst [vmem:[#allocation64_spill] sm:$0xff] %v9955_v48  ;;  %v9957_v54 = vpop.f32.mrb[143].mxu0 }
 0x80e   :  { %12523 = vst [vmem:[#allocation17_spill] sm:$0xff] %v9957_v54  ;;  %v2431_v10 = vmax.f32 %v9955_v48, %v9957_v54  ;;  %2429 = vmax.xlane.f32.xlu1 %v2428_v21 }
 0x810   :  { %2432 = vmax.xlane.f32.xlu0 %v2431_v10 }
 0x812   :  { %v9961_v36 = vpop.f32.mrb[144].mxu0 }
 0x813   :  { %12524 = vst [vmem:[#allocation19_spill] sm:$0xff] %v9961_v36  ;;  %v9963_v32 = vpop.f32.mrb[145].mxu0 }
 0x814   :  { %12525 = vst [vmem:[#allocation25_spill] sm:$0xff] %v9963_v32  ;;  %v2434_v33 = vmax.f32 %v9961_v36, %v9963_v32  ;;  %v9967_v0 = vpop.f32.mrb[146].mxu0  ;;  %v8655_v36 = vld [vmem:[%s12205_s6 + $0x18] sm:$0xff] }
 0x815   :  { %12526 = vst [vmem:[#allocation26_spill] sm:$0xff] %v9967_v0  ;;  %v9969_v20 = vpop.f32.mrb[147].mxu0 }
 0x816   :  { %12527 = vst [vmem:[#allocation65_spill] sm:$0xff] %v9969_v20  ;;  %v2437_v29 = vmax.f32 %v9967_v0, %v9969_v20 }
 0x818   :  { %2438 = vmax.xlane.f32.xlu0 %v2437_v29 }
 0x81a   :  { %v9973_v63 = vpop.f32.mrb[148].mxu0 }
 0x81b   :  { %12528 = vst [vmem:[#allocation66_spill] sm:$0xff] %v9973_v63  ;;  %v9975_v54 = vpop.f32.mrb[149].mxu0 }
 0x81c   :  { %12529 = vst [vmem:[#allocation40_spill] sm:$0xff] %v9975_v54  ;;  %v2440_v10 = vmax.f32 %v9973_v63, %v9975_v54  ;;  %v9979_v21 = vpop.f32.mrb[150].mxu0  ;;  %v52_v63 = vld [vmem:[%s12205_s6 + $0x50] sm:$0xff] }
 0x81d   :  { %12530 = vst [vmem:[#allocation34_spill] sm:$0xff] %v9979_v21  ;;  %v9981_v48 = vpop.f32.mrb[151].mxu0 }
 0x81e   :  { %12531 = vst [vmem:[#allocation33_spill] sm:$0xff] %v9981_v48  ;;  %2441 = vmax.xlane.f32.xlu0 %v2440_v10  ;;  %v2443_v32 = vmax.f32 %v9979_v21, %v9981_v48 }
 0x81f   :  { %309 = vperm.xlu1 %7533, %v8655_v36  }
 0x822   :  { %2444 = vmax.xlane.f32.xlu0 %v2443_v32 }
 0x833   :  { %v2352_v29 = vpop.xlane.xlu0 %2351 }
 0x834   :  { %v2446_v20 = vsub.f32 %v9793_v39, %v2352_v29  ;;  %v2447_v0 = vsub.f32 %v9795_v24, %v2352_v29 }
 0x835   :  { %v2355_v54 = vpop.xlane.xlu1 %2354 }
 0x836   :  { %v2510_v10 = vmul.f32 1.442695, %v2446_v20  ;;  %v2448_v3 = vsub.f32 %v9797_v56, %v2355_v54  ;;  %v2449_v48 = vsub.f32 %v9801_v61, %v2355_v54  ;;  %v2512_v21 = vmul.f32 1.442695, %v2447_v0 }
 0x838   :  { %v2514_v52 = vmul.f32 1.442695, %v2448_v3  ;;  %v2516_v50 = vmul.f32 1.442695, %v2449_v48  ;;  %344 = vperm.xlu0 %7534, %v52_v63   ;;  %7837 = vpow2.f32 %v2510_v10 }
 0x83a   :  { %7839 = vpow2.f32 %v2514_v52 }
 0x83b   :  { %7841 = vpow2.f32 %v2516_v50  ;;  %v2358_v36 = vpop.xlane.xlu0 %2357 }
 0x83c   :  { %7843 = vpow2.f32 %v2512_v21  ;;  %v2450_v39 = vsub.f32 %v9805_v25, %v2358_v36  ;;  %v2451_v24 = vsub.f32 %v9807_v18, %v2358_v36 }
 0x83e   :  { %v2518_v32 = vmul.f32 1.442695, %v2450_v39  ;;  %v2520_v29 = vmul.f32 1.442695, %v2451_v24 }
 0x83f   :  { %v2361_v20 = vpop.xlane.xlu0 %2360 }
 0x840   :  { %v2452_v56 = vsub.f32 %v9811_v13, %v2361_v20  ;;  %v2453_v54 = vsub.f32 %v9813_v38, %v2361_v20  ;;  %7845 = vpow2.f32 %v2518_v32 }
 0x841   :  { %7847 = vpow2.f32 %v2520_v29 }
 0x842   :  { %v2522_v0 = vmul.f32 1.442695, %v2452_v56  ;;  %v2524_v48 = vmul.f32 1.442695, %v2453_v54  ;;  %v7838_v3 = vpop.eup %7837 }
 0x843   :  { %v2364_v52 = vpop.xlane.xlu1 %2363  ;;  %2435 = vmax.xlane.f32.xlu1 %v2434_v33 }
 0x844   :  { %v7840_v50 = vpop.eup %7839  ;;  %7849 = vpow2.f32 %v2522_v0  ;;  %v2454_v61 = vsub.f32 %v9817_v23, %v2364_v52  ;;  %v2455_v25 = vsub.f32 %v9819_v6, %v2364_v52 }
 0x845   :  { %v7842_v18 = vpop.eup %7841  ;;  %7851 = vpow2.f32 %v2524_v48  ;;  %v2367_v63 = vpop.xlane.xlu0 %2366  ;;  %v2638_v21 = vpack.c.bf16 %v7840_v50, %v7838_v3 }
 0x846   :  { %v7844_v13 = vpop.eup %7843  ;;  %v2526_v10 = vmul.f32 1.442695, %v2454_v61  ;;  %v2456_v38 = vsub.f32 %v9823_v12, %v2367_v63  ;;  %v2457_v36 = vsub.f32 %v9825_v55, %v2367_v63  ;;  %v2528_v24 = vmul.f32 1.442695, %v2455_v25 }
 0x847   :  { %v2639_v39 = vpack.c.bf16 %v7842_v18, %v7844_v13 }
 0x848   :  { %v2530_v32 = vmul.f32 1.442695, %v2456_v38  ;;  %v2532_v33 = vmul.f32 1.442695, %v2457_v36  ;;  %7853 = vpow2.f32 %v2526_v10 }
 0x849   :  { %2672 = vmatprep.subr.bf16.mxu1 %v2639_v39 }
 0x84a   :  { %7855 = vpow2.f32 %v2530_v32  ;;  %2673 = vmatpush1.bf16.xpose.msra.mxu1 %v2638_v21  ;;  %v7846_v6 = vpop.eup %7845 }
 0x84b   :  { %7857 = vpow2.f32 %v2532_v33  ;;  %v2370_v23 = vpop.xlane.xlu1 %2369  ;;  %v7848_v56 = vpop.eup %7847 }
 0x84c   :  { %7859 = vpow2.f32 %v2528_v24  ;;  %v2458_v29 = vsub.f32 %v9829_v4, %v2370_v23  ;;  %v2459_v20 = vsub.f32 %v9831_v5, %v2370_v23  ;;  %v49_v4 = vld [vmem:[%s12205_s6 + $0x38] sm:$0xff] }
 0x84d   :  { %v2373_v12 = vpop.xlane.xlu0 %2372 }
 0x84e   :  { %v7850_v54 = vpop.eup %7849  ;;  %v2534_v55 = vmul.f32 1.442695, %v2458_v29  ;;  %v2460_v0 = vsub.f32 %v9835_v11, %v2373_v12  ;;  %v2461_v48 = vsub.f32 %v9837_v31, %v2373_v12  ;;  %v2536_v50 = vmul.f32 1.442695, %v2459_v20 }
 0x84f   :  { %v7852_v3 = vpop.eup %7851  ;;  %v2640_v52 = vpack.c.bf16 %v7850_v54, %v7846_v6 }
 0x850   :  { %v2538_v61 = vmul.f32 1.442695, %v2460_v0  ;;  %v2540_v25 = vmul.f32 1.442695, %v2461_v48  ;;  %v2641_v18 = vpack.c.bf16 %v7852_v3, %v7848_v56  ;;  %7861 = vpow2.f32 %v2534_v55 }
 0x852   :  { %7863 = vpow2.f32 %v2538_v61  ;;  %2674 = vmatprep.subr.bf16.mxu1 %v2641_v18  ;;  %v7854_v5 = vpop.eup %7853 }
 0x853   :  { %7865 = vpow2.f32 %v2540_v25  ;;  %2675 = vmatpush1.bf16.xpose.msra.mxu1 %v2640_v52  ;;  %v2376_v63 = vpop.xlane.xlu1 %2375 }
 0x854   :  { %v7856_v11 = vpop.eup %7855  ;;  %7867 = vpow2.f32 %v2536_v50  ;;  %v2462_v31 = vsub.f32 %v9841_v15, %v2376_v63  ;;  %v2463_v21 = vsub.f32 %v9843_v22, %v2376_v63  ;;  %329 = vperm.xlu1 %7533, %v49_v4  }
 0x855   :  { %v7858_v13 = vpop.eup %7857  ;;  %v2379_v10 = vpop.xlane.xlu0 %2378  ;;  %v2642_v38 = vpack.c.bf16 %v7856_v11, %v7854_v5 }
 0x856   :  { %v7860_v36 = vpop.eup %7859  ;;  %v2542_v39 = vmul.f32 1.442695, %v2462_v31  ;;  %v2464_v24 = vsub.f32 %v9847_v30, %v2379_v10  ;;  %v2465_v32 = vsub.f32 %v9849_v7, %v2379_v10  ;;  %v2544_v23 = vmul.f32 1.442695, %v2463_v21 }
 0x857   :  { %v2643_v33 = vpack.c.bf16 %v7858_v13, %v7860_v36 }
 0x858   :  { %v2546_v6 = vmul.f32 1.442695, %v2464_v24  ;;  %v2548_v29 = vmul.f32 1.442695, %v2465_v32  ;;  %7869 = vpow2.f32 %v2542_v39 }
 0x859   :  { %2676 = vmatprep.subr.bf16.mxu1 %v2643_v33 }
 0x85a   :  { %7871 = vpow2.f32 %v2546_v6  ;;  %v7862_v15 = vpop.eup %7861 }
 0x85b   :  { %7873 = vpow2.f32 %v2548_v29  ;;  %2677 = vmatpush1.bf16.xpose.msra.mxu1 %v2642_v38  ;;  %v2382_v22 = vpop.xlane.xlu1 %2381 }
 0x85c   :  { %v7864_v20 = vpop.eup %7863  ;;  %7875 = vpow2.f32 %v2544_v23  ;;  %v2466_v56 = vsub.f32 %v9853_v37, %v2382_v22  ;;  %v2467_v12 = vsub.f32 %v9855_v2, %v2382_v22 }
 0x85d   :  { %v7866_v30 = vpop.eup %7865  ;;  %v2385_v54 = vpop.xlane.xlu0 %2384  ;;  %v2644_v7 = vpack.c.bf16 %v7864_v20, %v7862_v15 }
 0x85e   :  { %v7868_v55 = vpop.eup %7867  ;;  %v2550_v0 = vmul.f32 1.442695, %v2466_v56  ;;  %v2468_v48 = vsub.f32 %v9859_v51, %v2385_v54  ;;  %v2469_v3 = vsub.f32 %v9861_v1, %v2385_v54  ;;  %v2552_v50 = vmul.f32 1.442695, %v2467_v12 }
 0x85f   :  { %v2645_v52 = vpack.c.bf16 %v7866_v30, %v7868_v55 }
 0x860   :  { %v2554_v61 = vmul.f32 1.442695, %v2468_v48  ;;  %v2556_v25 = vmul.f32 1.442695, %v2469_v3  ;;  %7877 = vpow2.f32 %v2550_v0 }
 0x861   :  { %2678 = vmatprep.subr.bf16.mxu1 %v2645_v52 }
 0x862   :  { %7879 = vpow2.f32 %v2554_v61  ;;  %v7870_v18 = vpop.eup %7869 }
 0x863   :  { %7881 = vpow2.f32 %v2556_v25  ;;  %2679 = vmatpush1.bf16.xpose.msra.mxu1 %v2644_v7  ;;  %v2388_v37 = vpop.xlane.xlu1 %2387 }
 0x864   :  { %v7872_v2 = vpop.eup %7871  ;;  %7883 = vpow2.f32 %v2552_v50  ;;  %v2470_v4 = vsub.f32 %v9865_v43, %v2388_v37  ;;  %v2471_v5 = vsub.f32 %v9867_v14, %v2388_v37 }
 0x865   :  { %v7874_v51 = vpop.eup %7873  ;;  %v2391_v63 = vpop.xlane.xlu0 %2390  ;;  %v2646_v1 = vpack.c.bf16 %v7872_v2, %v7870_v18 }
 0x866   :  { %v7876_v11 = vpop.eup %7875  ;;  %v2558_v31 = vmul.f32 1.442695, %v2470_v4  ;;  %v2472_v21 = vsub.f32 %v9871_v45, %v2391_v63  ;;  %v2473_v13 = vsub.f32 %v9873_v41, %v2391_v63  ;;  %v2560_v38 = vmul.f32 1.442695, %v2471_v5 }
 0x867   :  { %v2647_v10 = vpack.c.bf16 %v7874_v51, %v7876_v11 }
 0x868   :  { %v2562_v36 = vmul.f32 1.442695, %v2472_v21  ;;  %v2564_v39 = vmul.f32 1.442695, %v2473_v13  ;;  %7885 = vpow2.f32 %v2558_v31 }
 0x869   :  { %2680 = vmatprep.subr.bf16.mxu1 %v2647_v10 }
 0x86a   :  { %7887 = vpow2.f32 %v2562_v36  ;;  %v7878_v24 = vpop.eup %7877 }
 0x86b   :  { %7889 = vpow2.f32 %v2564_v39  ;;  %2681 = vmatpush1.bf16.xpose.msra.mxu1 %v2646_v1  ;;  %v2394_v43 = vpop.xlane.xlu1 %2393 }
 0x86c   :  { %v7880_v14 = vpop.eup %7879  ;;  %7891 = vpow2.f32 %v2560_v38  ;;  %v2474_v32 = vsub.f32 %v9877_v44, %v2394_v43  ;;  %v2475_v33 = vsub.f32 %v9879_v46, %v2394_v43 }
 0x86d   :  { %v7882_v45 = vpop.eup %7881  ;;  %v2397_v23 = vpop.xlane.xlu0 %2396  ;;  %v2648_v41 = vpack.c.bf16 %v7880_v14, %v7878_v24 }
 0x86e   :  { %v7884_v6 = vpop.eup %7883  ;;  %v2566_v29 = vmul.f32 1.442695, %v2474_v32  ;;  %v2476_v15 = vsub.f32 %v9883_v8, %v2397_v23  ;;  %v2477_v22 = vsub.f32 %v9885_v60, %v2397_v23  ;;  %v2568_v56 = vmul.f32 1.442695, %v2475_v33 }
 0x86f   :  { %v2649_v20 = vpack.c.bf16 %v7882_v45, %v7884_v6 }
 0x870   :  { %v2570_v12 = vmul.f32 1.442695, %v2476_v15  ;;  %v2572_v30 = vmul.f32 1.442695, %v2477_v22  ;;  %7893 = vpow2.f32 %v2566_v29 }
 0x871   :  { %2682 = vmatprep.subr.bf16.mxu1 %v2649_v20 }
 0x872   :  { %7895 = vpow2.f32 %v2570_v12  ;;  %v7886_v54 = vpop.eup %7885 }
 0x873   :  { %7897 = vpow2.f32 %v2572_v30  ;;  %2683 = vmatpush1.bf16.xpose.msra.mxu1 %v2648_v41  ;;  %v2400_v44 = vpop.xlane.xlu1 %2399 }
 0x874   :  { %v7888_v46 = vpop.eup %7887  ;;  %7899 = vpow2.f32 %v2568_v56  ;;  %v2478_v7 = vsub.f32 %v9889_v16, %v2400_v44  ;;  %v2479_v55 = vsub.f32 %v9891_v35, %v2400_v44 }
 0x875   :  { %v7890_v8 = vpop.eup %7889  ;;  %v2403_v0 = vpop.xlane.xlu0 %2402  ;;  %v2650_v60 = vpack.c.bf16 %v7888_v46, %v7886_v54 }
 0x876   :  { %v7892_v48 = vpop.eup %7891  ;;  %v2574_v3 = vmul.f32 1.442695, %v2478_v7  ;;  %v2480_v52 = vsub.f32 %v9895_v53, %v2403_v0  ;;  %v2481_v50 = vsub.f32 %v9897_v59, %v2403_v0  ;;  %v2576_v25 = vmul.f32 1.442695, %v2479_v55 }
 0x877   :  { %v2651_v61 = vpack.c.bf16 %v7890_v8, %v7892_v48 }
 0x878   :  { %v2578_v18 = vmul.f32 1.442695, %v2480_v52  ;;  %v2580_v37 = vmul.f32 1.442695, %v2481_v50  ;;  %7901 = vpow2.f32 %v2574_v3 }
 0x879   :  { %2684 = vmatprep.subr.bf16.mxu1 %v2651_v61 }
 0x87a   :  { %7903 = vpow2.f32 %v2578_v18  ;;  %v7894_v2 = vpop.eup %7893 }
 0x87b   :  { %7905 = vpow2.f32 %v2580_v37  ;;  %2685 = vmatpush1.bf16.xpose.msra.mxu1 %v2650_v60  ;;  %v2406_v16 = vpop.xlane.xlu1 %2405  ;;  %v12533_v37 = vld [vmem:[#allocation28_spill] sm:$0xff] }
 0x87c   :  { %v7896_v35 = vpop.eup %7895  ;;  %7907 = vpow2.f32 %v2576_v25  ;;  %v2482_v4 = vsub.f32 %v9901_v47, %v2406_v16  ;;  %v2483_v5 = vsub.f32 %v9903_v49, %v2406_v16  ;;  %v12532_v25 = vld [vmem:[#allocation30_spill] sm:$0xff] }
 0x87d   :  { %v7898_v53 = vpop.eup %7897  ;;  %v2409_v51 = vpop.xlane.xlu0 %2408  ;;  %v2652_v59 = vpack.c.bf16 %v7896_v35, %v7894_v2 }
 0x87e   :  { %v7900_v63 = vpop.eup %7899  ;;  %v2582_v1 = vmul.f32 1.442695, %v2482_v4  ;;  %v2484_v11 = vsub.f32 %v9907_v34, %v2409_v51  ;;  %v2485_v31 = vsub.f32 %v9909_v9, %v2409_v51  ;;  %v2584_v13 = vmul.f32 1.442695, %v2483_v5 }
 0x87f   :  { %v2653_v21 = vpack.c.bf16 %v7898_v53, %v7900_v63  ;;  %v12534_v53 = vld [vmem:[#allocation37_spill] sm:$0xff] }
 0x880   :  { %v2586_v10 = vmul.f32 1.442695, %v2484_v11  ;;  %v2588_v38 = vmul.f32 1.442695, %v2485_v31  ;;  %7909 = vpow2.f32 %v2582_v1 }
 0x881   :  { %2686 = vmatprep.subr.bf16.mxu1 %v2653_v21 }
 0x882   :  { %7911 = vpow2.f32 %v2586_v10  ;;  %v7902_v36 = vpop.eup %7901 }
 0x883   :  { %7913 = vpow2.f32 %v2588_v38  ;;  %2687 = vmatpush1.bf16.xpose.msra.mxu1 %v2652_v59  ;;  %v2412_v47 = vpop.xlane.xlu1 %2411  ;;  %v12535_v59 = vld [vmem:[#allocation63_spill] sm:$0xff]  ;;  %v12536_v38 = vld [vmem:[#allocation64_spill] sm:$0xff] }
 0x884   :  { %v7904_v49 = vpop.eup %7903  ;;  %7915 = vpow2.f32 %v2584_v13  ;;  %v2486_v39 = vsub.f32 %v9913_v58, %v2412_v47  ;;  %v2487_v24 = vsub.f32 %v9915_v28, %v2412_v47  ;;  %v12537_v47 = vld [vmem:[#allocation17_spill] sm:$0xff] }
 0x885   :  { %v7906_v34 = vpop.eup %7905  ;;  %v2415_v43 = vpop.xlane.xlu0 %2414  ;;  %v2654_v9 = vpack.c.bf16 %v7904_v49, %v7902_v36 }
 0x886   :  { %v7908_v14 = vpop.eup %7907  ;;  %v2590_v32 = vmul.f32 1.442695, %v2486_v39  ;;  %v2488_v33 = vsub.f32 %v9919_v19, %v2415_v43  ;;  %v2489_v45 = vsub.f32 %v9921_v57, %v2415_v43  ;;  %v2592_v41 = vmul.f32 1.442695, %v2487_v24 }
 0x887   :  { %v2655_v23 = vpack.c.bf16 %v7906_v34, %v7908_v14 }
 0x888   :  { %v2594_v6 = vmul.f32 1.442695, %v2488_v33  ;;  %v2596_v29 = vmul.f32 1.442695, %v2489_v45  ;;  %7917 = vpow2.f32 %v2590_v32  ;;  %v12539_v32 = vld [vmem:[#allocation22_spill] sm:$0xff]  ;;  %v12540_v45 = vld [vmem:[#allocation27_spill] sm:$0xff] }
 0x889   :  { %2688 = vmatprep.subr.bf16.mxu1 %v2655_v23 }
 0x88a   :  { %7919 = vpow2.f32 %v2594_v6  ;;  %v7910_v15 = vpop.eup %7909 }
 0x88b   :  { %7921 = vpow2.f32 %v2596_v29  ;;  %2689 = vmatpush1.bf16.xpose.msra.mxu1 %v2654_v9  ;;  %v2418_v58 = vpop.xlane.xlu1 %2417  ;;  %v12538_v9 = vld [vmem:[#allocation20_spill] sm:$0xff] }
 0x88c   :  { %v7912_v28 = vpop.eup %7911  ;;  %7923 = vpow2.f32 %v2592_v41  ;;  %v2490_v22 = vsub.f32 %v9925_v26, %v2418_v58  ;;  %v2491_v20 = vsub.f32 %v9927_v42, %v2418_v58  ;;  %v12542_v41 = vld [vmem:[#allocation29_spill] sm:$0xff] }
 0x88d   :  { %v7914_v19 = vpop.eup %7913  ;;  %v2421_v56 = vpop.xlane.xlu0 %2420  ;;  %v2656_v57 = vpack.c.bf16 %v7912_v28, %v7910_v15 }
 0x88e   :  { %v7916_v12 = vpop.eup %7915  ;;  %v2598_v30 = vmul.f32 1.442695, %v2490_v22  ;;  %v2492_v54 = vsub.f32 %v9931_v17, %v2421_v56  ;;  %v2493_v44 = vsub.f32 %v9933_v40, %v2421_v56  ;;  %v2600_v7 = vmul.f32 1.442695, %v2491_v20 }
 0x88f   :  { %v2657_v46 = vpack.c.bf16 %v7914_v19, %v7916_v12 }
 0x890   :  { %v2602_v55 = vmul.f32 1.442695, %v2492_v54  ;;  %v2604_v8 = vmul.f32 1.442695, %v2493_v44  ;;  %7925 = vpow2.f32 %v2598_v30 }
 0x891   :  { %2690 = vmatprep.subr.bf16.mxu1 %v2657_v46  ;;  %v12544_v46 = vld [vmem:[#allocation66_spill] sm:$0xff] }
 0x892   :  { %7927 = vpow2.f32 %v2602_v55  ;;  %v7918_v0 = vpop.eup %7917  ;;  %v12545_v55 = vld [vmem:[#allocation40_spill] sm:$0xff] }
 0x893   :  { %7929 = vpow2.f32 %v2604_v8  ;;  %2691 = vmatpush1.bf16.xpose.msra.mxu1 %v2656_v57  ;;  %v2424_v26 = vpop.xlane.xlu1 %2423 }
 0x894   :  { %v7920_v42 = vpop.eup %7919  ;;  %7931 = vpow2.f32 %v2600_v7  ;;  %v2494_v60 = vsub.f32 %v9937_v62, %v2424_v26  ;;  %v2495_v48 = vsub.f32 %v9939_v27, %v2424_v26 }
 0x895   :  { %v7922_v17 = vpop.eup %7921  ;;  %v2427_v3 = vpop.xlane.xlu0 %2426  ;;  %v2658_v40 = vpack.c.bf16 %v7920_v42, %v7918_v0 }
 0x896   :  { %v7924_v52 = vpop.eup %7923  ;;  %v2606_v50 = vmul.f32 1.442695, %v2494_v60  ;;  %v2608_v61 = vmul.f32 1.442695, %v2495_v48  ;;  %v2496_v18 = vsub.f32 %v12532_v25, %v2427_v3  ;;  %v2497_v2 = vsub.f32 %v12533_v37, %v2427_v3  ;;  %v12546_v3 = vld [vmem:[#allocation34_spill] sm:$0xff]  ;;  %v12549_v37 = vld [vmem:[#allocation11_spill] sm:$0xff] }
 0x897   :  { %v2659_v16 = vpack.c.bf16 %v7922_v17, %v7924_v52  ;;  %v12547_v52 = vld [vmem:[#allocation33_spill] sm:$0xff] }
 0x898   :  { %7933 = vpow2.f32 %v2606_v50  ;;  %v2610_v35 = vmul.f32 1.442695, %v2496_v18  ;;  %v2612_v4 = vmul.f32 1.442695, %v2497_v2 }
 0x899   :  { %7935 = vpow2.f32 %v2608_v61  ;;  %2692 = vmatprep.subr.bf16.mxu1 %v2659_v16  ;;  %v12550_v16 = vmov 1.0  }
 0x89a   :  { %7937 = vpow2.f32 %v2610_v35  ;;  %v7926_v62 = vpop.eup %7925 }
 0x89b   :  { %7939 = vpow2.f32 %v2612_v4  ;;  %2693 = vmatpush1.bf16.xpose.msra.mxu1 %v2658_v40  ;;  %v2430_v27 = vpop.xlane.xlu1 %2429 }
 0x89c   :  { %v7928_v5 = vpop.eup %7927  ;;  %v2498_v51 = vsub.f32 %v12534_v53, %v2430_v27  ;;  %v2499_v63 = vsub.f32 %v12535_v59, %v2430_v27  ;;  %v12551_v59 = vld [vmem:[#allocation26_spill] sm:$0xff] }
 0x89d   :  { %v7930_v1 = vpop.eup %7929  ;;  %v2433_v11 = vpop.xlane.xlu0 %2432  ;;  %v2660_v31 = vpack.c.bf16 %v7928_v5, %v7926_v62 }
 0x89e   :  { %v7932_v21 = vpop.eup %7931  ;;  %v2614_v13 = vmul.f32 1.442695, %v2498_v51  ;;  %v2616_v10 = vmul.f32 1.442695, %v2499_v63  ;;  %v2500_v36 = vsub.f32 %v12536_v38, %v2433_v11  ;;  %v2501_v49 = vsub.f32 %v12537_v47, %v2433_v11 }
 0x89f   :  { %v310_v39 = vpop.permute.xlu1 %309  ;;  %v2661_v24 = vpack.c.bf16 %v7930_v1, %v7932_v21  ;;  %v12552_v1 = vld [vmem:[#allocation65_spill] sm:$0xff] }
 0x8a0   :  { %7941 = vpow2.f32 %v2614_v13  ;;  %v2618_v34 = vmul.f32 1.442695, %v2500_v36  ;;  %v2620_v43 = vmul.f32 1.442695, %v2501_v49  ;;  %v450_v14 = vadd.f32 %v12538_v9, %v310_v39  ;;  %v12554_v36 = vld [vmem:[#allocation25_spill] sm:$0xff] }
 0x8a1   :  { %7943 = vpow2.f32 %v2616_v10  ;;  %v452_v33 = vadd.f32 %v12539_v32, %v310_v39  ;;  %v10053_v23 = vadd.f32 %v12540_v45, %v310_v39  ;;  %v10056_v6 = vadd.f32 %v12542_v41, %v310_v39  ;;  %2694 = vmatprep.subr.bf16.mxu1 %v2661_v24  ;;  %v12553_v10 = vld [vmem:[#allocation19_spill] sm:$0xff]  ;;  %v12556_v45 = vld [vmem:[#allocation36_spill] sm:$0xff] }
 0x8a2   :  { %v7934_v29 = vpop.eup %7933  ;;  %7945 = vpow2.f32 %v2618_v34  ;;  %v599_v15 = vmul.f32 0.35355338, %v450_v14 }
 0x8a3   :  { %12541 = vst [vmem:[#allocation39_spill] sm:$0xff] %v10053_v23  ;;  %12543 = vst [vmem:[#allocation30_spill] sm:$0xff] %v10056_v6  ;;  %v7936_v58 = vpop.eup %7935  ;;  %7947 = vpow2.f32 %v2620_v43  ;;  %v600_v28 = vmul.f32 0.35355338, %v452_v33  ;;  %2695 = vmatpush1.bf16.xpose.msra.mxu1 %v2660_v31 }
 0x8a4   :  { %v7938_v22 = vpop.eup %7937  ;;  %2729 = vxpose.xlu1.b32.start.end [1/1] (short) %v599_v15, 128  ;;  %v12557_v15 = vld [vmem:[#allocation35_spill] sm:$0xff] }
 0x8a5   :  { %v7940_v20 = vpop.eup %7939  ;;  %2761 = vxpose.xlu0.b32.start.end [1/1] (short) %v600_v28, 128  ;;  %v2662_v19 = vpack.c.bf16 %v7938_v22, %v7934_v29  ;;  %v2439_v57 = vpop.xlane.xlu0 %2438  ;;  %v12558_v28 = vld [vmem:[#allocation10_spill] sm:$0xff] }
 0x8a6   :  { %v2663_v56 = vpack.c.bf16 %v7940_v20, %v7936_v58  ;;  %v2504_v63 = vsub.f32 %v12551_v59, %v2439_v57  ;;  %v2505_v11 = vsub.f32 %v12552_v1, %v2439_v57  ;;  %v12559_v57 = vmov 0  }
 0x8a8   :  { %2696 = vmatprep.subr.bf16.mxu1 %v2663_v56  ;;  %v2626_v31 = vmul.f32 1.442695, %v2504_v63  ;;  %v2628_v21 = vmul.f32 1.442695, %v2505_v11 }
 0x8aa   :  { %v7942_v12 = vpop.eup %7941 }
 0x8ab   :  { %v7944_v30 = vpop.eup %7943  ;;  %2697 = vmatpush1.bf16.xpose.msra.mxu1 %v2662_v19  ;;  %v2442_v54 = vpop.xlane.xlu0 %2441 }
 0x8ac   :  { %v7946_v44 = vpop.eup %7945  ;;  %v2506_v7 = vsub.f32 %v12544_v46, %v2442_v54  ;;  %v2507_v8 = vsub.f32 %v12545_v55, %v2442_v54 }
 0x8ad   :  { %v7948_v0 = vpop.eup %7947  ;;  %v2664_v26 = vpack.c.bf16 %v7946_v44, %v7942_v12 }
 0x8ae   :  { %v2630_v42 = vmul.f32 1.442695, %v2506_v7  ;;  %v2665_v60 = vpack.c.bf16 %v7948_v0, %v7944_v30  ;;  %v2632_v48 = vmul.f32 1.442695, %v2507_v8 }
 0x8af   :  { %v2445_v17 = vpop.xlane.xlu0 %2444 }
 0x8b0   :  { %2698 = vmatprep.subr.bf16.mxu1 %v2665_v60  ;;  %v2508_v40 = vsub.f32 %v12546_v3, %v2445_v17  ;;  %v2509_v50 = vsub.f32 %v12547_v52, %v2445_v17  ;;  %7949 = vpow2.f32 %v2630_v42 }
 0x8b1   :  { %7951 = vpow2.f32 %v2632_v48 }
 0x8b2   :  { %v2634_v61 = vmul.f32 1.442695, %v2508_v40  ;;  %v2636_v25 = vmul.f32 1.442695, %v2509_v50 }
 0x8b3   :  { %2699 = vmatpush1.bf16.xpose.msra.mxu1 %v2664_v26 }
 0x8b4   :  { %7953 = vpow2.f32 %v2634_v61 }
 0x8b5   :  { %7955 = vpow2.f32 %v2636_v25 }
 0x8b6   :  { %7957 = vpow2.f32 %v2626_v31 }
 0x8b7   :  { %v10062_v18 = vpop.permute.xlu0 %344  ;;  %7959 = vpow2.f32 %v2628_v21 }
 0x8b8   :  { %12548 = vst [vmem:[#allocation28_spill] sm:$0xff] %v10062_v18  ;;  %v488_v2 = vadd.f32 %v12549_v37, %v10062_v18  ;;  %v486_v22 = vadd.f32 %v12558_v28, %v10062_v18 }
 0x8ba   :  { %v2671_v35 = vpack.c.bf16 %v12550_v16, %v488_v2  ;;  %v7950_v4 = vpop.eup %7949  ;;  %v2670_v19 = vpack.c.bf16 %v12550_v16, %v486_v22 }
 0x8bb   :  { %v7952_v62 = vpop.eup %7951 }
 0x8bc   :  { %2704 = vmatprep.mubr.bf16.mxu1 %v2671_v35 }
 0x8be   :  { %v7954_v27 = vpop.eup %7953 }
 0x8bf   :  { %v7956_v5 = vpop.eup %7955  ;;  %v2668_v53 = vpack.c.bf16 %v7954_v27, %v7950_v4 }
 0x8c0   :  { %v2669_v51 = vpack.c.bf16 %v7956_v5, %v7952_v62  ;;  %v7958_v24 = vpop.eup %7957 }
 0x8c1   :  { %v7960_v34 = vpop.eup %7959 }
 0x8d0   :  { %v2436_v13 = vpop.xlane.xlu1 %2435 }
 0x8d1   :  { %v2502_v38 = vsub.f32 %v12553_v10, %v2436_v13  ;;  %v2503_v47 = vsub.f32 %v12554_v36, %v2436_v13 }
 0x8d3   :  { %v2622_v49 = vmul.f32 1.442695, %v2502_v38  ;;  %v2624_v39 = vmul.f32 1.442695, %v2503_v47 }
 0x8d4   :  { %v10071_v33 = vpop.permute.xlu1 %329 }
 0x8d5   :  { %7961 = vpow2.f32 %v2622_v49  ;;  %12555 = vst [vmem:[#allocation37_spill] sm:$0xff] %v10071_v33  ;;  %v472_v41 = vadd.f32 %v12556_v45, %v10071_v33  ;;  %v470_v58 = vadd.f32 %v12557_v15, %v10071_v33  ;;  %v12561_v45 = vld [vmem:[#allocation62_spill] sm:$0xff] }
 0x8d6   :  { %7963 = vpow2.f32 %v2624_v39 }
 0x8d7   :  { %v2810_v29 = vpack.c.bf16 %v472_v41, %v472_v41  ;;  %v2809_v20 = vpack.c.bf16 %v470_v58, %v470_v58 }
 0x8d9   :  { %v2860_v56 = vsel %vm734_vm1, %v2809_v20, 0 }
 0x8df   :  { %v7962_v43 = vpop.eup %7961 }
 0x8e0   :  { %v7964_v9 = vpop.eup %7963  ;;  %v2666_v14 = vpack.c.bf16 %v7958_v24, %v7962_v43 }
 0x8e1   :  { %v2667_v32 = vpack.c.bf16 %v7960_v34, %v7964_v9 }
 0x8e3   :  { %2700 = vmatprep.subr.bf16.mxu1 %v2667_v32  ;;  %v12560_v32 = vld [vmem:[#allocation43_spill] sm:$0xff] }
 0x8e4   :  { %2701 = vmatpush1.bf16.xpose.msra.mxu1 %v2666_v14  ;;  %v571_v41 = vadd.f32 %v12561_v45, %v12560_v32 }
 0x8e5   :  { %2702 = vmatprep.subr.bf16.mxu1 %v2669_v51 }
 0x8e6   :  { %v4087_v15 = vpack.c.bf16 %v12550_v16, %v571_v41 }
 0x8ec   :  { %2703 = vmatpush1.bf16.xpose.msra.mxu1 %v2668_v53 }
 0x8ed   :  { %7392 = vmatprep.subr.msk.bf16.mxu1 %vm734_vm1, %v2810_v29 }
 0x8f3   :  { %2705 = vmatmul.mubr.bf16.vlgmr.msra.gmra.mrb[96].mxu1 %v2670_v19 }
 0x8f4   :  { %2866 = vmatpush1.bf16.msra.mxu1 %v2860_v56  ;;  %2897 = vmatprep.mubr.bf16.mxu1 %v12559_v57 }
 0x924   :  { %v2745_v12 = vpop.trf.xlu1 }
 0x925   :  { %v2777_v17 = vpop.trf.xlu0 }
 0x928   :  { %v2746_v30 = vpop.trf.xlu1 }
 0x929   :  { %v2793_v54 = vpack.c.bf16 %v2746_v30, %v2745_v12  ;;  %v2778_v52 = vpop.trf.xlu0  ;;  %v12562_v12 = vld [vmem:[#allocation51_spill] sm:$0xff] }
 0x92a   :  { %v2801_v1 = vpack.c.bf16 %v2778_v52, %v2777_v17 }
 0x92b   :  { %7393 = vmatmul.mubr.msk.bf16.vlgmr.msra.gmra.mrb[100].mxu1 %vm685_vm2, %v2793_v54 }
 0x92c   :  { %v2747_v44 = vpop.trf.xlu1  ;;  %2907 = vmatprep.mubr.bf16.mxu1 %v12559_v57 }
 0x92d   :  { %v2779_v25 = vpop.trf.xlu0 }
 0x930   :  { %v2748_v46 = vpop.trf.xlu1 }
 0x931   :  { %v2794_v7 = vpack.c.bf16 %v2748_v46, %v2747_v44  ;;  %v2780_v35 = vpop.trf.xlu0 }
 0x932   :  { %v2802_v31 = vpack.c.bf16 %v2780_v35, %v2779_v25 }
 0x933   :  { %7394 = vmatmul.mubr.msk.bf16.gmra.mrb[104].mxu1 %vm685_vm2, %v2794_v7 }
 0x934   :  { %v2749_v55 = vpop.trf.xlu1  ;;  %2917 = vmatprep.mubr.bf16.mxu1 %v12559_v57 }
 0x935   :  { %v2781_v5 = vpop.trf.xlu0 }
 0x938   :  { %v2750_v8 = vpop.trf.xlu1 }
 0x939   :  { %v2795_v0 = vpack.c.bf16 %v2750_v8, %v2749_v55  ;;  %v2782_v59 = vpop.trf.xlu0 }
 0x93a   :  { %v2803_v13 = vpack.c.bf16 %v2782_v59, %v2781_v5 }
 0x93b   :  { %7395 = vmatmul.mubr.msk.bf16.gmra.mrb[108].mxu1 %vm685_vm2, %v2795_v0 }
 0x93c   :  { %v2751_v26 = vpop.trf.xlu1  ;;  %2927 = vmatprep.mubr.bf16.mxu1 %v12559_v57 }
 0x93d   :  { %v2783_v63 = vpop.trf.xlu0 }
 0x940   :  { %v2752_v42 = vpop.trf.xlu1 }
 0x941   :  { %v2796_v60 = vpack.c.bf16 %v2752_v42, %v2751_v26  ;;  %v2784_v11 = vpop.trf.xlu0 }
 0x942   :  { %v2804_v36 = vpack.c.bf16 %v2784_v11, %v2783_v63 }
 0x943   :  { %7396 = vmatmul.mubr.msk.bf16.gmra.mrb[112].mxu1 %vm685_vm2, %v2796_v60 }
 0x944   :  { %v2753_v48 = vpop.trf.xlu1  ;;  %2937 = vmatprep.mubr.bf16.mxu1 %v12559_v57 }
 0x945   :  { %v2785_v21 = vpop.trf.xlu0 }
 0x948   :  { %v2754_v3 = vpop.trf.xlu1 }
 0x949   :  { %v2797_v40 = vpack.c.bf16 %v2754_v3, %v2753_v48  ;;  %v2786_v10 = vpop.trf.xlu0 }
 0x94a   :  { %v2805_v49 = vpack.c.bf16 %v2786_v10, %v2785_v21 }
 0x94b   :  { %7397 = vmatmul.mubr.msk.bf16.gmra.mrb[116].mxu1 %vm685_vm2, %v2797_v40 }
 0x94c   :  { %v2755_v50 = vpop.trf.xlu1  ;;  %2947 = vmatprep.mubr.bf16.mxu1 %v12559_v57 }
 0x94d   :  { %v2787_v38 = vpop.trf.xlu0 }
 0x950   :  { %v2756_v61 = vpop.trf.xlu1 }
 0x951   :  { %v2798_v37 = vpack.c.bf16 %v2756_v61, %v2755_v50  ;;  %v2788_v47 = vpop.trf.xlu0 }
 0x952   :  { %v2806_v24 = vpack.c.bf16 %v2788_v47, %v2787_v38 }
 0x953   :  { %7398 = vmatmul.mubr.msk.bf16.gmra.mrb[120].mxu1 %vm685_vm2, %v2798_v37 }
 0x954   :  { %v2757_v2 = vpop.trf.xlu1  ;;  %2957 = vmatprep.mubr.bf16.mxu1 %v12559_v57 }
 0x955   :  { %v2789_v39 = vpop.trf.xlu0 }
 0x958   :  { %v2758_v4 = vpop.trf.xlu1 }
 0x959   :  { %v2799_v62 = vpack.c.bf16 %v2758_v4, %v2757_v2  ;;  %v2790_v34 = vpop.trf.xlu0 }
 0x95a   :  { %v2807_v9 = vpack.c.bf16 %v2790_v34, %v2789_v39 }
 0x95b   :  { %7399 = vmatmul.mubr.msk.bf16.gmra.mrb[124].mxu1 %vm685_vm2, %v2799_v62 }
 0x95c   :  { %v2759_v27 = vpop.trf.xlu1  ;;  %2967 = vmatprep.mubr.bf16.mxu1 %v12559_v57 }
 0x95d   :  { %v2791_v43 = vpop.trf.xlu0 }
 0x960   :  { %v2760_v53 = vpop.trf.xlu1 }
 0x961   :  { %v2800_v51 = vpack.c.bf16 %v2760_v53, %v2759_v27  ;;  %v2792_v14 = vpop.trf.xlu0 }
 0x962   :  { %v2808_v29 = vpack.c.bf16 %v2792_v14, %v2791_v43 }
 0x963   :  { %7400 = vmatmul.mubr.msk.bf16.gmra.mrb[128].mxu1 %vm685_vm2, %v2800_v51 }
 0x964   :  { %2977 = vmatprep.mubr.bf16.mxu1 %v12559_v57 }
 0x96b   :  { %7401 = vmatmul.mubr.msk.bf16.gmra.mrb[132].mxu1 %vm685_vm2, %v2801_v1 }
 0x96c   :  { %2987 = vmatprep.mubr.bf16.mxu1 %v12559_v57 }
 0x973   :  { %7402 = vmatmul.mubr.msk.bf16.gmra.mrb[136].mxu1 %vm685_vm2, %v2802_v31 }
 0x974   :  { %2997 = vmatprep.mubr.bf16.mxu1 %v12559_v57 }
 0x97b   :  { %7403 = vmatmul.mubr.msk.bf16.gmra.mrb[140].mxu1 %vm685_vm2, %v2803_v13 }
 0x97c   :  { %3007 = vmatprep.mubr.bf16.mxu1 %v12559_v57 }
 0x983   :  { %7404 = vmatmul.mubr.msk.bf16.gmra.mrb[144].mxu1 %vm685_vm2, %v2804_v36 }
 0x984   :  { %3017 = vmatprep.mubr.bf16.mxu1 %v12559_v57 }
 0x98b   :  { %7405 = vmatmul.mubr.msk.bf16.gmra.mrb[148].mxu1 %vm685_vm2, %v2805_v49 }
 0x98c   :  { %3027 = vmatprep.mubr.bf16.mxu1 %v12559_v57 }
 0x993   :  { %7406 = vmatmul.mubr.msk.bf16.gmra.mrb[152].mxu1 %vm685_vm2, %v2806_v24 }
 0x994   :  { %3037 = vmatprep.mubr.bf16.mxu1 %v12559_v57 }
 0x99b   :  { %7407 = vmatmul.mubr.msk.bf16.gmra.mrb[156].mxu1 %vm685_vm2, %v2807_v9 }
 0x99c   :  { %3047 = vmatprep.mubr.bf16.mxu1 %v12559_v57 }
 0x9a3   :  { %7408 = vmatmul.mubr.msk.bf16.gmra.mrb[160].mxu1 %vm685_vm2, %v2808_v29 }
 0x9a4   :  { %4120 = vmatprep.mubr.bf16.mxu1 %v4087_v15 }
 0x9c6   :  { %v2706_v58 = vpop.f32.mrb[96].mxu1 }
 0x9c7   :  { %v2708_v28 = vpop.f32.mrb[97].mxu1 }
 0x9c8   :  { %v2710_v22 = vpop.f32.mrb[98].mxu1 }
 0x9c9   :  { %7965 = vrcp.f32 %v2710_v22  ;;  %v2712_v20 = vpop.f32.mrb[99].mxu1 }
 0x9ca   :  { %7967 = vrcp.f32 %v2712_v20 }
 0x9d3   :  { %v7966_v19 = vpop.eup %7965 }
 0x9d4   :  { %v7968_v56 = vpop.eup %7967  ;;  %v2720_v30 = vrot.slane %v7966_v19, %v12562_v12 }
 0x9d5   :  { %v2724_v54 = vrot.slane %v7968_v56, %v12562_v12 }
 0x9d6   :  { %v10119_v44 = vmul.f32 %v2720_v30, %v2706_v58 }
 0x9d7   :  { %v10121_v46 = vmul.f32 %v2724_v54, %v2708_v28 }
 0x9d8   :  { %12563 = vst [vmem:[#allocation63_spill] sm:$0xff] %v10119_v44 }
 0x9d9   :  { %12564 = vst [vmem:[#allocation64_spill] sm:$0xff] %v10121_v46 }
 0x9fe   :  { %v10123_v7 = vpop.f32.mrb[100].mxu1 }
 0x9ff   :  { %v10125_v55 = vpop.f32.mrb[101].mxu1 }
 0xa00   :  { %v3058_v8 = vmax.f32 %v10123_v7, %v10125_v55  ;;  %v10129_v0 = vpop.f32.mrb[102].mxu1 }
 0xa01   :  { %v10131_v26 = vpop.f32.mrb[103].mxu1 }
 0xa02   :  { %v3061_v42 = vmax.f32 %v10129_v0, %v10131_v26  ;;  %3059 = vmax.xlane.f32.xlu1 %v3058_v8 }
 0xa04   :  { %3062 = vmax.xlane.f32.xlu0 %v3061_v42 }
 0xa06   :  { %v10135_v60 = vpop.f32.mrb[104].mxu1 }
 0xa07   :  { %v10137_v48 = vpop.f32.mrb[105].mxu1 }
 0xa08   :  { %v3064_v17 = vmax.f32 %v10135_v60, %v10137_v48  ;;  %v10141_v3 = vpop.f32.mrb[106].mxu1 }
 0xa09   :  { %v10143_v40 = vpop.f32.mrb[107].mxu1 }
 0xa0a   :  { %v3067_v52 = vmax.f32 %v10141_v3, %v10143_v40  ;;  %3065 = vmax.xlane.f32.xlu1 %v3064_v17 }
 0xa0e   :  { %3068 = vmax.xlane.f32.xlu1 %v3067_v52  ;;  %v10147_v50 = vpop.f32.mrb[108].mxu1 }
 0xa0f   :  { %v10149_v61 = vpop.f32.mrb[109].mxu1 }
 0xa10   :  { %v3070_v25 = vmax.f32 %v10147_v50, %v10149_v61  ;;  %v10153_v37 = vpop.f32.mrb[110].mxu1 }
 0xa11   :  { %v10155_v2 = vpop.f32.mrb[111].mxu1 }
 0xa12   :  { %v3073_v35 = vmax.f32 %v10153_v37, %v10155_v2  ;;  %3071 = vmax.xlane.f32.xlu0 %v3070_v25 }
 0xa14   :  { %3074 = vmax.xlane.f32.xlu1 %v3073_v35 }
 0xa16   :  { %v10159_v4 = vpop.f32.mrb[112].mxu1 }
 0xa17   :  { %v10161_v62 = vpop.f32.mrb[113].mxu1 }
 0xa18   :  { %v3076_v27 = vmax.f32 %v10159_v4, %v10161_v62  ;;  %v10165_v5 = vpop.f32.mrb[114].mxu1 }
 0xa19   :  { %v10167_v53 = vpop.f32.mrb[115].mxu1 }
 0xa1a   :  { %v3079_v51 = vmax.f32 %v10165_v5, %v10167_v53  ;;  %3077 = vmax.xlane.f32.xlu0 %v3076_v27 }
 0xa1c   :  { %3080 = vmax.xlane.f32.xlu1 %v3079_v51 }
 0xa1e   :  { %v10171_v59 = vpop.f32.mrb[116].mxu1 }
 0xa1f   :  { %v10173_v63 = vpop.f32.mrb[117].mxu1 }
 0xa20   :  { %v3082_v1 = vmax.f32 %v10171_v59, %v10173_v63  ;;  %v10177_v11 = vpop.f32.mrb[118].mxu1 }
 0xa21   :  { %v10179_v31 = vpop.f32.mrb[119].mxu1 }
 0xa22   :  { %v3085_v21 = vmax.f32 %v10177_v11, %v10179_v31  ;;  %3083 = vmax.xlane.f32.xlu0 %v3082_v1 }
 0xa24   :  { %3086 = vmax.xlane.f32.xlu1 %v3085_v21 }
 0xa26   :  { %v10183_v13 = vpop.f32.mrb[120].mxu1 }
 0xa27   :  { %v10185_v10 = vpop.f32.mrb[121].mxu1 }
 0xa28   :  { %v3088_v38 = vmax.f32 %v10183_v13, %v10185_v10  ;;  %v10189_v36 = vpop.f32.mrb[122].mxu1 }
 0xa29   :  { %v10191_v47 = vpop.f32.mrb[123].mxu1 }
 0xa2a   :  { %v3091_v49 = vmax.f32 %v10189_v36, %v10191_v47  ;;  %3089 = vmax.xlane.f32.xlu0 %v3088_v38 }
 0xa2c   :  { %3092 = vmax.xlane.f32.xlu1 %v3091_v49 }
 0xa2e   :  { %v10195_v39 = vpop.f32.mrb[124].mxu1 }
 0xa2f   :  { %v10197_v24 = vpop.f32.mrb[125].mxu1 }
 0xa30   :  { %v3094_v34 = vmax.f32 %v10195_v39, %v10197_v24  ;;  %v10201_v43 = vpop.f32.mrb[126].mxu1 }
 0xa31   :  { %v10203_v9 = vpop.f32.mrb[127].mxu1 }
 0xa32   :  { %v3097_v14 = vmax.f32 %v10201_v43, %v10203_v9  ;;  %3095 = vmax.xlane.f32.xlu0 %v3094_v34 }
 0xa34   :  { %3098 = vmax.xlane.f32.xlu1 %v3097_v14 }
 0xa36   :  { %v10207_v45 = vpop.f32.mrb[128].mxu1 }
 0xa37   :  { %v10209_v41 = vpop.f32.mrb[129].mxu1 }
 0xa38   :  { %v3100_v29 = vmax.f32 %v10207_v45, %v10209_v41  ;;  %v10213_v15 = vpop.f32.mrb[130].mxu1 }
 0xa39   :  { %v10215_v58 = vpop.f32.mrb[131].mxu1 }
 0xa3a   :  { %v3103_v28 = vmax.f32 %v10213_v15, %v10215_v58  ;;  %3101 = vmax.xlane.f32.xlu0 %v3100_v29 }
 0xa3c   :  { %3104 = vmax.xlane.f32.xlu1 %v3103_v28 }
 0xa3e   :  { %v10219_v22 = vpop.f32.mrb[132].mxu1 }
 0xa3f   :  { %v10221_v20 = vpop.f32.mrb[133].mxu1 }
 0xa40   :  { %v3106_v19 = vmax.f32 %v10219_v22, %v10221_v20  ;;  %v10225_v56 = vpop.f32.mrb[134].mxu1 }
 0xa41   :  { %v10227_v30 = vpop.f32.mrb[135].mxu1 }
 0xa42   :  { %v3109_v54 = vmax.f32 %v10225_v56, %v10227_v30  ;;  %3107 = vmax.xlane.f32.xlu0 %v3106_v19 }
 0xa44   :  { %3110 = vmax.xlane.f32.xlu1 %v3109_v54 }
 0xa46   :  { %v10231_v8 = vpop.f32.mrb[136].mxu1 }
 0xa47   :  { %v10233_v42 = vpop.f32.mrb[137].mxu1 }
 0xa48   :  { %v3112_v17 = vmax.f32 %v10231_v8, %v10233_v42  ;;  %v10237_v52 = vpop.f32.mrb[138].mxu1 }
 0xa49   :  { %v10239_v25 = vpop.f32.mrb[139].mxu1 }
 0xa4a   :  { %v3115_v35 = vmax.f32 %v10237_v52, %v10239_v25  ;;  %3113 = vmax.xlane.f32.xlu0 %v3112_v17 }
 0xa4c   :  { %3116 = vmax.xlane.f32.xlu1 %v3115_v35 }
 0xa4e   :  { %v10243_v27 = vpop.f32.mrb[140].mxu1 }
 0xa4f   :  { %v10245_v51 = vpop.f32.mrb[141].mxu1 }
 0xa50   :  { %v3118_v1 = vmax.f32 %v10243_v27, %v10245_v51  ;;  %v10249_v21 = vpop.f32.mrb[142].mxu1 }
 0xa51   :  { %v10251_v38 = vpop.f32.mrb[143].mxu1 }
 0xa52   :  { %v3121_v49 = vmax.f32 %v10249_v21, %v10251_v38  ;;  %3119 = vmax.xlane.f32.xlu0 %v3118_v1 }
 0xa54   :  { %3122 = vmax.xlane.f32.xlu1 %v3121_v49 }
 0xa56   :  { %v10255_v34 = vpop.f32.mrb[144].mxu1 }
 0xa57   :  { %v10257_v14 = vpop.f32.mrb[145].mxu1 }
 0xa58   :  { %v3124_v29 = vmax.f32 %v10255_v34, %v10257_v14  ;;  %v10261_v28 = vpop.f32.mrb[146].mxu1 }
 0xa59   :  { %v10263_v19 = vpop.f32.mrb[147].mxu1 }
 0xa5a   :  { %v3127_v54 = vmax.f32 %v10261_v28, %v10263_v19  ;;  %3125 = vmax.xlane.f32.xlu0 %v3124_v29 }
 0xa5c   :  { %3128 = vmax.xlane.f32.xlu1 %v3127_v54 }
 0xa5e   :  { %v10267_v17 = vpop.f32.mrb[148].mxu1 }
 0xa5f   :  { %v10269_v35 = vpop.f32.mrb[149].mxu1 }
 0xa60   :  { %v3130_v1 = vmax.f32 %v10267_v17, %v10269_v35  ;;  %v10273_v49 = vpop.f32.mrb[150].mxu1 }
 0xa61   :  { %v10275_v33 = vpop.f32.mrb[151].mxu1 }
 0xa62   :  { %12565 = vst [vmem:[#allocation17_spill] sm:$0xff] %v10275_v33  ;;  %v3133_v6 = vmax.f32 %v10273_v49, %v10275_v33  ;;  %3131 = vmax.xlane.f32.xlu0 %v3130_v1 }
 0xa64   :  { %3134 = vmax.xlane.f32.xlu1 %v3133_v6 }
 0xa66   :  { %v10279_v23 = vpop.f32.mrb[152].mxu1 }
 0xa67   :  { %12566 = vst [vmem:[#allocation20_spill] sm:$0xff] %v10279_v23  ;;  %v10281_v29 = vpop.f32.mrb[153].mxu1 }
 0xa68   :  { %12567 = vst [vmem:[#allocation22_spill] sm:$0xff] %v10281_v29  ;;  %v3136_v54 = vmax.f32 %v10279_v23, %v10281_v29  ;;  %v10285_v18 = vpop.f32.mrb[154].mxu1 }
 0xa69   :  { %12568 = vst [vmem:[#allocation27_spill] sm:$0xff] %v10285_v18  ;;  %v10287_v32 = vpop.f32.mrb[155].mxu1 }
 0xa6a   :  { %12569 = vst [vmem:[#allocation29_spill] sm:$0xff] %v10287_v32  ;;  %v3139_v46 = vmax.f32 %v10285_v18, %v10287_v32  ;;  %3137 = vmax.xlane.f32.xlu0 %v3136_v54 }
 0xa6c   :  { %3140 = vmax.xlane.f32.xlu1 %v3139_v46 }
 0xa6e   :  { %v10291_v44 = vpop.f32.mrb[156].mxu1 }
 0xa6f   :  { %12570 = vst [vmem:[#allocation66_spill] sm:$0xff] %v10291_v44  ;;  %v10293_v1 = vpop.f32.mrb[157].mxu1 }
 0xa70   :  { %12571 = vst [vmem:[#allocation40_spill] sm:$0xff] %v10293_v1  ;;  %v3142_v6 = vmax.f32 %v10291_v44, %v10293_v1  ;;  %v10297_v12 = vpop.f32.mrb[158].mxu1 }
 0xa71   :  { %12572 = vst [vmem:[#allocation34_spill] sm:$0xff] %v10297_v12  ;;  %v10299_v57 = vpop.f32.mrb[159].mxu1 }
 0xa72   :  { %12573 = vst [vmem:[#allocation33_spill] sm:$0xff] %v10299_v57  ;;  %v3145_v16 = vmax.f32 %v10297_v12, %v10299_v57  ;;  %3143 = vmax.xlane.f32.xlu0 %v3142_v6 }
 0xa74   :  { %3146 = vmax.xlane.f32.xlu1 %v3145_v16  ;;  %v53_v16 = vld [vmem:[%s12205_s6 + $0x58] sm:$0xff] }
 0xa76   :  { %v10303_v29 = vpop.f32.mrb[160].mxu1 }
 0xa77   :  { %12574 = vst [vmem:[#allocation11_spill] sm:$0xff] %v10303_v29  ;;  %v10305_v54 = vpop.f32.mrb[161].mxu1 }
 0xa78   :  { %12575 = vst [vmem:[#allocation26_spill] sm:$0xff] %v10305_v54  ;;  %v3148_v46 = vmax.f32 %v10303_v29, %v10305_v54  ;;  %v10309_v32 = vpop.f32.mrb[162].mxu1 }
 0xa79   :  { %12576 = vst [vmem:[#allocation65_spill] sm:$0xff] %v10309_v32  ;;  %v10311_v18 = vpop.f32.mrb[163].mxu1 }
 0xa7a   :  { %12577 = vst [vmem:[#allocation19_spill] sm:$0xff] %v10311_v18  ;;  %v3151_v1 = vmax.f32 %v10309_v32, %v10311_v18  ;;  %3149 = vmax.xlane.f32.xlu0 %v3148_v46 }
 0xa7c   :  { %3152 = vmax.xlane.f32.xlu1 %v3151_v1 }
 0xa8f   :  { %v3060_v6 = vpop.xlane.xlu1 %3059 }
 0xa90   :  { %v3154_v57 = vsub.f32 %v10123_v7, %v3060_v6  ;;  %v3155_v12 = vsub.f32 %v10125_v55, %v3060_v6  ;;  %349 = vperm.xlu0 %7534, %v53_v16  }
 0xa91   :  { %v3063_v54 = vpop.xlane.xlu0 %3062 }
 0xa92   :  { %v3218_v29 = vmul.f32 1.442695, %v3154_v57  ;;  %v3156_v44 = vsub.f32 %v10129_v0, %v3063_v54  ;;  %v3157_v23 = vsub.f32 %v10131_v26, %v3063_v54  ;;  %v3220_v33 = vmul.f32 1.442695, %v3155_v12 }
 0xa94   :  { %v3222_v18 = vmul.f32 1.442695, %v3156_v44  ;;  %v3224_v46 = vmul.f32 1.442695, %v3157_v23  ;;  %7969 = vpow2.f32 %v3218_v29 }
 0xa96   :  { %7971 = vpow2.f32 %v3222_v18 }
 0xa97   :  { %7973 = vpow2.f32 %v3224_v46  ;;  %v3066_v1 = vpop.xlane.xlu1 %3065 }
 0xa98   :  { %7975 = vpow2.f32 %v3220_v33  ;;  %v3158_v32 = vsub.f32 %v10135_v60, %v3066_v1  ;;  %v3159_v7 = vsub.f32 %v10137_v48, %v3066_v1 }
 0xa9a   :  { %v3226_v55 = vmul.f32 1.442695, %v3158_v32  ;;  %v3228_v16 = vmul.f32 1.442695, %v3159_v7 }
 0xa9b   :  { %v3069_v6 = vpop.xlane.xlu1 %3068 }
 0xa9c   :  { %v3160_v57 = vsub.f32 %v10141_v3, %v3069_v6  ;;  %v3161_v0 = vsub.f32 %v10143_v40, %v3069_v6  ;;  %7977 = vpow2.f32 %v3226_v55 }
 0xa9d   :  { %7979 = vpow2.f32 %v3228_v16 }
 0xa9e   :  { %v3230_v12 = vmul.f32 1.442695, %v3160_v57  ;;  %v3232_v44 = vmul.f32 1.442695, %v3161_v0  ;;  %v7970_v23 = vpop.eup %7969 }
 0xa9f   :  { %v3072_v18 = vpop.xlane.xlu0 %3071 }
 0xaa0   :  { %v7972_v26 = vpop.eup %7971  ;;  %7981 = vpow2.f32 %v3230_v12  ;;  %v3162_v33 = vsub.f32 %v10147_v50, %v3072_v18  ;;  %v3163_v60 = vsub.f32 %v10149_v61, %v3072_v18  ;;  %v12578_v50 = vld [vmem:[#allocation9_spill] sm:$0xff]  ;;  %v12579_v61 = vld [vmem:[#allocation18_spill] sm:$0xff] }
 0xaa1   :  { %v7974_v48 = vpop.eup %7973  ;;  %7983 = vpow2.f32 %v3232_v44  ;;  %v3075_v32 = vpop.xlane.xlu1 %3074  ;;  %v3346_v29 = vpack.c.bf16 %v7972_v26, %v7970_v23  ;;  %v531_v6 = vadd.f32 %v12579_v61, %v12578_v50  ;;  %v12580_v44 = vld [vmem:[#allocation16_spill] sm:$0xff] }
 0xaa2   :  { %v7976_v54 = vpop.eup %7975  ;;  %v3234_v3 = vmul.f32 1.442695, %v3162_v33  ;;  %v3164_v40 = vsub.f32 %v10153_v37, %v3075_v32  ;;  %v3165_v46 = vsub.f32 %v10155_v2, %v3075_v32  ;;  %v3236_v7 = vmul.f32 1.442695, %v3163_v60 }
 0xaa3   :  { %v3347_v1 = vpack.c.bf16 %v7974_v48, %v7976_v54  ;;  %v529_v23 = vadd.f32 %v12580_v44, %v12578_v50 }
 0xaa4   :  { %v3238_v55 = vmul.f32 1.442695, %v3164_v40  ;;  %v3240_v16 = vmul.f32 1.442695, %v3165_v46  ;;  %7985 = vpow2.f32 %v3234_v3 }
 0xaa5   :  { %3380 = vmatprep.subr.bf16.mxu0 %v3347_v1  ;;  %v589_v1 = vmul.f32 0.35355338, %v529_v23 }
 0xaa6   :  { %7987 = vpow2.f32 %v3238_v55  ;;  %3381 = vmatpush1.bf16.xpose.msra.mxu0 %v3346_v29  ;;  %v7978_v0 = vpop.eup %7977  ;;  %v590_v29 = vmul.f32 0.35355338, %v531_v6 }
 0xaa7   :  { %7989 = vpow2.f32 %v3240_v16  ;;  %v3078_v57 = vpop.xlane.xlu0 %3077  ;;  %v7980_v2 = vpop.eup %7979 }
 0xaa8   :  { %7991 = vpow2.f32 %v3236_v7  ;;  %v3166_v12 = vsub.f32 %v10159_v4, %v3078_v57  ;;  %v3167_v37 = vsub.f32 %v10161_v62, %v3078_v57 }
 0xaa9   :  { %v3081_v18 = vpop.xlane.xlu1 %3080 }
 0xaaa   :  { %v7982_v26 = vpop.eup %7981  ;;  %v3242_v33 = vmul.f32 1.442695, %v3166_v12  ;;  %v3168_v60 = vsub.f32 %v10165_v5, %v3081_v18  ;;  %v3169_v48 = vsub.f32 %v10167_v53, %v3081_v18  ;;  %v3244_v3 = vmul.f32 1.442695, %v3167_v37 }
 0xaab   :  { %v7984_v32 = vpop.eup %7983  ;;  %v3348_v54 = vpack.c.bf16 %v7982_v26, %v7978_v0 }
 0xaac   :  { %v3246_v40 = vmul.f32 1.442695, %v3168_v60  ;;  %v3248_v46 = vmul.f32 1.442695, %v3169_v48  ;;  %v3349_v4 = vpack.c.bf16 %v7984_v32, %v7980_v2  ;;  %7993 = vpow2.f32 %v3242_v33 }
 0xaae   :  { %7995 = vpow2.f32 %v3246_v40  ;;  %3382 = vmatprep.subr.bf16.mxu0 %v3349_v4  ;;  %3469 = vxpose.xlu0.b32.start.end [1/1] (short) %v590_v29, 128  ;;  %v7986_v62 = vpop.eup %7985 }
 0xaaf   :  { %7997 = vpow2.f32 %v3248_v46  ;;  %3383 = vmatpush1.bf16.xpose.msra.mxu0 %v3348_v54  ;;  %3437 = vxpose.xlu1.b32.start.end [1/1] (short) %v589_v1, 128  ;;  %v3084_v7 = vpop.xlane.xlu0 %3083 }
 0xab0   :  { %v7988_v5 = vpop.eup %7987  ;;  %7999 = vpow2.f32 %v3244_v3  ;;  %v3170_v53 = vsub.f32 %v10171_v59, %v3084_v7  ;;  %v3171_v55 = vsub.f32 %v10173_v63, %v3084_v7 }
 0xab1   :  { %v7990_v16 = vpop.eup %7989  ;;  %v3087_v50 = vpop.xlane.xlu1 %3086  ;;  %v3350_v61 = vpack.c.bf16 %v7988_v5, %v7986_v62 }
 0xab2   :  { %v7992_v6 = vpop.eup %7991  ;;  %v3250_v57 = vmul.f32 1.442695, %v3170_v53  ;;  %v3172_v0 = vsub.f32 %v10177_v11, %v3087_v50  ;;  %v3173_v12 = vsub.f32 %v10179_v31, %v3087_v50  ;;  %v3252_v2 = vmul.f32 1.442695, %v3171_v55 }
 0xab3   :  { %v3351_v37 = vpack.c.bf16 %v7990_v16, %v7992_v6 }
 0xab4   :  { %v3254_v44 = vmul.f32 1.442695, %v3172_v0  ;;  %v3256_v23 = vmul.f32 1.442695, %v3173_v12  ;;  %8001 = vpow2.f32 %v3250_v57 }
 0xab5   :  { %3384 = vmatprep.subr.bf16.mxu0 %v3351_v37 }
 0xab6   :  { %8003 = vpow2.f32 %v3254_v44  ;;  %v7994_v18 = vpop.eup %7993 }
 0xab7   :  { %8005 = vpow2.f32 %v3256_v23  ;;  %3385 = vmatpush1.bf16.xpose.msra.mxu0 %v3350_v61  ;;  %v3090_v59 = vpop.xlane.xlu0 %3089 }
 0xab8   :  { %v7996_v63 = vpop.eup %7995  ;;  %8007 = vpow2.f32 %v3252_v2  ;;  %v3174_v26 = vsub.f32 %v10183_v13, %v3090_v59  ;;  %v3175_v33 = vsub.f32 %v10185_v10, %v3090_v59 }
 0xab9   :  { %v7998_v11 = vpop.eup %7997  ;;  %v3093_v60 = vpop.xlane.xlu1 %3092  ;;  %v3352_v31 = vpack.c.bf16 %v7996_v63, %v7994_v18 }
 0xaba   :  { %v8000_v48 = vpop.eup %7999  ;;  %v3258_v32 = vmul.f32 1.442695, %v3174_v26  ;;  %v3176_v29 = vsub.f32 %v10189_v36, %v3093_v60  ;;  %v3177_v54 = vsub.f32 %v10191_v47, %v3093_v60  ;;  %v3260_v40 = vmul.f32 1.442695, %v3175_v33 }
 0xabb   :  { %v3353_v3 = vpack.c.bf16 %v7998_v11, %v8000_v48 }
 0xabc   :  { %v3262_v46 = vmul.f32 1.442695, %v3176_v29  ;;  %v3264_v4 = vmul.f32 1.442695, %v3177_v54  ;;  %8009 = vpow2.f32 %v3258_v32 }
 0xabd   :  { %3386 = vmatprep.subr.bf16.mxu0 %v3353_v3 }
 0xabe   :  { %8011 = vpow2.f32 %v3262_v46  ;;  %v8002_v1 = vpop.eup %8001 }
 0xabf   :  { %8013 = vpow2.f32 %v3264_v4  ;;  %3387 = vmatpush1.bf16.xpose.msra.mxu0 %v3352_v31  ;;  %v3096_v13 = vpop.xlane.xlu0 %3095 }
 0xac0   :  { %v8004_v10 = vpop.eup %8003  ;;  %8015 = vpow2.f32 %v3260_v40  ;;  %v3178_v62 = vsub.f32 %v10195_v39, %v3096_v13  ;;  %v3179_v7 = vsub.f32 %v10197_v24, %v3096_v13 }
 0xac1   :  { %v8006_v36 = vpop.eup %8005  ;;  %v3099_v5 = vpop.xlane.xlu1 %3098  ;;  %v3354_v47 = vpack.c.bf16 %v8004_v10, %v8002_v1 }
 0xac2   :  { %v8008_v53 = vpop.eup %8007  ;;  %v3266_v55 = vmul.f32 1.442695, %v3178_v62  ;;  %v3180_v16 = vsub.f32 %v10201_v43, %v3099_v5  ;;  %v3181_v50 = vsub.f32 %v10203_v9, %v3099_v5  ;;  %v3268_v6 = vmul.f32 1.442695, %v3179_v7 }
 0xac3   :  { %v3355_v61 = vpack.c.bf16 %v8006_v36, %v8008_v53 }
 0xac4   :  { %v3270_v57 = vmul.f32 1.442695, %v3180_v16  ;;  %v3272_v0 = vmul.f32 1.442695, %v3181_v50  ;;  %8017 = vpow2.f32 %v3266_v55 }
 0xac5   :  { %3388 = vmatprep.subr.bf16.mxu0 %v3355_v61 }
 0xac6   :  { %8019 = vpow2.f32 %v3270_v57  ;;  %v8010_v12 = vpop.eup %8009 }
 0xac7   :  { %8021 = vpow2.f32 %v3272_v0  ;;  %3389 = vmatpush1.bf16.xpose.msra.mxu0 %v3354_v47  ;;  %v3102_v39 = vpop.xlane.xlu0 %3101 }
 0xac8   :  { %v8012_v24 = vpop.eup %8011  ;;  %8023 = vpow2.f32 %v3268_v6  ;;  %v3182_v37 = vsub.f32 %v10207_v45, %v3102_v39  ;;  %v3183_v2 = vsub.f32 %v10209_v41, %v3102_v39 }
 0xac9   :  { %v8014_v43 = vpop.eup %8013  ;;  %v3105_v44 = vpop.xlane.xlu1 %3104  ;;  %v3356_v9 = vpack.c.bf16 %v8012_v24, %v8010_v12 }
 0xaca   :  { %v8016_v23 = vpop.eup %8015  ;;  %v3274_v18 = vmul.f32 1.442695, %v3182_v37  ;;  %v3184_v59 = vsub.f32 %v10213_v15, %v3105_v44  ;;  %v3185_v63 = vsub.f32 %v10215_v58, %v3105_v44  ;;  %v3276_v33 = vmul.f32 1.442695, %v3183_v2 }
 0xacb   :  { %v3357_v26 = vpack.c.bf16 %v8014_v43, %v8016_v23 }
 0xacc   :  { %v3278_v11 = vmul.f32 1.442695, %v3184_v59  ;;  %v3280_v60 = vmul.f32 1.442695, %v3185_v63  ;;  %8025 = vpow2.f32 %v3274_v18 }
 0xacd   :  { %3390 = vmatprep.subr.bf16.mxu0 %v3357_v26 }
 0xace   :  { %8027 = vpow2.f32 %v3278_v11  ;;  %v8018_v31 = vpop.eup %8017 }
 0xacf   :  { %8029 = vpow2.f32 %v3280_v60  ;;  %3391 = vmatpush1.bf16.xpose.msra.mxu0 %v3356_v9  ;;  %v3108_v45 = vpop.xlane.xlu0 %3107 }
 0xad0   :  { %v8020_v41 = vpop.eup %8019  ;;  %8031 = vpow2.f32 %v3276_v33  ;;  %v3186_v48 = vsub.f32 %v10219_v22, %v3108_v45  ;;  %v3187_v32 = vsub.f32 %v10221_v20, %v3108_v45 }
 0xad1   :  { %v8022_v15 = vpop.eup %8021  ;;  %v3111_v29 = vpop.xlane.xlu1 %3110  ;;  %v3358_v58 = vpack.c.bf16 %v8020_v41, %v8018_v31 }
 0xad2   :  { %v8024_v54 = vpop.eup %8023  ;;  %v3282_v3 = vmul.f32 1.442695, %v3186_v48  ;;  %v3188_v40 = vsub.f32 %v10225_v56, %v3111_v29  ;;  %v3189_v46 = vsub.f32 %v10227_v30, %v3111_v29  ;;  %v3284_v1 = vmul.f32 1.442695, %v3187_v32 }
 0xad3   :  { %v3359_v4 = vpack.c.bf16 %v8022_v15, %v8024_v54 }
 0xad4   :  { %v3286_v13 = vmul.f32 1.442695, %v3188_v40  ;;  %v3288_v10 = vmul.f32 1.442695, %v3189_v46  ;;  %8033 = vpow2.f32 %v3282_v3 }
 0xad5   :  { %3392 = vmatprep.subr.bf16.mxu0 %v3359_v4 }
 0xad6   :  { %8035 = vpow2.f32 %v3286_v13  ;;  %v8026_v62 = vpop.eup %8025  ;;  %v12581_v13 = vld [vmem:[#allocation17_spill] sm:$0xff] }
 0xad7   :  { %8037 = vpow2.f32 %v3288_v10  ;;  %3393 = vmatpush1.bf16.xpose.msra.mxu0 %v3358_v58  ;;  %v3114_v22 = vpop.xlane.xlu0 %3113 }
 0xad8   :  { %v8028_v20 = vpop.eup %8027  ;;  %8039 = vpow2.f32 %v3284_v1  ;;  %v3190_v7 = vsub.f32 %v10231_v8, %v3114_v22  ;;  %v3191_v36 = vsub.f32 %v10233_v42, %v3114_v22 }
 0xad9   :  { %v8030_v56 = vpop.eup %8029  ;;  %v3117_v5 = vpop.xlane.xlu1 %3116  ;;  %v3360_v30 = vpack.c.bf16 %v8028_v20, %v8026_v62 }
 0xada   :  { %v8032_v47 = vpop.eup %8031  ;;  %v3290_v53 = vmul.f32 1.442695, %v3190_v7  ;;  %v3192_v55 = vsub.f32 %v10237_v52, %v3117_v5  ;;  %v3193_v16 = vsub.f32 %v10239_v25, %v3117_v5  ;;  %v3292_v61 = vmul.f32 1.442695, %v3191_v36 }
 0xadb   :  { %v3361_v50 = vpack.c.bf16 %v8030_v56, %v8032_v47  ;;  %v12582_v56 = vld [vmem:[#allocation20_spill] sm:$0xff] }
 0xadc   :  { %v3294_v6 = vmul.f32 1.442695, %v3192_v55  ;;  %v3296_v57 = vmul.f32 1.442695, %v3193_v16  ;;  %8041 = vpow2.f32 %v3290_v53 }
 0xadd   :  { %3394 = vmatprep.subr.bf16.mxu0 %v3361_v50 }
 0xade   :  { %8043 = vpow2.f32 %v3294_v6  ;;  %v8034_v0 = vpop.eup %8033 }
 0xadf   :  { %8045 = vpow2.f32 %v3296_v57  ;;  %3395 = vmatpush1.bf16.xpose.msra.mxu0 %v3360_v30  ;;  %v3120_v8 = vpop.xlane.xlu0 %3119  ;;  %v12583_v30 = vld [vmem:[#allocation22_spill] sm:$0xff]  ;;  %v12585_v57 = vld [vmem:[#allocation29_spill] sm:$0xff] }
 0xae0   :  { %v8036_v42 = vpop.eup %8035  ;;  %8047 = vpow2.f32 %v3292_v61  ;;  %v3194_v12 = vsub.f32 %v10243_v27, %v3120_v8  ;;  %v3195_v39 = vsub.f32 %v10245_v51, %v3120_v8  ;;  %v12584_v61 = vld [vmem:[#allocation27_spill] sm:$0xff] }
 0xae1   :  { %v8038_v52 = vpop.eup %8037  ;;  %v3123_v24 = vpop.xlane.xlu1 %3122  ;;  %v3362_v25 = vpack.c.bf16 %v8036_v42, %v8034_v0 }
 0xae2   :  { %v8040_v37 = vpop.eup %8039  ;;  %v3298_v2 = vmul.f32 1.442695, %v3194_v12  ;;  %v3196_v43 = vsub.f32 %v10249_v21, %v3123_v24  ;;  %v3197_v44 = vsub.f32 %v10251_v38, %v3123_v24  ;;  %v3300_v23 = vmul.f32 1.442695, %v3195_v39 }
 0xae3   :  { %v3363_v9 = vpack.c.bf16 %v8038_v52, %v8040_v37  ;;  %v12586_v37 = vld [vmem:[#allocation66_spill] sm:$0xff] }
 0xae4   :  { %v3302_v18 = vmul.f32 1.442695, %v3196_v43  ;;  %v3304_v59 = vmul.f32 1.442695, %v3197_v44  ;;  %8049 = vpow2.f32 %v3298_v2  ;;  %v12587_v43 = vld [vmem:[#allocation40_spill] sm:$0xff] }
 0xae5   :  { %3396 = vmatprep.subr.bf16.mxu0 %v3363_v9 }
 0xae6   :  { %8051 = vpow2.f32 %v3302_v18  ;;  %v8042_v63 = vpop.eup %8041 }
 0xae7   :  { %8053 = vpow2.f32 %v3304_v59  ;;  %3397 = vmatpush1.bf16.xpose.msra.mxu0 %v3362_v25  ;;  %v3126_v27 = vpop.xlane.xlu0 %3125 }
 0xae8   :  { %v8044_v51 = vpop.eup %8043  ;;  %8055 = vpow2.f32 %v3300_v23  ;;  %v3198_v26 = vsub.f32 %v10255_v34, %v3126_v27  ;;  %v3199_v33 = vsub.f32 %v10257_v14, %v3126_v27 }
 0xae9   :  { %v8046_v21 = vpop.eup %8045  ;;  %v3129_v11 = vpop.xlane.xlu1 %3128  ;;  %v3364_v38 = vpack.c.bf16 %v8044_v51, %v8042_v63  ;;  %v12588_v51 = vld [vmem:[#allocation34_spill] sm:$0xff] }
 0xaea   :  { %v8048_v60 = vpop.eup %8047  ;;  %v3306_v31 = vmul.f32 1.442695, %v3198_v26  ;;  %v3200_v45 = vsub.f32 %v10261_v28, %v3129_v11  ;;  %v3201_v41 = vsub.f32 %v10263_v19, %v3129_v11  ;;  %v3308_v32 = vmul.f32 1.442695, %v3199_v33  ;;  %v12589_v33 = vld [vmem:[#allocation33_spill] sm:$0xff] }
 0xaeb   :  { %v3365_v48 = vpack.c.bf16 %v8046_v21, %v8048_v60 }
 0xaec   :  { %v3310_v15 = vmul.f32 1.442695, %v3200_v45  ;;  %v3312_v29 = vmul.f32 1.442695, %v3201_v41  ;;  %8057 = vpow2.f32 %v3306_v31 }
 0xaed   :  { %3398 = vmatprep.subr.bf16.mxu0 %v3365_v48  ;;  %v12590_v48 = vld [vmem:[#allocation11_spill] sm:$0xff] }
 0xaee   :  { %8059 = vpow2.f32 %v3310_v15  ;;  %v8050_v58 = vpop.eup %8049  ;;  %v12591_v15 = vld [vmem:[#allocation26_spill] sm:$0xff] }
 0xaef   :  { %8061 = vpow2.f32 %v3312_v29  ;;  %3399 = vmatpush1.bf16.xpose.msra.mxu0 %v3364_v38  ;;  %v3132_v34 = vpop.xlane.xlu0 %3131 }
 0xaf0   :  { %v8052_v14 = vpop.eup %8051  ;;  %8063 = vpow2.f32 %v3308_v32  ;;  %v3202_v54 = vsub.f32 %v10267_v17, %v3132_v34  ;;  %v3203_v3 = vsub.f32 %v10269_v35, %v3132_v34 }
 0xaf1   :  { %v8054_v28 = vpop.eup %8053  ;;  %v3135_v40 = vpop.xlane.xlu1 %3134  ;;  %v3366_v19 = vpack.c.bf16 %v8052_v14, %v8050_v58 }
 0xaf2   :  { %v8056_v46 = vpop.eup %8055  ;;  %v3314_v4 = vmul.f32 1.442695, %v3202_v54  ;;  %v3204_v1 = vsub.f32 %v10273_v49, %v3135_v40  ;;  %v3205_v10 = vsub.f32 %v12581_v13, %v3135_v40  ;;  %v3316_v22 = vmul.f32 1.442695, %v3203_v3  ;;  %v12592_v40 = vld [vmem:[#allocation65_spill] sm:$0xff] }
 0xaf3   :  { %v3367_v62 = vpack.c.bf16 %v8054_v28, %v8056_v46  ;;  %v12593_v46 = vld [vmem:[#allocation19_spill] sm:$0xff] }
 0xaf4   :  { %v3318_v20 = vmul.f32 1.442695, %v3204_v1  ;;  %v3320_v7 = vmul.f32 1.442695, %v3205_v10  ;;  %8065 = vpow2.f32 %v3314_v4 }
 0xaf5   :  { %3400 = vmatprep.subr.bf16.mxu0 %v3367_v62 }
 0xaf6   :  { %8067 = vpow2.f32 %v3318_v20  ;;  %v8058_v36 = vpop.eup %8057 }
 0xaf7   :  { %8069 = vpow2.f32 %v3320_v7  ;;  %3401 = vmatpush1.bf16.xpose.msra.mxu0 %v3366_v19  ;;  %v3138_v17 = vpop.xlane.xlu0 %3137 }
 0xaf8   :  { %v8060_v35 = vpop.eup %8059  ;;  %8071 = vpow2.f32 %v3316_v22  ;;  %v3206_v5 = vsub.f32 %v12582_v56, %v3138_v17  ;;  %v3207_v47 = vsub.f32 %v12583_v30, %v3138_v17  ;;  %v12596_v30 = vmov 1.0  }
 0xaf9   :  { %v8062_v49 = vpop.eup %8061  ;;  %v3141_v53 = vpop.xlane.xlu1 %3140  ;;  %v3368_v55 = vpack.c.bf16 %v8060_v35, %v8058_v36  ;;  %v12595_v36 = vld [vmem:[#allocation15_spill] sm:$0xff] }
 0xafa   :  { %v8064_v16 = vpop.eup %8063  ;;  %v3322_v50 = vmul.f32 1.442695, %v3206_v5  ;;  %v3208_v6 = vsub.f32 %v12584_v61, %v3141_v53  ;;  %v3209_v0 = vsub.f32 %v12585_v57, %v3141_v53  ;;  %v3324_v42 = vmul.f32 1.442695, %v3207_v47  ;;  %v12597_v61 = vld [vmem:[#allocation24_spill] sm:$0xff] }
 0xafb   :  { %v3369_v8 = vpack.c.bf16 %v8062_v49, %v8064_v16 }
 0xafc   :  { %v3326_v12 = vmul.f32 1.442695, %v3208_v6  ;;  %v3328_v39 = vmul.f32 1.442695, %v3209_v0  ;;  %8073 = vpow2.f32 %v3322_v50  ;;  %v12598_v6 = vld [vmem:[#allocation32_spill] sm:$0xff] }
 0xafd   :  { %3402 = vmatprep.subr.bf16.mxu0 %v3369_v8  ;;  %v551_v57 = vadd.f32 %v12598_v6, %v12597_v61  ;;  %v12599_v8 = vld [vmem:[#allocation31_spill] sm:$0xff] }
 0xafe   :  { %8075 = vpow2.f32 %v3326_v12  ;;  %v8066_v52 = vpop.eup %8065 }
 0xaff   :  { %8077 = vpow2.f32 %v3328_v39  ;;  %3403 = vmatpush1.bf16.xpose.msra.mxu0 %v3368_v55  ;;  %v3144_v24 = vpop.xlane.xlu0 %3143  ;;  %v3518_v12 = vpack.c.bf16 %v551_v57, %v551_v57  ;;  %v12600_v39 = vld [vmem:[#allocation13_spill] sm:$0xff] }
 0xb00   :  { %v8068_v25 = vpop.eup %8067  ;;  %8079 = vpow2.f32 %v3324_v42  ;;  %v3210_v2 = vsub.f32 %v12586_v37, %v3144_v24  ;;  %v3211_v44 = vsub.f32 %v12587_v43, %v3144_v24  ;;  %v549_v42 = vadd.f32 %v12599_v8, %v12597_v61 }
 0xb01   :  { %v8070_v9 = vpop.eup %8069  ;;  %v3147_v23 = vpop.xlane.xlu1 %3146  ;;  %v3370_v18 = vpack.c.bf16 %v8068_v25, %v8066_v52 }
 0xb02   :  { %v8072_v59 = vpop.eup %8071  ;;  %v3330_v63 = vmul.f32 1.442695, %v3210_v2  ;;  %v3332_v27 = vmul.f32 1.442695, %v3211_v44  ;;  %v3212_v26 = vsub.f32 %v12588_v51, %v3147_v23  ;;  %v3213_v21 = vsub.f32 %v12589_v33, %v3147_v23 }
 0xb03   :  { %v3371_v11 = vpack.c.bf16 %v8070_v9, %v8072_v59  ;;  %v3517_v24 = vpack.c.bf16 %v549_v42, %v549_v42  ;;  %v12601_v2 = vmov 0  }
 0xb04   :  { %8081 = vpow2.f32 %v3330_v63  ;;  %v3334_v38 = vmul.f32 1.442695, %v3212_v26  ;;  %v3336_v60 = vmul.f32 1.442695, %v3213_v21 }
 0xb05   :  { %8083 = vpow2.f32 %v3332_v27  ;;  %3404 = vmatprep.subr.bf16.mxu0 %v3371_v11  ;;  %v3568_v37 = vsel %vm734_vm1, %v3517_v24, 0  ;;  %v12604_v24 = vld [vmem:[#allocation51_spill] sm:$0xff] }
 0xb06   :  { %8085 = vpow2.f32 %v3334_v38  ;;  %v8074_v31 = vpop.eup %8073 }
 0xb07   :  { %8087 = vpow2.f32 %v3336_v60  ;;  %3405 = vmatpush1.bf16.xpose.msra.mxu0 %v3370_v18  ;;  %v3150_v45 = vpop.xlane.xlu0 %3149 }
 0xb08   :  { %v8076_v41 = vpop.eup %8075  ;;  %v3214_v32 = vsub.f32 %v12590_v48, %v3150_v45  ;;  %v3215_v29 = vsub.f32 %v12591_v15, %v3150_v45 }
 0xb09   :  { %v8078_v58 = vpop.eup %8077  ;;  %v3153_v34 = vpop.xlane.xlu1 %3152  ;;  %v3372_v14 = vpack.c.bf16 %v8076_v41, %v8074_v31 }
 0xb0a   :  { %v8080_v54 = vpop.eup %8079  ;;  %v3338_v3 = vmul.f32 1.442695, %v3214_v32  ;;  %v3340_v28 = vmul.f32 1.442695, %v3215_v29  ;;  %v3216_v19 = vsub.f32 %v12592_v40, %v3153_v34  ;;  %v3217_v4 = vsub.f32 %v12593_v46, %v3153_v34 }
 0xb0b   :  { %v3373_v1 = vpack.c.bf16 %v8078_v58, %v8080_v54 }
 0xb0c   :  { %8089 = vpow2.f32 %v3338_v3  ;;  %v3342_v13 = vmul.f32 1.442695, %v3216_v19  ;;  %v3344_v10 = vmul.f32 1.442695, %v3217_v4 }
 0xb0d   :  { %8091 = vpow2.f32 %v3340_v28  ;;  %3406 = vmatprep.subr.bf16.mxu0 %v3373_v1 }
 0xb0e   :  { %v8082_v62 = vpop.eup %8081  ;;  %8093 = vpow2.f32 %v3342_v13 }
 0xb0f   :  { %v8084_v22 = vpop.eup %8083  ;;  %8095 = vpow2.f32 %v3344_v10  ;;  %3407 = vmatpush1.bf16.xpose.msra.mxu0 %v3372_v14  ;;  %v10386_v20 = vpop.permute.xlu0 %349 }
 0xb10   :  { %12594 = vst [vmem:[#allocation25_spill] sm:$0xff] %v10386_v20  ;;  %v8086_v7 = vpop.eup %8085  ;;  %v492_v17 = vadd.f32 %v12595_v36, %v10386_v20  ;;  %v490_v52 = vadd.f32 %v12600_v39, %v10386_v20 }
 0xb11   :  { %v8088_v35 = vpop.eup %8087  ;;  %v3374_v56 = vpack.c.bf16 %v8086_v7, %v8082_v62 }
 0xb12   :  { %v3375_v5 = vpack.c.bf16 %v8088_v35, %v8084_v22  ;;  %v3379_v47 = vpack.c.bf16 %v12596_v30, %v492_v17  ;;  %v3378_v25 = vpack.c.bf16 %v12596_v30, %v490_v52 }
 0xb14   :  { %3408 = vmatprep.subr.bf16.mxu0 %v3375_v5  ;;  %3412 = vmatprep.mubr.bf16.mxu0 %v3379_v47 }
 0xb16   :  { %v8090_v49 = vpop.eup %8089 }
 0xb17   :  { %v8092_v53 = vpop.eup %8091  ;;  %3409 = vmatpush1.bf16.xpose.msra.mxu0 %v3374_v56 }
 0xb18   :  { %v8094_v55 = vpop.eup %8093 }
 0xb19   :  { %v8096_v16 = vpop.eup %8095  ;;  %v3376_v50 = vpack.c.bf16 %v8094_v55, %v8090_v49 }
 0xb1a   :  { %v3377_v0 = vpack.c.bf16 %v8096_v16, %v8092_v53  ;;  %v12602_v16 = vld [vmem:[#allocation49_spill] sm:$0xff] }
 0xb1c   :  { %3410 = vmatprep.subr.bf16.mxu0 %v3377_v0 }
 0xb1f   :  { %3411 = vmatpush1.bf16.xpose.msra.mxu0 %v3376_v50  ;;  %v12603_v50 = vld [vmem:[#allocation46_spill] sm:$0xff] }
 0xb20   :  { %7409 = vmatprep.subr.msk.bf16.mxu0 %vm734_vm1, %v3518_v12  ;;  %v575_v61 = vadd.f32 %v12603_v50, %v12602_v16 }
 0xb22   :  { %v4795_v57 = vpack.c.bf16 %v12596_v30, %v575_v61 }
 0xb26   :  { %3413 = vmatmul.mubr.bf16.vlgmr.msra.gmra.mrb[152].mxu0 %v3378_v25 }
 0xb27   :  { %3574 = vmatpush1.bf16.msra.mxu0 %v3568_v37  ;;  %3605 = vmatprep.mubr.bf16.mxu0 %v12601_v2 }
 0xb2e   :  { %v3485_v38 = vpop.trf.xlu0 }
 0xb2f   :  { %v3453_v43 = vpop.trf.xlu1 }
 0xb32   :  { %v3486_v45 = vpop.trf.xlu0 }
 0xb33   :  { %v3454_v44 = vpop.trf.xlu1  ;;  %v3509_v4 = vpack.c.bf16 %v3486_v45, %v3485_v38 }
 0xb34   :  { %v3501_v9 = vpack.c.bf16 %v3454_v44, %v3453_v43 }
 0xb36   :  { %7410 = vmatmul.mubr.msk.bf16.vlgmr.msra.gmra.mrb[156].mxu0 %vm685_vm2, %v3501_v9  ;;  %v3487_v32 = vpop.trf.xlu0 }
 0xb37   :  { %v3455_v23 = vpop.trf.xlu1  ;;  %3615 = vmatprep.mubr.bf16.mxu0 %v12601_v2 }
 0xb3a   :  { %v3488_v58 = vpop.trf.xlu0 }
 0xb3b   :  { %v3456_v18 = vpop.trf.xlu1  ;;  %v3510_v13 = vpack.c.bf16 %v3488_v58, %v3487_v32 }
 0xb3c   :  { %v3502_v59 = vpack.c.bf16 %v3456_v18, %v3455_v23 }
 0xb3e   :  { %7411 = vmatmul.mubr.msk.bf16.gmra.mrb[160].mxu0 %vm685_vm2, %v3502_v59  ;;  %v3489_v3 = vpop.trf.xlu0 }
 0xb3f   :  { %v3457_v63 = vpop.trf.xlu1  ;;  %3625 = vmatprep.mubr.bf16.mxu0 %v12601_v2 }
 0xb42   :  { %v3490_v19 = vpop.trf.xlu0 }
 0xb43   :  { %v3458_v27 = vpop.trf.xlu1  ;;  %v3511_v62 = vpack.c.bf16 %v3490_v19, %v3489_v3 }
 0xb44   :  { %v3503_v51 = vpack.c.bf16 %v3458_v27, %v3457_v63 }
 0xb46   :  { %7412 = vmatmul.mubr.msk.bf16.gmra.mrb[164].mxu0 %vm685_vm2, %v3503_v51  ;;  %v3491_v46 = vpop.trf.xlu0 }
 0xb47   :  { %v3459_v26 = vpop.trf.xlu1  ;;  %3635 = vmatprep.mubr.bf16.mxu0 %v12601_v2 }
 0xb4a   :  { %v3492_v1 = vpop.trf.xlu0 }
 0xb4b   :  { %v3460_v33 = vpop.trf.xlu1  ;;  %v3512_v36 = vpack.c.bf16 %v3492_v1, %v3491_v46 }
 0xb4c   :  { %v3504_v21 = vpack.c.bf16 %v3460_v33, %v3459_v26 }
 0xb4e   :  { %7413 = vmatmul.mubr.msk.bf16.gmra.mrb[168].mxu0 %vm685_vm2, %v3504_v21  ;;  %v3493_v10 = vpop.trf.xlu0 }
 0xb4f   :  { %v3461_v11 = vpop.trf.xlu1  ;;  %3645 = vmatprep.mubr.bf16.mxu0 %v12601_v2 }
 0xb52   :  { %v3494_v22 = vpop.trf.xlu0 }
 0xb53   :  { %v3462_v60 = vpop.trf.xlu1  ;;  %v3513_v35 = vpack.c.bf16 %v3494_v22, %v3493_v10 }
 0xb54   :  { %v3505_v31 = vpack.c.bf16 %v3462_v60, %v3461_v11 }
 0xb56   :  { %7414 = vmatmul.mubr.msk.bf16.gmra.mrb[172].mxu0 %vm685_vm2, %v3505_v31  ;;  %v3495_v7 = vpop.trf.xlu0 }
 0xb57   :  { %v3463_v41 = vpop.trf.xlu1  ;;  %3655 = vmatprep.mubr.bf16.mxu0 %v12601_v2 }
 0xb5a   :  { %v3496_v17 = vpop.trf.xlu0 }
 0xb5b   :  { %v3464_v48 = vpop.trf.xlu1  ;;  %v3514_v5 = vpack.c.bf16 %v3496_v17, %v3495_v7 }
 0xb5c   :  { %v3506_v15 = vpack.c.bf16 %v3464_v48, %v3463_v41 }
 0xb5e   :  { %7415 = vmatmul.mubr.msk.bf16.gmra.mrb[176].mxu0 %vm685_vm2, %v3506_v15  ;;  %v3497_v56 = vpop.trf.xlu0 }
 0xb5f   :  { %v3465_v29 = vpop.trf.xlu1  ;;  %3665 = vmatprep.mubr.bf16.mxu0 %v12601_v2 }
 0xb62   :  { %v3498_v47 = vpop.trf.xlu0 }
 0xb63   :  { %v3466_v34 = vpop.trf.xlu1  ;;  %v3515_v53 = vpack.c.bf16 %v3498_v47, %v3497_v56 }
 0xb64   :  { %v3507_v14 = vpack.c.bf16 %v3466_v34, %v3465_v29 }
 0xb66   :  { %7416 = vmatmul.mubr.msk.bf16.gmra.mrb[180].mxu0 %vm685_vm2, %v3507_v14  ;;  %v3499_v49 = vpop.trf.xlu0 }
 0xb67   :  { %v3467_v54 = vpop.trf.xlu1  ;;  %3675 = vmatprep.mubr.bf16.mxu0 %v12601_v2 }
 0xb6a   :  { %v3500_v55 = vpop.trf.xlu0 }
 0xb6b   :  { %v3468_v28 = vpop.trf.xlu1  ;;  %v3516_v6 = vpack.c.bf16 %v3500_v55, %v3499_v49 }
 0xb6c   :  { %v3508_v40 = vpack.c.bf16 %v3468_v28, %v3467_v54 }
 0xb6e   :  { %7417 = vmatmul.mubr.msk.bf16.gmra.mrb[184].mxu0 %vm685_vm2, %v3508_v40 }
 0xb6f   :  { %3685 = vmatprep.mubr.bf16.mxu0 %v12601_v2 }
 0xb76   :  { %7418 = vmatmul.mubr.msk.bf16.gmra.mrb[188].mxu0 %vm685_vm2, %v3509_v4 }
 0xb77   :  { %3695 = vmatprep.mubr.bf16.mxu0 %v12601_v2 }
 0xb7e   :  { %7419 = vmatmul.mubr.msk.bf16.gmra.mrb[192].mxu0 %vm685_vm2, %v3510_v13 }
 0xb7f   :  { %3705 = vmatprep.mubr.bf16.mxu0 %v12601_v2 }
 0xb86   :  { %7420 = vmatmul.mubr.msk.bf16.gmra.mrb[196].mxu0 %vm685_vm2, %v3511_v62 }
 0xb87   :  { %3715 = vmatprep.mubr.bf16.mxu0 %v12601_v2 }
 0xb8e   :  { %7421 = vmatmul.mubr.msk.bf16.gmra.mrb[200].mxu0 %vm685_vm2, %v3512_v36 }
 0xb8f   :  { %3725 = vmatprep.mubr.bf16.mxu0 %v12601_v2 }
 0xb96   :  { %7422 = vmatmul.mubr.msk.bf16.gmra.mrb[204].mxu0 %vm685_vm2, %v3513_v35 }
 0xb97   :  { %3735 = vmatprep.mubr.bf16.mxu0 %v12601_v2 }
 0xb9e   :  { %7423 = vmatmul.mubr.msk.bf16.gmra.mrb[208].mxu0 %vm685_vm2, %v3514_v5 }
 0xb9f   :  { %3745 = vmatprep.mubr.bf16.mxu0 %v12601_v2 }
 0xba6   :  { %7424 = vmatmul.mubr.msk.bf16.gmra.mrb[212].mxu0 %vm685_vm2, %v3515_v53 }
 0xba7   :  { %3755 = vmatprep.mubr.bf16.mxu0 %v12601_v2 }
 0xbae   :  { %7425 = vmatmul.mubr.msk.bf16.gmra.mrb[216].mxu0 %vm685_vm2, %v3516_v6 }
 0xbaf   :  { %4828 = vmatprep.mubr.bf16.mxu0 %v4795_v57 }
 0xbf9   :  { %v3414_v0 = vpop.f32.mrb[152].mxu0 }
 0xbfa   :  { %v3416_v8 = vpop.f32.mrb[153].mxu0 }
 0xbfb   :  { %v3418_v42 = vpop.f32.mrb[154].mxu0 }
 0xbfc   :  { %8097 = vrcp.f32 %v3418_v42  ;;  %v3420_v12 = vpop.f32.mrb[155].mxu0 }
 0xbfd   :  { %8099 = vrcp.f32 %v3420_v12 }
 0xc06   :  { %v8098_v39 = vpop.eup %8097 }
 0xc07   :  { %v8100_v52 = vpop.eup %8099  ;;  %v3428_v25 = vrot.slane %v8098_v39, %v12604_v24 }
 0xc08   :  { %v3432_v37 = vrot.slane %v8100_v52, %v12604_v24 }
 0xc09   :  { %v10437_v43 = vpop.f32.mrb[156].mxu0  ;;  %v10439_v44 = vmul.f32 %v3428_v25, %v3414_v0 }
 0xc0a   :  { %v10441_v9 = vpop.f32.mrb[157].mxu0  ;;  %v10443_v23 = vmul.f32 %v3432_v37, %v3416_v8 }
 0xc0b   :  { %12605 = vst [vmem:[#allocation36_spill] sm:$0xff] %v10439_v44  ;;  %v3766_v18 = vmax.f32 %v10437_v43, %v10441_v9  ;;  %v10447_v59 = vpop.f32.mrb[158].mxu0 }
 0xc0c   :  { %12606 = vst [vmem:[#allocation35_spill] sm:$0xff] %v10443_v23  ;;  %v10451_v51 = vpop.f32.mrb[159].mxu0 }
 0xc0d   :  { %v3769_v21 = vmax.f32 %v10447_v59, %v10451_v51  ;;  %3767 = vmax.xlane.f32.xlu0 %v3766_v18 }
 0xc0f   :  { %3770 = vmax.xlane.f32.xlu1 %v3769_v21 }
 0xc11   :  { %v10457_v11 = vpop.f32.mrb[160].mxu0 }
 0xc12   :  { %v10459_v38 = vpop.f32.mrb[161].mxu0 }
 0xc13   :  { %v3772_v60 = vmax.f32 %v10457_v11, %v10459_v38  ;;  %v10463_v31 = vpop.f32.mrb[162].mxu0 }
 0xc14   :  { %v10465_v45 = vpop.f32.mrb[163].mxu0 }
 0xc15   :  { %v3775_v41 = vmax.f32 %v10463_v31, %v10465_v45  ;;  %3773 = vmax.xlane.f32.xlu1 %v3772_v60 }
 0xc19   :  { %3776 = vmax.xlane.f32.xlu1 %v3775_v41  ;;  %v10469_v48 = vpop.f32.mrb[164].mxu0 }
 0xc1a   :  { %v10471_v32 = vpop.f32.mrb[165].mxu0 }
 0xc1b   :  { %v3778_v15 = vmax.f32 %v10469_v48, %v10471_v32  ;;  %v10475_v29 = vpop.f32.mrb[166].mxu0 }
 0xc1c   :  { %v10477_v58 = vpop.f32.mrb[167].mxu0 }
 0xc1d   :  { %v3781_v34 = vmax.f32 %v10475_v29, %v10477_v58  ;;  %3779 = vmax.xlane.f32.xlu0 %v3778_v15 }
 0xc1f   :  { %3782 = vmax.xlane.f32.xlu1 %v3781_v34 }
 0xc21   :  { %v10481_v14 = vpop.f32.mrb[168].mxu0 }
 0xc22   :  { %v10483_v54 = vpop.f32.mrb[169].mxu0 }
 0xc23   :  { %v3784_v3 = vmax.f32 %v10481_v14, %v10483_v54  ;;  %v10487_v28 = vpop.f32.mrb[170].mxu0 }
 0xc24   :  { %v10489_v40 = vpop.f32.mrb[171].mxu0 }
 0xc25   :  { %v3787_v19 = vmax.f32 %v10487_v28, %v10489_v40  ;;  %3785 = vmax.xlane.f32.xlu0 %v3784_v3 }
 0xc27   :  { %3788 = vmax.xlane.f32.xlu1 %v3787_v19 }
 0xc29   :  { %v10493_v46 = vpop.f32.mrb[172].mxu0 }
 0xc2a   :  { %v10495_v4 = vpop.f32.mrb[173].mxu0 }
 0xc2b   :  { %v3790_v1 = vmax.f32 %v10493_v46, %v10495_v4  ;;  %v10499_v13 = vpop.f32.mrb[174].mxu0 }
 0xc2c   :  { %v10501_v10 = vpop.f32.mrb[175].mxu0 }
 0xc2d   :  { %v3793_v62 = vmax.f32 %v10499_v13, %v10501_v10  ;;  %3791 = vmax.xlane.f32.xlu0 %v3790_v1 }
 0xc2f   :  { %3794 = vmax.xlane.f32.xlu1 %v3793_v62 }
 0xc31   :  { %v10505_v22 = vpop.f32.mrb[176].mxu0 }
 0xc32   :  { %v10507_v7 = vpop.f32.mrb[177].mxu0 }
 0xc33   :  { %v3796_v36 = vmax.f32 %v10505_v22, %v10507_v7  ;;  %v10511_v17 = vpop.f32.mrb[178].mxu0 }
 0xc34   :  { %v10513_v35 = vpop.f32.mrb[179].mxu0 }
 0xc35   :  { %v3799_v56 = vmax.f32 %v10511_v17, %v10513_v35  ;;  %3797 = vmax.xlane.f32.xlu0 %v3796_v36 }
 0xc37   :  { %3800 = vmax.xlane.f32.xlu1 %v3799_v56 }
 0xc39   :  { %v10517_v5 = vpop.f32.mrb[180].mxu0 }
 0xc3a   :  { %v10519_v47 = vpop.f32.mrb[181].mxu0 }
 0xc3b   :  { %v3802_v49 = vmax.f32 %v10517_v5, %v10519_v47  ;;  %v10523_v53 = vpop.f32.mrb[182].mxu0 }
 0xc3c   :  { %v10525_v55 = vpop.f32.mrb[183].mxu0 }
 0xc3d   :  { %v3805_v50 = vmax.f32 %v10523_v53, %v10525_v55  ;;  %3803 = vmax.xlane.f32.xlu0 %v3802_v49 }
 0xc3f   :  { %3806 = vmax.xlane.f32.xlu1 %v3805_v50 }
 0xc41   :  { %v10529_v61 = vpop.f32.mrb[184].mxu0 }
 0xc42   :  { %v10531_v6 = vpop.f32.mrb[185].mxu0 }
 0xc43   :  { %v3808_v57 = vmax.f32 %v10529_v61, %v10531_v6  ;;  %v10535_v0 = vpop.f32.mrb[186].mxu0 }
 0xc44   :  { %v10537_v8 = vpop.f32.mrb[187].mxu0 }
 0xc45   :  { %v3811_v42 = vmax.f32 %v10535_v0, %v10537_v8  ;;  %3809 = vmax.xlane.f32.xlu0 %v3808_v57 }
 0xc47   :  { %3812 = vmax.xlane.f32.xlu1 %v3811_v42 }
 0xc49   :  { %v10541_v12 = vpop.f32.mrb[188].mxu0 }
 0xc4a   :  { %v10543_v39 = vpop.f32.mrb[189].mxu0 }
 0xc4b   :  { %v3814_v52 = vmax.f32 %v10541_v12, %v10543_v39  ;;  %v10547_v25 = vpop.f32.mrb[190].mxu0 }
 0xc4c   :  { %v10549_v37 = vpop.f32.mrb[191].mxu0 }
 0xc4d   :  { %v3817_v18 = vmax.f32 %v10547_v25, %v10549_v37  ;;  %3815 = vmax.xlane.f32.xlu0 %v3814_v52 }
 0xc4f   :  { %3818 = vmax.xlane.f32.xlu1 %v3817_v18 }
 0xc51   :  { %v10553_v21 = vpop.f32.mrb[192].mxu0 }
 0xc52   :  { %v10555_v60 = vpop.f32.mrb[193].mxu0 }
 0xc53   :  { %v3820_v41 = vmax.f32 %v10553_v21, %v10555_v60  ;;  %v10559_v15 = vpop.f32.mrb[194].mxu0 }
 0xc54   :  { %v10561_v34 = vpop.f32.mrb[195].mxu0 }
 0xc55   :  { %v3823_v3 = vmax.f32 %v10559_v15, %v10561_v34  ;;  %3821 = vmax.xlane.f32.xlu0 %v3820_v41 }
 0xc57   :  { %3824 = vmax.xlane.f32.xlu1 %v3823_v3 }
 0xc59   :  { %v10565_v19 = vpop.f32.mrb[196].mxu0 }
 0xc5a   :  { %v10567_v1 = vpop.f32.mrb[197].mxu0 }
 0xc5b   :  { %v3826_v62 = vmax.f32 %v10565_v19, %v10567_v1  ;;  %v10571_v36 = vpop.f32.mrb[198].mxu0 }
 0xc5c   :  { %v10573_v56 = vpop.f32.mrb[199].mxu0 }
 0xc5d   :  { %v3829_v49 = vmax.f32 %v10571_v36, %v10573_v56  ;;  %3827 = vmax.xlane.f32.xlu0 %v3826_v62 }
 0xc5f   :  { %3830 = vmax.xlane.f32.xlu1 %v3829_v49 }
 0xc61   :  { %v10577_v50 = vpop.f32.mrb[200].mxu0 }
 0xc62   :  { %v10579_v57 = vpop.f32.mrb[201].mxu0 }
 0xc63   :  { %v3832_v42 = vmax.f32 %v10577_v50, %v10579_v57  ;;  %v10583_v52 = vpop.f32.mrb[202].mxu0 }
 0xc64   :  { %v10585_v18 = vpop.f32.mrb[203].mxu0 }
 0xc65   :  { %v3835_v41 = vmax.f32 %v10583_v52, %v10585_v18  ;;  %3833 = vmax.xlane.f32.xlu0 %v3832_v42 }
 0xc67   :  { %3836 = vmax.xlane.f32.xlu1 %v3835_v41 }
 0xc69   :  { %v10589_v3 = vpop.f32.mrb[204].mxu0 }
 0xc6a   :  { %v10591_v62 = vpop.f32.mrb[205].mxu0 }
 0xc6b   :  { %v3838_v49 = vmax.f32 %v10589_v3, %v10591_v62  ;;  %v10595_v27 = vpop.f32.mrb[206].mxu0 }
 0xc6c   :  { %12609 = vst [vmem:[#allocation10_spill] sm:$0xff] %v10595_v27  ;;  %v10597_v33 = vpop.f32.mrb[207].mxu0 }
 0xc6d   :  { %12610 = vst [vmem:[#allocation62_spill] sm:$0xff] %v10597_v33  ;;  %v3841_v63 = vmax.f32 %v10595_v27, %v10597_v33  ;;  %3839 = vmax.xlane.f32.xlu0 %v3838_v49 }
 0xc6f   :  { %3842 = vmax.xlane.f32.xlu1 %v3841_v63 }
 0xc71   :  { %v10601_v44 = vpop.f32.mrb[208].mxu0 }
 0xc72   :  { %12611 = vst [vmem:[#allocation9_spill] sm:$0xff] %v10601_v44  ;;  %v10603_v42 = vpop.f32.mrb[209].mxu0 }
 0xc73   :  { %12612 = vst [vmem:[#allocation18_spill] sm:$0xff] %v10603_v42  ;;  %v3844_v41 = vmax.f32 %v10601_v44, %v10603_v42  ;;  %v10607_v26 = vpop.f32.mrb[210].mxu0 }
 0xc74   :  { %12613 = vst [vmem:[#allocation16_spill] sm:$0xff] %v10607_v26  ;;  %v10609_v23 = vpop.f32.mrb[211].mxu0 }
 0xc75   :  { %12614 = vst [vmem:[#allocation17_spill] sm:$0xff] %v10609_v23  ;;  %v3847_v20 = vmax.f32 %v10607_v26, %v10609_v23  ;;  %3845 = vmax.xlane.f32.xlu0 %v3844_v41 }
 0xc77   :  { %3848 = vmax.xlane.f32.xlu1 %v3847_v20 }
 0xc79   :  { %v10613_v16 = vpop.f32.mrb[212].mxu0 }
 0xc7a   :  { %12615 = vst [vmem:[#allocation20_spill] sm:$0xff] %v10613_v16  ;;  %v10615_v49 = vpop.f32.mrb[213].mxu0 }
 0xc7b   :  { %12616 = vst [vmem:[#allocation22_spill] sm:$0xff] %v10615_v49  ;;  %v3850_v63 = vmax.f32 %v10613_v16, %v10615_v49  ;;  %v10619_v24 = vpop.f32.mrb[214].mxu0 }
 0xc7c   :  { %12617 = vst [vmem:[#allocation27_spill] sm:$0xff] %v10619_v24  ;;  %v10621_v2 = vpop.f32.mrb[215].mxu0 }
 0xc7d   :  { %12618 = vst [vmem:[#allocation29_spill] sm:$0xff] %v10621_v2  ;;  %v3853_v30 = vmax.f32 %v10619_v24, %v10621_v2  ;;  %3851 = vmax.xlane.f32.xlu0 %v3850_v63 }
 0xc7f   :  { %3854 = vmax.xlane.f32.xlu1 %v3853_v30 }
 0xc81   :  { %v10625_v42 = vpop.f32.mrb[216].mxu0 }
 0xc82   :  { %12619 = vst [vmem:[#allocation66_spill] sm:$0xff] %v10625_v42  ;;  %v10627_v41 = vpop.f32.mrb[217].mxu0 }
 0xc83   :  { %12620 = vst [vmem:[#allocation40_spill] sm:$0xff] %v10627_v41  ;;  %v3856_v20 = vmax.f32 %v10625_v42, %v10627_v41  ;;  %v10631_v23 = vpop.f32.mrb[218].mxu0 }
 0xc84   :  { %v10633_v26 = vpop.f32.mrb[219].mxu0 }
 0xc85   :  { %12621 = vst [vmem:[#allocation34_spill] sm:$0xff] %v10633_v26  ;;  %v3859_v49 = vmax.f32 %v10631_v23, %v10633_v26  ;;  %3857 = vmax.xlane.f32.xlu0 %v3856_v20 }
 0xc87   :  { %3860 = vmax.xlane.f32.xlu1 %v3859_v49 }
 0xc9a   :  { %v3768_v16 = vpop.xlane.xlu0 %3767 }
 0xc9b   :  { %v3862_v63 = vsub.f32 %v10437_v43, %v3768_v16  ;;  %v3863_v30 = vsub.f32 %v10441_v9, %v3768_v16 }
 0xc9c   :  { %v3771_v2 = vpop.xlane.xlu1 %3770 }
 0xc9d   :  { %v3926_v24 = vmul.f32 1.442695, %v3862_v63  ;;  %v3864_v44 = vsub.f32 %v10447_v59, %v3771_v2  ;;  %v3865_v41 = vsub.f32 %v10451_v51, %v3771_v2  ;;  %v3928_v42 = vmul.f32 1.442695, %v3863_v30 }
 0xc9f   :  { %v3930_v33 = vmul.f32 1.442695, %v3864_v44  ;;  %v3932_v27 = vmul.f32 1.442695, %v3865_v41  ;;  %8101 = vpow2.f32 %v3926_v24 }
 0xca1   :  { %8103 = vpow2.f32 %v3930_v33 }
 0xca2   :  { %8105 = vpow2.f32 %v3932_v27  ;;  %v3774_v26 = vpop.xlane.xlu1 %3773 }
 0xca3   :  { %8107 = vpow2.f32 %v3928_v42  ;;  %v3866_v49 = vsub.f32 %v10457_v11, %v3774_v26  ;;  %v3867_v43 = vsub.f32 %v10459_v38, %v3774_v26 }
 0xca5   :  { %v3934_v20 = vmul.f32 1.442695, %v3866_v49  ;;  %v3936_v16 = vmul.f32 1.442695, %v3867_v43 }
 0xca6   :  { %v3777_v9 = vpop.xlane.xlu1 %3776 }
 0xca7   :  { %v3868_v63 = vsub.f32 %v10463_v31, %v3777_v9  ;;  %v3869_v59 = vsub.f32 %v10465_v45, %v3777_v9  ;;  %8109 = vpow2.f32 %v3934_v20  ;;  %v12622_v9 = vld [vmem:[#allocation41_spill] sm:$0xff] }
 0xca8   :  { %8111 = vpow2.f32 %v3936_v16 }
 0xca9   :  { %v3938_v2 = vmul.f32 1.442695, %v3868_v63  ;;  %v3940_v44 = vmul.f32 1.442695, %v3869_v59  ;;  %v8102_v51 = vpop.eup %8101  ;;  %v593_v63 = vmul.f32 0.35355338, %v12622_v9 }
 0xcaa   :  { %v3780_v24 = vpop.xlane.xlu0 %3779 }
 0xcab   :  { %v8104_v27 = vpop.eup %8103  ;;  %8113 = vpow2.f32 %v3938_v2  ;;  %v3870_v33 = vsub.f32 %v10469_v48, %v3780_v24  ;;  %v3871_v11 = vsub.f32 %v10471_v32, %v3780_v24 }
 0xcac   :  { %v8106_v26 = vpop.eup %8105  ;;  %8115 = vpow2.f32 %v3940_v44  ;;  %v3783_v38 = vpop.xlane.xlu1 %3782  ;;  %v4054_v42 = vpack.c.bf16 %v8104_v27, %v8102_v51 }
 0xcad   :  { %v8108_v41 = vpop.eup %8107  ;;  %v3942_v31 = vmul.f32 1.442695, %v3870_v33  ;;  %v3872_v45 = vsub.f32 %v10475_v29, %v3783_v38  ;;  %v3873_v30 = vsub.f32 %v10477_v58, %v3783_v38  ;;  %v3944_v43 = vmul.f32 1.442695, %v3871_v11 }
 0xcae   :  { %v4055_v49 = vpack.c.bf16 %v8106_v26, %v8108_v41 }
 0xcaf   :  { %v3946_v20 = vmul.f32 1.442695, %v3872_v45  ;;  %v3948_v16 = vmul.f32 1.442695, %v3873_v30  ;;  %8117 = vpow2.f32 %v3942_v31  ;;  %v12623_v31 = vld [vmem:[#allocation42_spill] sm:$0xff] }
 0xcb0   :  { %4088 = vmatprep.subr.bf16.mxu1 %v4055_v49  ;;  %v594_v45 = vmul.f32 0.35355338, %v12623_v31 }
 0xcb1   :  { %8119 = vpow2.f32 %v3946_v20  ;;  %4089 = vmatpush1.bf16.xpose.msra.mxu1 %v4054_v42  ;;  %v8110_v32 = vpop.eup %8109 }
 0xcb2   :  { %8121 = vpow2.f32 %v3948_v16  ;;  %4145 = vxpose.xlu0.b32.start.end [1/1] (short) %v593_v63, 128  ;;  %v3786_v48 = vpop.xlane.xlu0 %3785  ;;  %v8112_v58 = vpop.eup %8111 }
 0xcb3   :  { %8123 = vpow2.f32 %v3944_v43  ;;  %v3874_v59 = vsub.f32 %v10481_v14, %v3786_v48  ;;  %v3875_v29 = vsub.f32 %v10483_v54, %v3786_v48 }
 0xcb4   :  { %v3789_v2 = vpop.xlane.xlu1 %3788 }
 0xcb5   :  { %v8114_v44 = vpop.eup %8113  ;;  %v3950_v51 = vmul.f32 1.442695, %v3874_v59  ;;  %v3876_v24 = vsub.f32 %v10487_v28, %v3789_v2  ;;  %v3877_v27 = vsub.f32 %v10489_v40, %v3789_v2  ;;  %v3952_v26 = vmul.f32 1.442695, %v3875_v29 }
 0xcb6   :  { %v8116_v33 = vpop.eup %8115  ;;  %v4056_v11 = vpack.c.bf16 %v8114_v44, %v8110_v32 }
 0xcb7   :  { %v3954_v38 = vmul.f32 1.442695, %v3876_v24  ;;  %v3956_v42 = vmul.f32 1.442695, %v3877_v27  ;;  %v4057_v41 = vpack.c.bf16 %v8116_v33, %v8112_v58  ;;  %8125 = vpow2.f32 %v3950_v51 }
 0xcb9   :  { %8127 = vpow2.f32 %v3954_v38  ;;  %4090 = vmatprep.subr.bf16.mxu1 %v4057_v41  ;;  %v8118_v14 = vpop.eup %8117 }
 0xcba   :  { %8129 = vpow2.f32 %v3956_v42  ;;  %4091 = vmatpush1.bf16.xpose.msra.mxu1 %v4056_v11  ;;  %4177 = vxpose.xlu1.b32.start.end [1/1] (short) %v594_v45, 128  ;;  %v3792_v54 = vpop.xlane.xlu0 %3791 }
 0xcbb   :  { %v8120_v30 = vpop.eup %8119  ;;  %8131 = vpow2.f32 %v3952_v26  ;;  %v3878_v28 = vsub.f32 %v10493_v46, %v3792_v54  ;;  %v3879_v40 = vsub.f32 %v10495_v4, %v3792_v54 }
 0xcbc   :  { %v8122_v49 = vpop.eup %8121  ;;  %v3795_v43 = vpop.xlane.xlu1 %3794  ;;  %v4058_v20 = vpack.c.bf16 %v8120_v30, %v8118_v14 }
 0xcbd   :  { %v8124_v16 = vpop.eup %8123  ;;  %v3958_v9 = vmul.f32 1.442695, %v3878_v28  ;;  %v3880_v63 = vsub.f32 %v10499_v13, %v3795_v43  ;;  %v3881_v48 = vsub.f32 %v10501_v10, %v3795_v43  ;;  %v3960_v59 = vmul.f32 1.442695, %v3879_v40 }
 0xcbe   :  { %v4059_v32 = vpack.c.bf16 %v8122_v49, %v8124_v16 }
 0xcbf   :  { %v3962_v29 = vmul.f32 1.442695, %v3880_v63  ;;  %v3964_v58 = vmul.f32 1.442695, %v3881_v48  ;;  %8133 = vpow2.f32 %v3958_v9 }
 0xcc0   :  { %4092 = vmatprep.subr.bf16.mxu1 %v4059_v32 }
 0xcc1   :  { %8135 = vpow2.f32 %v3962_v29  ;;  %v8126_v2 = vpop.eup %8125 }
 0xcc2   :  { %8137 = vpow2.f32 %v3964_v58  ;;  %4093 = vmatpush1.bf16.xpose.msra.mxu1 %v4058_v20  ;;  %v3798_v46 = vpop.xlane.xlu0 %3797 }
 0xcc3   :  { %v8128_v4 = vpop.eup %8127  ;;  %8139 = vpow2.f32 %v3960_v59  ;;  %v3882_v44 = vsub.f32 %v10505_v22, %v3798_v46  ;;  %v3883_v51 = vsub.f32 %v10507_v7, %v3798_v46 }
 0xcc4   :  { %v8130_v13 = vpop.eup %8129  ;;  %v3801_v24 = vpop.xlane.xlu1 %3800  ;;  %v4060_v10 = vpack.c.bf16 %v8128_v4, %v8126_v2 }
 0xcc5   :  { %v8132_v27 = vpop.eup %8131  ;;  %v3966_v33 = vmul.f32 1.442695, %v3882_v44  ;;  %v3884_v11 = vsub.f32 %v10511_v17, %v3801_v24  ;;  %v3885_v26 = vsub.f32 %v10513_v35, %v3801_v24  ;;  %v3968_v42 = vmul.f32 1.442695, %v3883_v51 }
 0xcc6   :  { %v4061_v38 = vpack.c.bf16 %v8130_v13, %v8132_v27 }
 0xcc7   :  { %v3970_v41 = vmul.f32 1.442695, %v3884_v11  ;;  %v3972_v31 = vmul.f32 1.442695, %v3885_v26  ;;  %8141 = vpow2.f32 %v3966_v33 }
 0xcc8   :  { %4094 = vmatprep.subr.bf16.mxu1 %v4061_v38 }
 0xcc9   :  { %8143 = vpow2.f32 %v3970_v41  ;;  %v8134_v45 = vpop.eup %8133 }
 0xcca   :  { %8145 = vpow2.f32 %v3972_v31  ;;  %4095 = vmatpush1.bf16.xpose.msra.mxu1 %v4060_v10  ;;  %v3804_v22 = vpop.xlane.xlu0 %3803 }
 0xccb   :  { %v8136_v7 = vpop.eup %8135  ;;  %8147 = vpow2.f32 %v3968_v42  ;;  %v3886_v14 = vsub.f32 %v10517_v5, %v3804_v22  ;;  %v3887_v54 = vsub.f32 %v10519_v47, %v3804_v22 }
 0xccc   :  { %v8138_v17 = vpop.eup %8137  ;;  %v3807_v30 = vpop.xlane.xlu1 %3806  ;;  %v4062_v35 = vpack.c.bf16 %v8136_v7, %v8134_v45 }
 0xccd   :  { %v8140_v28 = vpop.eup %8139  ;;  %v3974_v40 = vmul.f32 1.442695, %v3886_v14  ;;  %v3888_v49 = vsub.f32 %v10523_v53, %v3807_v30  ;;  %v3889_v43 = vsub.f32 %v10525_v55, %v3807_v30  ;;  %v3976_v16 = vmul.f32 1.442695, %v3887_v54 }
 0xcce   :  { %v4063_v20 = vpack.c.bf16 %v8138_v17, %v8140_v28 }
 0xccf   :  { %v3978_v9 = vmul.f32 1.442695, %v3888_v49  ;;  %v3980_v63 = vmul.f32 1.442695, %v3889_v43  ;;  %8149 = vpow2.f32 %v3974_v40 }
 0xcd0   :  { %4096 = vmatprep.subr.bf16.mxu1 %v4063_v20 }
 0xcd1   :  { %8151 = vpow2.f32 %v3978_v9  ;;  %v8142_v48 = vpop.eup %8141 }
 0xcd2   :  { %8153 = vpow2.f32 %v3980_v63  ;;  %4097 = vmatpush1.bf16.xpose.msra.mxu1 %v4062_v35  ;;  %v3810_v5 = vpop.xlane.xlu0 %3809 }
 0xcd3   :  { %v8144_v47 = vpop.eup %8143  ;;  %8155 = vpow2.f32 %v3976_v16  ;;  %v3890_v32 = vsub.f32 %v10529_v61, %v3810_v5  ;;  %v3891_v59 = vsub.f32 %v10531_v6, %v3810_v5 }
 0xcd4   :  { %v8146_v53 = vpop.eup %8145  ;;  %v3813_v29 = vpop.xlane.xlu1 %3812  ;;  %v4064_v55 = vpack.c.bf16 %v8144_v47, %v8142_v48 }
 0xcd5   :  { %v8148_v58 = vpop.eup %8147  ;;  %v3982_v2 = vmul.f32 1.442695, %v3890_v32  ;;  %v3892_v46 = vsub.f32 %v10535_v0, %v3813_v29  ;;  %v3893_v4 = vsub.f32 %v10537_v8, %v3813_v29  ;;  %v3984_v51 = vmul.f32 1.442695, %v3891_v59 }
 0xcd6   :  { %v4065_v44 = vpack.c.bf16 %v8146_v53, %v8148_v58 }
 0xcd7   :  { %v3986_v13 = vmul.f32 1.442695, %v3892_v46  ;;  %v3988_v24 = vmul.f32 1.442695, %v3893_v4  ;;  %8157 = vpow2.f32 %v3982_v2 }
 0xcd8   :  { %4098 = vmatprep.subr.bf16.mxu1 %v4065_v44 }
 0xcd9   :  { %8159 = vpow2.f32 %v3986_v13  ;;  %v8150_v10 = vpop.eup %8149 }
 0xcda   :  { %8161 = vpow2.f32 %v3988_v24  ;;  %4099 = vmatpush1.bf16.xpose.msra.mxu1 %v4064_v55  ;;  %v3816_v61 = vpop.xlane.xlu0 %3815 }
 0xcdb   :  { %v8152_v6 = vpop.eup %8151  ;;  %8163 = vpow2.f32 %v3984_v51  ;;  %v3894_v27 = vsub.f32 %v10541_v12, %v3816_v61  ;;  %v3895_v33 = vsub.f32 %v10543_v39, %v3816_v61 }
 0xcdc   :  { %v8154_v0 = vpop.eup %8153  ;;  %v3819_v11 = vpop.xlane.xlu1 %3818  ;;  %v4066_v8 = vpack.c.bf16 %v8152_v6, %v8150_v10 }
 0xcdd   :  { %v8156_v26 = vpop.eup %8155  ;;  %v3990_v38 = vmul.f32 1.442695, %v3894_v27  ;;  %v3896_v42 = vsub.f32 %v10547_v25, %v3819_v11  ;;  %v3897_v41 = vsub.f32 %v10549_v37, %v3819_v11  ;;  %v3992_v45 = vmul.f32 1.442695, %v3895_v33 }
 0xcde   :  { %v4067_v31 = vpack.c.bf16 %v8154_v0, %v8156_v26 }
 0xcdf   :  { %v3994_v22 = vmul.f32 1.442695, %v3896_v42  ;;  %v3996_v7 = vmul.f32 1.442695, %v3897_v41  ;;  %8165 = vpow2.f32 %v3990_v38 }
 0xce0   :  { %4100 = vmatprep.subr.bf16.mxu1 %v4067_v31 }
 0xce1   :  { %8167 = vpow2.f32 %v3994_v22  ;;  %v8158_v14 = vpop.eup %8157 }
 0xce2   :  { %8169 = vpow2.f32 %v3996_v7  ;;  %4101 = vmatpush1.bf16.xpose.msra.mxu1 %v4066_v8  ;;  %v3822_v12 = vpop.xlane.xlu0 %3821  ;;  %v12625_v7 = vld [vmem:[#allocation62_spill] sm:$0xff] }
 0xce3   :  { %v8160_v39 = vpop.eup %8159  ;;  %8171 = vpow2.f32 %v3992_v45  ;;  %v3898_v54 = vsub.f32 %v10553_v21, %v3822_v12  ;;  %v3899_v17 = vsub.f32 %v10555_v60, %v3822_v12  ;;  %v12624_v45 = vld [vmem:[#allocation10_spill] sm:$0xff] }
 0xce4   :  { %v8162_v25 = vpop.eup %8161  ;;  %v3825_v30 = vpop.xlane.xlu1 %3824  ;;  %v4068_v37 = vpack.c.bf16 %v8160_v39, %v8158_v14 }
 0xce5   :  { %v8164_v35 = vpop.eup %8163  ;;  %v3998_v28 = vmul.f32 1.442695, %v3898_v54  ;;  %v3900_v40 = vsub.f32 %v10559_v15, %v3825_v30  ;;  %v3901_v49 = vsub.f32 %v10561_v34, %v3825_v30  ;;  %v4000_v20 = vmul.f32 1.442695, %v3899_v17  ;;  %v12626_v30 = vld [vmem:[#allocation9_spill] sm:$0xff] }
 0xce6   :  { %v4069_v43 = vpack.c.bf16 %v8162_v25, %v8164_v35  ;;  %v12627_v35 = vld [vmem:[#allocation18_spill] sm:$0xff] }
 0xce7   :  { %v4002_v16 = vmul.f32 1.442695, %v3900_v40  ;;  %v4004_v9 = vmul.f32 1.442695, %v3901_v49  ;;  %8173 = vpow2.f32 %v3998_v28 }
 0xce8   :  { %4102 = vmatprep.subr.bf16.mxu1 %v4069_v43 }
 0xce9   :  { %8175 = vpow2.f32 %v4002_v16  ;;  %v8166_v63 = vpop.eup %8165 }
 0xcea   :  { %8177 = vpow2.f32 %v4004_v9  ;;  %4103 = vmatpush1.bf16.xpose.msra.mxu1 %v4068_v37  ;;  %v3828_v21 = vpop.xlane.xlu0 %3827  ;;  %v12628_v9 = vld [vmem:[#allocation16_spill] sm:$0xff] }
 0xceb   :  { %v8168_v60 = vpop.eup %8167  ;;  %8179 = vpow2.f32 %v4000_v20  ;;  %v3902_v48 = vsub.f32 %v10565_v19, %v3828_v21  ;;  %v3903_v5 = vsub.f32 %v10567_v1, %v3828_v21  ;;  %v12629_v21 = vld [vmem:[#allocation17_spill] sm:$0xff] }
 0xcec   :  { %v8170_v15 = vpop.eup %8169  ;;  %v3831_v47 = vpop.xlane.xlu1 %3830  ;;  %v4070_v34 = vpack.c.bf16 %v8168_v60, %v8166_v63 }
 0xced   :  { %v8172_v32 = vpop.eup %8171  ;;  %v4006_v59 = vmul.f32 1.442695, %v3902_v48  ;;  %v3904_v53 = vsub.f32 %v10571_v36, %v3831_v47  ;;  %v3905_v29 = vsub.f32 %v10573_v56, %v3831_v47  ;;  %v4008_v58 = vmul.f32 1.442695, %v3903_v5 }
 0xcee   :  { %v4071_v55 = vpack.c.bf16 %v8170_v15, %v8172_v32 }
 0xcef   :  { %v4010_v2 = vmul.f32 1.442695, %v3904_v53  ;;  %v4012_v46 = vmul.f32 1.442695, %v3905_v29  ;;  %8181 = vpow2.f32 %v4006_v59  ;;  %v12630_v53 = vld [vmem:[#allocation20_spill] sm:$0xff] }
 0xcf0   :  { %4104 = vmatprep.subr.bf16.mxu1 %v4071_v55  ;;  %v12631_v55 = vld [vmem:[#allocation22_spill] sm:$0xff] }
 0xcf1   :  { %8183 = vpow2.f32 %v4010_v2  ;;  %v8174_v4 = vpop.eup %8173 }
 0xcf2   :  { %8185 = vpow2.f32 %v4012_v46  ;;  %4105 = vmatpush1.bf16.xpose.msra.mxu1 %v4070_v34  ;;  %v3834_v19 = vpop.xlane.xlu0 %3833 }
 0xcf3   :  { %v8176_v1 = vpop.eup %8175  ;;  %8187 = vpow2.f32 %v4008_v58  ;;  %v3906_v44 = vsub.f32 %v10577_v50, %v3834_v19  ;;  %v3907_v51 = vsub.f32 %v10579_v57, %v3834_v19 }
 0xcf4   :  { %v8178_v36 = vpop.eup %8177  ;;  %v3837_v13 = vpop.xlane.xlu1 %3836  ;;  %v4072_v56 = vpack.c.bf16 %v8176_v1, %v8174_v4 }
 0xcf5   :  { %v8180_v24 = vpop.eup %8179  ;;  %v4014_v10 = vmul.f32 1.442695, %v3906_v44  ;;  %v3908_v61 = vsub.f32 %v10583_v52, %v3837_v13  ;;  %v3909_v6 = vsub.f32 %v10585_v18, %v3837_v13  ;;  %v4016_v33 = vmul.f32 1.442695, %v3907_v51  ;;  %v12632_v51 = vld [vmem:[#allocation27_spill] sm:$0xff]  ;;  %v12633_v13 = vld [vmem:[#allocation29_spill] sm:$0xff] }
 0xcf6   :  { %v4073_v27 = vpack.c.bf16 %v8178_v36, %v8180_v24 }
 0xcf7   :  { %v4018_v0 = vmul.f32 1.442695, %v3908_v61  ;;  %v4020_v11 = vmul.f32 1.442695, %v3909_v6  ;;  %8189 = vpow2.f32 %v4014_v10 }
 0xcf8   :  { %4106 = vmatprep.subr.bf16.mxu1 %v4073_v27 }
 0xcf9   :  { %8191 = vpow2.f32 %v4018_v0  ;;  %v8182_v8 = vpop.eup %8181  ;;  %v12634_v0 = vld [vmem:[#allocation66_spill] sm:$0xff] }
 0xcfa   :  { %8193 = vpow2.f32 %v4020_v11  ;;  %4107 = vmatpush1.bf16.xpose.msra.mxu1 %v4072_v56  ;;  %v3840_v50 = vpop.xlane.xlu0 %3839 }
 0xcfb   :  { %v8184_v57 = vpop.eup %8183  ;;  %8195 = vpow2.f32 %v4016_v33  ;;  %v3910_v26 = vsub.f32 %v10589_v3, %v3840_v50  ;;  %v3911_v38 = vsub.f32 %v10591_v62, %v3840_v50 }
 0xcfc   :  { %v8186_v52 = vpop.eup %8185  ;;  %v3843_v42 = vpop.xlane.xlu1 %3842  ;;  %v4074_v18 = vpack.c.bf16 %v8184_v57, %v8182_v8  ;;  %v12635_v8 = vld [vmem:[#allocation40_spill] sm:$0xff] }
 0xcfd   :  { %v8188_v41 = vpop.eup %8187  ;;  %v4022_v31 = vmul.f32 1.442695, %v3910_v26  ;;  %v3912_v22 = vsub.f32 %v12624_v45, %v3843_v42  ;;  %v3913_v14 = vsub.f32 %v12625_v7, %v3843_v42  ;;  %v4024_v39 = vmul.f32 1.442695, %v3911_v38 }
 0xcfe   :  { %v4075_v12 = vpack.c.bf16 %v8186_v52, %v8188_v41 }
 0xcff   :  { %v4026_v54 = vmul.f32 1.442695, %v3912_v22  ;;  %v4028_v17 = vmul.f32 1.442695, %v3913_v14  ;;  %8197 = vpow2.f32 %v4022_v31  ;;  %v12636_v31 = vld [vmem:[#allocation34_spill] sm:$0xff] }
 0xd00   :  { %4108 = vmatprep.subr.bf16.mxu1 %v4075_v12 }
 0xd01   :  { %8199 = vpow2.f32 %v4026_v54  ;;  %v8190_v25 = vpop.eup %8189 }
 0xd02   :  { %8201 = vpow2.f32 %v4028_v17  ;;  %4109 = vmatpush1.bf16.xpose.msra.mxu1 %v4074_v18  ;;  %v3846_v3 = vpop.xlane.xlu0 %3845 }
 0xd03   :  { %v8192_v62 = vpop.eup %8191  ;;  %8203 = vpow2.f32 %v4024_v39  ;;  %v3914_v37 = vsub.f32 %v12626_v30, %v3846_v3  ;;  %v3915_v28 = vsub.f32 %v12627_v35, %v3846_v3 }
 0xd04   :  { %v8194_v40 = vpop.eup %8193  ;;  %v3849_v49 = vpop.xlane.xlu1 %3848  ;;  %v4076_v43 = vpack.c.bf16 %v8192_v62, %v8190_v25 }
 0xd05   :  { %v8196_v20 = vpop.eup %8195  ;;  %v4030_v16 = vmul.f32 1.442695, %v3914_v37  ;;  %v3916_v63 = vsub.f32 %v12628_v9, %v3849_v49  ;;  %v3917_v60 = vsub.f32 %v12629_v21, %v3849_v49  ;;  %v4032_v5 = vmul.f32 1.442695, %v3915_v28  ;;  %v12637_v28 = vld [vmem:[#allocation44_spill] sm:$0xff]  ;;  %v12641_v21 = vld [vmem:[#allocation61_spill] sm:$0xff] }
 0xd06   :  { %v4077_v48 = vpack.c.bf16 %v8194_v40, %v8196_v20  ;;  %v12638_v40 = vld [vmem:[#allocation56_spill] sm:$0xff]  ;;  %v12639_v20 = vld [vmem:[#allocation55_spill] sm:$0xff] }
 0xd07   :  { %v4034_v15 = vmul.f32 1.442695, %v3916_v63  ;;  %v4036_v47 = vmul.f32 1.442695, %v3917_v60  ;;  %8205 = vpow2.f32 %v4030_v16  ;;  %v555_v49 = vadd.f32 %v12638_v40, %v12637_v28  ;;  %v12640_v63 = vld [vmem:[#allocation43_spill] sm:$0xff] }
 0xd08   :  { %4110 = vmatprep.subr.bf16.mxu1 %v4077_v48  ;;  %v553_v16 = vadd.f32 %v12639_v20, %v12637_v28  ;;  %v569_v60 = vadd.f32 %v12641_v21, %v12640_v63 }
 0xd09   :  { %8207 = vpow2.f32 %v4034_v15  ;;  %v8198_v34 = vpop.eup %8197  ;;  %v4226_v9 = vpack.c.bf16 %v555_v49, %v555_v49 }
 0xd0a   :  { %8209 = vpow2.f32 %v4036_v47  ;;  %4111 = vmatpush1.bf16.xpose.msra.mxu1 %v4076_v43  ;;  %v3852_v32 = vpop.xlane.xlu0 %3851  ;;  %v4225_v48 = vpack.c.bf16 %v553_v16, %v553_v16 }
 0xd0b   :  { %v8200_v59 = vpop.eup %8199  ;;  %8211 = vpow2.f32 %v4032_v5  ;;  %v3918_v29 = vsub.f32 %v12630_v53, %v3852_v32  ;;  %v3919_v58 = vsub.f32 %v12631_v55, %v3852_v32  ;;  %v12642_v5 = vmov 1.0  }
 0xd0c   :  { %v8202_v2 = vpop.eup %8201  ;;  %v3855_v46 = vpop.xlane.xlu1 %3854  ;;  %v4078_v4 = vpack.c.bf16 %v8200_v59, %v8198_v34  ;;  %v4086_v15 = vpack.c.bf16 %v12642_v5, %v569_v60  ;;  %v4276_v47 = vsel %vm734_vm1, %v4225_v48, 0  ;;  %v12643_v32 = vmov 0  }
 0xd0d   :  { %v8204_v19 = vpop.eup %8203  ;;  %v4038_v1 = vmul.f32 1.442695, %v3918_v29  ;;  %v4040_v44 = vmul.f32 1.442695, %v3919_v58  ;;  %v3920_v36 = vsub.f32 %v12632_v51, %v3855_v46  ;;  %v3921_v56 = vsub.f32 %v12633_v13, %v3855_v46 }
 0xd0e   :  { %v4079_v24 = vpack.c.bf16 %v8202_v2, %v8204_v19 }
 0xd0f   :  { %8213 = vpow2.f32 %v4038_v1  ;;  %v4042_v10 = vmul.f32 1.442695, %v3920_v36  ;;  %v4044_v61 = vmul.f32 1.442695, %v3921_v56 }
 0xd10   :  { %8215 = vpow2.f32 %v4040_v44  ;;  %4112 = vmatprep.subr.bf16.mxu1 %v4079_v24 }
 0xd11   :  { %8217 = vpow2.f32 %v4042_v10  ;;  %v8206_v6 = vpop.eup %8205 }
 0xd12   :  { %8219 = vpow2.f32 %v4044_v61  ;;  %4113 = vmatpush1.bf16.xpose.msra.mxu1 %v4078_v4  ;;  %v3858_v27 = vpop.xlane.xlu0 %3857 }
 0xd13   :  { %v8208_v33 = vpop.eup %8207  ;;  %v3922_v11 = vsub.f32 %v12634_v0, %v3858_v27  ;;  %v3923_v50 = vsub.f32 %v12635_v8, %v3858_v27 }
 0xd14   :  { %v8210_v57 = vpop.eup %8209  ;;  %v3861_v26 = vpop.xlane.xlu1 %3860  ;;  %v4080_v38 = vpack.c.bf16 %v8208_v33, %v8206_v6 }
 0xd15   :  { %v8212_v52 = vpop.eup %8211  ;;  %v4046_v42 = vmul.f32 1.442695, %v3922_v11  ;;  %v4048_v18 = vmul.f32 1.442695, %v3923_v50  ;;  %v3924_v41 = vsub.f32 %v10631_v23, %v3861_v26  ;;  %v3925_v45 = vsub.f32 %v12636_v31, %v3861_v26 }
 0xd16   :  { %v4081_v22 = vpack.c.bf16 %v8210_v57, %v8212_v52 }
 0xd17   :  { %8221 = vpow2.f32 %v4046_v42  ;;  %v4050_v7 = vmul.f32 1.442695, %v3924_v41  ;;  %v4052_v14 = vmul.f32 1.442695, %v3925_v45 }
 0xd18   :  { %8223 = vpow2.f32 %v4048_v18  ;;  %4114 = vmatprep.subr.bf16.mxu1 %v4081_v22 }
 0xd19   :  { %v8214_v12 = vpop.eup %8213  ;;  %8225 = vpow2.f32 %v4050_v7 }
 0xd1a   :  { %v8216_v39 = vpop.eup %8215  ;;  %8227 = vpow2.f32 %v4052_v14  ;;  %4115 = vmatpush1.bf16.xpose.msra.mxu1 %v4080_v38 }
 0xd1b   :  { %v8218_v54 = vpop.eup %8217 }
 0xd1c   :  { %v8220_v17 = vpop.eup %8219  ;;  %v4082_v25 = vpack.c.bf16 %v8218_v54, %v8214_v12 }
 0xd1d   :  { %v4083_v3 = vpack.c.bf16 %v8220_v17, %v8216_v39 }
 0xd1f   :  { %4116 = vmatprep.subr.bf16.mxu1 %v4083_v3 }
 0xd21   :  { %v8222_v62 = vpop.eup %8221 }
 0xd22   :  { %v8224_v23 = vpop.eup %8223  ;;  %4117 = vmatpush1.bf16.xpose.msra.mxu1 %v4082_v25 }
 0xd23   :  { %v8226_v30 = vpop.eup %8225 }
 0xd24   :  { %v8228_v37 = vpop.eup %8227  ;;  %v4084_v35 = vpack.c.bf16 %v8226_v30, %v8222_v62 }
 0xd25   :  { %v4085_v43 = vpack.c.bf16 %v8228_v37, %v8224_v23  ;;  %v12644_v37 = vld [vmem:[#allocation28_spill] sm:$0xff] }
 0xd27   :  { %4118 = vmatprep.subr.bf16.mxu1 %v4085_v43 }
 0xd2a   :  { %4119 = vmatpush1.bf16.xpose.msra.mxu1 %v4084_v35  ;;  %v12645_v35 = vld [vmem:[#allocation14_spill] sm:$0xff] }
 0xd2b   :  { %7426 = vmatprep.subr.msk.bf16.mxu1 %vm734_vm1, %v4226_v9  ;;  %v581_v28 = vadd.f32 %v12645_v35, %v12644_v37 }
 0xd2d   :  { %v5503_v49 = vpack.c.bf16 %v12642_v5, %v581_v28 }
 0xd31   :  { %4121 = vmatmul.mubr.bf16.vlgmr.msra.gmra.mrb[164].mxu1 %v4086_v15 }
 0xd32   :  { %4282 = vmatpush1.bf16.msra.mxu1 %v4276_v47  ;;  %v4161_v34 = vpop.trf.xlu0  ;;  %4313 = vmatprep.mubr.bf16.mxu1 %v12643_v32 }
 0xd36   :  { %v4162_v59 = vpop.trf.xlu0 }
 0xd37   :  { %v4209_v53 = vpack.c.bf16 %v4162_v59, %v4161_v34 }
 0xd39   :  { %7427 = vmatmul.mubr.msk.bf16.vlgmr.msra.gmra.mrb[168].mxu1 %vm685_vm2, %v4209_v53  ;;  %v12646_v53 = vld [vmem:[#allocation51_spill] sm:$0xff] }
 0xd3a   :  { %v4163_v29 = vpop.trf.xlu0  ;;  %4323 = vmatprep.mubr.bf16.mxu1 %v12643_v32  ;;  %v4193_v36 = vpop.trf.xlu1 }
 0xd3e   :  { %v4164_v55 = vpop.trf.xlu0  ;;  %v4194_v24 = vpop.trf.xlu1 }
 0xd3f   :  { %v4210_v58 = vpack.c.bf16 %v4164_v55, %v4163_v29  ;;  %v4217_v18 = vpack.c.bf16 %v4194_v24, %v4193_v36 }
 0xd41   :  { %7428 = vmatmul.mubr.msk.bf16.gmra.mrb[172].mxu1 %vm685_vm2, %v4210_v58 }
 0xd42   :  { %v4165_v2 = vpop.trf.xlu0  ;;  %4333 = vmatprep.mubr.bf16.mxu1 %v12643_v32  ;;  %v4195_v6 = vpop.trf.xlu1 }
 0xd46   :  { %v4166_v46 = vpop.trf.xlu0  ;;  %v4196_v0 = vpop.trf.xlu1 }
 0xd47   :  { %v4211_v4 = vpack.c.bf16 %v4166_v46, %v4165_v2  ;;  %v4218_v31 = vpack.c.bf16 %v4196_v0, %v4195_v6 }
 0xd49   :  { %7429 = vmatmul.mubr.msk.bf16.gmra.mrb[176].mxu1 %vm685_vm2, %v4211_v4 }
 0xd4a   :  { %v4167_v19 = vpop.trf.xlu0  ;;  %4343 = vmatprep.mubr.bf16.mxu1 %v12643_v32  ;;  %v4197_v57 = vpop.trf.xlu1 }
 0xd4e   :  { %v4168_v1 = vpop.trf.xlu0  ;;  %v4198_v52 = vpop.trf.xlu1 }
 0xd4f   :  { %v4212_v44 = vpack.c.bf16 %v4168_v1, %v4167_v19  ;;  %v4219_v22 = vpack.c.bf16 %v4198_v52, %v4197_v57 }
 0xd51   :  { %7430 = vmatmul.mubr.msk.bf16.gmra.mrb[180].mxu1 %vm685_vm2, %v4212_v44 }
 0xd52   :  { %v4169_v51 = vpop.trf.xlu0  ;;  %4353 = vmatprep.mubr.bf16.mxu1 %v12643_v32  ;;  %v4199_v42 = vpop.trf.xlu1 }
 0xd56   :  { %v4170_v13 = vpop.trf.xlu0  ;;  %v4200_v41 = vpop.trf.xlu1 }
 0xd57   :  { %v4213_v56 = vpack.c.bf16 %v4170_v13, %v4169_v51  ;;  %v4220_v12 = vpack.c.bf16 %v4200_v41, %v4199_v42 }
 0xd59   :  { %7431 = vmatmul.mubr.msk.bf16.gmra.mrb[184].mxu1 %vm685_vm2, %v4213_v56 }
 0xd5a   :  { %v4171_v10 = vpop.trf.xlu0  ;;  %4363 = vmatprep.mubr.bf16.mxu1 %v12643_v32  ;;  %v4201_v45 = vpop.trf.xlu1 }
 0xd5e   :  { %v4172_v61 = vpop.trf.xlu0  ;;  %v4202_v7 = vpop.trf.xlu1 }
 0xd5f   :  { %v4214_v27 = vpack.c.bf16 %v4172_v61, %v4171_v10  ;;  %v4221_v54 = vpack.c.bf16 %v4202_v7, %v4201_v45 }
 0xd61   :  { %7432 = vmatmul.mubr.msk.bf16.gmra.mrb[188].mxu1 %vm685_vm2, %v4214_v27 }
 0xd62   :  { %v4173_v33 = vpop.trf.xlu0  ;;  %4373 = vmatprep.mubr.bf16.mxu1 %v12643_v32  ;;  %v4203_v14 = vpop.trf.xlu1 }
 0xd66   :  { %v4174_v11 = vpop.trf.xlu0  ;;  %v4204_v39 = vpop.trf.xlu1 }
 0xd67   :  { %v4215_v8 = vpack.c.bf16 %v4174_v11, %v4173_v33  ;;  %v4222_v25 = vpack.c.bf16 %v4204_v39, %v4203_v14 }
 0xd69   :  { %7433 = vmatmul.mubr.msk.bf16.gmra.mrb[192].mxu1 %vm685_vm2, %v4215_v8 }
 0xd6a   :  { %v4175_v50 = vpop.trf.xlu0  ;;  %4383 = vmatprep.mubr.bf16.mxu1 %v12643_v32  ;;  %v4205_v17 = vpop.trf.xlu1 }
 0xd6e   :  { %v4176_v26 = vpop.trf.xlu0  ;;  %v4206_v3 = vpop.trf.xlu1 }
 0xd6f   :  { %v4216_v38 = vpack.c.bf16 %v4176_v26, %v4175_v50  ;;  %v4223_v23 = vpack.c.bf16 %v4206_v3, %v4205_v17 }
 0xd71   :  { %7434 = vmatmul.mubr.msk.bf16.gmra.mrb[196].mxu1 %vm685_vm2, %v4216_v38 }
 0xd72   :  { %4393 = vmatprep.mubr.bf16.mxu1 %v12643_v32  ;;  %v4207_v62 = vpop.trf.xlu1 }
 0xd76   :  { %v4208_v30 = vpop.trf.xlu1 }
 0xd77   :  { %v4224_v40 = vpack.c.bf16 %v4208_v30, %v4207_v62 }
 0xd79   :  { %7435 = vmatmul.mubr.msk.bf16.gmra.mrb[200].mxu1 %vm685_vm2, %v4217_v18 }
 0xd7a   :  { %4403 = vmatprep.mubr.bf16.mxu1 %v12643_v32 }
 0xd81   :  { %7436 = vmatmul.mubr.msk.bf16.gmra.mrb[204].mxu1 %vm685_vm2, %v4218_v31 }
 0xd82   :  { %4413 = vmatprep.mubr.bf16.mxu1 %v12643_v32 }
 0xd89   :  { %7437 = vmatmul.mubr.msk.bf16.gmra.mrb[208].mxu1 %vm685_vm2, %v4219_v22 }
 0xd8a   :  { %4423 = vmatprep.mubr.bf16.mxu1 %v12643_v32 }
 0xd91   :  { %7438 = vmatmul.mubr.msk.bf16.gmra.mrb[212].mxu1 %vm685_vm2, %v4220_v12 }
 0xd92   :  { %4433 = vmatprep.mubr.bf16.mxu1 %v12643_v32 }
 0xd99   :  { %7439 = vmatmul.mubr.msk.bf16.gmra.mrb[216].mxu1 %vm685_vm2, %v4221_v54 }
 0xd9a   :  { %4443 = vmatprep.mubr.bf16.mxu1 %v12643_v32 }
 0xda1   :  { %7440 = vmatmul.mubr.msk.bf16.gmra.mrb[220].mxu1 %vm685_vm2, %v4222_v25 }
 0xda2   :  { %4453 = vmatprep.mubr.bf16.mxu1 %v12643_v32 }
 0xda9   :  { %7441 = vmatmul.mubr.msk.bf16.gmra.mrb[224].mxu1 %vm685_vm2, %v4223_v23 }
 0xdaa   :  { %4463 = vmatprep.mubr.bf16.mxu1 %v12643_v32 }
 0xdb1   :  { %7442 = vmatmul.mubr.msk.bf16.gmra.mrb[228].mxu1 %vm685_vm2, %v4224_v40 }
 0xdb2   :  { %5536 = vmatprep.mubr.bf16.mxu1 %v5503_v49 }
 0xe04   :  { %v4122_v43 = vpop.f32.mrb[164].mxu1 }
 0xe05   :  { %v4124_v20 = vpop.f32.mrb[165].mxu1 }
 0xe06   :  { %v4126_v16 = vpop.f32.mrb[166].mxu1 }
 0xe07   :  { %8229 = vrcp.f32 %v4126_v16  ;;  %v4128_v9 = vpop.f32.mrb[167].mxu1 }
 0xe08   :  { %8231 = vrcp.f32 %v4128_v9 }
 0xe0c   :  { %v10747_v63 = vpop.f32.mrb[168].mxu1 }
 0xe0d   :  { %v10749_v21 = vpop.f32.mrb[169].mxu1 }
 0xe0e   :  { %v4474_v60 = vmax.f32 %v10747_v63, %v10749_v21  ;;  %v10753_v48 = vpop.f32.mrb[170].mxu1 }
 0xe0f   :  { %v10755_v15 = vpop.f32.mrb[171].mxu1 }
 0xe10   :  { %v4477_v47 = vmax.f32 %v10753_v48, %v10755_v15  ;;  %4475 = vmax.xlane.f32.xlu0 %v4474_v60 }
 0xe11   :  { %v8230_v34 = vpop.eup %8229 }
 0xe12   :  { %v8232_v59 = vpop.eup %8231  ;;  %4478 = vmax.xlane.f32.xlu1 %v4477_v47  ;;  %v4136_v29 = vrot.slane %v8230_v34, %v12646_v53 }
 0xe13   :  { %v4140_v55 = vrot.slane %v8232_v59, %v12646_v53 }
 0xe14   :  { %v10761_v58 = vpop.f32.mrb[172].mxu1  ;;  %v10763_v2 = vmul.f32 %v4136_v29, %v4122_v43 }
 0xe15   :  { %v10765_v46 = vpop.f32.mrb[173].mxu1  ;;  %v10767_v4 = vmul.f32 %v4140_v55, %v4124_v20 }
 0xe16   :  { %12647 = vst [vmem:[#allocation33_spill] sm:$0xff] %v10763_v2  ;;  %v4480_v19 = vmax.f32 %v10761_v58, %v10765_v46  ;;  %v10771_v1 = vpop.f32.mrb[174].mxu1 }
 0xe17   :  { %12648 = vst [vmem:[#allocation11_spill] sm:$0xff] %v10767_v4  ;;  %v10773_v44 = vpop.f32.mrb[175].mxu1 }
 0xe18   :  { %v4483_v51 = vmax.f32 %v10771_v1, %v10773_v44  ;;  %4481 = vmax.xlane.f32.xlu0 %v4480_v19 }
 0xe1a   :  { %4484 = vmax.xlane.f32.xlu1 %v4483_v51 }
 0xe1c   :  { %v10777_v36 = vpop.f32.mrb[176].mxu1 }
 0xe1d   :  { %v10779_v13 = vpop.f32.mrb[177].mxu1 }
 0xe1e   :  { %v4486_v56 = vmax.f32 %v10777_v36, %v10779_v13  ;;  %v10783_v24 = vpop.f32.mrb[178].mxu1 }
 0xe1f   :  { %v10785_v10 = vpop.f32.mrb[179].mxu1 }
 0xe20   :  { %v4489_v61 = vmax.f32 %v10783_v24, %v10785_v10  ;;  %4487 = vmax.xlane.f32.xlu0 %v4486_v56 }
 0xe22   :  { %4490 = vmax.xlane.f32.xlu1 %v4489_v61 }
 0xe24   :  { %v10789_v6 = vpop.f32.mrb[180].mxu1 }
 0xe25   :  { %v10791_v27 = vpop.f32.mrb[181].mxu1 }
 0xe26   :  { %v4492_v33 = vmax.f32 %v10789_v6, %v10791_v27  ;;  %v10795_v0 = vpop.f32.mrb[182].mxu1 }
 0xe27   :  { %v10797_v11 = vpop.f32.mrb[183].mxu1 }
 0xe28   :  { %v4495_v8 = vmax.f32 %v10795_v0, %v10797_v11  ;;  %4493 = vmax.xlane.f32.xlu0 %v4492_v33 }
 0xe2a   :  { %4496 = vmax.xlane.f32.xlu1 %v4495_v8 }
 0xe2c   :  { %v10801_v50 = vpop.f32.mrb[184].mxu1 }
 0xe2d   :  { %v10803_v57 = vpop.f32.mrb[185].mxu1 }
 0xe2e   :  { %v4498_v26 = vmax.f32 %v10801_v50, %v10803_v57  ;;  %v10807_v38 = vpop.f32.mrb[186].mxu1 }
 0xe2f   :  { %v10809_v52 = vpop.f32.mrb[187].mxu1 }
 0xe30   :  { %v4501_v42 = vmax.f32 %v10807_v38, %v10809_v52  ;;  %4499 = vmax.xlane.f32.xlu0 %v4498_v26 }
 0xe32   :  { %4502 = vmax.xlane.f32.xlu1 %v4501_v42 }
 0xe34   :  { %v10813_v18 = vpop.f32.mrb[188].mxu1 }
 0xe35   :  { %v10815_v41 = vpop.f32.mrb[189].mxu1 }
 0xe36   :  { %v4504_v31 = vmax.f32 %v10813_v18, %v10815_v41  ;;  %v10819_v45 = vpop.f32.mrb[190].mxu1 }
 0xe37   :  { %v10821_v22 = vpop.f32.mrb[191].mxu1 }
 0xe38   :  { %v4507_v7 = vmax.f32 %v10819_v45, %v10821_v22  ;;  %4505 = vmax.xlane.f32.xlu0 %v4504_v31 }
 0xe3a   :  { %4508 = vmax.xlane.f32.xlu1 %v4507_v7 }
 0xe3c   :  { %v10825_v14 = vpop.f32.mrb[192].mxu1 }
 0xe3d   :  { %v10827_v12 = vpop.f32.mrb[193].mxu1 }
 0xe3e   :  { %v4510_v39 = vmax.f32 %v10825_v14, %v10827_v12  ;;  %v10831_v54 = vpop.f32.mrb[194].mxu1 }
 0xe3f   :  { %v10833_v17 = vpop.f32.mrb[195].mxu1 }
 0xe40   :  { %v4513_v25 = vmax.f32 %v10831_v54, %v10833_v17  ;;  %4511 = vmax.xlane.f32.xlu0 %v4510_v39 }
 0xe42   :  { %4514 = vmax.xlane.f32.xlu1 %v4513_v25 }
 0xe44   :  { %v10837_v3 = vpop.f32.mrb[196].mxu1 }
 0xe45   :  { %v10839_v62 = vpop.f32.mrb[197].mxu1 }
 0xe46   :  { %v4516_v23 = vmax.f32 %v10837_v3, %v10839_v62  ;;  %v10843_v30 = vpop.f32.mrb[198].mxu1 }
 0xe47   :  { %v10845_v35 = vpop.f32.mrb[199].mxu1 }
 0xe48   :  { %v4519_v28 = vmax.f32 %v10843_v30, %v10845_v35  ;;  %4517 = vmax.xlane.f32.xlu0 %v4516_v23 }
 0xe4a   :  { %4520 = vmax.xlane.f32.xlu1 %v4519_v28 }
 0xe4c   :  { %v10849_v40 = vpop.f32.mrb[200].mxu1 }
 0xe4d   :  { %v10851_v49 = vpop.f32.mrb[201].mxu1 }
 0xe4e   :  { %v4522_v43 = vmax.f32 %v10849_v40, %v10851_v49  ;;  %v10855_v20 = vpop.f32.mrb[202].mxu1 }
 0xe4f   :  { %v10857_v16 = vpop.f32.mrb[203].mxu1 }
 0xe50   :  { %v4525_v9 = vmax.f32 %v10855_v20, %v10857_v16  ;;  %4523 = vmax.xlane.f32.xlu0 %v4522_v43 }
 0xe52   :  { %4526 = vmax.xlane.f32.xlu1 %v4525_v9 }
 0xe54   :  { %v10861_v60 = vpop.f32.mrb[204].mxu1 }
 0xe55   :  { %v10863_v47 = vpop.f32.mrb[205].mxu1 }
 0xe56   :  { %v4528_v34 = vmax.f32 %v10861_v60, %v10863_v47  ;;  %v10867_v59 = vpop.f32.mrb[206].mxu1 }
 0xe57   :  { %v10869_v29 = vpop.f32.mrb[207].mxu1 }
 0xe58   :  { %v4531_v55 = vmax.f32 %v10867_v59, %v10869_v29  ;;  %4529 = vmax.xlane.f32.xlu0 %v4528_v34 }
 0xe5a   :  { %4532 = vmax.xlane.f32.xlu1 %v4531_v55 }
 0xe5c   :  { %v10873_v19 = vpop.f32.mrb[208].mxu1 }
 0xe5d   :  { %v10875_v51 = vpop.f32.mrb[209].mxu1 }
 0xe5e   :  { %v4534_v56 = vmax.f32 %v10873_v19, %v10875_v51  ;;  %v10879_v61 = vpop.f32.mrb[210].mxu1 }
 0xe5f   :  { %v10881_v33 = vpop.f32.mrb[211].mxu1 }
 0xe60   :  { %v4537_v8 = vmax.f32 %v10879_v61, %v10881_v33  ;;  %4535 = vmax.xlane.f32.xlu0 %v4534_v56 }
 0xe62   :  { %4538 = vmax.xlane.f32.xlu1 %v4537_v8 }
 0xe64   :  { %v10885_v26 = vpop.f32.mrb[212].mxu1 }
 0xe65   :  { %v10887_v42 = vpop.f32.mrb[213].mxu1 }
 0xe66   :  { %v4540_v31 = vmax.f32 %v10885_v26, %v10887_v42  ;;  %v10891_v7 = vpop.f32.mrb[214].mxu1 }
 0xe67   :  { %v10893_v39 = vpop.f32.mrb[215].mxu1 }
 0xe68   :  { %v4543_v25 = vmax.f32 %v10891_v7, %v10893_v39  ;;  %4541 = vmax.xlane.f32.xlu0 %v4540_v31 }
 0xe6a   :  { %4544 = vmax.xlane.f32.xlu1 %v4543_v25 }
 0xe6c   :  { %v10897_v23 = vpop.f32.mrb[216].mxu1 }
 0xe6d   :  { %v10899_v28 = vpop.f32.mrb[217].mxu1 }
 0xe6e   :  { %v4546_v43 = vmax.f32 %v10897_v23, %v10899_v28  ;;  %v10903_v9 = vpop.f32.mrb[218].mxu1 }
 0xe6f   :  { %12649 = vst [vmem:[#allocation26_spill] sm:$0xff] %v10903_v9  ;;  %v10905_v34 = vpop.f32.mrb[219].mxu1 }
 0xe70   :  { %12650 = vst [vmem:[#allocation65_spill] sm:$0xff] %v10905_v34  ;;  %v4549_v55 = vmax.f32 %v10903_v9, %v10905_v34  ;;  %4547 = vmax.xlane.f32.xlu0 %v4546_v43 }
 0xe72   :  { %4550 = vmax.xlane.f32.xlu1 %v4549_v55 }
 0xe74   :  { %v10909_v56 = vpop.f32.mrb[220].mxu1 }
 0xe75   :  { %12651 = vst [vmem:[#allocation19_spill] sm:$0xff] %v10909_v56  ;;  %v10911_v8 = vpop.f32.mrb[221].mxu1 }
 0xe76   :  { %12652 = vst [vmem:[#allocation15_spill] sm:$0xff] %v10911_v8  ;;  %v4552_v31 = vmax.f32 %v10909_v56, %v10911_v8  ;;  %v10915_v25 = vpop.f32.mrb[222].mxu1 }
 0xe77   :  { %12653 = vst [vmem:[#allocation24_spill] sm:$0xff] %v10915_v25  ;;  %v10917_v37 = vpop.f32.mrb[223].mxu1 }
 0xe78   :  { %12654 = vst [vmem:[#allocation32_spill] sm:$0xff] %v10917_v37  ;;  %v4555_v4 = vmax.f32 %v10915_v25, %v10917_v37  ;;  %4553 = vmax.xlane.f32.xlu0 %v4552_v31 }
 0xe7a   :  { %4556 = vmax.xlane.f32.xlu1 %v4555_v4 }
 0xe7c   :  { %v10921_v2 = vpop.f32.mrb[224].mxu1 }
 0xe7d   :  { %12655 = vst [vmem:[#allocation31_spill] sm:$0xff] %v10921_v2  ;;  %v10923_v43 = vpop.f32.mrb[225].mxu1 }
 0xe7e   :  { %12656 = vst [vmem:[#allocation13_spill] sm:$0xff] %v10923_v43  ;;  %v4558_v55 = vmax.f32 %v10921_v2, %v10923_v43  ;;  %v10927_v53 = vpop.f32.mrb[226].mxu1 }
 0xe7f   :  { %12657 = vst [vmem:[#allocation46_spill] sm:$0xff] %v10927_v53  ;;  %v10929_v32 = vpop.f32.mrb[227].mxu1 }
 0xe80   :  { %12658 = vst [vmem:[#allocation41_spill] sm:$0xff] %v10929_v32  ;;  %v4561_v5 = vmax.f32 %v10927_v53, %v10929_v32  ;;  %4559 = vmax.xlane.f32.xlu0 %v4558_v55 }
 0xe82   :  { %4562 = vmax.xlane.f32.xlu1 %v4561_v5 }
 0xe84   :  { %v10933_v8 = vpop.f32.mrb[228].mxu1 }
 0xe85   :  { %12659 = vst [vmem:[#allocation42_spill] sm:$0xff] %v10933_v8  ;;  %v10935_v31 = vpop.f32.mrb[229].mxu1 }
 0xe86   :  { %12660 = vst [vmem:[#allocation10_spill] sm:$0xff] %v10935_v31  ;;  %v4564_v4 = vmax.f32 %v10933_v8, %v10935_v31  ;;  %v10939_v37 = vpop.f32.mrb[230].mxu1 }
 0xe87   :  { %v10941_v25 = vpop.f32.mrb[231].mxu1 }
 0xe88   :  { %12661 = vst [vmem:[#allocation62_spill] sm:$0xff] %v10941_v25  ;;  %v4567_v43 = vmax.f32 %v10939_v37, %v10941_v25  ;;  %4565 = vmax.xlane.f32.xlu0 %v4564_v4 }
 0xe8a   :  { %4568 = vmax.xlane.f32.xlu1 %v4567_v43 }
 0xe9d   :  { %v4476_v2 = vpop.xlane.xlu0 %4475 }
 0xe9e   :  { %v4570_v55 = vsub.f32 %v10747_v63, %v4476_v2  ;;  %v4571_v5 = vsub.f32 %v10749_v21, %v4476_v2 }
 0xe9f   :  { %v4479_v32 = vpop.xlane.xlu1 %4478 }
 0xea0   :  { %v4634_v53 = vmul.f32 1.442695, %v4570_v55  ;;  %v4572_v56 = vsub.f32 %v10753_v48, %v4479_v32  ;;  %v4573_v31 = vsub.f32 %v10755_v15, %v4479_v32  ;;  %v4636_v8 = vmul.f32 1.442695, %v4571_v5 }
 0xea2   :  { %v4638_v34 = vmul.f32 1.442695, %v4572_v56  ;;  %v4640_v9 = vmul.f32 1.442695, %v4573_v31  ;;  %8233 = vpow2.f32 %v4634_v53 }
 0xea4   :  { %8235 = vpow2.f32 %v4638_v34 }
 0xea5   :  { %8237 = vpow2.f32 %v4640_v9  ;;  %v4482_v25 = vpop.xlane.xlu0 %4481 }
 0xea6   :  { %8239 = vpow2.f32 %v4636_v8  ;;  %v4574_v43 = vsub.f32 %v10761_v58, %v4482_v25  ;;  %v4575_v63 = vsub.f32 %v10765_v46, %v4482_v25 }
 0xea7   :  { %v4485_v4 = vpop.xlane.xlu1 %4484 }
 0xea8   :  { %v4642_v21 = vmul.f32 1.442695, %v4574_v43  ;;  %v4576_v2 = vsub.f32 %v10771_v1, %v4485_v4  ;;  %v4577_v48 = vsub.f32 %v10773_v44, %v4485_v4  ;;  %v4644_v55 = vmul.f32 1.442695, %v4575_v63 }
 0xeaa   :  { %v4646_v32 = vmul.f32 1.442695, %v4576_v2  ;;  %v4648_v15 = vmul.f32 1.442695, %v4577_v48  ;;  %8241 = vpow2.f32 %v4642_v21  ;;  %v12662_v2 = vld [vmem:[#allocation54_spill] sm:$0xff] }
 0xeab   :  { %v597_v48 = vmul.f32 0.35355338, %v12662_v2 }
 0xeac   :  { %8243 = vpow2.f32 %v4646_v32  ;;  %v8234_v53 = vpop.eup %8233 }
 0xead   :  { %8245 = vpow2.f32 %v4648_v15  ;;  %v4488_v9 = vpop.xlane.xlu0 %4487 }
 0xeae   :  { %v8236_v34 = vpop.eup %8235  ;;  %8247 = vpow2.f32 %v4644_v55  ;;  %v4578_v58 = vsub.f32 %v10777_v36, %v4488_v9  ;;  %v4579_v46 = vsub.f32 %v10779_v13, %v4488_v9 }
 0xeaf   :  { %v8238_v56 = vpop.eup %8237  ;;  %v4491_v8 = vpop.xlane.xlu1 %4490  ;;  %v4762_v25 = vpack.c.bf16 %v8236_v34, %v8234_v53 }
 0xeb0   :  { %v8240_v1 = vpop.eup %8239  ;;  %v4650_v31 = vmul.f32 1.442695, %v4578_v58  ;;  %v4580_v44 = vsub.f32 %v10783_v24, %v4491_v8  ;;  %v4581_v5 = vsub.f32 %v10785_v10, %v4491_v8  ;;  %v4652_v63 = vmul.f32 1.442695, %v4579_v46 }
 0xeb1   :  { %v4763_v43 = vpack.c.bf16 %v8238_v56, %v8240_v1 }
 0xeb2   :  { %v4654_v4 = vmul.f32 1.442695, %v4580_v44  ;;  %v4656_v21 = vmul.f32 1.442695, %v4581_v5  ;;  %8249 = vpow2.f32 %v4650_v31  ;;  %v12663_v31 = vld [vmem:[#allocation38_spill] sm:$0xff] }
 0xeb3   :  { %4796 = vmatprep.subr.bf16.mxu0 %v4763_v43  ;;  %v598_v44 = vmul.f32 0.35355338, %v12663_v31 }
 0xeb4   :  { %8251 = vpow2.f32 %v4654_v4  ;;  %4797 = vmatpush1.bf16.xpose.msra.mxu0 %v4762_v25  ;;  %v8242_v36 = vpop.eup %8241 }
 0xeb5   :  { %8253 = vpow2.f32 %v4656_v21  ;;  %4853 = vxpose.xlu0.b32.start.end [1/1] (short) %v597_v48, 128  ;;  %v4494_v13 = vpop.xlane.xlu0 %4493 }
 0xeb6   :  { %v8244_v55 = vpop.eup %8243  ;;  %8255 = vpow2.f32 %v4652_v63  ;;  %v4582_v24 = vsub.f32 %v10789_v6, %v4494_v13  ;;  %v4583_v10 = vsub.f32 %v10791_v27, %v4494_v13 }
 0xeb7   :  { %v8246_v32 = vpop.eup %8245  ;;  %v4497_v15 = vpop.xlane.xlu1 %4496  ;;  %v4764_v53 = vpack.c.bf16 %v8244_v55, %v8242_v36 }
 0xeb8   :  { %v8248_v9 = vpop.eup %8247  ;;  %v4658_v34 = vmul.f32 1.442695, %v4582_v24  ;;  %v4584_v58 = vsub.f32 %v10795_v0, %v4497_v15  ;;  %v4585_v46 = vsub.f32 %v10797_v11, %v4497_v15  ;;  %v4660_v8 = vmul.f32 1.442695, %v4583_v10 }
 0xeb9   :  { %v4765_v56 = vpack.c.bf16 %v8246_v32, %v8248_v9 }
 0xeba   :  { %v4662_v25 = vmul.f32 1.442695, %v4584_v58  ;;  %v4664_v1 = vmul.f32 1.442695, %v4585_v46  ;;  %8257 = vpow2.f32 %v4658_v34 }
 0xebb   :  { %4798 = vmatprep.subr.bf16.mxu0 %v4765_v56 }
 0xebc   :  { %8259 = vpow2.f32 %v4662_v25  ;;  %4799 = vmatpush1.bf16.xpose.msra.mxu0 %v4764_v53  ;;  %v8250_v6 = vpop.eup %8249 }
 0xebd   :  { %8261 = vpow2.f32 %v4664_v1  ;;  %4885 = vxpose.xlu1.b32.start.end [1/1] (short) %v598_v44, 128  ;;  %v4500_v27 = vpop.xlane.xlu0 %4499 }
 0xebe   :  { %v8252_v5 = vpop.eup %8251  ;;  %8263 = vpow2.f32 %v4660_v8  ;;  %v4586_v0 = vsub.f32 %v10801_v50, %v4500_v27  ;;  %v4587_v11 = vsub.f32 %v10803_v57, %v4500_v27 }
 0xebf   :  { %v8254_v43 = vpop.eup %8253  ;;  %v4503_v63 = vpop.xlane.xlu1 %4502  ;;  %v4766_v4 = vpack.c.bf16 %v8252_v5, %v8250_v6 }
 0xec0   :  { %v8256_v21 = vpop.eup %8255  ;;  %v4666_v2 = vmul.f32 1.442695, %v4586_v0  ;;  %v4588_v48 = vsub.f32 %v10807_v38, %v4503_v63  ;;  %v4589_v36 = vsub.f32 %v10809_v52, %v4503_v63  ;;  %v4668_v55 = vmul.f32 1.442695, %v4587_v11 }
 0xec1   :  { %v4767_v13 = vpack.c.bf16 %v8254_v43, %v8256_v21 }
 0xec2   :  { %v4670_v24 = vmul.f32 1.442695, %v4588_v48  ;;  %v4672_v10 = vmul.f32 1.442695, %v4589_v36  ;;  %8265 = vpow2.f32 %v4666_v2 }
 0xec3   :  { %4800 = vmatprep.subr.bf16.mxu0 %v4767_v13 }
 0xec4   :  { %8267 = vpow2.f32 %v4670_v24  ;;  %4801 = vmatpush1.bf16.xpose.msra.mxu0 %v4766_v4  ;;  %v8258_v50 = vpop.eup %8257 }
 0xec5   :  { %8269 = vpow2.f32 %v4672_v10  ;;  %v4506_v57 = vpop.xlane.xlu0 %4505 }
 0xec6   :  { %v8260_v32 = vpop.eup %8259  ;;  %8271 = vpow2.f32 %v4668_v55  ;;  %v4590_v15 = vsub.f32 %v10813_v18, %v4506_v57  ;;  %v4591_v53 = vsub.f32 %v10815_v41, %v4506_v57 }
 0xec7   :  { %v8262_v38 = vpop.eup %8261  ;;  %v4509_v9 = vpop.xlane.xlu1 %4508  ;;  %v4768_v52 = vpack.c.bf16 %v8260_v32, %v8258_v50 }
 0xec8   :  { %v8264_v34 = vpop.eup %8263  ;;  %v4674_v58 = vmul.f32 1.442695, %v4590_v15  ;;  %v4592_v46 = vsub.f32 %v10819_v45, %v4509_v9  ;;  %v4593_v56 = vsub.f32 %v10821_v22, %v4509_v9  ;;  %v4676_v25 = vmul.f32 1.442695, %v4591_v53 }
 0xec9   :  { %v4769_v8 = vpack.c.bf16 %v8262_v38, %v8264_v34 }
 0xeca   :  { %v4678_v1 = vmul.f32 1.442695, %v4592_v46  ;;  %v4680_v31 = vmul.f32 1.442695, %v4593_v56  ;;  %8273 = vpow2.f32 %v4674_v58 }
 0xecb   :  { %4802 = vmatprep.subr.bf16.mxu0 %v4769_v8 }
 0xecc   :  { %8275 = vpow2.f32 %v4678_v1  ;;  %4803 = vmatpush1.bf16.xpose.msra.mxu0 %v4768_v52  ;;  %v8266_v18 = vpop.eup %8265 }
 0xecd   :  { %8277 = vpow2.f32 %v4680_v31  ;;  %v4512_v41 = vpop.xlane.xlu0 %4511 }
 0xece   :  { %v8268_v44 = vpop.eup %8267  ;;  %8279 = vpow2.f32 %v4676_v25  ;;  %v4594_v6 = vsub.f32 %v10825_v14, %v4512_v41  ;;  %v4595_v27 = vsub.f32 %v10827_v12, %v4512_v41 }
 0xecf   :  { %v8270_v45 = vpop.eup %8269  ;;  %v4515_v5 = vpop.xlane.xlu1 %4514  ;;  %v4770_v22 = vpack.c.bf16 %v8268_v44, %v8266_v18 }
 0xed0   :  { %v8272_v0 = vpop.eup %8271  ;;  %v4682_v11 = vmul.f32 1.442695, %v4594_v6  ;;  %v4596_v43 = vsub.f32 %v10831_v54, %v4515_v5  ;;  %v4597_v63 = vsub.f32 %v10833_v17, %v4515_v5  ;;  %v4684_v21 = vmul.f32 1.442695, %v4595_v27 }
 0xed1   :  { %v4771_v4 = vpack.c.bf16 %v8270_v45, %v8272_v0 }
 0xed2   :  { %v4686_v2 = vmul.f32 1.442695, %v4596_v43  ;;  %v4688_v48 = vmul.f32 1.442695, %v4597_v63  ;;  %8281 = vpow2.f32 %v4682_v11 }
 0xed3   :  { %4804 = vmatprep.subr.bf16.mxu0 %v4771_v4 }
 0xed4   :  { %8283 = vpow2.f32 %v4686_v2  ;;  %4805 = vmatpush1.bf16.xpose.msra.mxu0 %v4770_v22  ;;  %v8274_v14 = vpop.eup %8273 }
 0xed5   :  { %8285 = vpow2.f32 %v4688_v48  ;;  %v4518_v12 = vpop.xlane.xlu0 %4517 }
 0xed6   :  { %v8276_v36 = vpop.eup %8275  ;;  %8287 = vpow2.f32 %v4684_v21  ;;  %v4598_v13 = vsub.f32 %v10837_v3, %v4518_v12  ;;  %v4599_v55 = vsub.f32 %v10839_v62, %v4518_v12 }
 0xed7   :  { %v8278_v54 = vpop.eup %8277  ;;  %v4521_v24 = vpop.xlane.xlu1 %4520  ;;  %v4772_v17 = vpack.c.bf16 %v8276_v36, %v8274_v14 }
 0xed8   :  { %v8280_v10 = vpop.eup %8279  ;;  %v4690_v50 = vmul.f32 1.442695, %v4598_v13  ;;  %v4600_v57 = vsub.f32 %v10843_v30, %v4521_v24  ;;  %v4601_v32 = vsub.f32 %v10845_v35, %v4521_v24  ;;  %v4692_v53 = vmul.f32 1.442695, %v4599_v55 }
 0xed9   :  { %v4773_v15 = vpack.c.bf16 %v8278_v54, %v8280_v10 }
 0xeda   :  { %v4694_v38 = vmul.f32 1.442695, %v4600_v57  ;;  %v4696_v9 = vmul.f32 1.442695, %v4601_v32  ;;  %8289 = vpow2.f32 %v4690_v50 }
 0xedb   :  { %4806 = vmatprep.subr.bf16.mxu0 %v4773_v15 }
 0xedc   :  { %8291 = vpow2.f32 %v4694_v38  ;;  %4807 = vmatpush1.bf16.xpose.msra.mxu0 %v4772_v17  ;;  %v8282_v3 = vpop.eup %8281 }
 0xedd   :  { %8293 = vpow2.f32 %v4696_v9  ;;  %v4524_v62 = vpop.xlane.xlu0 %4523 }
 0xede   :  { %v8284_v52 = vpop.eup %8283  ;;  %8295 = vpow2.f32 %v4692_v53  ;;  %v4602_v34 = vsub.f32 %v10849_v40, %v4524_v62  ;;  %v4603_v58 = vsub.f32 %v10851_v49, %v4524_v62 }
 0xedf   :  { %v8286_v30 = vpop.eup %8285  ;;  %v4527_v46 = vpop.xlane.xlu1 %4526  ;;  %v4774_v35 = vpack.c.bf16 %v8284_v52, %v8282_v3 }
 0xee0   :  { %v8288_v56 = vpop.eup %8287  ;;  %v4698_v8 = vmul.f32 1.442695, %v4602_v34  ;;  %v4604_v25 = vsub.f32 %v10855_v20, %v4527_v46  ;;  %v4605_v1 = vsub.f32 %v10857_v16, %v4527_v46  ;;  %v4700_v18 = vmul.f32 1.442695, %v4603_v58 }
 0xee1   :  { %v4775_v31 = vpack.c.bf16 %v8286_v30, %v8288_v56 }
 0xee2   :  { %v4702_v41 = vmul.f32 1.442695, %v4604_v25  ;;  %v4704_v44 = vmul.f32 1.442695, %v4605_v1  ;;  %8297 = vpow2.f32 %v4698_v8 }
 0xee3   :  { %4808 = vmatprep.subr.bf16.mxu0 %v4775_v31 }
 0xee4   :  { %8299 = vpow2.f32 %v4702_v41  ;;  %4809 = vmatpush1.bf16.xpose.msra.mxu0 %v4774_v35  ;;  %v8290_v40 = vpop.eup %8289 }
 0xee5   :  { %8301 = vpow2.f32 %v4704_v44  ;;  %v4530_v49 = vpop.xlane.xlu0 %4529  ;;  %v12665_v44 = vld [vmem:[#allocation65_spill] sm:$0xff] }
 0xee6   :  { %v8292_v6 = vpop.eup %8291  ;;  %8303 = vpow2.f32 %v4700_v18  ;;  %v4606_v27 = vsub.f32 %v10861_v60, %v4530_v49  ;;  %v4607_v45 = vsub.f32 %v10863_v47, %v4530_v49  ;;  %v12664_v18 = vld [vmem:[#allocation26_spill] sm:$0xff] }
 0xee7   :  { %v8294_v20 = vpop.eup %8293  ;;  %v4533_v5 = vpop.xlane.xlu1 %4532  ;;  %v4776_v16 = vpack.c.bf16 %v8292_v6, %v8290_v40 }
 0xee8   :  { %v8296_v22 = vpop.eup %8295  ;;  %v4706_v0 = vmul.f32 1.442695, %v4606_v27  ;;  %v4608_v11 = vsub.f32 %v10867_v59, %v4533_v5  ;;  %v4609_v43 = vsub.f32 %v10869_v29, %v4533_v5  ;;  %v4708_v4 = vmul.f32 1.442695, %v4607_v45  ;;  %v12666_v5 = vld [vmem:[#allocation19_spill] sm:$0xff] }
 0xee9   :  { %v4777_v63 = vpack.c.bf16 %v8294_v20, %v8296_v22  ;;  %v12667_v22 = vld [vmem:[#allocation15_spill] sm:$0xff] }
 0xeea   :  { %v4710_v21 = vmul.f32 1.442695, %v4608_v11  ;;  %v4712_v2 = vmul.f32 1.442695, %v4609_v43  ;;  %8305 = vpow2.f32 %v4706_v0 }
 0xeeb   :  { %4810 = vmatprep.subr.bf16.mxu0 %v4777_v63 }
 0xeec   :  { %8307 = vpow2.f32 %v4710_v21  ;;  %4811 = vmatpush1.bf16.xpose.msra.mxu0 %v4776_v16  ;;  %v8298_v60 = vpop.eup %8297 }
 0xeed   :  { %8309 = vpow2.f32 %v4712_v2  ;;  %v4536_v47 = vpop.xlane.xlu0 %4535  ;;  %v12668_v2 = vld [vmem:[#allocation24_spill] sm:$0xff] }
 0xeee   :  { %v8300_v48 = vpop.eup %8299  ;;  %8311 = vpow2.f32 %v4708_v4  ;;  %v4610_v14 = vsub.f32 %v10873_v19, %v4536_v47  ;;  %v4611_v12 = vsub.f32 %v10875_v51, %v4536_v47  ;;  %v12669_v47 = vld [vmem:[#allocation32_spill] sm:$0xff] }
 0xeef   :  { %v8302_v59 = vpop.eup %8301  ;;  %v4539_v36 = vpop.xlane.xlu1 %4538  ;;  %v4778_v29 = vpack.c.bf16 %v8300_v48, %v8298_v60 }
 0xef0   :  { %v8304_v13 = vpop.eup %8303  ;;  %v4714_v55 = vmul.f32 1.442695, %v4610_v14  ;;  %v4612_v54 = vsub.f32 %v10879_v61, %v4539_v36  ;;  %v4613_v24 = vsub.f32 %v10881_v33, %v4539_v36  ;;  %v4716_v10 = vmul.f32 1.442695, %v4611_v12 }
 0xef1   :  { %v4779_v17 = vpack.c.bf16 %v8302_v59, %v8304_v13 }
 0xef2   :  { %v4718_v50 = vmul.f32 1.442695, %v4612_v54  ;;  %v4720_v57 = vmul.f32 1.442695, %v4613_v24  ;;  %8313 = vpow2.f32 %v4714_v55  ;;  %v12670_v54 = vld [vmem:[#allocation31_spill] sm:$0xff] }
 0xef3   :  { %4812 = vmatprep.subr.bf16.mxu0 %v4779_v17  ;;  %v12671_v17 = vld [vmem:[#allocation13_spill] sm:$0xff] }
 0xef4   :  { %8315 = vpow2.f32 %v4718_v50  ;;  %4813 = vmatpush1.bf16.xpose.msra.mxu0 %v4778_v29  ;;  %v8306_v19 = vpop.eup %8305 }
 0xef5   :  { %8317 = vpow2.f32 %v4720_v57  ;;  %v4542_v51 = vpop.xlane.xlu0 %4541 }
 0xef6   :  { %v8308_v32 = vpop.eup %8307  ;;  %8319 = vpow2.f32 %v4716_v10  ;;  %v4614_v15 = vsub.f32 %v10885_v26, %v4542_v51  ;;  %v4615_v53 = vsub.f32 %v10887_v42, %v4542_v51 }
 0xef7   :  { %v8310_v61 = vpop.eup %8309  ;;  %v4545_v38 = vpop.xlane.xlu1 %4544  ;;  %v4780_v33 = vpack.c.bf16 %v8308_v32, %v8306_v19 }
 0xef8   :  { %v8312_v9 = vpop.eup %8311  ;;  %v4722_v3 = vmul.f32 1.442695, %v4614_v15  ;;  %v4616_v62 = vsub.f32 %v10891_v7, %v4545_v38  ;;  %v4617_v52 = vsub.f32 %v10893_v39, %v4545_v38  ;;  %v4724_v58 = vmul.f32 1.442695, %v4615_v53  ;;  %v12672_v53 = vld [vmem:[#allocation46_spill] sm:$0xff]  ;;  %v12673_v38 = vld [vmem:[#allocation41_spill] sm:$0xff] }
 0xef9   :  { %v4781_v34 = vpack.c.bf16 %v8310_v61, %v8312_v9 }
 0xefa   :  { %v4726_v30 = vmul.f32 1.442695, %v4616_v62  ;;  %v4728_v46 = vmul.f32 1.442695, %v4617_v52  ;;  %8321 = vpow2.f32 %v4722_v3 }
 0xefb   :  { %4814 = vmatprep.subr.bf16.mxu0 %v4781_v34 }
 0xefc   :  { %8323 = vpow2.f32 %v4726_v30  ;;  %4815 = vmatpush1.bf16.xpose.msra.mxu0 %v4780_v33  ;;  %v8314_v26 = vpop.eup %8313  ;;  %v12674_v30 = vld [vmem:[#allocation42_spill] sm:$0xff] }
 0xefd   :  { %8325 = vpow2.f32 %v4728_v46  ;;  %v4548_v42 = vpop.xlane.xlu0 %4547 }
 0xefe   :  { %v8316_v35 = vpop.eup %8315  ;;  %8327 = vpow2.f32 %v4724_v58  ;;  %v4618_v56 = vsub.f32 %v10897_v23, %v4548_v42  ;;  %v4619_v8 = vsub.f32 %v10899_v28, %v4548_v42 }
 0xeff   :  { %v8318_v7 = vpop.eup %8317  ;;  %v4551_v25 = vpop.xlane.xlu1 %4550  ;;  %v4782_v39 = vpack.c.bf16 %v8316_v35, %v8314_v26  ;;  %v12675_v26 = vld [vmem:[#allocation10_spill] sm:$0xff] }
 0xf00   :  { %v8320_v1 = vpop.eup %8319  ;;  %v4730_v31 = vmul.f32 1.442695, %v4618_v56  ;;  %v4620_v41 = vsub.f32 %v12664_v18, %v4551_v25  ;;  %v4621_v40 = vsub.f32 %v12665_v44, %v4551_v25  ;;  %v4732_v6 = vmul.f32 1.442695, %v4619_v8 }
 0xf01   :  { %v4783_v49 = vpack.c.bf16 %v8318_v7, %v8320_v1 }
 0xf02   :  { %v4734_v27 = vmul.f32 1.442695, %v4620_v41  ;;  %v4736_v45 = vmul.f32 1.442695, %v4621_v40  ;;  %8329 = vpow2.f32 %v4730_v31  ;;  %v12676_v31 = vld [vmem:[#allocation62_spill] sm:$0xff] }
 0xf03   :  { %4816 = vmatprep.subr.bf16.mxu0 %v4783_v49 }
 0xf04   :  { %8331 = vpow2.f32 %v4734_v27  ;;  %4817 = vmatpush1.bf16.xpose.msra.mxu0 %v4782_v39  ;;  %v8322_v23 = vpop.eup %8321 }
 0xf05   :  { %8333 = vpow2.f32 %v4736_v45  ;;  %v4554_v28 = vpop.xlane.xlu0 %4553 }
 0xf06   :  { %v8324_v20 = vpop.eup %8323  ;;  %8335 = vpow2.f32 %v4732_v6  ;;  %v4622_v16 = vsub.f32 %v12666_v5, %v4554_v28  ;;  %v4623_v0 = vsub.f32 %v12667_v22, %v4554_v28  ;;  %v12677_v22 = vld [vmem:[#allocation50_spill] sm:$0xff] }
 0xf07   :  { %v8326_v11 = vpop.eup %8325  ;;  %v4557_v43 = vpop.xlane.xlu1 %4556  ;;  %v4784_v63 = vpack.c.bf16 %v8324_v20, %v8322_v23 }
 0xf08   :  { %v8328_v4 = vpop.eup %8327  ;;  %v4738_v21 = vmul.f32 1.442695, %v4622_v16  ;;  %v4624_v60 = vsub.f32 %v12668_v2, %v4557_v43  ;;  %v4625_v48 = vsub.f32 %v12669_v47, %v4557_v43  ;;  %v4740_v12 = vmul.f32 1.442695, %v4623_v0  ;;  %v12678_v0 = vld [vmem:[#allocation58_spill] sm:$0xff]  ;;  %v12681_v47 = vld [vmem:[#allocation45_spill] sm:$0xff] }
 0xf09   :  { %v4785_v14 = vpack.c.bf16 %v8326_v11, %v8328_v4  ;;  %v561_v11 = vadd.f32 %v12678_v0, %v12677_v22  ;;  %v12679_v4 = vld [vmem:[#allocation57_spill] sm:$0xff] }
 0xf0a   :  { %v4742_v59 = vmul.f32 1.442695, %v4624_v60  ;;  %v4744_v36 = vmul.f32 1.442695, %v4625_v48  ;;  %8337 = vpow2.f32 %v4738_v21  ;;  %v559_v21 = vadd.f32 %v12679_v4, %v12677_v22  ;;  %v12680_v60 = vld [vmem:[#allocation49_spill] sm:$0xff]  ;;  %v12685_v22 = vld [vmem:[#allocation23_spill] sm:$0xff] }
 0xf0b   :  { %4818 = vmatprep.subr.bf16.mxu0 %v4785_v14  ;;  %v4934_v2 = vpack.c.bf16 %v561_v11, %v561_v11  ;;  %v573_v48 = vadd.f32 %v12681_v47, %v12680_v60 }
 0xf0c   :  { %8339 = vpow2.f32 %v4742_v59  ;;  %4819 = vmatpush1.bf16.xpose.msra.mxu0 %v4784_v63  ;;  %v8330_v29 = vpop.eup %8329  ;;  %v4933_v14 = vpack.c.bf16 %v559_v21, %v559_v21 }
 0xf0d   :  { %8341 = vpow2.f32 %v4744_v36  ;;  %v4560_v13 = vpop.xlane.xlu0 %4559 }
 0xf0e   :  { %v8332_v55 = vpop.eup %8331  ;;  %8343 = vpow2.f32 %v4740_v12  ;;  %v4626_v24 = vsub.f32 %v12670_v54, %v4560_v13  ;;  %v4627_v10 = vsub.f32 %v12671_v17, %v4560_v13  ;;  %v12682_v12 = vmov 1.0  }
 0xf0f   :  { %v8334_v50 = vpop.eup %8333  ;;  %v4563_v57 = vpop.xlane.xlu1 %4562  ;;  %v4786_v19 = vpack.c.bf16 %v8332_v55, %v8330_v29  ;;  %v4794_v59 = vpack.c.bf16 %v12682_v12, %v573_v48  ;;  %v4984_v36 = vsel %vm734_vm1, %v4933_v14, 0  ;;  %v12683_v29 = vmov 0  }
 0xf10   :  { %v8336_v51 = vpop.eup %8335  ;;  %v4746_v32 = vmul.f32 1.442695, %v4626_v24  ;;  %v4748_v15 = vmul.f32 1.442695, %v4627_v10  ;;  %v4628_v61 = vsub.f32 %v12672_v53, %v4563_v57  ;;  %v4629_v33 = vsub.f32 %v12673_v38, %v4563_v57 }
 0xf11   :  { %v4787_v9 = vpack.c.bf16 %v8334_v50, %v8336_v51 }
 0xf12   :  { %8345 = vpow2.f32 %v4746_v32  ;;  %v4750_v3 = vmul.f32 1.442695, %v4628_v61  ;;  %v4752_v62 = vmul.f32 1.442695, %v4629_v33 }
 0xf13   :  { %8347 = vpow2.f32 %v4748_v15  ;;  %4820 = vmatprep.subr.bf16.mxu0 %v4787_v9 }
 0xf14   :  { %8349 = vpow2.f32 %v4750_v3  ;;  %4821 = vmatpush1.bf16.xpose.msra.mxu0 %v4786_v19  ;;  %v8338_v52 = vpop.eup %8337 }
 0xf15   :  { %8351 = vpow2.f32 %v4752_v62  ;;  %v4566_v34 = vpop.xlane.xlu0 %4565 }
 0xf16   :  { %v8340_v58 = vpop.eup %8339  ;;  %v4630_v46 = vsub.f32 %v12674_v30, %v4566_v34  ;;  %v4631_v42 = vsub.f32 %v12675_v26, %v4566_v34 }
 0xf17   :  { %v8342_v35 = vpop.eup %8341  ;;  %v4569_v56 = vpop.xlane.xlu1 %4568  ;;  %v4788_v8 = vpack.c.bf16 %v8340_v58, %v8338_v52 }
 0xf18   :  { %v8344_v7 = vpop.eup %8343  ;;  %v4754_v25 = vmul.f32 1.442695, %v4630_v46  ;;  %v4756_v39 = vmul.f32 1.442695, %v4631_v42  ;;  %v4632_v1 = vsub.f32 %v10939_v37, %v4569_v56  ;;  %v4633_v18 = vsub.f32 %v12676_v31, %v4569_v56 }
 0xf19   :  { %v4789_v41 = vpack.c.bf16 %v8342_v35, %v8344_v7 }
 0xf1a   :  { %8353 = vpow2.f32 %v4754_v25  ;;  %v4758_v44 = vmul.f32 1.442695, %v4632_v1  ;;  %v4760_v40 = vmul.f32 1.442695, %v4633_v18 }
 0xf1b   :  { %8355 = vpow2.f32 %v4756_v39  ;;  %4822 = vmatprep.subr.bf16.mxu0 %v4789_v41 }
 0xf1c   :  { %v8346_v49 = vpop.eup %8345  ;;  %8357 = vpow2.f32 %v4758_v44  ;;  %4823 = vmatpush1.bf16.xpose.msra.mxu0 %v4788_v8 }
 0xf1d   :  { %v8348_v6 = vpop.eup %8347  ;;  %8359 = vpow2.f32 %v4760_v40 }
 0xf1e   :  { %v8350_v27 = vpop.eup %8349 }
 0xf1f   :  { %v8352_v45 = vpop.eup %8351  ;;  %v4790_v23 = vpack.c.bf16 %v8350_v27, %v8346_v49 }
 0xf20   :  { %v4791_v28 = vpack.c.bf16 %v8352_v45, %v8348_v6 }
 0xf22   :  { %4824 = vmatprep.subr.bf16.mxu0 %v4791_v28 }
 0xf24   :  { %v8354_v20 = vpop.eup %8353  ;;  %4825 = vmatpush1.bf16.xpose.msra.mxu0 %v4790_v23 }
 0xf25   :  { %v8356_v37 = vpop.eup %8355 }
 0xf26   :  { %v8358_v5 = vpop.eup %8357 }
 0xf27   :  { %v8360_v16 = vpop.eup %8359  ;;  %v4792_v43 = vpack.c.bf16 %v8358_v5, %v8354_v20 }
 0xf28   :  { %v4793_v63 = vpack.c.bf16 %v8360_v16, %v8356_v37  ;;  %v12684_v16 = vld [vmem:[#allocation25_spill] sm:$0xff] }
 0xf29   :  { %v585_v0 = vadd.f32 %v12685_v22, %v12684_v16 }
 0xf2a   :  { %4826 = vmatprep.subr.bf16.mxu0 %v4793_v63 }
 0xf2c   :  { %4827 = vmatpush1.bf16.xpose.msra.mxu0 %v4792_v43  ;;  %v6211_v43 = vpack.c.bf16 %v12682_v12, %v585_v0 }
 0xf2d   :  { %7443 = vmatprep.subr.msk.bf16.mxu0 %vm734_vm1, %v4934_v2 }
 0xf33   :  { %4829 = vmatmul.mubr.bf16.vlgmr.msra.gmra.mrb[220].mxu0 %v4794_v59 }
 0xf34   :  { %4990 = vmatpush1.bf16.msra.mxu0 %v4984_v36  ;;  %5021 = vmatprep.mubr.bf16.mxu0 %v12683_v29 }
 0xf35   :  { %v4869_v13 = vpop.trf.xlu0 }
 0xf39   :  { %v4870_v55 = vpop.trf.xlu0 }
 0xf3a   :  { %v4917_v54 = vpack.c.bf16 %v4870_v55, %v4869_v13 }
 0xf3c   :  { %7444 = vmatmul.mubr.msk.bf16.vlgmr.msra.gmra.mrb[224].mxu0 %vm685_vm2, %v4917_v54  ;;  %v12686_v54 = vld [vmem:[#allocation51_spill] sm:$0xff] }
 0xf3d   :  { %v4871_v24 = vpop.trf.xlu0  ;;  %5031 = vmatprep.mubr.bf16.mxu0 %v12683_v29  ;;  %v4901_v61 = vpop.trf.xlu1 }
 0xf41   :  { %v4872_v17 = vpop.trf.xlu0  ;;  %v4902_v9 = vpop.trf.xlu1 }
 0xf42   :  { %v4918_v10 = vpack.c.bf16 %v4872_v17, %v4871_v24  ;;  %v4925_v39 = vpack.c.bf16 %v4902_v9, %v4901_v61 }
 0xf44   :  { %7445 = vmatmul.mubr.msk.bf16.gmra.mrb[228].mxu0 %vm685_vm2, %v4918_v10 }
 0xf45   :  { %v4873_v50 = vpop.trf.xlu0  ;;  %5041 = vmatprep.mubr.bf16.mxu0 %v12683_v29  ;;  %v4903_v52 = vpop.trf.xlu1 }
 0xf49   :  { %v4874_v57 = vpop.trf.xlu0  ;;  %v4904_v30 = vpop.trf.xlu1 }
 0xf4a   :  { %v4919_v19 = vpack.c.bf16 %v4874_v57, %v4873_v50  ;;  %v4926_v31 = vpack.c.bf16 %v4904_v30, %v4903_v52 }
 0xf4c   :  { %7446 = vmatmul.mubr.msk.bf16.gmra.mrb[232].mxu0 %vm685_vm2, %v4919_v19 }
 0xf4d   :  { %v4875_v51 = vpop.trf.xlu0  ;;  %5051 = vmatprep.mubr.bf16.mxu0 %v12683_v29  ;;  %v4905_v35 = vpop.trf.xlu1 }
 0xf51   :  { %v4876_v32 = vpop.trf.xlu0  ;;  %v4906_v7 = vpop.trf.xlu1 }
 0xf52   :  { %v4920_v15 = vpack.c.bf16 %v4876_v32, %v4875_v51  ;;  %v4927_v41 = vpack.c.bf16 %v4906_v7, %v4905_v35 }
 0xf54   :  { %7447 = vmatmul.mubr.msk.bf16.gmra.mrb[236].mxu0 %vm685_vm2, %v4920_v15 }
 0xf55   :  { %v4877_v53 = vpop.trf.xlu0  ;;  %5061 = vmatprep.mubr.bf16.mxu0 %v12683_v29  ;;  %v4907_v25 = vpop.trf.xlu1 }
 0xf59   :  { %v4878_v38 = vpop.trf.xlu0  ;;  %v4908_v1 = vpop.trf.xlu1 }
 0xf5a   :  { %v4921_v33 = vpack.c.bf16 %v4878_v38, %v4877_v53  ;;  %v4928_v49 = vpack.c.bf16 %v4908_v1, %v4907_v25 }
 0xf5c   :  { %7448 = vmatmul.mubr.msk.bf16.gmra.mrb[240].mxu0 %vm685_vm2, %v4921_v33 }
 0xf5d   :  { %v4879_v3 = vpop.trf.xlu0  ;;  %5071 = vmatprep.mubr.bf16.mxu0 %v12683_v29  ;;  %v4909_v18 = vpop.trf.xlu1 }
 0xf61   :  { %v4880_v62 = vpop.trf.xlu0  ;;  %v4910_v44 = vpop.trf.xlu1 }
 0xf62   :  { %v4922_v34 = vpack.c.bf16 %v4880_v62, %v4879_v3  ;;  %v4929_v27 = vpack.c.bf16 %v4910_v44, %v4909_v18 }
 0xf64   :  { %7449 = vmatmul.mubr.msk.bf16.gmra.mrb[244].mxu0 %vm685_vm2, %v4922_v34 }
 0xf65   :  { %v4881_v58 = vpop.trf.xlu0  ;;  %5081 = vmatprep.mubr.bf16.mxu0 %v12683_v29  ;;  %v4911_v40 = vpop.trf.xlu1 }
 0xf69   :  { %v4882_v46 = vpop.trf.xlu0  ;;  %v4912_v6 = vpop.trf.xlu1 }
 0xf6a   :  { %v4923_v26 = vpack.c.bf16 %v4882_v46, %v4881_v58  ;;  %v4930_v23 = vpack.c.bf16 %v4912_v6, %v4911_v40 }
 0xf6c   :  { %7450 = vmatmul.mubr.msk.bf16.gmra.mrb[248].mxu0 %vm685_vm2, %v4923_v26 }
 0xf6d   :  { %v4883_v42 = vpop.trf.xlu0  ;;  %5091 = vmatprep.mubr.bf16.mxu0 %v12683_v29  ;;  %v4913_v45 = vpop.trf.xlu1 }
 0xf71   :  { %v4884_v56 = vpop.trf.xlu0  ;;  %v4914_v28 = vpop.trf.xlu1 }
 0xf72   :  { %v4924_v8 = vpack.c.bf16 %v4884_v56, %v4883_v42  ;;  %v4931_v37 = vpack.c.bf16 %v4914_v28, %v4913_v45 }
 0xf74   :  { %7451 = vmatmul.mubr.msk.bf16.gmra.mrb[252].mxu0 %vm685_vm2, %v4924_v8 }
 0xf75   :  { %5101 = vmatprep.mubr.bf16.mxu0 %v12683_v29  ;;  %v4915_v20 = vpop.trf.xlu1 }
 0xf79   :  { %v4916_v5 = vpop.trf.xlu1 }
 0xf7a   :  { %v4932_v11 = vpack.c.bf16 %v4916_v5, %v4915_v20 }
 0xf7c   :  { %7452 = vmatmul.mubr.msk.bf16.gmra.mrb[0].mxu0 %vm685_vm2, %v4925_v39 }
 0xf7d   :  { %5111 = vmatprep.mubr.bf16.mxu0 %v12683_v29 }
 0xf84   :  { %7453 = vmatmul.mubr.msk.bf16.gmra.mrb[4].mxu0 %vm685_vm2, %v4926_v31 }
 0xf85   :  { %5121 = vmatprep.mubr.bf16.mxu0 %v12683_v29 }
 0xf8c   :  { %7454 = vmatmul.mubr.msk.bf16.gmra.mrb[8].mxu0 %vm685_vm2, %v4927_v41 }
 0xf8d   :  { %5131 = vmatprep.mubr.bf16.mxu0 %v12683_v29 }
 0xf94   :  { %7455 = vmatmul.mubr.msk.bf16.gmra.mrb[12].mxu0 %vm685_vm2, %v4928_v49 }
 0xf95   :  { %5141 = vmatprep.mubr.bf16.mxu0 %v12683_v29 }
 0xf9c   :  { %7456 = vmatmul.mubr.msk.bf16.gmra.mrb[16].mxu0 %vm685_vm2, %v4929_v27 }
 0xf9d   :  { %5151 = vmatprep.mubr.bf16.mxu0 %v12683_v29 }
 0xfa4   :  { %7457 = vmatmul.mubr.msk.bf16.gmra.mrb[20].mxu0 %vm685_vm2, %v4930_v23 }
 0xfa5   :  { %5161 = vmatprep.mubr.bf16.mxu0 %v12683_v29 }
 0xfac   :  { %7458 = vmatmul.mubr.msk.bf16.gmra.mrb[24].mxu0 %vm685_vm2, %v4931_v37 }
 0xfad   :  { %5171 = vmatprep.mubr.bf16.mxu0 %v12683_v29 }
 0xfb4   :  { %7459 = vmatmul.mubr.msk.bf16.gmra.mrb[28].mxu0 %vm685_vm2, %v4932_v11 }
 0xfb5   :  { %6244 = vmatprep.mubr.bf16.mxu0 %v6211_v43 }
0x1006   :  { %v4830_v63 = vpop.f32.mrb[220].mxu0 }
0x1007   :  { %v4832_v4 = vpop.f32.mrb[221].mxu0 }
0x1008   :  { %v4834_v21 = vpop.f32.mrb[222].mxu0 }
0x1009   :  { %8361 = vrcp.f32 %v4834_v21  ;;  %v4836_v2 = vpop.f32.mrb[223].mxu0 }
0x100a   :  { %8363 = vrcp.f32 %v4836_v2 }
0x100f   :  { %v11055_v60 = vpop.f32.mrb[224].mxu0 }
0x1010   :  { %v11057_v47 = vpop.f32.mrb[225].mxu0 }
0x1011   :  { %v5182_v48 = vmax.f32 %v11055_v60, %v11057_v47  ;;  %v11061_v14 = vpop.f32.mrb[226].mxu0 }
0x1012   :  { %v11063_v59 = vpop.f32.mrb[227].mxu0 }
0x1013   :  { %v8362_v36 = vpop.eup %8361  ;;  %v5185_v13 = vmax.f32 %v11061_v14, %v11063_v59  ;;  %5183 = vmax.xlane.f32.xlu0 %v5182_v48 }
0x1014   :  { %v8364_v55 = vpop.eup %8363  ;;  %v4844_v24 = vrot.slane %v8362_v36, %v12686_v54 }
0x1015   :  { %5186 = vmax.xlane.f32.xlu1 %v5185_v13  ;;  %v4848_v17 = vrot.slane %v8364_v55, %v12686_v54 }
0x1016   :  { %v11069_v10 = vmul.f32 %v4844_v24, %v4830_v63 }
0x1017   :  { %v11071_v50 = vpop.f32.mrb[228].mxu0  ;;  %v11073_v57 = vmul.f32 %v4848_v17, %v4832_v4 }
0x1018   :  { %12687 = vst [vmem:[#allocation9_spill] sm:$0xff] %v11069_v10  ;;  %v11075_v19 = vpop.f32.mrb[229].mxu0 }
0x1019   :  { %12688 = vst [vmem:[#allocation18_spill] sm:$0xff] %v11073_v57  ;;  %v5188_v15 = vmax.f32 %v11071_v50, %v11075_v19  ;;  %v11081_v53 = vpop.f32.mrb[230].mxu0 }
0x101a   :  { %v11085_v33 = vpop.f32.mrb[231].mxu0 }
0x101b   :  { %v5191_v9 = vmax.f32 %v11081_v53, %v11085_v33  ;;  %5189 = vmax.xlane.f32.xlu0 %v5188_v15 }
0x101d   :  { %5192 = vmax.xlane.f32.xlu1 %v5191_v9 }
0x101f   :  { %v11089_v3 = vpop.f32.mrb[232].mxu0 }
0x1020   :  { %v11091_v62 = vpop.f32.mrb[233].mxu0 }
0x1021   :  { %v5194_v52 = vmax.f32 %v11089_v3, %v11091_v62  ;;  %v11095_v34 = vpop.f32.mrb[234].mxu0 }
0x1022   :  { %v11097_v58 = vpop.f32.mrb[235].mxu0 }
0x1023   :  { %v5197_v30 = vmax.f32 %v11095_v34, %v11097_v58  ;;  %5195 = vmax.xlane.f32.xlu0 %v5194_v52 }
0x1025   :  { %5198 = vmax.xlane.f32.xlu1 %v5197_v30 }
0x1027   :  { %v11101_v46 = vpop.f32.mrb[236].mxu0 }
0x1028   :  { %v11103_v26 = vpop.f32.mrb[237].mxu0 }
0x1029   :  { %v5200_v42 = vmax.f32 %v11101_v46, %v11103_v26  ;;  %v11107_v35 = vpop.f32.mrb[238].mxu0 }
0x102a   :  { %v11109_v56 = vpop.f32.mrb[239].mxu0 }
0x102b   :  { %v5203_v8 = vmax.f32 %v11107_v35, %v11109_v56  ;;  %5201 = vmax.xlane.f32.xlu0 %v5200_v42 }
0x102d   :  { %5204 = vmax.xlane.f32.xlu1 %v5203_v8 }
0x102f   :  { %v11113_v7 = vpop.f32.mrb[240].mxu0 }
0x1030   :  { %v11115_v25 = vpop.f32.mrb[241].mxu0 }
0x1031   :  { %v5206_v39 = vmax.f32 %v11113_v7, %v11115_v25  ;;  %v11119_v1 = vpop.f32.mrb[242].mxu0 }
0x1032   :  { %v11121_v31 = vpop.f32.mrb[243].mxu0 }
0x1033   :  { %v5209_v18 = vmax.f32 %v11119_v1, %v11121_v31  ;;  %5207 = vmax.xlane.f32.xlu0 %v5206_v39 }
0x1035   :  { %5210 = vmax.xlane.f32.xlu1 %v5209_v18 }
0x1037   :  { %v11125_v41 = vpop.f32.mrb[244].mxu0 }
0x1038   :  { %v11127_v44 = vpop.f32.mrb[245].mxu0 }
0x1039   :  { %v5212_v40 = vmax.f32 %v11125_v41, %v11127_v44  ;;  %v11131_v49 = vpop.f32.mrb[246].mxu0 }
0x103a   :  { %v11133_v6 = vpop.f32.mrb[247].mxu0 }
0x103b   :  { %v5215_v27 = vmax.f32 %v11131_v49, %v11133_v6  ;;  %5213 = vmax.xlane.f32.xlu0 %v5212_v40 }
0x103d   :  { %5216 = vmax.xlane.f32.xlu1 %v5215_v27 }
0x103f   :  { %v11137_v45 = vpop.f32.mrb[248].mxu0 }
0x1040   :  { %v11139_v23 = vpop.f32.mrb[249].mxu0 }
0x1041   :  { %v5218_v28 = vmax.f32 %v11137_v45, %v11139_v23  ;;  %v11143_v20 = vpop.f32.mrb[250].mxu0 }
0x1042   :  { %v11145_v37 = vpop.f32.mrb[251].mxu0 }
0x1043   :  { %v5221_v5 = vmax.f32 %v11143_v20, %v11145_v37  ;;  %5219 = vmax.xlane.f32.xlu0 %v5218_v28 }
0x1045   :  { %5222 = vmax.xlane.f32.xlu1 %v5221_v5 }
0x1047   :  { %v11149_v22 = vpop.f32.mrb[252].mxu0 }
0x1048   :  { %v11151_v0 = vpop.f32.mrb[253].mxu0 }
0x1049   :  { %v5224_v11 = vmax.f32 %v11149_v22, %v11151_v0  ;;  %v11155_v43 = vpop.f32.mrb[254].mxu0 }
0x104a   :  { %v11157_v63 = vpop.f32.mrb[255].mxu0 }
0x104b   :  { %v5227_v4 = vmax.f32 %v11155_v43, %v11157_v63  ;;  %5225 = vmax.xlane.f32.xlu0 %v5224_v11 }
0x104d   :  { %5228 = vmax.xlane.f32.xlu1 %v5227_v4 }
0x104f   :  { %v11161_v21 = vpop.f32.mrb[0].mxu0 }
0x1050   :  { %v11163_v2 = vpop.f32.mrb[1].mxu0 }
0x1051   :  { %v5230_v48 = vmax.f32 %v11161_v21, %v11163_v2  ;;  %v11167_v36 = vpop.f32.mrb[2].mxu0 }
0x1052   :  { %v11169_v13 = vpop.f32.mrb[3].mxu0 }
0x1053   :  { %v5233_v55 = vmax.f32 %v11167_v36, %v11169_v13  ;;  %5231 = vmax.xlane.f32.xlu0 %v5230_v48 }
0x1055   :  { %5234 = vmax.xlane.f32.xlu1 %v5233_v55 }
0x1057   :  { %v11173_v24 = vpop.f32.mrb[4].mxu0 }
0x1058   :  { %v11175_v17 = vpop.f32.mrb[5].mxu0 }
0x1059   :  { %v5236_v15 = vmax.f32 %v11173_v24, %v11175_v17  ;;  %v11179_v9 = vpop.f32.mrb[6].mxu0 }
0x105a   :  { %v11181_v52 = vpop.f32.mrb[7].mxu0 }
0x105b   :  { %v5239_v30 = vmax.f32 %v11179_v9, %v11181_v52  ;;  %5237 = vmax.xlane.f32.xlu0 %v5236_v15 }
0x105d   :  { %5240 = vmax.xlane.f32.xlu1 %v5239_v30 }
0x105f   :  { %v11185_v42 = vpop.f32.mrb[8].mxu0 }
0x1060   :  { %v11187_v8 = vpop.f32.mrb[9].mxu0 }
0x1061   :  { %v5242_v39 = vmax.f32 %v11185_v42, %v11187_v8  ;;  %v11191_v18 = vpop.f32.mrb[10].mxu0 }
0x1062   :  { %v11193_v40 = vpop.f32.mrb[11].mxu0 }
0x1063   :  { %v5245_v27 = vmax.f32 %v11191_v18, %v11193_v40  ;;  %5243 = vmax.xlane.f32.xlu0 %v5242_v39 }
0x1065   :  { %5246 = vmax.xlane.f32.xlu1 %v5245_v27 }
0x1067   :  { %v11197_v28 = vpop.f32.mrb[12].mxu0 }
0x1068   :  { %v11199_v5 = vpop.f32.mrb[13].mxu0 }
0x1069   :  { %v5248_v11 = vmax.f32 %v11197_v28, %v11199_v5  ;;  %v11203_v4 = vpop.f32.mrb[14].mxu0 }
0x106a   :  { %v11205_v48 = vpop.f32.mrb[15].mxu0 }
0x106b   :  { %v5251_v55 = vmax.f32 %v11203_v4, %v11205_v48  ;;  %5249 = vmax.xlane.f32.xlu0 %v5248_v11 }
0x106d   :  { %5252 = vmax.xlane.f32.xlu1 %v5251_v55 }
0x106f   :  { %v11209_v15 = vpop.f32.mrb[16].mxu0 }
0x1070   :  { %v11211_v30 = vpop.f32.mrb[17].mxu0 }
0x1071   :  { %v5254_v39 = vmax.f32 %v11209_v15, %v11211_v30  ;;  %v11215_v27 = vpop.f32.mrb[18].mxu0 }
0x1072   :  { %12691 = vst [vmem:[#allocation16_spill] sm:$0xff] %v11215_v27  ;;  %v11217_v32 = vpop.f32.mrb[19].mxu0 }
0x1073   :  { %12692 = vst [vmem:[#allocation17_spill] sm:$0xff] %v11217_v32  ;;  %v5257_v38 = vmax.f32 %v11215_v27, %v11217_v32  ;;  %5255 = vmax.xlane.f32.xlu0 %v5254_v39 }
0x1075   :  { %5258 = vmax.xlane.f32.xlu1 %v5257_v38 }
0x1077   :  { %v11221_v51 = vpop.f32.mrb[20].mxu0 }
0x1078   :  { %12693 = vst [vmem:[#allocation20_spill] sm:$0xff] %v11221_v51  ;;  %v11223_v11 = vpop.f32.mrb[21].mxu0 }
0x1079   :  { %12694 = vst [vmem:[#allocation22_spill] sm:$0xff] %v11223_v11  ;;  %v5260_v55 = vmax.f32 %v11221_v51, %v11223_v11  ;;  %v11227_v10 = vpop.f32.mrb[22].mxu0 }
0x107a   :  { %12695 = vst [vmem:[#allocation27_spill] sm:$0xff] %v11227_v10  ;;  %v11229_v61 = vpop.f32.mrb[23].mxu0 }
0x107b   :  { %12696 = vst [vmem:[#allocation29_spill] sm:$0xff] %v11229_v61  ;;  %v5263_v57 = vmax.f32 %v11227_v10, %v11229_v61  ;;  %5261 = vmax.xlane.f32.xlu0 %v5260_v55 }
0x107d   :  { %5264 = vmax.xlane.f32.xlu1 %v5263_v57 }
0x107f   :  { %v11233_v16 = vpop.f32.mrb[24].mxu0 }
0x1080   :  { %12697 = vst [vmem:[#allocation66_spill] sm:$0xff] %v11233_v16  ;;  %v11235_v39 = vpop.f32.mrb[25].mxu0 }
0x1081   :  { %12698 = vst [vmem:[#allocation40_spill] sm:$0xff] %v11235_v39  ;;  %v5266_v38 = vmax.f32 %v11233_v16, %v11235_v39  ;;  %v11239_v54 = vpop.f32.mrb[26].mxu0 }
0x1082   :  { %12699 = vst [vmem:[#allocation34_spill] sm:$0xff] %v11239_v54  ;;  %v11241_v29 = vpop.f32.mrb[27].mxu0 }
0x1083   :  { %12700 = vst [vmem:[#allocation44_spill] sm:$0xff] %v11241_v29  ;;  %v5269_v12 = vmax.f32 %v11239_v54, %v11241_v29  ;;  %5267 = vmax.xlane.f32.xlu0 %v5266_v38 }
0x1085   :  { %5270 = vmax.xlane.f32.xlu1 %v5269_v12 }
0x1087   :  { %v11245_v11 = vpop.f32.mrb[28].mxu0 }
0x1088   :  { %12701 = vst [vmem:[#allocation56_spill] sm:$0xff] %v11245_v11  ;;  %v11247_v55 = vpop.f32.mrb[29].mxu0 }
0x1089   :  { %12702 = vst [vmem:[#allocation55_spill] sm:$0xff] %v11247_v55  ;;  %v5272_v57 = vmax.f32 %v11245_v11, %v11247_v55  ;;  %v11251_v61 = vpop.f32.mrb[30].mxu0 }
0x108a   :  { %v11253_v10 = vpop.f32.mrb[31].mxu0 }
0x108b   :  { %12703 = vst [vmem:[#allocation43_spill] sm:$0xff] %v11253_v10  ;;  %v5275_v39 = vmax.f32 %v11251_v61, %v11253_v10  ;;  %5273 = vmax.xlane.f32.xlu0 %v5272_v57 }
0x108d   :  { %5276 = vmax.xlane.f32.xlu1 %v5275_v39 }
0x10a0   :  { %v5184_v16 = vpop.xlane.xlu0 %5183 }
0x10a1   :  { %v5278_v38 = vsub.f32 %v11055_v60, %v5184_v16  ;;  %v5279_v12 = vsub.f32 %v11057_v47, %v5184_v16 }
0x10a2   :  { %v5187_v29 = vpop.xlane.xlu1 %5186 }
0x10a3   :  { %v5342_v54 = vmul.f32 1.442695, %v5278_v38  ;;  %v5280_v51 = vsub.f32 %v11061_v14, %v5187_v29  ;;  %v5281_v55 = vsub.f32 %v11063_v59, %v5187_v29  ;;  %v5344_v11 = vmul.f32 1.442695, %v5279_v12 }
0x10a5   :  { %v5346_v32 = vmul.f32 1.442695, %v5280_v51  ;;  %v5348_v27 = vmul.f32 1.442695, %v5281_v55  ;;  %8365 = vpow2.f32 %v5342_v54 }
0x10a7   :  { %8367 = vpow2.f32 %v5346_v32 }
0x10a8   :  { %8369 = vpow2.f32 %v5348_v27  ;;  %v5190_v10 = vpop.xlane.xlu0 %5189 }
0x10a9   :  { %8371 = vpow2.f32 %v5344_v11  ;;  %v5282_v39 = vsub.f32 %v11071_v50, %v5190_v10  ;;  %v5283_v60 = vsub.f32 %v11075_v19, %v5190_v10 }
0x10aa   :  { %v5193_v57 = vpop.xlane.xlu1 %5192 }
0x10ab   :  { %v5350_v16 = vmul.f32 1.442695, %v5282_v39  ;;  %v5284_v47 = vsub.f32 %v11081_v53, %v5193_v57  ;;  %v5285_v14 = vsub.f32 %v11085_v33, %v5193_v57  ;;  %v5352_v38 = vmul.f32 1.442695, %v5283_v60 }
0x10ad   :  { %v5354_v29 = vmul.f32 1.442695, %v5284_v47  ;;  %v5356_v59 = vmul.f32 1.442695, %v5285_v14  ;;  %8373 = vpow2.f32 %v5350_v16  ;;  %v12704_v47 = vld [vmem:[#allocation39_spill] sm:$0xff] }
0x10ae   :  { %v601_v14 = vmul.f32 0.35355338, %v12704_v47 }
0x10af   :  { %8375 = vpow2.f32 %v5354_v29  ;;  %v8366_v54 = vpop.eup %8365 }
0x10b0   :  { %8377 = vpow2.f32 %v5356_v59  ;;  %v5196_v51 = vpop.xlane.xlu0 %5195 }
0x10b1   :  { %v8368_v32 = vpop.eup %8367  ;;  %8379 = vpow2.f32 %v5352_v38  ;;  %v5286_v50 = vsub.f32 %v11089_v3, %v5196_v51  ;;  %v5287_v10 = vsub.f32 %v11091_v62, %v5196_v51 }
0x10b2   :  { %v8370_v19 = vpop.eup %8369  ;;  %v5199_v27 = vpop.xlane.xlu1 %5198  ;;  %v5470_v11 = vpack.c.bf16 %v8368_v32, %v8366_v54 }
0x10b3   :  { %v8372_v53 = vpop.eup %8371  ;;  %v5358_v55 = vmul.f32 1.442695, %v5286_v50  ;;  %v5288_v33 = vsub.f32 %v11095_v34, %v5199_v27  ;;  %v5289_v12 = vsub.f32 %v11097_v58, %v5199_v27  ;;  %v5360_v60 = vmul.f32 1.442695, %v5287_v10 }
0x10b4   :  { %v5471_v39 = vpack.c.bf16 %v8370_v19, %v8372_v53 }
0x10b5   :  { %v5362_v57 = vmul.f32 1.442695, %v5288_v33  ;;  %v5364_v16 = vmul.f32 1.442695, %v5289_v12  ;;  %8381 = vpow2.f32 %v5358_v55  ;;  %v12705_v55 = vld [vmem:[#allocation30_spill] sm:$0xff] }
0x10b6   :  { %5504 = vmatprep.subr.bf16.mxu1 %v5471_v39  ;;  %v602_v33 = vmul.f32 0.35355338, %v12705_v55 }
0x10b7   :  { %8383 = vpow2.f32 %v5362_v57  ;;  %5505 = vmatpush1.bf16.xpose.msra.mxu1 %v5470_v11  ;;  %v8374_v3 = vpop.eup %8373 }
0x10b8   :  { %8385 = vpow2.f32 %v5364_v16  ;;  %5561 = vxpose.xlu0.b32.start.end [1/1] (short) %v601_v14, 128  ;;  %v5202_v62 = vpop.xlane.xlu0 %5201 }
0x10b9   :  { %v8376_v38 = vpop.eup %8375  ;;  %8387 = vpow2.f32 %v5360_v60  ;;  %v5290_v34 = vsub.f32 %v11101_v46, %v5202_v62  ;;  %v5291_v58 = vsub.f32 %v11103_v26, %v5202_v62 }
0x10ba   :  { %v8378_v29 = vpop.eup %8377  ;;  %v5205_v59 = vpop.xlane.xlu1 %5204  ;;  %v5472_v54 = vpack.c.bf16 %v8376_v38, %v8374_v3 }
0x10bb   :  { %v8380_v51 = vpop.eup %8379  ;;  %v5366_v32 = vmul.f32 1.442695, %v5290_v34  ;;  %v5292_v50 = vsub.f32 %v11107_v35, %v5205_v59  ;;  %v5293_v10 = vsub.f32 %v11109_v56, %v5205_v59  ;;  %v5368_v27 = vmul.f32 1.442695, %v5291_v58 }
0x10bc   :  { %v5473_v19 = vpack.c.bf16 %v8378_v29, %v8380_v51 }
0x10bd   :  { %v5370_v11 = vmul.f32 1.442695, %v5292_v50  ;;  %v5372_v53 = vmul.f32 1.442695, %v5293_v10  ;;  %8389 = vpow2.f32 %v5366_v32 }
0x10be   :  { %5506 = vmatprep.subr.bf16.mxu1 %v5473_v19 }
0x10bf   :  { %8391 = vpow2.f32 %v5370_v11  ;;  %5507 = vmatpush1.bf16.xpose.msra.mxu1 %v5472_v54  ;;  %v8382_v46 = vpop.eup %8381 }
0x10c0   :  { %8393 = vpow2.f32 %v5372_v53  ;;  %5593 = vxpose.xlu1.b32.start.end [1/1] (short) %v602_v33, 128  ;;  %v5208_v26 = vpop.xlane.xlu0 %5207 }
0x10c1   :  { %v8384_v12 = vpop.eup %8383  ;;  %8395 = vpow2.f32 %v5368_v27  ;;  %v5294_v35 = vsub.f32 %v11113_v7, %v5208_v26  ;;  %v5295_v56 = vsub.f32 %v11115_v25, %v5208_v26 }
0x10c2   :  { %v8386_v39 = vpop.eup %8385  ;;  %v5211_v60 = vpop.xlane.xlu1 %5210  ;;  %v5474_v57 = vpack.c.bf16 %v8384_v12, %v8382_v46 }
0x10c3   :  { %v8388_v16 = vpop.eup %8387  ;;  %v5374_v47 = vmul.f32 1.442695, %v5294_v35  ;;  %v5296_v14 = vsub.f32 %v11119_v1, %v5211_v60  ;;  %v5297_v3 = vsub.f32 %v11121_v31, %v5211_v60  ;;  %v5376_v38 = vmul.f32 1.442695, %v5295_v56 }
0x10c4   :  { %v5475_v62 = vpack.c.bf16 %v8386_v39, %v8388_v16 }
0x10c5   :  { %v5378_v34 = vmul.f32 1.442695, %v5296_v14  ;;  %v5380_v58 = vmul.f32 1.442695, %v5297_v3  ;;  %8397 = vpow2.f32 %v5374_v47 }
0x10c6   :  { %5508 = vmatprep.subr.bf16.mxu1 %v5475_v62 }
0x10c7   :  { %8399 = vpow2.f32 %v5378_v34  ;;  %5509 = vmatpush1.bf16.xpose.msra.mxu1 %v5474_v57  ;;  %v8390_v7 = vpop.eup %8389 }
0x10c8   :  { %8401 = vpow2.f32 %v5380_v58  ;;  %v5214_v25 = vpop.xlane.xlu0 %5213 }
0x10c9   :  { %v8392_v29 = vpop.eup %8391  ;;  %8403 = vpow2.f32 %v5376_v38  ;;  %v5298_v59 = vsub.f32 %v11125_v41, %v5214_v25  ;;  %v5299_v54 = vsub.f32 %v11127_v44, %v5214_v25 }
0x10ca   :  { %v8394_v1 = vpop.eup %8393  ;;  %v5217_v51 = vpop.xlane.xlu1 %5216  ;;  %v5476_v31 = vpack.c.bf16 %v8392_v29, %v8390_v7 }
0x10cb   :  { %v8396_v32 = vpop.eup %8395  ;;  %v5382_v50 = vmul.f32 1.442695, %v5298_v59  ;;  %v5300_v10 = vsub.f32 %v11131_v49, %v5217_v51  ;;  %v5301_v19 = vsub.f32 %v11133_v6, %v5217_v51  ;;  %v5384_v11 = vmul.f32 1.442695, %v5299_v54 }
0x10cc   :  { %v5477_v27 = vpack.c.bf16 %v8394_v1, %v8396_v32 }
0x10cd   :  { %v5386_v53 = vmul.f32 1.442695, %v5300_v10  ;;  %v5388_v55 = vmul.f32 1.442695, %v5301_v19  ;;  %8405 = vpow2.f32 %v5382_v50 }
0x10ce   :  { %5510 = vmatprep.subr.bf16.mxu1 %v5477_v27 }
0x10cf   :  { %8407 = vpow2.f32 %v5386_v53  ;;  %5511 = vmatpush1.bf16.xpose.msra.mxu1 %v5476_v31  ;;  %v8398_v41 = vpop.eup %8397 }
0x10d0   :  { %8409 = vpow2.f32 %v5388_v55  ;;  %v5220_v44 = vpop.xlane.xlu0 %5219 }
0x10d1   :  { %v8400_v33 = vpop.eup %8399  ;;  %8411 = vpow2.f32 %v5384_v11  ;;  %v5302_v46 = vsub.f32 %v11137_v45, %v5220_v44  ;;  %v5303_v26 = vsub.f32 %v11139_v23, %v5220_v44 }
0x10d2   :  { %v8402_v49 = vpop.eup %8401  ;;  %v5223_v12 = vpop.xlane.xlu1 %5222  ;;  %v5478_v6 = vpack.c.bf16 %v8400_v33, %v8398_v41 }
0x10d3   :  { %v8404_v35 = vpop.eup %8403  ;;  %v5390_v56 = vmul.f32 1.442695, %v5302_v46  ;;  %v5304_v39 = vsub.f32 %v11143_v20, %v5223_v12  ;;  %v5305_v60 = vsub.f32 %v11145_v37, %v5223_v12  ;;  %v5392_v16 = vmul.f32 1.442695, %v5303_v26 }
0x10d4   :  { %v5479_v57 = vpack.c.bf16 %v8402_v49, %v8404_v35 }
0x10d5   :  { %v5394_v47 = vmul.f32 1.442695, %v5304_v39  ;;  %v5396_v14 = vmul.f32 1.442695, %v5305_v60  ;;  %8413 = vpow2.f32 %v5390_v56 }
0x10d6   :  { %5512 = vmatprep.subr.bf16.mxu1 %v5479_v57 }
0x10d7   :  { %8415 = vpow2.f32 %v5394_v47  ;;  %5513 = vmatpush1.bf16.xpose.msra.mxu1 %v5478_v6  ;;  %v8406_v45 = vpop.eup %8405 }
0x10d8   :  { %8417 = vpow2.f32 %v5396_v14  ;;  %v5226_v23 = vpop.xlane.xlu0 %5225 }
0x10d9   :  { %v8408_v3 = vpop.eup %8407  ;;  %8419 = vpow2.f32 %v5392_v16  ;;  %v5306_v62 = vsub.f32 %v11149_v22, %v5226_v23  ;;  %v5307_v38 = vsub.f32 %v11151_v0, %v5226_v23 }
0x10da   :  { %v8410_v20 = vpop.eup %8409  ;;  %v5229_v34 = vpop.xlane.xlu1 %5228  ;;  %v5480_v37 = vpack.c.bf16 %v8408_v3, %v8406_v45 }
0x10db   :  { %v8412_v58 = vpop.eup %8411  ;;  %v5398_v7 = vmul.f32 1.442695, %v5306_v62  ;;  %v5308_v25 = vsub.f32 %v11155_v43, %v5229_v34  ;;  %v5309_v29 = vsub.f32 %v11157_v63, %v5229_v34  ;;  %v5400_v54 = vmul.f32 1.442695, %v5307_v38 }
0x10dc   :  { %v5481_v59 = vpack.c.bf16 %v8410_v20, %v8412_v58 }
0x10dd   :  { %v5402_v1 = vmul.f32 1.442695, %v5308_v25  ;;  %v5404_v51 = vmul.f32 1.442695, %v5309_v29  ;;  %8421 = vpow2.f32 %v5398_v7 }
0x10de   :  { %5514 = vmatprep.subr.bf16.mxu1 %v5481_v59 }
0x10df   :  { %8423 = vpow2.f32 %v5402_v1  ;;  %5515 = vmatpush1.bf16.xpose.msra.mxu1 %v5480_v37  ;;  %v8414_v22 = vpop.eup %8413 }
0x10e0   :  { %8425 = vpow2.f32 %v5404_v51  ;;  %v5232_v0 = vpop.xlane.xlu0 %5231 }
0x10e1   :  { %v8416_v31 = vpop.eup %8415  ;;  %8427 = vpow2.f32 %v5400_v54  ;;  %v5310_v32 = vsub.f32 %v11161_v21, %v5232_v0  ;;  %v5311_v50 = vsub.f32 %v11163_v2, %v5232_v0 }
0x10e2   :  { %v8418_v43 = vpop.eup %8417  ;;  %v5235_v10 = vpop.xlane.xlu1 %5234  ;;  %v5482_v63 = vpack.c.bf16 %v8416_v31, %v8414_v22 }
0x10e3   :  { %v8420_v19 = vpop.eup %8419  ;;  %v5406_v27 = vmul.f32 1.442695, %v5310_v32  ;;  %v5312_v11 = vsub.f32 %v11167_v36, %v5235_v10  ;;  %v5313_v53 = vsub.f32 %v11169_v13, %v5235_v10  ;;  %v5408_v41 = vmul.f32 1.442695, %v5311_v50 }
0x10e4   :  { %v5483_v55 = vpack.c.bf16 %v8418_v43, %v8420_v19 }
0x10e5   :  { %v5410_v44 = vmul.f32 1.442695, %v5312_v11  ;;  %v5412_v33 = vmul.f32 1.442695, %v5313_v53  ;;  %8429 = vpow2.f32 %v5406_v27 }
0x10e6   :  { %5516 = vmatprep.subr.bf16.mxu1 %v5483_v55 }
0x10e7   :  { %8431 = vpow2.f32 %v5410_v44  ;;  %5517 = vmatpush1.bf16.xpose.msra.mxu1 %v5482_v63  ;;  %v8422_v21 = vpop.eup %8421 }
0x10e8   :  { %8433 = vpow2.f32 %v5412_v33  ;;  %v5238_v2 = vpop.xlane.xlu0 %5237  ;;  %v12707_v33 = vld [vmem:[#allocation17_spill] sm:$0xff] }
0x10e9   :  { %v8424_v46 = vpop.eup %8423  ;;  %8435 = vpow2.f32 %v5408_v41  ;;  %v5314_v26 = vsub.f32 %v11173_v24, %v5238_v2  ;;  %v5315_v49 = vsub.f32 %v11175_v17, %v5238_v2  ;;  %v12706_v41 = vld [vmem:[#allocation16_spill] sm:$0xff] }
0x10ea   :  { %v8426_v36 = vpop.eup %8425  ;;  %v5241_v12 = vpop.xlane.xlu1 %5240  ;;  %v5484_v13 = vpack.c.bf16 %v8424_v46, %v8422_v21 }
0x10eb   :  { %v8428_v6 = vpop.eup %8427  ;;  %v5414_v35 = vmul.f32 1.442695, %v5314_v26  ;;  %v5316_v56 = vsub.f32 %v11179_v9, %v5241_v12  ;;  %v5317_v39 = vsub.f32 %v11181_v52, %v5241_v12  ;;  %v5416_v57 = vmul.f32 1.442695, %v5315_v49  ;;  %v12708_v12 = vld [vmem:[#allocation20_spill] sm:$0xff] }
0x10ec   :  { %v5485_v60 = vpack.c.bf16 %v8426_v36, %v8428_v6  ;;  %v12709_v6 = vld [vmem:[#allocation22_spill] sm:$0xff] }
0x10ed   :  { %v5418_v16 = vmul.f32 1.442695, %v5316_v56  ;;  %v5420_v47 = vmul.f32 1.442695, %v5317_v39  ;;  %8437 = vpow2.f32 %v5414_v35 }
0x10ee   :  { %5518 = vmatprep.subr.bf16.mxu1 %v5485_v60 }
0x10ef   :  { %8439 = vpow2.f32 %v5418_v16  ;;  %5519 = vmatpush1.bf16.xpose.msra.mxu1 %v5484_v13  ;;  %v8430_v24 = vpop.eup %8429 }
0x10f0   :  { %8441 = vpow2.f32 %v5420_v47  ;;  %v5244_v17 = vpop.xlane.xlu0 %5243  ;;  %v12710_v47 = vld [vmem:[#allocation27_spill] sm:$0xff] }
0x10f1   :  { %v8432_v14 = vpop.eup %8431  ;;  %8443 = vpow2.f32 %v5416_v57  ;;  %v5318_v45 = vsub.f32 %v11185_v42, %v5244_v17  ;;  %v5319_v23 = vsub.f32 %v11187_v8, %v5244_v17  ;;  %v12711_v17 = vld [vmem:[#allocation29_spill] sm:$0xff] }
0x10f2   :  { %v8434_v9 = vpop.eup %8433  ;;  %v5247_v3 = vpop.xlane.xlu1 %5246  ;;  %v5486_v52 = vpack.c.bf16 %v8432_v14, %v8430_v24 }
0x10f3   :  { %v8436_v62 = vpop.eup %8435  ;;  %v5422_v38 = vmul.f32 1.442695, %v5318_v45  ;;  %v5320_v20 = vsub.f32 %v11191_v18, %v5247_v3  ;;  %v5321_v34 = vsub.f32 %v11193_v40, %v5247_v3  ;;  %v5424_v58 = vmul.f32 1.442695, %v5319_v23 }
0x10f4   :  { %v5487_v37 = vpack.c.bf16 %v8434_v9, %v8436_v62 }
0x10f5   :  { %v5426_v7 = vmul.f32 1.442695, %v5320_v20  ;;  %v5428_v25 = vmul.f32 1.442695, %v5321_v34  ;;  %8445 = vpow2.f32 %v5422_v38  ;;  %v12712_v20 = vld [vmem:[#allocation66_spill] sm:$0xff] }
0x10f6   :  { %5520 = vmatprep.subr.bf16.mxu1 %v5487_v37  ;;  %v12713_v37 = vld [vmem:[#allocation40_spill] sm:$0xff] }
0x10f7   :  { %8447 = vpow2.f32 %v5426_v7  ;;  %5521 = vmatpush1.bf16.xpose.msra.mxu1 %v5486_v52  ;;  %v8438_v42 = vpop.eup %8437 }
0x10f8   :  { %8449 = vpow2.f32 %v5428_v25  ;;  %v5250_v8 = vpop.xlane.xlu0 %5249 }
0x10f9   :  { %v8440_v29 = vpop.eup %8439  ;;  %8451 = vpow2.f32 %v5424_v58  ;;  %v5322_v59 = vsub.f32 %v11197_v28, %v5250_v8  ;;  %v5323_v54 = vsub.f32 %v11199_v5, %v5250_v8 }
0x10fa   :  { %v8442_v18 = vpop.eup %8441  ;;  %v5253_v1 = vpop.xlane.xlu1 %5252  ;;  %v5488_v40 = vpack.c.bf16 %v8440_v29, %v8438_v42 }
0x10fb   :  { %v8444_v51 = vpop.eup %8443  ;;  %v5430_v22 = vmul.f32 1.442695, %v5322_v59  ;;  %v5324_v0 = vsub.f32 %v11203_v4, %v5253_v1  ;;  %v5325_v31 = vsub.f32 %v11205_v48, %v5253_v1  ;;  %v5432_v50 = vmul.f32 1.442695, %v5323_v54  ;;  %v12714_v54 = vld [vmem:[#allocation34_spill] sm:$0xff]  ;;  %v12715_v1 = vld [vmem:[#allocation44_spill] sm:$0xff] }
0x10fc   :  { %v5489_v32 = vpack.c.bf16 %v8442_v18, %v8444_v51 }
0x10fd   :  { %v5434_v43 = vmul.f32 1.442695, %v5324_v0  ;;  %v5436_v10 = vmul.f32 1.442695, %v5325_v31  ;;  %8453 = vpow2.f32 %v5430_v22 }
0x10fe   :  { %5522 = vmatprep.subr.bf16.mxu1 %v5489_v32 }
0x10ff   :  { %8455 = vpow2.f32 %v5434_v43  ;;  %5523 = vmatpush1.bf16.xpose.msra.mxu1 %v5488_v40  ;;  %v8446_v28 = vpop.eup %8445  ;;  %v12716_v43 = vld [vmem:[#allocation56_spill] sm:$0xff] }
0x1100   :  { %8457 = vpow2.f32 %v5436_v10  ;;  %v5256_v5 = vpop.xlane.xlu0 %5255 }
0x1101   :  { %v8448_v63 = vpop.eup %8447  ;;  %8459 = vpow2.f32 %v5432_v50  ;;  %v5326_v19 = vsub.f32 %v11209_v15, %v5256_v5  ;;  %v5327_v27 = vsub.f32 %v11211_v30, %v5256_v5 }
0x1102   :  { %v8450_v4 = vpop.eup %8449  ;;  %v5259_v11 = vpop.xlane.xlu1 %5258  ;;  %v5490_v48 = vpack.c.bf16 %v8448_v63, %v8446_v28  ;;  %v12717_v28 = vld [vmem:[#allocation55_spill] sm:$0xff] }
0x1103   :  { %v8452_v53 = vpop.eup %8451  ;;  %v5438_v55 = vmul.f32 1.442695, %v5326_v19  ;;  %v5328_v44 = vsub.f32 %v12706_v41, %v5259_v11  ;;  %v5329_v21 = vsub.f32 %v12707_v33, %v5259_v11  ;;  %v5440_v46 = vmul.f32 1.442695, %v5327_v27 }
0x1104   :  { %v5491_v2 = vpack.c.bf16 %v8450_v4, %v8452_v53 }
0x1105   :  { %v5442_v26 = vmul.f32 1.442695, %v5328_v44  ;;  %v5444_v49 = vmul.f32 1.442695, %v5329_v21  ;;  %8461 = vpow2.f32 %v5438_v55  ;;  %v12718_v55 = vld [vmem:[#allocation43_spill] sm:$0xff] }
0x1106   :  { %5524 = vmatprep.subr.bf16.mxu1 %v5491_v2 }
0x1107   :  { %8463 = vpow2.f32 %v5442_v26  ;;  %5525 = vmatpush1.bf16.xpose.msra.mxu1 %v5490_v48  ;;  %v8454_v15 = vpop.eup %8453 }
0x1108   :  { %8465 = vpow2.f32 %v5444_v49  ;;  %v5262_v30 = vpop.xlane.xlu0 %5261 }
0x1109   :  { %v8456_v36 = vpop.eup %8455  ;;  %8467 = vpow2.f32 %v5440_v46  ;;  %v5330_v13 = vsub.f32 %v12708_v12, %v5262_v30  ;;  %v5331_v35 = vsub.f32 %v12709_v6, %v5262_v30 }
0x110a   :  { %v8458_v56 = vpop.eup %8457  ;;  %v5265_v39 = vpop.xlane.xlu1 %5264  ;;  %v5492_v60 = vpack.c.bf16 %v8456_v36, %v8454_v15 }
0x110b   :  { %v8460_v57 = vpop.eup %8459  ;;  %v5446_v16 = vmul.f32 1.442695, %v5330_v13  ;;  %v5332_v24 = vsub.f32 %v12710_v47, %v5265_v39  ;;  %v5333_v14 = vsub.f32 %v12711_v17, %v5265_v39  ;;  %v5448_v23 = vmul.f32 1.442695, %v5331_v35  ;;  %v12719_v35 = vld [vmem:[#allocation37_spill] sm:$0xff]  ;;  %v12723_v17 = vld [vmem:[#allocation12_spill] sm:$0xff] }
0x110c   :  { %v5493_v45 = vpack.c.bf16 %v8458_v56, %v8460_v57  ;;  %v12720_v56 = vld [vmem:[#allocation60_spill] sm:$0xff] }
0x110d   :  { %v5450_v9 = vmul.f32 1.442695, %v5332_v24  ;;  %v5452_v3 = vmul.f32 1.442695, %v5333_v14  ;;  %8469 = vpow2.f32 %v5446_v16  ;;  %v565_v39 = vadd.f32 %v12720_v56, %v12719_v35  ;;  %v12721_v16 = vld [vmem:[#allocation59_spill] sm:$0xff]  ;;  %v12722_v24 = vld [vmem:[#allocation28_spill] sm:$0xff] }
0x110e   :  { %5526 = vmatprep.subr.bf16.mxu1 %v5493_v45  ;;  %v563_v47 = vadd.f32 %v12721_v16, %v12719_v35  ;;  %v579_v14 = vadd.f32 %v12723_v17, %v12722_v24 }
0x110f   :  { %8471 = vpow2.f32 %v5450_v9  ;;  %5527 = vmatpush1.bf16.xpose.msra.mxu1 %v5492_v60  ;;  %v8462_v52 = vpop.eup %8461  ;;  %v5642_v57 = vpack.c.bf16 %v565_v39, %v565_v39 }
0x1110   :  { %8473 = vpow2.f32 %v5452_v3  ;;  %v5268_v62 = vpop.xlane.xlu0 %5267  ;;  %v5641_v45 = vpack.c.bf16 %v563_v47, %v563_v47 }
0x1111   :  { %v8464_v38 = vpop.eup %8463  ;;  %8475 = vpow2.f32 %v5448_v23  ;;  %v5334_v34 = vsub.f32 %v12712_v20, %v5268_v62  ;;  %v5335_v58 = vsub.f32 %v12713_v37, %v5268_v62  ;;  %v12724_v23 = vmov 1.0  }
0x1112   :  { %v8466_v7 = vpop.eup %8465  ;;  %v5271_v25 = vpop.xlane.xlu1 %5270  ;;  %v5494_v42 = vpack.c.bf16 %v8464_v38, %v8462_v52  ;;  %v5502_v9 = vpack.c.bf16 %v12724_v23, %v579_v14  ;;  %v5692_v3 = vsel %vm734_vm1, %v5641_v45, 0  ;;  %v12725_v52 = vmov 0  }
0x1113   :  { %v8468_v8 = vpop.eup %8467  ;;  %v5454_v29 = vmul.f32 1.442695, %v5334_v34  ;;  %v5456_v59 = vmul.f32 1.442695, %v5335_v58  ;;  %v5336_v18 = vsub.f32 %v12714_v54, %v5271_v25  ;;  %v5337_v40 = vsub.f32 %v12715_v1, %v5271_v25 }
0x1114   :  { %v5495_v51 = vpack.c.bf16 %v8466_v7, %v8468_v8 }
0x1115   :  { %8477 = vpow2.f32 %v5454_v29  ;;  %v5458_v22 = vmul.f32 1.442695, %v5336_v18  ;;  %v5460_v0 = vmul.f32 1.442695, %v5337_v40 }
0x1116   :  { %8479 = vpow2.f32 %v5456_v59  ;;  %5528 = vmatprep.subr.bf16.mxu1 %v5495_v51 }
0x1117   :  { %8481 = vpow2.f32 %v5458_v22  ;;  %5529 = vmatpush1.bf16.xpose.msra.mxu1 %v5494_v42  ;;  %v8470_v31 = vpop.eup %8469 }
0x1118   :  { %8483 = vpow2.f32 %v5460_v0  ;;  %v5274_v32 = vpop.xlane.xlu0 %5273 }
0x1119   :  { %v8472_v50 = vpop.eup %8471  ;;  %v5338_v10 = vsub.f32 %v12716_v43, %v5274_v32  ;;  %v5339_v5 = vsub.f32 %v12717_v28, %v5274_v32 }
0x111a   :  { %v8474_v63 = vpop.eup %8473  ;;  %v5277_v19 = vpop.xlane.xlu1 %5276  ;;  %v5496_v27 = vpack.c.bf16 %v8472_v50, %v8470_v31 }
0x111b   :  { %v8476_v4 = vpop.eup %8475  ;;  %v5462_v11 = vmul.f32 1.442695, %v5338_v10  ;;  %v5464_v48 = vmul.f32 1.442695, %v5339_v5  ;;  %v5340_v53 = vsub.f32 %v11251_v61, %v5277_v19  ;;  %v5341_v41 = vsub.f32 %v12718_v55, %v5277_v19 }
0x111c   :  { %v5497_v44 = vpack.c.bf16 %v8474_v63, %v8476_v4 }
0x111d   :  { %8485 = vpow2.f32 %v5462_v11  ;;  %v5466_v33 = vmul.f32 1.442695, %v5340_v53  ;;  %v5468_v21 = vmul.f32 1.442695, %v5341_v41 }
0x111e   :  { %8487 = vpow2.f32 %v5464_v48  ;;  %5530 = vmatprep.subr.bf16.mxu1 %v5497_v44 }
0x111f   :  { %v8478_v2 = vpop.eup %8477  ;;  %8489 = vpow2.f32 %v5466_v33  ;;  %5531 = vmatpush1.bf16.xpose.msra.mxu1 %v5496_v27 }
0x1120   :  { %v8480_v46 = vpop.eup %8479  ;;  %8491 = vpow2.f32 %v5468_v21 }
0x1121   :  { %v8482_v26 = vpop.eup %8481 }
0x1122   :  { %v8484_v49 = vpop.eup %8483  ;;  %v5498_v15 = vpack.c.bf16 %v8482_v26, %v8478_v2 }
0x1123   :  { %v5499_v30 = vpack.c.bf16 %v8484_v49, %v8480_v46 }
0x1125   :  { %5532 = vmatprep.subr.bf16.mxu1 %v5499_v30 }
0x1127   :  { %v8486_v36 = vpop.eup %8485  ;;  %5533 = vmatpush1.bf16.xpose.msra.mxu1 %v5498_v15 }
0x1128   :  { %v8488_v61 = vpop.eup %8487 }
0x1129   :  { %v8490_v12 = vpop.eup %8489 }
0x112a   :  { %v8492_v13 = vpop.eup %8491  ;;  %v5500_v6 = vpack.c.bf16 %v8490_v12, %v8486_v36 }
0x112b   :  { %v5501_v60 = vpack.c.bf16 %v8492_v13, %v8488_v61 }
0x112d   :  { %5534 = vmatprep.subr.bf16.mxu1 %v5501_v60 }
0x112f   :  { %5535 = vmatpush1.bf16.xpose.msra.mxu1 %v5500_v6 }
0x1130   :  { %7460 = vmatprep.subr.msk.bf16.mxu1 %vm734_vm1, %v5642_v57 }
0x1136   :  { %5537 = vmatmul.mubr.bf16.vlgmr.msra.gmra.mrb[232].mxu1 %v5502_v9  ;;  %v12726_v9 = vld [vmem:[#allocation51_spill] sm:$0xff] }
0x1137   :  { %5698 = vmatpush1.bf16.msra.mxu1 %v5692_v3  ;;  %5729 = vmatprep.mubr.bf16.mxu1 %v12725_v52 }
0x1138   :  { %v5577_v62 = vpop.trf.xlu0 }
0x113c   :  { %v5578_v38 = vpop.trf.xlu0 }
0x113d   :  { %v5625_v20 = vpack.c.bf16 %v5578_v38, %v5577_v62 }
0x113f   :  { %7461 = vmatmul.mubr.msk.bf16.vlgmr.msra.gmra.mrb[236].mxu1 %vm685_vm2, %v5625_v20 }
0x1140   :  { %v5579_v34 = vpop.trf.xlu0  ;;  %5739 = vmatprep.mubr.bf16.mxu1 %v12725_v52  ;;  %v5609_v18 = vpop.trf.xlu1 }
0x1144   :  { %v5580_v37 = vpop.trf.xlu0  ;;  %v5610_v51 = vpop.trf.xlu1 }
0x1145   :  { %v5626_v58 = vpack.c.bf16 %v5580_v37, %v5579_v34  ;;  %v5633_v48 = vpack.c.bf16 %v5610_v51, %v5609_v18 }
0x1147   :  { %7462 = vmatmul.mubr.msk.bf16.gmra.mrb[240].mxu1 %vm685_vm2, %v5626_v58 }
0x1148   :  { %v5581_v7 = vpop.trf.xlu0  ;;  %5749 = vmatprep.mubr.bf16.mxu1 %v12725_v52  ;;  %v5611_v31 = vpop.trf.xlu1 }
0x114c   :  { %v5582_v25 = vpop.trf.xlu0  ;;  %v5612_v43 = vpop.trf.xlu1 }
0x114d   :  { %v5627_v42 = vpack.c.bf16 %v5582_v25, %v5581_v7  ;;  %v5634_v55 = vpack.c.bf16 %v5612_v43, %v5611_v31 }
0x114f   :  { %7463 = vmatmul.mubr.msk.bf16.gmra.mrb[244].mxu1 %vm685_vm2, %v5627_v42 }
0x1150   :  { %v5583_v8 = vpop.trf.xlu0  ;;  %5759 = vmatprep.mubr.bf16.mxu1 %v12725_v52  ;;  %v5613_v63 = vpop.trf.xlu1 }
0x1154   :  { %v5584_v29 = vpop.trf.xlu0  ;;  %v5614_v4 = vpop.trf.xlu1 }
0x1155   :  { %v5628_v59 = vpack.c.bf16 %v5584_v29, %v5583_v8  ;;  %v5635_v44 = vpack.c.bf16 %v5614_v4, %v5613_v63 }
0x1157   :  { %7464 = vmatmul.mubr.msk.bf16.gmra.mrb[248].mxu1 %vm685_vm2, %v5628_v59 }
0x1158   :  { %v5585_v54 = vpop.trf.xlu0  ;;  %5769 = vmatprep.mubr.bf16.mxu1 %v12725_v52  ;;  %v5615_v11 = vpop.trf.xlu1 }
0x115c   :  { %v5586_v1 = vpop.trf.xlu0  ;;  %v5616_v53 = vpop.trf.xlu1 }
0x115d   :  { %v5629_v40 = vpack.c.bf16 %v5586_v1, %v5585_v54  ;;  %v5636_v2 = vpack.c.bf16 %v5616_v53, %v5615_v11 }
0x115f   :  { %7465 = vmatmul.mubr.msk.bf16.gmra.mrb[252].mxu1 %vm685_vm2, %v5629_v40 }
0x1160   :  { %v5587_v22 = vpop.trf.xlu0  ;;  %5779 = vmatprep.mubr.bf16.mxu1 %v12725_v52  ;;  %v5617_v41 = vpop.trf.xlu1 }
0x1164   :  { %v5588_v0 = vpop.trf.xlu0  ;;  %v5618_v33 = vpop.trf.xlu1 }
0x1165   :  { %v5630_v32 = vpack.c.bf16 %v5588_v0, %v5587_v22  ;;  %v5637_v26 = vpack.c.bf16 %v5618_v33, %v5617_v41 }
0x1167   :  { %7466 = vmatmul.mubr.msk.bf16.gmra.mrb[0].mxu1 %vm685_vm2, %v5630_v32 }
0x1168   :  { %v5589_v50 = vpop.trf.xlu0  ;;  %5789 = vmatprep.mubr.bf16.mxu1 %v12725_v52  ;;  %v5619_v21 = vpop.trf.xlu1 }
0x116c   :  { %v5590_v10 = vpop.trf.xlu0  ;;  %v5620_v46 = vpop.trf.xlu1 }
0x116d   :  { %v5631_v28 = vpack.c.bf16 %v5590_v10, %v5589_v50  ;;  %v5638_v15 = vpack.c.bf16 %v5620_v46, %v5619_v21 }
0x116f   :  { %7467 = vmatmul.mubr.msk.bf16.gmra.mrb[4].mxu1 %vm685_vm2, %v5631_v28 }
0x1170   :  { %v5591_v5 = vpop.trf.xlu0  ;;  %5799 = vmatprep.mubr.bf16.mxu1 %v12725_v52  ;;  %v5621_v49 = vpop.trf.xlu1 }
0x1174   :  { %v5592_v19 = vpop.trf.xlu0  ;;  %v5622_v30 = vpop.trf.xlu1 }
0x1175   :  { %v5632_v27 = vpack.c.bf16 %v5592_v19, %v5591_v5  ;;  %v5639_v61 = vpack.c.bf16 %v5622_v30, %v5621_v49 }
0x1177   :  { %7468 = vmatmul.mubr.msk.bf16.gmra.mrb[8].mxu1 %vm685_vm2, %v5632_v27 }
0x1178   :  { %5809 = vmatprep.mubr.bf16.mxu1 %v12725_v52  ;;  %v5623_v36 = vpop.trf.xlu1 }
0x117c   :  { %v5624_v12 = vpop.trf.xlu1 }
0x117d   :  { %v5640_v13 = vpack.c.bf16 %v5624_v12, %v5623_v36 }
0x117f   :  { %7469 = vmatmul.mubr.msk.bf16.gmra.mrb[12].mxu1 %vm685_vm2, %v5633_v48 }
0x1180   :  { %5819 = vmatprep.mubr.bf16.mxu1 %v12725_v52 }
0x1187   :  { %7470 = vmatmul.mubr.msk.bf16.gmra.mrb[16].mxu1 %vm685_vm2, %v5634_v55 }
0x1188   :  { %5829 = vmatprep.mubr.bf16.mxu1 %v12725_v52 }
0x118f   :  { %7471 = vmatmul.mubr.msk.bf16.gmra.mrb[20].mxu1 %vm685_vm2, %v5635_v44 }
0x1190   :  { %5839 = vmatprep.mubr.bf16.mxu1 %v12725_v52 }
0x1197   :  { %7472 = vmatmul.mubr.msk.bf16.gmra.mrb[24].mxu1 %vm685_vm2, %v5636_v2 }
0x1198   :  { %5849 = vmatprep.mubr.bf16.mxu1 %v12725_v52 }
0x119f   :  { %7473 = vmatmul.mubr.msk.bf16.gmra.mrb[28].mxu1 %vm685_vm2, %v5637_v26 }
0x11a0   :  { %5859 = vmatprep.mubr.bf16.mxu1 %v12725_v52 }
0x11a7   :  { %7474 = vmatmul.mubr.msk.bf16.gmra.mrb[32].mxu1 %vm685_vm2, %v5638_v15 }
0x11a8   :  { %5869 = vmatprep.mubr.bf16.mxu1 %v12725_v52 }
0x11af   :  { %7475 = vmatmul.mubr.msk.bf16.gmra.mrb[36].mxu1 %vm685_vm2, %v5639_v61 }
0x11b0   :  { %5879 = vmatprep.mubr.bf16.mxu1 %v12725_v52 }
0x11b7   :  { %7476 = vmatmul.mubr.msk.bf16.gmra.mrb[40].mxu1 %vm685_vm2, %v5640_v13 }
0x11b8   :  { %7191 = vmatprep.mubr.bf16.mxu1 %v12725_v52 }
0x1209   :  { %v5538_v6 = vpop.f32.mrb[232].mxu1 }
0x120a   :  { %v5540_v35 = vpop.f32.mrb[233].mxu1 }
0x120b   :  { %v5542_v56 = vpop.f32.mrb[234].mxu1 }
0x120c   :  { %8493 = vrcp.f32 %v5542_v56  ;;  %v5544_v39 = vpop.f32.mrb[235].mxu1 }
0x120d   :  { %8495 = vrcp.f32 %v5544_v39 }
0x1212   :  { %v11365_v60 = vpop.f32.mrb[236].mxu1 }
0x1213   :  { %v11367_v57 = vpop.f32.mrb[237].mxu1 }
0x1214   :  { %v5890_v16 = vmax.f32 %v11365_v60, %v11367_v57  ;;  %v11371_v47 = vpop.f32.mrb[238].mxu1 }
0x1215   :  { %v11373_v24 = vpop.f32.mrb[239].mxu1 }
0x1216   :  { %v8494_v17 = vpop.eup %8493  ;;  %v5893_v14 = vmax.f32 %v11371_v47, %v11373_v24  ;;  %5891 = vmax.xlane.f32.xlu0 %v5890_v16 }
0x1217   :  { %v8496_v45 = vpop.eup %8495  ;;  %v5552_v3 = vrot.slane %v8494_v17, %v12726_v9 }
0x1218   :  { %5894 = vmax.xlane.f32.xlu1 %v5893_v14  ;;  %v5556_v62 = vrot.slane %v8496_v45, %v12726_v9 }
0x1219   :  { %v11379_v38 = vmul.f32 %v5552_v3, %v5538_v6 }
0x121a   :  { %v11381_v20 = vpop.f32.mrb[240].mxu1  ;;  %v11383_v34 = vmul.f32 %v5556_v62, %v5540_v35 }
0x121b   :  { %12727 = vst [vmem:[#allocation61_spill] sm:$0xff] %v11379_v38  ;;  %v11385_v37 = vpop.f32.mrb[241].mxu1 }
0x121c   :  { %12728 = vst [vmem:[#allocation14_spill] sm:$0xff] %v11383_v34  ;;  %v5896_v58 = vmax.f32 %v11381_v20, %v11385_v37  ;;  %v11389_v7 = vpop.f32.mrb[242].mxu1 }
0x121d   :  { %v11391_v25 = vpop.f32.mrb[243].mxu1 }
0x121e   :  { %v5899_v42 = vmax.f32 %v11389_v7, %v11391_v25  ;;  %5897 = vmax.xlane.f32.xlu0 %v5896_v58 }
0x1220   :  { %5900 = vmax.xlane.f32.xlu1 %v5899_v42 }
0x1222   :  { %v11395_v8 = vpop.f32.mrb[244].mxu1 }
0x1223   :  { %v11397_v29 = vpop.f32.mrb[245].mxu1 }
0x1224   :  { %v5902_v59 = vmax.f32 %v11395_v8, %v11397_v29  ;;  %v11401_v54 = vpop.f32.mrb[246].mxu1 }
0x1225   :  { %v11403_v18 = vpop.f32.mrb[247].mxu1 }
0x1226   :  { %v5905_v1 = vmax.f32 %v11401_v54, %v11403_v18  ;;  %5903 = vmax.xlane.f32.xlu0 %v5902_v59 }
0x1228   :  { %5906 = vmax.xlane.f32.xlu1 %v5905_v1 }
0x122a   :  { %v11407_v40 = vpop.f32.mrb[248].mxu1 }
0x122b   :  { %v11409_v51 = vpop.f32.mrb[249].mxu1 }
0x122c   :  { %v5908_v22 = vmax.f32 %v11407_v40, %v11409_v51  ;;  %v11413_v0 = vpop.f32.mrb[250].mxu1 }
0x122d   :  { %v11415_v31 = vpop.f32.mrb[251].mxu1 }
0x122e   :  { %v5911_v32 = vmax.f32 %v11413_v0, %v11415_v31  ;;  %5909 = vmax.xlane.f32.xlu0 %v5908_v22 }
0x1230   :  { %5912 = vmax.xlane.f32.xlu1 %v5911_v32 }
0x1232   :  { %v11419_v50 = vpop.f32.mrb[252].mxu1 }
0x1233   :  { %v11421_v43 = vpop.f32.mrb[253].mxu1 }
0x1234   :  { %v5914_v10 = vmax.f32 %v11419_v50, %v11421_v43  ;;  %v11425_v28 = vpop.f32.mrb[254].mxu1 }
0x1235   :  { %v11427_v5 = vpop.f32.mrb[255].mxu1 }
0x1236   :  { %v5917_v63 = vmax.f32 %v11425_v28, %v11427_v5  ;;  %5915 = vmax.xlane.f32.xlu0 %v5914_v10 }
0x1238   :  { %5918 = vmax.xlane.f32.xlu1 %v5917_v63 }
0x123a   :  { %v11431_v19 = vpop.f32.mrb[0].mxu1 }
0x123b   :  { %v11433_v27 = vpop.f32.mrb[1].mxu1 }
0x123c   :  { %v5920_v4 = vmax.f32 %v11431_v19, %v11433_v27  ;;  %v11437_v11 = vpop.f32.mrb[2].mxu1 }
0x123d   :  { %v11439_v48 = vpop.f32.mrb[3].mxu1 }
0x123e   :  { %v5923_v53 = vmax.f32 %v11437_v11, %v11439_v48  ;;  %5921 = vmax.xlane.f32.xlu0 %v5920_v4 }
0x1240   :  { %5924 = vmax.xlane.f32.xlu1 %v5923_v53 }
0x1242   :  { %v11443_v55 = vpop.f32.mrb[4].mxu1 }
0x1243   :  { %v11445_v41 = vpop.f32.mrb[5].mxu1 }
0x1244   :  { %v5926_v44 = vmax.f32 %v11443_v55, %v11445_v41  ;;  %v11449_v33 = vpop.f32.mrb[6].mxu1 }
0x1245   :  { %v11451_v21 = vpop.f32.mrb[7].mxu1 }
0x1246   :  { %v5929_v2 = vmax.f32 %v11449_v33, %v11451_v21  ;;  %5927 = vmax.xlane.f32.xlu0 %v5926_v44 }
0x1248   :  { %5930 = vmax.xlane.f32.xlu1 %v5929_v2 }
0x124a   :  { %v11455_v46 = vpop.f32.mrb[8].mxu1 }
0x124b   :  { %v11457_v26 = vpop.f32.mrb[9].mxu1 }
0x124c   :  { %v5932_v49 = vmax.f32 %v11455_v46, %v11457_v26  ;;  %v11461_v15 = vpop.f32.mrb[10].mxu1 }
0x124d   :  { %v11463_v30 = vpop.f32.mrb[11].mxu1 }
0x124e   :  { %v5935_v36 = vmax.f32 %v11461_v15, %v11463_v30  ;;  %5933 = vmax.xlane.f32.xlu0 %v5932_v49 }
0x1250   :  { %5936 = vmax.xlane.f32.xlu1 %v5935_v36 }
0x1252   :  { %v11467_v61 = vpop.f32.mrb[12].mxu1 }
0x1253   :  { %v11469_v12 = vpop.f32.mrb[13].mxu1 }
0x1254   :  { %v5938_v13 = vmax.f32 %v11467_v61, %v11469_v12  ;;  %v11473_v6 = vpop.f32.mrb[14].mxu1 }
0x1255   :  { %v11475_v35 = vpop.f32.mrb[15].mxu1 }
0x1256   :  { %v5941_v56 = vmax.f32 %v11473_v6, %v11475_v35  ;;  %5939 = vmax.xlane.f32.xlu0 %v5938_v13 }
0x1258   :  { %5942 = vmax.xlane.f32.xlu1 %v5941_v56 }
0x125a   :  { %v11479_v39 = vpop.f32.mrb[16].mxu1 }
0x125b   :  { %v11481_v16 = vpop.f32.mrb[17].mxu1 }
0x125c   :  { %v5944_v17 = vmax.f32 %v11479_v39, %v11481_v16  ;;  %v11485_v14 = vpop.f32.mrb[18].mxu1 }
0x125d   :  { %v11487_v45 = vpop.f32.mrb[19].mxu1 }
0x125e   :  { %v5947_v3 = vmax.f32 %v11485_v14, %v11487_v45  ;;  %5945 = vmax.xlane.f32.xlu0 %v5944_v17 }
0x1260   :  { %5948 = vmax.xlane.f32.xlu1 %v5947_v3 }
0x1262   :  { %v11491_v62 = vpop.f32.mrb[20].mxu1 }
0x1263   :  { %v11493_v58 = vpop.f32.mrb[21].mxu1 }
0x1264   :  { %v5950_v42 = vmax.f32 %v11491_v62, %v11493_v58  ;;  %v11497_v59 = vpop.f32.mrb[22].mxu1 }
0x1265   :  { %v11499_v1 = vpop.f32.mrb[23].mxu1 }
0x1266   :  { %v5953_v22 = vmax.f32 %v11497_v59, %v11499_v1  ;;  %5951 = vmax.xlane.f32.xlu0 %v5950_v42 }
0x1268   :  { %5954 = vmax.xlane.f32.xlu1 %v5953_v22 }
0x126a   :  { %v11503_v32 = vpop.f32.mrb[24].mxu1 }
0x126b   :  { %v11505_v10 = vpop.f32.mrb[25].mxu1 }
0x126c   :  { %v5956_v63 = vmax.f32 %v11503_v32, %v11505_v10  ;;  %v11509_v4 = vpop.f32.mrb[26].mxu1 }
0x126d   :  { %v11511_v53 = vpop.f32.mrb[27].mxu1 }
0x126e   :  { %v5959_v44 = vmax.f32 %v11509_v4, %v11511_v53  ;;  %5957 = vmax.xlane.f32.xlu0 %v5956_v63 }
0x1270   :  { %5960 = vmax.xlane.f32.xlu1 %v5959_v44 }
0x1272   :  { %v11515_v2 = vpop.f32.mrb[28].mxu1 }
0x1273   :  { %v11517_v49 = vpop.f32.mrb[29].mxu1 }
0x1274   :  { %v5962_v36 = vmax.f32 %v11515_v2, %v11517_v49  ;;  %v11521_v13 = vpop.f32.mrb[30].mxu1 }
0x1275   :  { %12729 = vst [vmem:[#allocation54_spill] sm:$0xff] %v11521_v13  ;;  %v11523_v56 = vpop.f32.mrb[31].mxu1 }
0x1276   :  { %12730 = vst [vmem:[#allocation38_spill] sm:$0xff] %v11523_v56  ;;  %v5965_v17 = vmax.f32 %v11521_v13, %v11523_v56  ;;  %5963 = vmax.xlane.f32.xlu0 %v5962_v36 }
0x1278   :  { %5966 = vmax.xlane.f32.xlu1 %v5965_v17 }
0x127a   :  { %v11527_v3 = vpop.f32.mrb[32].mxu1 }
0x127b   :  { %12731 = vst [vmem:[#allocation26_spill] sm:$0xff] %v11527_v3  ;;  %v11529_v42 = vpop.f32.mrb[33].mxu1 }
0x127c   :  { %12732 = vst [vmem:[#allocation65_spill] sm:$0xff] %v11529_v42  ;;  %v5968_v22 = vmax.f32 %v11527_v3, %v11529_v42  ;;  %v11533_v63 = vpop.f32.mrb[34].mxu1 }
0x127d   :  { %12733 = vst [vmem:[#allocation19_spill] sm:$0xff] %v11533_v63  ;;  %v11535_v44 = vpop.f32.mrb[35].mxu1 }
0x127e   :  { %12734 = vst [vmem:[#allocation15_spill] sm:$0xff] %v11535_v44  ;;  %v5971_v34 = vmax.f32 %v11533_v63, %v11535_v44  ;;  %5969 = vmax.xlane.f32.xlu0 %v5968_v22 }
0x1280   :  { %5972 = vmax.xlane.f32.xlu1 %v5971_v34 }
0x1282   :  { %v11539_v38 = vpop.f32.mrb[36].mxu1 }
0x1283   :  { %12735 = vst [vmem:[#allocation24_spill] sm:$0xff] %v11539_v38  ;;  %v11541_v36 = vpop.f32.mrb[37].mxu1 }
0x1284   :  { %12736 = vst [vmem:[#allocation32_spill] sm:$0xff] %v11541_v36  ;;  %v5974_v17 = vmax.f32 %v11539_v38, %v11541_v36  ;;  %v11545_v9 = vpop.f32.mrb[38].mxu1 }
0x1285   :  { %12737 = vst [vmem:[#allocation31_spill] sm:$0xff] %v11545_v9  ;;  %v11547_v52 = vpop.f32.mrb[39].mxu1 }
0x1286   :  { %12738 = vst [vmem:[#allocation13_spill] sm:$0xff] %v11547_v52  ;;  %v5977_v23 = vmax.f32 %v11545_v9, %v11547_v52  ;;  %5975 = vmax.xlane.f32.xlu0 %v5974_v17 }
0x1288   :  { %5978 = vmax.xlane.f32.xlu1 %v5977_v23 }
0x128a   :  { %v11551_v42 = vpop.f32.mrb[40].mxu1 }
0x128b   :  { %12739 = vst [vmem:[#allocation46_spill] sm:$0xff] %v11551_v42  ;;  %v11553_v22 = vpop.f32.mrb[41].mxu1 }
0x128c   :  { %12740 = vst [vmem:[#allocation41_spill] sm:$0xff] %v11553_v22  ;;  %v5980_v34 = vmax.f32 %v11551_v42, %v11553_v22  ;;  %v11557_v44 = vpop.f32.mrb[42].mxu1 }
0x128d   :  { %v11559_v63 = vpop.f32.mrb[43].mxu1 }
0x128e   :  { %12741 = vst [vmem:[#allocation42_spill] sm:$0xff] %v11559_v63  ;;  %v5983_v36 = vmax.f32 %v11557_v44, %v11559_v63  ;;  %5981 = vmax.xlane.f32.xlu0 %v5980_v34 }
0x1290   :  { %5984 = vmax.xlane.f32.xlu1 %v5983_v36 }
0x12a3   :  { %v5892_v38 = vpop.xlane.xlu0 %5891 }
0x12a4   :  { %v5986_v17 = vsub.f32 %v11365_v60, %v5892_v38  ;;  %v5987_v23 = vsub.f32 %v11367_v57, %v5892_v38 }
0x12a5   :  { %v5895_v52 = vpop.xlane.xlu1 %5894 }
0x12a6   :  { %v6050_v9 = vmul.f32 1.442695, %v5986_v17  ;;  %v5988_v3 = vsub.f32 %v11371_v47, %v5895_v52  ;;  %v5989_v22 = vsub.f32 %v11373_v24, %v5895_v52  ;;  %v6052_v42 = vmul.f32 1.442695, %v5987_v23 }
0x12a8   :  { %v6054_v56 = vmul.f32 1.442695, %v5988_v3  ;;  %v6056_v13 = vmul.f32 1.442695, %v5989_v22  ;;  %8497 = vpow2.f32 %v6050_v9 }
0x12aa   :  { %8499 = vpow2.f32 %v6054_v56 }
0x12ab   :  { %8501 = vpow2.f32 %v6056_v13  ;;  %v5898_v63 = vpop.xlane.xlu0 %5897 }
0x12ac   :  { %8503 = vpow2.f32 %v6052_v42  ;;  %v5990_v36 = vsub.f32 %v11381_v20, %v5898_v63  ;;  %v5991_v60 = vsub.f32 %v11385_v37, %v5898_v63 }
0x12ad   :  { %v5901_v34 = vpop.xlane.xlu1 %5900 }
0x12ae   :  { %v6058_v57 = vmul.f32 1.442695, %v5990_v36  ;;  %v5992_v38 = vsub.f32 %v11389_v7, %v5901_v34  ;;  %v5993_v47 = vsub.f32 %v11391_v25, %v5901_v34  ;;  %v6060_v17 = vmul.f32 1.442695, %v5991_v60 }
0x12b0   :  { %v6062_v52 = vmul.f32 1.442695, %v5992_v38  ;;  %v6064_v24 = vmul.f32 1.442695, %v5993_v47  ;;  %8505 = vpow2.f32 %v6058_v57 }
0x12b2   :  { %8507 = vpow2.f32 %v6062_v52  ;;  %v8498_v9 = vpop.eup %8497 }
0x12b3   :  { %8509 = vpow2.f32 %v6064_v24  ;;  %v5904_v13 = vpop.xlane.xlu0 %5903 }
0x12b4   :  { %v8500_v56 = vpop.eup %8499  ;;  %8511 = vpow2.f32 %v6060_v17  ;;  %v5994_v20 = vsub.f32 %v11395_v8, %v5904_v13  ;;  %v5995_v37 = vsub.f32 %v11397_v29, %v5904_v13 }
0x12b5   :  { %v8502_v3 = vpop.eup %8501  ;;  %v5907_v42 = vpop.xlane.xlu1 %5906  ;;  %v6178_v63 = vpack.c.bf16 %v8500_v56, %v8498_v9 }
0x12b6   :  { %v8504_v7 = vpop.eup %8503  ;;  %v6066_v22 = vmul.f32 1.442695, %v5994_v20  ;;  %v5996_v25 = vsub.f32 %v11401_v54, %v5907_v42  ;;  %v5997_v23 = vsub.f32 %v11403_v18, %v5907_v42  ;;  %v6068_v60 = vmul.f32 1.442695, %v5995_v37 }
0x12b7   :  { %v6179_v36 = vpack.c.bf16 %v8502_v3, %v8504_v7 }
0x12b8   :  { %v6070_v34 = vmul.f32 1.442695, %v5996_v25  ;;  %v6072_v57 = vmul.f32 1.442695, %v5997_v23  ;;  %8513 = vpow2.f32 %v6066_v22 }
0x12b9   :  { %6212 = vmatprep.subr.bf16.mxu0 %v6179_v36 }
0x12ba   :  { %8515 = vpow2.f32 %v6070_v34  ;;  %6213 = vmatpush1.bf16.xpose.msra.mxu0 %v6178_v63  ;;  %v8506_v8 = vpop.eup %8505 }
0x12bb   :  { %8517 = vpow2.f32 %v6072_v57  ;;  %v5910_v29 = vpop.xlane.xlu0 %5909 }
0x12bc   :  { %v8508_v38 = vpop.eup %8507  ;;  %8519 = vpow2.f32 %v6068_v60  ;;  %v5998_v47 = vsub.f32 %v11407_v40, %v5910_v29  ;;  %v5999_v17 = vsub.f32 %v11409_v51, %v5910_v29 }
0x12bd   :  { %v8510_v54 = vpop.eup %8509  ;;  %v5913_v52 = vpop.xlane.xlu1 %5912  ;;  %v6180_v18 = vpack.c.bf16 %v8508_v38, %v8506_v8 }
0x12be   :  { %v8512_v24 = vpop.eup %8511  ;;  %v6074_v9 = vmul.f32 1.442695, %v5998_v47  ;;  %v6000_v13 = vsub.f32 %v11413_v0, %v5913_v52  ;;  %v6001_v56 = vsub.f32 %v11415_v31, %v5913_v52  ;;  %v6076_v37 = vmul.f32 1.442695, %v5999_v17  ;;  %v11586_v17 = vld [vmem:[%s12205_s6 + $0x8] sm:$0xff]  ;;  %v11594_v52 = vld [vmem:[%s12205_s6] sm:$0xff] }
0x12bf   :  { %v6181_v20 = vpack.c.bf16 %v8510_v54, %v8512_v24 }
0x12c0   :  { %v6078_v3 = vmul.f32 1.442695, %v6000_v13  ;;  %v6080_v42 = vmul.f32 1.442695, %v6001_v56  ;;  %8521 = vpow2.f32 %v6074_v9 }
0x12c1   :  { %6214 = vmatprep.subr.bf16.mxu0 %v6181_v20 }
0x12c2   :  { %8523 = vpow2.f32 %v6078_v3  ;;  %6215 = vmatpush1.bf16.xpose.msra.mxu0 %v6180_v18  ;;  %v8514_v40 = vpop.eup %8513 }
0x12c3   :  { %8525 = vpow2.f32 %v6080_v42  ;;  %v5916_v51 = vpop.xlane.xlu0 %5915 }
0x12c4   :  { %v8516_v63 = vpop.eup %8515  ;;  %8527 = vpow2.f32 %v6076_v37  ;;  %v6002_v7 = vsub.f32 %v11419_v50, %v5916_v51  ;;  %v6003_v22 = vsub.f32 %v11421_v43, %v5916_v51  ;;  %v8735_v50 = vmov 3  }
0x12c5   :  { %v8518_v0 = vpop.eup %8517  ;;  %v5919_v25 = vpop.xlane.xlu1 %5918  ;;  %v6182_v31 = vpack.c.bf16 %v8516_v63, %v8514_v40  ;;  %7536 = vset.pattern.permute.xlu1 %v8735_v50  ;;  %7535 = vset.pattern.permute.xlu0 %v8735_v50  ;;  %v8736_v51 = vmov 4  }
0x12c6   :  { %v8520_v23 = vpop.eup %8519  ;;  %v6082_v36 = vmul.f32 1.442695, %v6002_v7  ;;  %v6004_v60 = vsub.f32 %v11425_v28, %v5919_v25  ;;  %v6005_v34 = vsub.f32 %v11427_v5, %v5919_v25  ;;  %v6084_v8 = vmul.f32 1.442695, %v6003_v22  ;;  %6302 = vperm.xlu1 %7536, %v11586_v17   ;;  %6298 = vperm.xlu0 %7535, %v11594_v52  }
0x12c7   :  { %v6183_v57 = vpack.c.bf16 %v8518_v0, %v8520_v23 }
0x12c8   :  { %v6086_v29 = vmul.f32 1.442695, %v6004_v60  ;;  %v6088_v38 = vmul.f32 1.442695, %v6005_v34  ;;  %8529 = vpow2.f32 %v6082_v36 }
0x12c9   :  { %6216 = vmatprep.subr.bf16.mxu0 %v6183_v57 }
0x12ca   :  { %8531 = vpow2.f32 %v6086_v29  ;;  %6217 = vmatpush1.bf16.xpose.msra.mxu0 %v6182_v31  ;;  %v8522_v43 = vpop.eup %8521  ;;  %7540 = vset.pattern.permute.xlu0 %v8736_v51 }
0x12cb   :  { %8533 = vpow2.f32 %v6088_v38  ;;  %v5922_v47 = vpop.xlane.xlu0 %5921 }
0x12cc   :  { %v8524_v28 = vpop.eup %8523  ;;  %8535 = vpow2.f32 %v6084_v8  ;;  %v6006_v5 = vsub.f32 %v11431_v19, %v5922_v47  ;;  %v6007_v54 = vsub.f32 %v11433_v27, %v5922_v47  ;;  %v11602_v19 = vld [vmem:[%s12205_s6 + $0x10] sm:$0xff] }
0x12cd   :  { %v8526_v18 = vpop.eup %8525  ;;  %v5925_v24 = vpop.xlane.xlu1 %5924  ;;  %v6184_v9 = vpack.c.bf16 %v8524_v28, %v8522_v43  ;;  %6306 = vperm.xlu1 %7536, %v11602_v19  }
0x12ce   :  { %v8528_v13 = vpop.eup %8527  ;;  %v6090_v56 = vmul.f32 1.442695, %v6006_v5  ;;  %v6008_v20 = vsub.f32 %v11437_v11, %v5925_v24  ;;  %v6009_v37 = vsub.f32 %v11439_v48, %v5925_v24  ;;  %v6092_v27 = vmul.f32 1.442695, %v6007_v54  ;;  %v11609_v11 = vld [vmem:[%s12205_s6 + $0x18] sm:$0xff] }
0x12cf   :  { %v6185_v3 = vpack.c.bf16 %v8526_v18, %v8528_v13  ;;  %6600 = vperm.xlu0 %7540, %v11609_v11  }
0x12d0   :  { %v6094_v42 = vmul.f32 1.442695, %v6008_v20  ;;  %v6096_v40 = vmul.f32 1.442695, %v6009_v37  ;;  %8537 = vpow2.f32 %v6090_v56 }
0x12d1   :  { %6218 = vmatprep.subr.bf16.mxu0 %v6185_v3  ;;  %6310 = vperm.xlu1 %7536, %v11609_v11   ;;  %v8737_v3 = vmov 5  }
0x12d2   :  { %8539 = vpow2.f32 %v6094_v42  ;;  %6219 = vmatpush1.bf16.xpose.msra.mxu0 %v6184_v9  ;;  %v8530_v48 = vpop.eup %8529 }
0x12d3   :  { %8541 = vpow2.f32 %v6096_v40  ;;  %v5928_v63 = vpop.xlane.xlu0 %5927 }
0x12d4   :  { %v8532_v7 = vpop.eup %8531  ;;  %8543 = vpow2.f32 %v6092_v27  ;;  %v6010_v22 = vsub.f32 %v11443_v55, %v5928_v63  ;;  %v6011_v0 = vsub.f32 %v11445_v41, %v5928_v63 }
0x12d5   :  { %v8534_v25 = vpop.eup %8533  ;;  %v5931_v31 = vpop.xlane.xlu1 %5930  ;;  %v6186_v23 = vpack.c.bf16 %v8532_v7, %v8530_v48  ;;  %7537 = vset.pattern.permute.xlu1 %v8736_v51 }
0x12d6   :  { %v8536_v36 = vpop.eup %8535  ;;  %v6098_v60 = vmul.f32 1.442695, %v6010_v22  ;;  %v6012_v34 = vsub.f32 %v11449_v33, %v5931_v31  ;;  %v6013_v57 = vsub.f32 %v11451_v21, %v5931_v31  ;;  %v6100_v29 = vmul.f32 1.442695, %v6011_v0  ;;  %6588 = vperm.xlu1 %7537, %v11594_v52  }
0x12d7   :  { %v6187_v8 = vpack.c.bf16 %v8534_v25, %v8536_v36 }
0x12d8   :  { %v6102_v38 = vmul.f32 1.442695, %v6012_v34  ;;  %v6104_v50 = vmul.f32 1.442695, %v6013_v57  ;;  %8545 = vpow2.f32 %v6098_v60 }
0x12d9   :  { %6220 = vmatprep.subr.bf16.mxu0 %v6187_v8 }
0x12da   :  { %8547 = vpow2.f32 %v6102_v38  ;;  %6221 = vmatpush1.bf16.xpose.msra.mxu0 %v6186_v23  ;;  %v8538_v55 = vpop.eup %8537  ;;  %6592 = vperm.xlu1 %7537, %v11586_v17  }
0x12db   :  { %8549 = vpow2.f32 %v6104_v50  ;;  %v5934_v41 = vpop.xlane.xlu0 %5933 }
0x12dc   :  { %v8540_v43 = vpop.eup %8539  ;;  %8551 = vpow2.f32 %v6100_v29  ;;  %v6014_v33 = vsub.f32 %v11455_v46, %v5934_v41  ;;  %v6015_v21 = vsub.f32 %v11457_v26, %v5934_v41 }
0x12dd   :  { %v8542_v47 = vpop.eup %8541  ;;  %v5937_v28 = vpop.xlane.xlu1 %5936  ;;  %v6188_v5 = vpack.c.bf16 %v8540_v43, %v8538_v55 }
0x12de   :  { %v8544_v54 = vpop.eup %8543  ;;  %v6106_v18 = vmul.f32 1.442695, %v6014_v33  ;;  %v6016_v24 = vsub.f32 %v11461_v15, %v5937_v28  ;;  %v6017_v9 = vsub.f32 %v11463_v30, %v5937_v28  ;;  %v6108_v56 = vmul.f32 1.442695, %v6015_v21  ;;  %7538 = vset.pattern.permute.xlu1 %v8737_v3 }
0x12df   :  { %v6189_v13 = vpack.c.bf16 %v8542_v47, %v8544_v54  ;;  %6620 = vperm.xlu1 %7538, %v11594_v52  }
0x12e0   :  { %v6110_v20 = vmul.f32 1.442695, %v6016_v24  ;;  %v6112_v37 = vmul.f32 1.442695, %v6017_v9  ;;  %8553 = vpow2.f32 %v6106_v18 }
0x12e1   :  { %6222 = vmatprep.subr.bf16.mxu0 %v6189_v13 }
0x12e2   :  { %8555 = vpow2.f32 %v6110_v20  ;;  %6223 = vmatpush1.bf16.xpose.msra.mxu0 %v6188_v5  ;;  %v8546_v46 = vpop.eup %8545 }
0x12e3   :  { %8557 = vpow2.f32 %v6112_v37  ;;  %v5940_v26 = vpop.xlane.xlu0 %5939  ;;  %6624 = vperm.xlu1 %7538, %v11586_v17  }
0x12e4   :  { %v8548_v27 = vpop.eup %8547  ;;  %8559 = vpow2.f32 %v6108_v56  ;;  %v6018_v15 = vsub.f32 %v11467_v61, %v5940_v26  ;;  %v6019_v30 = vsub.f32 %v11469_v12, %v5940_v26 }
0x12e5   :  { %v8550_v42 = vpop.eup %8549  ;;  %v5943_v40 = vpop.xlane.xlu1 %5942  ;;  %v6190_v48 = vpack.c.bf16 %v8548_v27, %v8546_v46 }
0x12e6   :  { %v8552_v63 = vpop.eup %8551  ;;  %v6114_v7 = vmul.f32 1.442695, %v6018_v15  ;;  %v6020_v22 = vsub.f32 %v11473_v6, %v5943_v40  ;;  %v6021_v0 = vsub.f32 %v11475_v35, %v5943_v40  ;;  %v6116_v31 = vmul.f32 1.442695, %v6019_v30 }
0x12e7   :  { %v6191_v25 = vpack.c.bf16 %v8550_v42, %v8552_v63  ;;  %7539 = vset.pattern.permute.xlu1 %v8736_v51 }
0x12e8   :  { %v6118_v23 = vmul.f32 1.442695, %v6020_v22  ;;  %v6120_v36 = vmul.f32 1.442695, %v6021_v0  ;;  %8561 = vpow2.f32 %v6114_v7  ;;  %6596 = vperm.xlu1 %7539, %v11602_v19  }
0x12e9   :  { %6224 = vmatprep.subr.bf16.mxu0 %v6191_v25 }
0x12ea   :  { %8563 = vpow2.f32 %v6118_v23  ;;  %6225 = vmatpush1.bf16.xpose.msra.mxu0 %v6190_v48  ;;  %v8554_v61 = vpop.eup %8553 }
0x12eb   :  { %8565 = vpow2.f32 %v6120_v36  ;;  %v5946_v12 = vpop.xlane.xlu0 %5945 }
0x12ec   :  { %v8556_v60 = vpop.eup %8555  ;;  %8567 = vpow2.f32 %v6116_v31  ;;  %v6022_v6 = vsub.f32 %v11479_v39, %v5946_v12  ;;  %v6023_v35 = vsub.f32 %v11481_v16, %v5946_v12  ;;  %7541 = vset.pattern.permute.xlu1 %v8737_v3  ;;  %v12742_v12 = vld [vmem:[#allocation54_spill] sm:$0xff] }
0x12ed   :  { %v8558_v34 = vpop.eup %8557  ;;  %v5949_v57 = vpop.xlane.xlu1 %5948  ;;  %v6192_v8 = vpack.c.bf16 %v8556_v60, %v8554_v61  ;;  %6628 = vperm.xlu1 %7541, %v11602_v19  }
0x12ee   :  { %v8560_v29 = vpop.eup %8559  ;;  %v6122_v38 = vmul.f32 1.442695, %v6022_v6  ;;  %v6024_v51 = vsub.f32 %v11485_v14, %v5949_v57  ;;  %v6025_v50 = vsub.f32 %v11487_v45, %v5949_v57  ;;  %v6124_v41 = vmul.f32 1.442695, %v6023_v35  ;;  %v12743_v6 = vld [vmem:[#allocation38_spill] sm:$0xff] }
0x12ef   :  { %v6193_v55 = vpack.c.bf16 %v8558_v34, %v8560_v29 }
0x12f0   :  { %v6126_v43 = vmul.f32 1.442695, %v6024_v51  ;;  %v6128_v33 = vmul.f32 1.442695, %v6025_v50  ;;  %8569 = vpow2.f32 %v6122_v38  ;;  %v12744_v51 = vld [vmem:[#allocation26_spill] sm:$0xff] }
0x12f1   :  { %6226 = vmatprep.subr.bf16.mxu0 %v6193_v55  ;;  %6632 = vperm.xlu1 %7541, %v11609_v11   ;;  %v12745_v55 = vld [vmem:[#allocation65_spill] sm:$0xff] }
0x12f2   :  { %8571 = vpow2.f32 %v6126_v43  ;;  %6227 = vmatpush1.bf16.xpose.msra.mxu0 %v6192_v8  ;;  %v8562_v39 = vpop.eup %8561 }
0x12f3   :  { %8573 = vpow2.f32 %v6128_v33  ;;  %v5952_v16 = vpop.xlane.xlu0 %5951 }
0x12f4   :  { %v8564_v21 = vpop.eup %8563  ;;  %8575 = vpow2.f32 %v6124_v41  ;;  %v6026_v14 = vsub.f32 %v11491_v62, %v5952_v16  ;;  %v6027_v45 = vsub.f32 %v11493_v58, %v5952_v16 }
0x12f5   :  { %v8566_v47 = vpop.eup %8565  ;;  %v5955_v28 = vpop.xlane.xlu1 %5954  ;;  %v6194_v5 = vpack.c.bf16 %v8564_v21, %v8562_v39 }
0x12f6   :  { %v8568_v54 = vpop.eup %8567  ;;  %v6130_v18 = vmul.f32 1.442695, %v6026_v14  ;;  %v6028_v24 = vsub.f32 %v11497_v59, %v5955_v28  ;;  %v6029_v9 = vsub.f32 %v11499_v1, %v5955_v28  ;;  %v6132_v56 = vmul.f32 1.442695, %v6027_v45  ;;  %v12746_v14 = vld [vmem:[#allocation19_spill] sm:$0xff] }
0x12f7   :  { %v6195_v13 = vpack.c.bf16 %v8566_v47, %v8568_v54  ;;  %v12747_v47 = vld [vmem:[#allocation15_spill] sm:$0xff] }
0x12f8   :  { %v6134_v20 = vmul.f32 1.442695, %v6028_v24  ;;  %v6136_v37 = vmul.f32 1.442695, %v6029_v9  ;;  %8577 = vpow2.f32 %v6130_v18 }
0x12f9   :  { %6228 = vmatprep.subr.bf16.mxu0 %v6195_v13 }
0x12fa   :  { %8579 = vpow2.f32 %v6134_v20  ;;  %6229 = vmatpush1.bf16.xpose.msra.mxu0 %v6194_v5  ;;  %v8570_v62 = vpop.eup %8569  ;;  %v12748_v20 = vld [vmem:[#allocation24_spill] sm:$0xff] }
0x12fb   :  { %8581 = vpow2.f32 %v6136_v37  ;;  %v5958_v58 = vpop.xlane.xlu0 %5957 }
0x12fc   :  { %v8572_v3 = vpop.eup %8571  ;;  %8583 = vpow2.f32 %v6132_v56  ;;  %v6030_v46 = vsub.f32 %v11503_v32, %v5958_v58  ;;  %v6031_v26 = vsub.f32 %v11505_v10, %v5958_v58 }
0x12fd   :  { %v8574_v59 = vpop.eup %8573  ;;  %v5961_v27 = vpop.xlane.xlu1 %5960  ;;  %v6196_v1 = vpack.c.bf16 %v8572_v3, %v8570_v62  ;;  %v12749_v62 = vld [vmem:[#allocation32_spill] sm:$0xff] }
0x12fe   :  { %v8576_v15 = vpop.eup %8575  ;;  %v6138_v30 = vmul.f32 1.442695, %v6030_v46  ;;  %v6032_v42 = vsub.f32 %v11509_v4, %v5961_v27  ;;  %v6033_v40 = vsub.f32 %v11511_v53, %v5961_v27  ;;  %v6140_v63 = vmul.f32 1.442695, %v6031_v26 }
0x12ff   :  { %v6197_v48 = vpack.c.bf16 %v8574_v59, %v8576_v15  ;;  %v12750_v15 = vld [vmem:[#allocation31_spill] sm:$0xff] }
0x1300   :  { %v6142_v7 = vmul.f32 1.442695, %v6032_v42  ;;  %v6144_v22 = vmul.f32 1.442695, %v6033_v40  ;;  %8585 = vpow2.f32 %v6138_v30  ;;  %v12751_v42 = vld [vmem:[#allocation13_spill] sm:$0xff] }
0x1301   :  { %6230 = vmatprep.subr.bf16.mxu0 %v6197_v48 }
0x1302   :  { %8587 = vpow2.f32 %v6142_v7  ;;  %6231 = vmatpush1.bf16.xpose.msra.mxu0 %v6196_v1  ;;  %v8578_v32 = vpop.eup %8577 }
0x1303   :  { %8589 = vpow2.f32 %v6144_v22  ;;  %v5964_v10 = vpop.xlane.xlu0 %5963 }
0x1304   :  { %v8580_v0 = vpop.eup %8579  ;;  %8591 = vpow2.f32 %v6140_v63  ;;  %v6034_v25 = vsub.f32 %v11515_v2, %v5964_v10  ;;  %v6035_v31 = vsub.f32 %v11517_v49, %v5964_v10 }
0x1305   :  { %v8582_v4 = vpop.eup %8581  ;;  %v5967_v23 = vpop.xlane.xlu1 %5966  ;;  %v6198_v53 = vpack.c.bf16 %v8580_v0, %v8578_v32  ;;  %v12752_v0 = vld [vmem:[#allocation46_spill] sm:$0xff] }
0x1306   :  { %v8584_v36 = vpop.eup %8583  ;;  %v6146_v61 = vmul.f32 1.442695, %v6034_v25  ;;  %v6036_v60 = vsub.f32 %v12742_v12, %v5967_v23  ;;  %v6037_v35 = vsub.f32 %v12743_v6, %v5967_v23  ;;  %v6148_v57 = vmul.f32 1.442695, %v6035_v31  ;;  %v12753_v31 = vld [vmem:[#allocation41_spill] sm:$0xff] }
0x1307   :  { %v6199_v34 = vpack.c.bf16 %v8582_v4, %v8584_v36 }
0x1308   :  { %v6150_v8 = vmul.f32 1.442695, %v6036_v60  ;;  %v6152_v29 = vmul.f32 1.442695, %v6037_v35  ;;  %8593 = vpow2.f32 %v6146_v61  ;;  %v12754_v35 = vld [vmem:[#allocation42_spill] sm:$0xff] }
0x1309   :  { %6232 = vmatprep.subr.bf16.mxu0 %v6199_v34 }
0x130a   :  { %8595 = vpow2.f32 %v6150_v8  ;;  %6233 = vmatpush1.bf16.xpose.msra.mxu0 %v6198_v53  ;;  %v8586_v2 = vpop.eup %8585 }
0x130b   :  { %8597 = vpow2.f32 %v6152_v29  ;;  %v5970_v49 = vpop.xlane.xlu0 %5969 }
0x130c   :  { %v8588_v38 = vpop.eup %8587  ;;  %8599 = vpow2.f32 %v6148_v57  ;;  %v6038_v50 = vsub.f32 %v12744_v51, %v5970_v49  ;;  %v6039_v41 = vsub.f32 %v12745_v55, %v5970_v49 }
0x130d   :  { %v8590_v43 = vpop.eup %8589  ;;  %v5973_v33 = vpop.xlane.xlu1 %5972  ;;  %v6200_v39 = vpack.c.bf16 %v8588_v38, %v8586_v2 }
0x130e   :  { %v8592_v16 = vpop.eup %8591  ;;  %v6154_v21 = vmul.f32 1.442695, %v6038_v50  ;;  %v6040_v45 = vsub.f32 %v12746_v14, %v5973_v33  ;;  %v6041_v28 = vsub.f32 %v12747_v47, %v5973_v33  ;;  %v6156_v54 = vmul.f32 1.442695, %v6039_v41  ;;  %v12756_v14 = vld [vmem:[#allocation21_spill] sm:$0xff]  ;;  %v12757_v47 = vld [vmem:[#allocation48_spill] sm:$0xff] }
0x130f   :  { %v6201_v5 = vpack.c.bf16 %v8590_v43, %v8592_v16 }
0x1310   :  { %v6158_v18 = vmul.f32 1.442695, %v6040_v45  ;;  %v6160_v24 = vmul.f32 1.442695, %v6041_v28  ;;  %8601 = vpow2.f32 %v6154_v21  ;;  %v12755_v21 = vld [vmem:[#allocation25_spill] sm:$0xff] }
0x1311   :  { %6234 = vmatprep.subr.bf16.mxu0 %v6201_v5  ;;  %v583_v45 = vadd.f32 %v12756_v14, %v12755_v21  ;;  %v12758_v28 = vld [vmem:[#allocation53_spill] sm:$0xff] }
0x1312   :  { %8603 = vpow2.f32 %v6158_v18  ;;  %6235 = vmatpush1.bf16.xpose.msra.mxu0 %v6200_v39  ;;  %v8594_v9 = vpop.eup %8593  ;;  %v12759_v5 = vpack.c.bf16 %v12757_v47, %v12758_v28 }
0x1313   :  { %8605 = vpow2.f32 %v6160_v24  ;;  %v5976_v13 = vpop.xlane.xlu0 %5975  ;;  %v12761_v24 = vld [vmem:[#allocation47_spill] sm:$0xff] }
0x1314   :  { %v8596_v56 = vpop.eup %8595  ;;  %8607 = vpow2.f32 %v6156_v54  ;;  %v6042_v37 = vsub.f32 %v12748_v20, %v5976_v13  ;;  %v6043_v58 = vsub.f32 %v12749_v62, %v5976_v13  ;;  %v12760_v54 = vmov 1.0   ;;  %v12765_v20 = vld [vmem:[#allocation35_spill] sm:$0xff] }
0x1315   :  { %v8598_v3 = vpop.eup %8597  ;;  %v5979_v46 = vpop.xlane.xlu1 %5978  ;;  %v6202_v26 = vpack.c.bf16 %v8596_v56, %v8594_v9  ;;  %v6210_v18 = vpack.c.bf16 %v12760_v54, %v583_v45  ;;  %v12762_v9 = vld [vmem:[#allocation52_spill] sm:$0xff]  ;;  %v12764_v56 = vmov 0   ;;  %v12778_v45 = vld [vmem:[#allocation61_spill] sm:$0xff] }
0x1316   :  { %v8600_v59 = vpop.eup %8599  ;;  %v6162_v27 = vmul.f32 1.442695, %v6042_v37  ;;  %v6164_v1 = vmul.f32 1.442695, %v6043_v58  ;;  %v6044_v30 = vsub.f32 %v12750_v15, %v5979_v46  ;;  %v6045_v40 = vsub.f32 %v12751_v42, %v5979_v46  ;;  %v12766_v37 = vld [vmem:[#allocation64_spill] sm:$0xff]  ;;  %v11678_v58 = vld [vmem:[%s12201_s2] sm:$0xff]  }
0x1317   :  { %v6203_v48 = vpack.c.bf16 %v8598_v3, %v8600_v59  ;;  %v12763_v13 = vpack.c.bf16 %v12761_v24, %v12762_v9  ;;  %v12767_v62 = vpack.c.bf16 %v12765_v20, %v12766_v37  ;;  %v12768_v3 = vld [vmem:[#allocation36_spill] sm:$0xff]  ;;  %v12769_v46 = vld [vmem:[#allocation63_spill] sm:$0xff]  ;;  %v12771_v59 = vld [vmem:[#allocation18_spill] sm:$0xff] }
0x1318   :  { %8609 = vpow2.f32 %v6162_v27  ;;  %v6166_v63 = vmul.f32 1.442695, %v6044_v30  ;;  %v6168_v7 = vmul.f32 1.442695, %v6045_v40  ;;  %v12772_v27 = vld [vmem:[#allocation11_spill] sm:$0xff]  ;;  %v12774_v15 = vld [vmem:[#allocation9_spill] sm:$0xff] }
0x1319   :  { %8611 = vpow2.f32 %v6164_v1  ;;  %6236 = vmatprep.subr.bf16.mxu0 %v6203_v48  ;;  %v12773_v1 = vpack.c.bf16 %v12771_v59, %v12772_v27  ;;  %v12775_v30 = vld [vmem:[#allocation33_spill] sm:$0xff]  ;;  %v11695_v40 = vld [vmem:[%s12201_s2 + $0x8] sm:$0xff]   ;;  %v8738_v48 = vmov 6   ;;  %v8664_v9 = vld [vmem:[%s12199_s0 + $0x20] sm:$0xff] }
0x131a   :  { %8613 = vpow2.f32 %v6166_v63  ;;  %6237 = vmatpush1.bf16.xpose.msra.mxu0 %v6202_v26  ;;  %v8602_v22 = vpop.eup %8601  ;;  %v12770_v26 = vpack.c.bf16 %v12768_v3, %v12769_v46  ;;  %v12776_v42 = vpack.c.bf16 %v12774_v15, %v12775_v30  ;;  %7542 = vset.pattern.permute.xlu0 %v8738_v48  ;;  %v8666_v59 = vld [vmem:[%s12199_s0 + $0x30] sm:$0xff]  ;;  %v8667_v15 = vld [vmem:[%s12199_s0 + $0x38] sm:$0xff] }
0x131b   :  { %8615 = vpow2.f32 %v6168_v7  ;;  %v5982_v32 = vpop.xlane.xlu0 %5981  ;;  %7543 = vset.pattern.permute.xlu1 %v8738_v48  ;;  %6664 = vperm.xlu0 %7542, %v11594_v52  }
0x131c   :  { %v8604_v10 = vpop.eup %8603  ;;  %v6046_v25 = vsub.f32 %v12752_v0, %v5982_v32  ;;  %v6047_v4 = vsub.f32 %v12753_v31, %v5982_v32  ;;  %6668 = vperm.xlu1 %7543, %v11586_v17  }
0x131d   :  { %v8606_v23 = vpop.eup %8605  ;;  %v5985_v53 = vpop.xlane.xlu1 %5984  ;;  %v6204_v36 = vpack.c.bf16 %v8604_v10, %v8602_v22 }
0x131e   :  { %v8608_v61 = vpop.eup %8607  ;;  %v6170_v12 = vmul.f32 1.442695, %v6046_v25  ;;  %v6172_v60 = vmul.f32 1.442695, %v6047_v4  ;;  %v6048_v6 = vsub.f32 %v11557_v44, %v5985_v53  ;;  %v6049_v34 = vsub.f32 %v12754_v35, %v5985_v53  ;;  %v8660_v35 = vld [vmem:[%s12199_s0 + $0x10] sm:$0xff] }
0x131f   :  { %v6205_v57 = vpack.c.bf16 %v8606_v23, %v8608_v61  ;;  %6676 = vperm.xlu0 %7542, %v11609_v11  }
0x1320   :  { %8617 = vpow2.f32 %v6170_v12  ;;  %v6174_v8 = vmul.f32 1.442695, %v6048_v6  ;;  %v6176_v29 = vmul.f32 1.442695, %v6049_v34  ;;  %6672 = vperm.xlu1 %7543, %v11602_v19  }
0x1321   :  { %8619 = vpow2.f32 %v6172_v60  ;;  %6238 = vmatprep.subr.bf16.mxu0 %v6205_v57  ;;  %v8661_v57 = vld [vmem:[%s12199_s0] sm:$0xff] }
0x1322   :  { %v8610_v2 = vpop.eup %8609  ;;  %8621 = vpow2.f32 %v6174_v8  ;;  %6239 = vmatpush1.bf16.xpose.msra.mxu0 %v6204_v36 }
0x1323   :  { %v8612_v49 = vpop.eup %8611  ;;  %8623 = vpow2.f32 %v6176_v29 }
0x1324   :  { %v8614_v38 = vpop.eup %8613 }
0x1325   :  { %v8616_v51 = vpop.eup %8615  ;;  %v6206_v50 = vpack.c.bf16 %v8614_v38, %v8610_v2  ;;  %v12777_v2 = vld [vmem:[#allocation51_spill] sm:$0xff]  ;;  %v8662_v38 = vld [vmem:[%s12199_s0 + $0x18] sm:$0xff] }
0x1326   :  { %v6207_v55 = vpack.c.bf16 %v8616_v51, %v8612_v49 }
0x1328   :  { %6240 = vmatprep.subr.bf16.mxu0 %v6207_v55 }
0x132a   :  { %v8618_v41 = vpop.eup %8617  ;;  %6241 = vmatpush1.bf16.xpose.msra.mxu0 %v6206_v50  ;;  %v8663_v50 = vld [vmem:[%s12199_s0 + $0x8] sm:$0xff] }
0x132b   :  { %v8620_v44 = vpop.eup %8619 }
0x132c   :  { %v8622_v43 = vpop.eup %8621 }
0x132d   :  { %v8624_v33 = vpop.eup %8623  ;;  %v6208_v39 = vpack.c.bf16 %v8622_v43, %v8618_v41 }
0x132e   :  { %v6209_v16 = vpack.c.bf16 %v8624_v33, %v8620_v44 }
0x1330   :  { %6242 = vmatprep.subr.bf16.mxu0 %v6209_v16 }
0x1332   :  { %6243 = vmatpush1.bf16.xpose.msra.mxu0 %v6208_v39 }
0x1333   :  { %6329 = vmatprep.subr.bf16.mxu0 %v12759_v5 }
0x1339   :  { %6245 = vmatmul.mubr.bf16.vlgmr.msra.gmra.mrb[32].mxu0 %v6210_v18  ;;  %v12779_v18 = vld [vmem:[#allocation14_spill] sm:$0xff] }
0x133a   :  { %6330 = vmatpush1.bf16.msra.mxu0 %v12763_v13  ;;  %6361 = vmatprep.mubr.bf16.mxu0 %v12764_v56 }
0x133b   :  { %6331 = vmatprep.subr.bf16.mxu0 %v12767_v62  ;;  %v8665_v62 = vld [vmem:[%s12199_s0 + $0x28] sm:$0xff] }
0x133e   :  { %6332 = vmatpush1.bf16.msra.mxu0 %v12770_v26 }
0x133f   :  { %6382 = vmatprep.subr.bf16.mxu0 %v12773_v1 }
0x1341   :  { %7479 = vmatmul.mubr.msk.bf16.vlgmr.msra.gmra.mrb[36].mxu0 %vm382_vm0, %v11678_v58 }
0x1342   :  { %6383 = vmatpush1.bf16.msra.mxu0 %v12776_v42  ;;  %6371 = vmatprep.mubr.bf16.mxu0 %v12764_v56 }
0x1345   :  { %v11704_v10 = vpop.permute.xlu1 %6302  ;;  %v11706_v0 = vpop.permute.xlu0 %6298 }
0x1349   :  { %7480 = vmatmul.mubr.msk.bf16.gmra.mrb[40].mxu0 %vm382_vm0, %v11695_v40 }
0x134a   :  { %6414 = vmatprep.mubr.bf16.mxu0 %v12764_v56 }
0x134c   :  { %v11709_v53 = vpop.permute.xlu1 %6306 }
0x1350   :  { %v11736_v33 = vpop.permute.xlu1 %6310 }
0x140c   :  { %v6246_v63 = vpop.f32.mrb[32].mxu0 }
0x140d   :  { %v6248_v7 = vpop.f32.mrb[33].mxu0 }
0x140e   :  { %v6250_v22 = vpop.f32.mrb[34].mxu0 }
0x140f   :  { %8625 = vrcp.f32 %v6250_v22  ;;  %v6252_v32 = vpop.f32.mrb[35].mxu0 }
0x1410   :  { %8627 = vrcp.f32 %v6252_v32 }
0x1414   :  { %v6363_v25 = vpop.f32.mrb[36].mxu0 }
0x1415   :  { %v6365_v31 = vpop.f32.mrb[37].mxu0  ;;  %v6364_v4 = vadd.f32 %v6363_v25, %v11706_v0 }
0x1416   :  { %v6367_v23 = vpop.f32.mrb[38].mxu0  ;;  %v6366_v36 = vadd.f32 %v6365_v31, %v11706_v0 }
0x1417   :  { %v6368_v61 = vadd.f32 %v6367_v23, %v11704_v10  ;;  %v6369_v12 = vpop.f32.mrb[39].mxu0  ;;  %v11722_v8 = vadd.f32 %v8661_v57, %v6364_v4 }
0x1418   :  { %v6370_v60 = vadd.f32 %v6369_v12, %v11704_v10  ;;  %v11733_v55 = vadd.f32 %v8663_v50, %v6366_v36 }
0x1419   :  { %v8626_v6 = vpop.eup %8625  ;;  %v11717_v34 = vadd.f32 %v8660_v35, %v6368_v61 }
0x141a   :  { %v8628_v29 = vpop.eup %8627  ;;  %v6260_v49 = vrot.slane %v8626_v6, %v12777_v2  ;;  %v11728_v51 = vadd.f32 %v8662_v38, %v6370_v60 }
0x141b   :  { %v6264_v41 = vrot.slane %v8628_v29, %v12777_v2  ;;  %v6451_v21 = vadd.f32 %v11717_v34, %v11722_v8 }
0x141c   :  { %v6265_v44 = vmul.f32 %v6260_v49, %v6246_v63  ;;  %v6373_v43 = vpop.f32.mrb[40].mxu0  ;;  %v6460_v5 = vadd.f32 %v11728_v51, %v11733_v55 }
0x141d   :  { %v6266_v39 = vmul.f32 %v6264_v41, %v6248_v7  ;;  %v6374_v16 = vadd.f32 %v6373_v43, %v11709_v53  ;;  %v6375_v14 = vpop.f32.mrb[41].mxu0 }
0x141e   :  { %v6295_v47 = vpack.c.bf16 %v6265_v44, %v12778_v45  ;;  %v6376_v28 = vadd.f32 %v6375_v14, %v11709_v53  ;;  %v6377_v54 = vpop.f32.mrb[42].mxu0 }
0x141f   :  { %v6296_v24 = vpack.c.bf16 %v6266_v39, %v12779_v18  ;;  %v11749_v13 = vadd.f32 %v8664_v9, %v6374_v16  ;;  %v6378_v20 = vadd.f32 %v6377_v54, %v11736_v33  ;;  %v6379_v37 = vpop.f32.mrb[43].mxu0  ;;  %v11786_v16 = vpop.permute.xlu1 %6588 }
0x1420   :  { %v11755_v3 = vadd.f32 %v8665_v62, %v6376_v28  ;;  %v6380_v46 = vadd.f32 %v6379_v37, %v11736_v33 }
0x1421   :  { %6384 = vmatprep.subr.bf16.mxu0 %v6296_v24  ;;  %v6452_v26 = vadd.f32 %v6451_v21, %v11749_v13  ;;  %v11762_v27 = vadd.f32 %v8666_v59, %v6378_v20 }
0x1422   :  { %6385 = vmatpush1.bf16.msra.mxu0 %v6295_v47  ;;  %v6461_v1 = vadd.f32 %v6460_v5, %v11755_v3  ;;  %v11768_v30 = vadd.f32 %v8667_v15, %v6380_v46 }
0x1423   :  { %v6453_v42 = vadd.f32 %v6452_v26, %v11762_v27  ;;  %v11788_v37 = vpop.permute.xlu1 %6592 }
0x1424   :  { %v6462_v48 = vadd.f32 %v6461_v1, %v11768_v30 }
0x1425   :  { %7481 = vmatmul.mubr.msk.bf16.vlgmr.msra.gmra.mrb[44].mxu0 %vm382_vm0, %v11678_v58  ;;  %v6454_v63 = vrot.slane %v6453_v42, 4 }
0x1426   :  { %v6463_v7 = vrot.slane %v6462_v48, 4  ;;  %6424 = vmatprep.mubr.bf16.mxu0 %v12764_v56 }
0x1427   :  { %v6455_v22 = vadd.f32 %v6454_v63, %v6453_v42  ;;  %v11790_v42 = vpop.permute.xlu1 %6620 }
0x1428   :  { %v6464_v32 = vadd.f32 %v6463_v7, %v6462_v48 }
0x1429   :  { %v6456_v25 = vrot.slane %v6455_v22, 2 }
0x142a   :  { %v6465_v31 = vrot.slane %v6464_v32, 2 }
0x142b   :  { %v6457_v4 = vadd.f32 %v6456_v25, %v6455_v22 }
0x142c   :  { %v6466_v23 = vadd.f32 %v6465_v31, %v6464_v32  ;;  %v11792_v31 = vpop.permute.xlu1 %6624 }
0x142d   :  { %v6458_v36 = vrot.slane %v6457_v4, 1  ;;  %7482 = vmatmul.mubr.msk.bf16.gmra.mrb[48].mxu0 %vm382_vm0, %v11695_v40 }
0x142e   :  { %v6467_v61 = vrot.slane %v6466_v23, 1  ;;  %6727 = vmatprep.mubr.bf16.mxu0 %v12764_v56 }
0x142f   :  { %v6459_v12 = vadd.f32 %v6458_v36, %v6457_v4 }
0x1430   :  { %v6468_v60 = vadd.f32 %v6467_v61, %v6466_v23 }
0x1431   :  { %v6487_v58 = vmul.f32 0.03125, %v6459_v12  ;;  %v11794_v12 = vpop.permute.xlu1 %6596 }
0x1432   :  { %v6488_v6 = vmul.f32 0.03125, %v6468_v60 }
0x1433   :  { %v6495_v35 = vsub.f32 %v11717_v34, %v6487_v58  ;;  %v6499_v57 = vsub.f32 %v11749_v13, %v6487_v58  ;;  %v6503_v29 = vsub.f32 %v11762_v27, %v6487_v58  ;;  %v6491_v49 = vsub.f32 %v11722_v8, %v6487_v58 }
0x1434   :  { %v6496_v38 = vsub.f32 %v11728_v51, %v6488_v6  ;;  %v6500_v50 = vsub.f32 %v11755_v3, %v6488_v6  ;;  %v6504_v40 = vsub.f32 %v11768_v30, %v6488_v6  ;;  %v6492_v41 = vsub.f32 %v11733_v55, %v6488_v6  ;;  %v11798_v6 = vpop.permute.xlu0 %6600 }
0x1435   :  { %v6507_v44 = vmul.f32 %v6491_v49, %v6491_v49  ;;  %v6511_v43 = vmul.f32 %v6495_v35, %v6495_v35  ;;  %v6515_v39 = vmul.f32 %v6499_v57, %v6499_v57  ;;  %v6519_v47 = vmul.f32 %v6503_v29, %v6503_v29  ;;  %v11796_v60 = vpop.permute.xlu1 %6628 }
0x1436   :  { %v6508_v21 = vmul.f32 %v6492_v41, %v6492_v41  ;;  %v6512_v14 = vmul.f32 %v6496_v38, %v6496_v38  ;;  %v6516_v45 = vmul.f32 %v6500_v50, %v6500_v50  ;;  %v6520_v5 = vmul.f32 %v6504_v40, %v6504_v40 }
0x1437   :  { %v6523_v28 = vadd.f32 %v6511_v43, %v6507_v44 }
0x1438   :  { %v6532_v54 = vadd.f32 %v6512_v14, %v6508_v21 }
0x1439   :  { %v6524_v18 = vadd.f32 %v6523_v28, %v6515_v39 }
0x143a   :  { %v6533_v24 = vadd.f32 %v6532_v54, %v6516_v45 }
0x143b   :  { %v6525_v9 = vadd.f32 %v6524_v18, %v6519_v47 }
0x143c   :  { %v6534_v20 = vadd.f32 %v6533_v24, %v6520_v5 }
0x143d   :  { %v6526_v62 = vrot.slane %v6525_v9, 4 }
0x143e   :  { %v6535_v46 = vrot.slane %v6534_v20, 4 }
0x143f   :  { %v6527_v26 = vadd.f32 %v6526_v62, %v6525_v9 }
0x1440   :  { %v6536_v59 = vadd.f32 %v6535_v46, %v6534_v20  ;;  %v11804_v20 = vpop.permute.xlu1 %6632 }
0x1441   :  { %v6528_v1 = vrot.slane %v6527_v26, 2 }
0x1442   :  { %v6537_v15 = vrot.slane %v6536_v59, 2 }
0x1443   :  { %v6529_v48 = vadd.f32 %v6528_v1, %v6527_v26 }
0x1444   :  { %v6538_v63 = vadd.f32 %v6537_v15, %v6536_v59 }
0x1445   :  { %v6530_v7 = vrot.slane %v6529_v48, 1 }
0x1446   :  { %v6539_v22 = vrot.slane %v6538_v63, 1 }
0x1447   :  { %v6531_v32 = vadd.f32 %v6530_v7, %v6529_v48  ;;  %v11821_v7 = vld [vmem:[%s12202_s3] sm:$0xff]  }
0x1448   :  { %v6540_v25 = vadd.f32 %v6539_v22, %v6538_v63  ;;  %v11829_v22 = vld [vmem:[%s12202_s3 + $0x8] sm:$0xff]  }
0x1449   :  { %v6559_v4 = vmul.f32 0.03125, %v6531_v32  ;;  %v8739_v32 = vmov 7  }
0x144a   :  { %v6560_v23 = vmul.f32 0.03125, %v6540_v25  ;;  %7544 = vset.pattern.permute.xlu1 %v8739_v32  ;;  %7545 = vset.pattern.permute.xlu0 %v8739_v32  ;;  %v8740_v25 = vmov 8  }
0x144b   :  { %v6563_v36 = vadd.f32 1e-05, %v6559_v4  ;;  %6830 = vperm.xlu1 %7544, %v11594_v52   ;;  %6834 = vperm.xlu0 %7545, %v11586_v17  }
0x144c   :  { %v6564_v61 = vadd.f32 1e-05, %v6560_v23 }
0x144d   :  { %8629 = vrsqrt.f32 %v6563_v36 }
0x144e   :  { %8631 = vrsqrt.f32 %v6564_v61 }
0x144f   :  { %6838 = vperm.xlu1 %7544, %v11602_v19   ;;  %7546 = vset.pattern.permute.xlu0 %v8740_v25 }
0x1450   :  { %6984 = vperm.xlu0 %7546, %v11594_v52  }
0x1453   :  { %6842 = vperm.xlu1 %7544, %v11609_v11  }
0x1454   :  { %6996 = vperm.xlu0 %7546, %v11609_v11  }
0x1457   :  { %v8630_v58 = vpop.eup %8629  ;;  %7547 = vset.pattern.permute.xlu1 %v8740_v25 }
0x1458   :  { %v8632_v44 = vpop.eup %8631  ;;  %v6571_v43 = vmul.f32 %v8630_v58, %v6491_v49  ;;  %v6575_v39 = vmul.f32 %v8630_v58, %v6495_v35  ;;  %v6579_v21 = vmul.f32 %v8630_v58, %v6499_v57  ;;  %v6583_v14 = vmul.f32 %v8630_v58, %v6503_v29  ;;  %6988 = vperm.xlu1 %7547, %v11586_v17   ;;  %v8668_v17 = vld [vmem:[%s12199_s0 + $0x50] sm:$0xff] }
0x1459   :  { %v6572_v45 = vmul.f32 %v8632_v44, %v6492_v41  ;;  %v6576_v47 = vmul.f32 %v8632_v44, %v6496_v38  ;;  %v6580_v28 = vmul.f32 %v8632_v44, %v6500_v50  ;;  %v6584_v5 = vmul.f32 %v8632_v44, %v6504_v40 }
0x145a   :  { %v6603_v54 = vmul.f32 %v11786_v16, %v6571_v43  ;;  %v6607_v18 = vmul.f32 %v11788_v37, %v6575_v39  ;;  %v6611_v24 = vmul.f32 %v11794_v12, %v6579_v21  ;;  %v6615_v9 = vmul.f32 %v11798_v6, %v6583_v14  ;;  %v8669_v21 = vld [vmem:[%s12199_s0 + $0x58] sm:$0xff] }
0x145b   :  { %v6604_v62 = vmul.f32 %v11786_v16, %v6572_v45  ;;  %v6608_v35 = vmul.f32 %v11788_v37, %v6576_v47  ;;  %v6612_v57 = vmul.f32 %v11794_v12, %v6580_v28  ;;  %v6616_v29 = vmul.f32 %v11798_v6, %v6584_v5  ;;  %v8670_v45 = vld [vmem:[%s12199_s0 + $0x40] sm:$0xff]  ;;  %v8671_v28 = vld [vmem:[%s12199_s0 + $0x48] sm:$0xff] }
0x145c   :  { %v6635_v49 = vadd.f32 %v11790_v42, %v6603_v54  ;;  %v6639_v38 = vadd.f32 %v11792_v31, %v6607_v18  ;;  %v6643_v26 = vadd.f32 %v11796_v60, %v6611_v24  ;;  %v6647_v59 = vadd.f32 %v11804_v20, %v6615_v9  ;;  %6992 = vperm.xlu1 %7547, %v11602_v19   ;;  %v8672_v9 = vld [vmem:[%s12199_s0 + $0x60] sm:$0xff] }
0x145d   :  { %v6636_v50 = vadd.f32 %v11790_v42, %v6604_v62  ;;  %v6640_v40 = vadd.f32 %v11792_v31, %v6608_v35  ;;  %v6644_v41 = vadd.f32 %v11796_v60, %v6612_v57  ;;  %v6648_v46 = vadd.f32 %v11804_v20, %v6616_v29 }
0x145e   :  { %v6655_v1 = vpack.c.bf16 %v6639_v38, %v6635_v49  ;;  %v6659_v63 = vpack.c.bf16 %v6647_v59, %v6643_v26  ;;  %v8741_v43 = vmov 10   ;;  %v8675_v26 = vld [vmem:[%s12199_s0 + $0x78] sm:$0xff] }
0x145f   :  { %v6656_v15 = vpack.c.bf16 %v6640_v40, %v6636_v50  ;;  %v6660_v48 = vpack.c.bf16 %v6648_v46, %v6644_v41  ;;  %v8674_v40 = vld [vmem:[%s12199_s0 + $0x70] sm:$0xff] }
0x1460   :  { %7548 = vset.pattern.permute.xlu1 %v8741_v43 }
0x1461   :  { %6695 = vmatprep.subr.bf16.mxu0 %v6656_v15  ;;  %7052 = vperm.xlu1 %7548, %v11594_v52  }
0x1462   :  { %6696 = vmatpush1.bf16.msra.mxu0 %v6655_v1 }
0x1463   :  { %6697 = vmatprep.subr.bf16.mxu0 %v6660_v48 }
0x1466   :  { %6698 = vmatpush1.bf16.msra.mxu0 %v6659_v63 }
0x1469   :  { %7485 = vmatmul.mubr.msk.bf16.vlgmr.msra.gmra.mrb[52].mxu0 %vm382_vm0, %v11821_v7 }
0x146a   :  { %6737 = vmatprep.mubr.bf16.mxu0 %v12764_v56 }
0x1471   :  { %7486 = vmatmul.mubr.msk.bf16.gmra.mrb[56].mxu0 %vm382_vm0, %v11829_v22 }
0x1472   :  { %6780 = vmatprep.mubr.bf16.mxu0 %v12764_v56 }
0x14f8   :  { %v6416_v4 = vpop.f32.mrb[44].mxu0 }
0x14f9   :  { %v6418_v23 = vpop.f32.mrb[45].mxu0  ;;  %v6417_v39 = vadd.f32 %v6416_v4, %v11706_v0 }
0x14fa   :  { %v6420_v36 = vpop.f32.mrb[46].mxu0  ;;  %v6419_v11 = vadd.f32 %v6418_v23, %v11706_v0 }
0x14fb   :  { %v6421_v61 = vadd.f32 %v6420_v36, %v11704_v10  ;;  %v6422_v58 = vpop.f32.mrb[47].mxu0  ;;  %v11860_v52 = vadd.f32 %v8670_v45, %v6417_v39 }
0x14fc   :  { %v6423_v44 = vadd.f32 %v6422_v58, %v11704_v10  ;;  %v11866_v5 = vadd.f32 %v8671_v28, %v6419_v11 }
0x14fd   :  { %v11850_v19 = vadd.f32 %v8668_v17, %v6421_v61 }
0x14fe   :  { %v11855_v14 = vadd.f32 %v8669_v21, %v6423_v44 }
0x14ff   :  { %v6469_v24 = vadd.f32 %v11850_v19, %v11860_v52 }
0x1500   :  { %v6426_v10 = vpop.f32.mrb[48].mxu0  ;;  %v6478_v29 = vadd.f32 %v11855_v14, %v11866_v5 }
0x1501   :  { %v6427_v0 = vadd.f32 %v6426_v10, %v11709_v53  ;;  %v6428_v47 = vpop.f32.mrb[49].mxu0 }
0x1502   :  { %v6429_v54 = vadd.f32 %v6428_v47, %v11709_v53  ;;  %v6430_v18 = vpop.f32.mrb[50].mxu0  ;;  %v8673_v53 = vld [vmem:[%s12199_s0 + $0x68] sm:$0xff] }
0x1503   :  { %v11874_v62 = vadd.f32 %v8672_v9, %v6427_v0  ;;  %v6431_v35 = vadd.f32 %v6430_v18, %v11736_v33  ;;  %v6432_v57 = vpop.f32.mrb[51].mxu0 }
0x1504   :  { %v11882_v49 = vadd.f32 %v8673_v53, %v6429_v54  ;;  %v6433_v38 = vadd.f32 %v6432_v57, %v11736_v33 }
0x1505   :  { %v6470_v50 = vadd.f32 %v6469_v24, %v11874_v62  ;;  %v11889_v41 = vadd.f32 %v8674_v40, %v6431_v35 }
0x1506   :  { %v6479_v46 = vadd.f32 %v6478_v29, %v11882_v49  ;;  %v11895_v59 = vadd.f32 %v8675_v26, %v6433_v38 }
0x1507   :  { %v6471_v1 = vadd.f32 %v6470_v50, %v11889_v41 }
0x1508   :  { %v6480_v33 = vadd.f32 %v6479_v46, %v11895_v59 }
0x1509   :  { %v6472_v15 = vrot.slane %v6471_v1, 4 }
0x150a   :  { %v6481_v48 = vrot.slane %v6480_v33, 4 }
0x150b   :  { %v6473_v63 = vadd.f32 %v6472_v15, %v6471_v1 }
0x150c   :  { %v6482_v32 = vadd.f32 %v6481_v48, %v6480_v33 }
0x150d   :  { %v6474_v25 = vrot.slane %v6473_v63, 2 }
0x150e   :  { %v6483_v4 = vrot.slane %v6482_v32, 2 }
0x150f   :  { %v6475_v23 = vadd.f32 %v6474_v25, %v6473_v63 }
0x1510   :  { %v6484_v36 = vadd.f32 %v6483_v4, %v6482_v32 }
0x1511   :  { %v6476_v61 = vrot.slane %v6475_v23, 1 }
0x1512   :  { %v6485_v58 = vrot.slane %v6484_v36, 1 }
0x1513   :  { %v6477_v44 = vadd.f32 %v6476_v61, %v6475_v23 }
0x1514   :  { %v6486_v43 = vadd.f32 %v6485_v58, %v6484_v36 }
0x1515   :  { %v6489_v39 = vmul.f32 0.03125, %v6477_v44 }
0x1516   :  { %v6490_v11 = vmul.f32 0.03125, %v6486_v43 }
0x1517   :  { %v6493_v17 = vsub.f32 %v11860_v52, %v6489_v39  ;;  %v6497_v21 = vsub.f32 %v11850_v19, %v6489_v39  ;;  %v6501_v10 = vsub.f32 %v11874_v62, %v6489_v39  ;;  %v6505_v28 = vsub.f32 %v11889_v41, %v6489_v39 }
0x1518   :  { %v6494_v45 = vsub.f32 %v11866_v5, %v6490_v11  ;;  %v6498_v0 = vsub.f32 %v11855_v14, %v6490_v11  ;;  %v6502_v47 = vsub.f32 %v11882_v49, %v6490_v11  ;;  %v6506_v24 = vsub.f32 %v11895_v59, %v6490_v11 }
0x1519   :  { %v6509_v54 = vmul.f32 %v6493_v17, %v6493_v17  ;;  %v6513_v18 = vmul.f32 %v6497_v21, %v6497_v21  ;;  %v6517_v57 = vmul.f32 %v6501_v10, %v6501_v10  ;;  %v6521_v50 = vmul.f32 %v6505_v28, %v6505_v28 }
0x151a   :  { %v6510_v9 = vmul.f32 %v6494_v45, %v6494_v45  ;;  %v6514_v35 = vmul.f32 %v6498_v0, %v6498_v0  ;;  %v6518_v53 = vmul.f32 %v6502_v47, %v6502_v47  ;;  %v6522_v46 = vmul.f32 %v6506_v24, %v6506_v24 }
0x151b   :  { %v6541_v29 = vadd.f32 %v6513_v18, %v6509_v54 }
0x151c   :  { %v6550_v38 = vadd.f32 %v6514_v35, %v6510_v9 }
0x151d   :  { %v6542_v40 = vadd.f32 %v6541_v29, %v6517_v57 }
0x151e   :  { %v6551_v26 = vadd.f32 %v6550_v38, %v6518_v53 }
0x151f   :  { %v6543_v1 = vadd.f32 %v6542_v40, %v6521_v50 }
0x1520   :  { %v6552_v33 = vadd.f32 %v6551_v26, %v6522_v46 }
0x1521   :  { %v6544_v15 = vrot.slane %v6543_v1, 4 }
0x1522   :  { %v6553_v48 = vrot.slane %v6552_v33, 4 }
0x1523   :  { %v6545_v63 = vadd.f32 %v6544_v15, %v6543_v1  ;;  %v11907_v15 = vpop.permute.xlu1 %6668 }
0x1524   :  { %v6554_v32 = vadd.f32 %v6553_v48, %v6552_v33 }
0x1525   :  { %v6546_v25 = vrot.slane %v6545_v63, 2 }
0x1526   :  { %v6555_v4 = vrot.slane %v6554_v32, 2 }
0x1527   :  { %v6547_v23 = vadd.f32 %v6546_v25, %v6545_v63  ;;  %v11911_v25 = vpop.permute.xlu0 %6664 }
0x1528   :  { %v6556_v36 = vadd.f32 %v6555_v4, %v6554_v32 }
0x1529   :  { %v6548_v61 = vrot.slane %v6547_v23, 1 }
0x152a   :  { %v6557_v58 = vrot.slane %v6556_v36, 1 }
0x152b   :  { %v6549_v44 = vadd.f32 %v6548_v61, %v6547_v23 }
0x152c   :  { %v6558_v43 = vadd.f32 %v6557_v58, %v6556_v36 }
0x152d   :  { %v6561_v39 = vmul.f32 0.03125, %v6549_v44 }
0x152e   :  { %v6562_v11 = vmul.f32 0.03125, %v6558_v43 }
0x152f   :  { %v6565_v54 = vadd.f32 1e-05, %v6561_v39 }
0x1530   :  { %v6566_v18 = vadd.f32 1e-05, %v6562_v11 }
0x1531   :  { %8633 = vrsqrt.f32 %v6565_v54 }
0x1532   :  { %8635 = vrsqrt.f32 %v6566_v18  ;;  %v11942_v18 = vpop.permute.xlu0 %6676 }
0x153b   :  { %v8634_v9 = vpop.eup %8633 }
0x153c   :  { %v8636_v35 = vpop.eup %8635  ;;  %v6585_v57 = vmul.f32 %v8634_v9, %v6505_v28  ;;  %v6573_v29 = vmul.f32 %v8634_v9, %v6493_v17  ;;  %v6577_v53 = vmul.f32 %v8634_v9, %v6497_v21  ;;  %v6581_v38 = vmul.f32 %v8634_v9, %v6501_v10  ;;  %v6729_v50 = vpop.f32.mrb[52].mxu0 }
0x153d   :  { %v6586_v40 = vmul.f32 %v8636_v35, %v6506_v24  ;;  %v6574_v46 = vmul.f32 %v8636_v35, %v6494_v45  ;;  %v6578_v26 = vmul.f32 %v8636_v35, %v6498_v0  ;;  %v6582_v1 = vmul.f32 %v8636_v35, %v6502_v47  ;;  %v6731_v33 = vpop.f32.mrb[53].mxu0 }
0x153e   :  { %v6605_v48 = vmul.f32 %v11786_v16, %v6573_v29  ;;  %v6609_v63 = vmul.f32 %v11788_v37, %v6577_v53  ;;  %v6733_v32 = vpop.f32.mrb[54].mxu0  ;;  %v6617_v0 = vmul.f32 %v11798_v6, %v6585_v57  ;;  %v6613_v4 = vmul.f32 %v11794_v12, %v6581_v38 }
0x153f   :  { %v6606_v28 = vmul.f32 %v11786_v16, %v6574_v46  ;;  %v6610_v17 = vmul.f32 %v11788_v37, %v6578_v26  ;;  %v6614_v21 = vmul.f32 %v11794_v12, %v6582_v1  ;;  %v6618_v10 = vmul.f32 %v11798_v6, %v6586_v40  ;;  %v6735_v45 = vpop.f32.mrb[55].mxu0 }
0x1540   :  { %v6637_v47 = vadd.f32 %v11790_v42, %v6605_v48  ;;  %v6641_v24 = vadd.f32 %v11792_v31, %v6609_v63  ;;  %v11926_v61 = vadd.f32 %v6733_v32, %v11907_v15  ;;  %v11929_v58 = vadd.f32 %v6735_v45, %v11907_v15 }
0x1541   :  { %v6638_v23 = vadd.f32 %v11790_v42, %v6606_v28  ;;  %v6642_v36 = vadd.f32 %v11792_v31, %v6610_v17  ;;  %v6646_v16 = vadd.f32 %v11796_v60, %v6614_v21  ;;  %v6650_v37 = vadd.f32 %v11804_v20, %v6618_v10  ;;  %v11937_v42 = vpop.permute.xlu1 %6672  ;;  %v11985_v10 = vld [vmem:[#allocation3] sm:$0xff]  }
0x1542   :  { %v11932_v44 = vadd.f32 %v6729_v50, %v11911_v25  ;;  %v11935_v12 = vadd.f32 %v6731_v33, %v11911_v25  ;;  %v6657_v31 = vpack.c.bf16 %v6641_v24, %v6637_v47  ;;  %v6645_v43 = vadd.f32 %v11796_v60, %v6613_v4  ;;  %v8678_v47 = vld [vmem:[%s12205_s6 + $0x10] sm:$0xff]  ;;  %v8679_v24 = vld [vmem:[%s12205_s6 + $0x18] sm:$0xff] }
0x1543   :  { %v6658_v6 = vpack.c.bf16 %v6642_v36, %v6638_v23  ;;  %v6649_v39 = vadd.f32 %v11804_v20, %v6617_v0  ;;  %v12379_v11 = vmax.f32 %v11929_v58, 0.0  ;;  %v6662_v9 = vpack.c.bf16 %v6650_v37, %v6646_v16  ;;  %v8677_v0 = vld [vmem:[%s12205_s6 + $0x8] sm:$0xff] }
0x1544   :  { %v6739_v54 = vpop.f32.mrb[56].mxu0  ;;  %v12380_v57 = vmax.f32 %v11935_v12, 0.0  ;;  %v12381_v29 = vmax.f32 %v11926_v61, 0.0  ;;  %v12382_v53 = vmax.f32 %v11932_v44, 0.0  ;;  %v8742_v45 = vmov 9  }
0x1545   :  { %6748 = vmatprep.subr.bf16.mxu0 %v6658_v6  ;;  %v6741_v35 = vpop.f32.mrb[57].mxu0  ;;  %v11948_v60 = vadd.f32 %v6739_v54, %v11937_v42  ;;  %v6661_v26 = vpack.c.bf16 %v6649_v39, %v6645_v43  ;;  %7549 = vset.pattern.permute.xlu0 %v8742_v45  ;;  %v12010_v37 = vpop.permute.xlu1 %6830 }
0x1546   :  { %6749 = vmatpush1.bf16.msra.mxu0 %v6657_v31  ;;  %v6743_v38 = vpop.f32.mrb[58].mxu0  ;;  %v11951_v20 = vadd.f32 %v6741_v35, %v11937_v42  ;;  %v6822_v46 = vpack.c.bf16 %v12379_v11, %v12380_v57  ;;  %v6821_v32 = vpack.c.bf16 %v12381_v29, %v12382_v53  ;;  %7550 = vset.pattern.permute.xlu1 %v8742_v45 }
0x1547   :  { %6750 = vmatprep.subr.bf16.mxu0 %v6662_v9  ;;  %v6745_v50 = vpop.f32.mrb[59].mxu0  ;;  %v11954_v40 = vadd.f32 %v6743_v38, %v11942_v18  ;;  %v12376_v48 = vmax.f32 %v11948_v60, 0.0  ;;  %7132 = vperm.xlu1 %7550, %v8677_v0  }
0x1548   :  { %v11961_v1 = vadd.f32 %v6745_v50, %v11942_v18  ;;  %v12378_v33 = vmax.f32 %v11951_v20, 0.0 }
0x1549   :  { %v12375_v63 = vmax.f32 %v11954_v40, 0.0 }
0x154a   :  { %6751 = vmatpush1.bf16.msra.mxu0 %v6661_v26  ;;  %v12377_v28 = vmax.f32 %v11961_v1, 0.0 }
0x154b   :  { %6861 = vmatprep.subr.bf16.mxu0 %v6822_v46  ;;  %v6825_v21 = vpack.c.bf16 %v12375_v63, %v12376_v48  ;;  %7136 = vperm.xlu1 %7550, %v8678_v47   ;;  %v12029_v46 = vpop.permute.xlu1 %6838  ;;  %v12047_v47 = vpop.permute.xlu0 %6834 }
0x154c   :  { %v6826_v17 = vpack.c.bf16 %v12377_v28, %v12378_v33 }
0x154d   :  { %7487 = vmatmul.mubr.msk.bf16.vlgmr.msra.gmra.mrb[60].mxu0 %vm382_vm0, %v11821_v7  ;;  %v11990_v7 = vld [vmem:[#allocation3 + $0x8] sm:$0xff]  }
0x154e   :  { %6790 = vmatprep.mubr.bf16.mxu0 %v12764_v56  ;;  %6862 = vmatpush1.bf16.msra.mxu0 %v6821_v32 }
0x154f   :  { %6863 = vmatprep.subr.bf16.mxu0 %v6826_v17 }
0x1552   :  { %6864 = vmatpush1.bf16.msra.mxu0 %v6825_v21 }
0x1555   :  { %7488 = vmatmul.mubr.msk.bf16.gmra.mrb[64].mxu0 %vm382_vm0, %v11829_v22  ;;  %v8676_v22 = vld [vmem:[%s12205_s6] sm:$0xff] }
0x1556   :  { %6893 = vmatprep.mubr.bf16.mxu0 %v12764_v56  ;;  %7128 = vperm.xlu0 %7549, %v8676_v22  }
0x155a   :  { %7140 = vperm.xlu0 %7549, %v8679_v24  }
0x155d   :  { %7491 = vmatmul.mubr.msk.bf16.vlgmr.msra.gmra.mrb[68].mxu0 %vm382_vm0, %v11985_v10 }
0x155e   :  { %6903 = vmatprep.mubr.bf16.mxu0 %v12764_v56 }
0x1565   :  { %7492 = vmatmul.mubr.msk.bf16.gmra.mrb[72].mxu0 %vm382_vm0, %v11990_v7 }
0x1566   :  { %6946 = vmatprep.mubr.bf16.mxu0 %v12764_v56 }
0x1620   :  { %v6782_v4 = vpop.f32.mrb[60].mxu0 }
0x1621   :  { %v6784_v23 = vpop.f32.mrb[61].mxu0  ;;  %v12013_v6 = vadd.f32 %v6782_v4, %v11911_v25 }
0x1622   :  { %v12008_v36 = vadd.f32 %v6784_v23, %v11911_v25  ;;  %v6786_v16 = vpop.f32.mrb[62].mxu0 }
0x1623   :  { %v12016_v31 = vadd.f32 %v6786_v16, %v11907_v15  ;;  %v6788_v43 = vpop.f32.mrb[63].mxu0  ;;  %v12372_v38 = vmax.f32 %v12013_v6, 0.0  ;;  %v12052_v16 = vpop.permute.xlu1 %6842 }
0x1624   :  { %v12019_v39 = vadd.f32 %v6788_v43, %v11907_v15  ;;  %v12368_v9 = vmax.f32 %v12008_v36, 0.0 }
0x1625   :  { %v12371_v54 = vmax.f32 %v12016_v31, 0.0 }
0x1626   :  { %v12367_v35 = vmax.f32 %v12019_v39, 0.0 }
0x1627   :  { %v6823_v15 = vpack.c.bf16 %v12371_v54, %v12372_v38  ;;  %v12069_v38 = vpop.permute.xlu1 %6988 }
0x1628   :  { %v6824_v25 = vpack.c.bf16 %v12367_v35, %v12368_v9  ;;  %v6792_v50 = vpop.f32.mrb[64].mxu0 }
0x1629   :  { %v6794_v26 = vpop.f32.mrb[65].mxu0  ;;  %v12039_v21 = vadd.f32 %v6792_v50, %v11937_v42 }
0x162a   :  { %v12036_v32 = vadd.f32 %v6794_v26, %v11937_v42  ;;  %v6796_v17 = vpop.f32.mrb[66].mxu0  ;;  %6914 = vmatprep.subr.bf16.mxu0 %v6824_v25 }
0x162b   :  { %v12042_v45 = vadd.f32 %v6796_v17, %v11942_v18  ;;  %v6798_v22 = vpop.f32.mrb[67].mxu0  ;;  %6915 = vmatpush1.bf16.msra.mxu0 %v6823_v15  ;;  %v12374_v42 = vmax.f32 %v12039_v21, 0.0  ;;  %v12080_v48 = vpop.permute.xlu1 %6992 }
0x162c   :  { %v12045_v0 = vadd.f32 %v6798_v22, %v11942_v18  ;;  %v12370_v4 = vmax.f32 %v12036_v32, 0.0  ;;  %v12065_v22 = vpop.permute.xlu0 %6984 }
0x162d   :  { %v12373_v24 = vmax.f32 %v12042_v45, 0.0 }
0x162e   :  { %v12369_v23 = vmax.f32 %v12045_v0, 0.0 }
0x162f   :  { %v6827_v18 = vpack.c.bf16 %v12373_v24, %v12374_v42 }
0x1630   :  { %v6828_v43 = vpack.c.bf16 %v12369_v23, %v12370_v4  ;;  %v6895_v25 = vpop.f32.mrb[68].mxu0  ;;  %v12084_v33 = vpop.permute.xlu0 %6996 }
0x1631   :  { %v6896_v50 = vadd.f32 %v6895_v25, %v12010_v37  ;;  %v6897_v15 = vpop.f32.mrb[69].mxu0 }
0x1632   :  { %6916 = vmatprep.subr.bf16.mxu0 %v6828_v43  ;;  %v6898_v26 = vadd.f32 %v6897_v15, %v12010_v37  ;;  %v6899_v17 = vpop.f32.mrb[70].mxu0 }
0x1633   :  { %6917 = vmatpush1.bf16.msra.mxu0 %v6827_v18  ;;  %v6967_v35 = vmax.f32 %v6896_v50, 0.0  ;;  %v6900_v9 = vadd.f32 %v6899_v17, %v12047_v47  ;;  %v6901_v23 = vpop.f32.mrb[71].mxu0 }
0x1634   :  { %v6968_v4 = vmax.f32 %v6898_v26, 0.0  ;;  %v6902_v54 = vadd.f32 %v6901_v23, %v12047_v47 }
0x1635   :  { %v6971_v24 = vmax.f32 %v6900_v9, 0.0  ;;  %v6999_v25 = vmul.f32 %v12065_v22, %v6967_v35 }
0x1636   :  { %7493 = vmatmul.mubr.msk.bf16.vlgmr.msra.gmra.mrb[76].mxu0 %vm382_vm0, %v11985_v10  ;;  %v6972_v43 = vmax.f32 %v6902_v54, 0.0  ;;  %v7000_v15 = vmul.f32 %v12065_v22, %v6968_v4 }
0x1637   :  { %v7003_v18 = vmul.f32 %v12069_v38, %v6971_v24  ;;  %6956 = vmatprep.mubr.bf16.mxu0 %v12764_v56 }
0x1638   :  { %v7004_v50 = vmul.f32 %v12069_v38, %v6972_v43  ;;  %v6905_v26 = vpop.f32.mrb[72].mxu0 }
0x1639   :  { %v6906_v23 = vadd.f32 %v6905_v26, %v12029_v46  ;;  %v6907_v17 = vpop.f32.mrb[73].mxu0  ;;  %v7015_v42 = vadd.f32 %v7003_v18, %v6999_v25 }
0x163a   :  { %v6908_v9 = vadd.f32 %v6907_v17, %v12029_v46  ;;  %v6909_v35 = vpop.f32.mrb[74].mxu0  ;;  %v7024_v63 = vadd.f32 %v7004_v50, %v7000_v15 }
0x163b   :  { %v6975_v10 = vmax.f32 %v6906_v23, 0.0  ;;  %v6910_v54 = vadd.f32 %v6909_v35, %v12052_v16  ;;  %v6911_v4 = vpop.f32.mrb[75].mxu0 }
0x163c   :  { %v6976_v24 = vmax.f32 %v6908_v9, 0.0  ;;  %v6912_v28 = vadd.f32 %v6911_v4, %v12052_v16 }
0x163d   :  { %v6979_v43 = vmax.f32 %v6910_v54, 0.0  ;;  %v7007_v26 = vmul.f32 %v12080_v48, %v6975_v10 }
0x163e   :  { %v6980_v11 = vmax.f32 %v6912_v28, 0.0  ;;  %v7008_v25 = vmul.f32 %v12080_v48, %v6976_v24  ;;  %7494 = vmatmul.mubr.msk.bf16.gmra.mrb[80].mxu0 %vm382_vm0, %v11990_v7  ;;  %v12093_v7 = vpop.permute.xlu1 %7052 }
0x163f   :  { %v7016_v15 = vadd.f32 %v7015_v42, %v7007_v26  ;;  %v7011_v18 = vmul.f32 %v12084_v33, %v6979_v43  ;;  %7244 = vmatprep.mubr.bf16.mxu0 %v12764_v56 }
0x1640   :  { %v7025_v50 = vadd.f32 %v7024_v63, %v7008_v25  ;;  %v7012_v23 = vmul.f32 %v12084_v33, %v6980_v11 }
0x1641   :  { %v7017_v17 = vadd.f32 %v7016_v15, %v7011_v18 }
0x1642   :  { %v7026_v9 = vadd.f32 %v7025_v50, %v7012_v23 }
0x1643   :  { %v7018_v35 = vrot.slane %v7017_v17, 4 }
0x1644   :  { %v7027_v54 = vrot.slane %v7026_v9, 4 }
0x1645   :  { %v7019_v4 = vadd.f32 %v7018_v35, %v7017_v17 }
0x1646   :  { %v7028_v10 = vadd.f32 %v7027_v54, %v7026_v9 }
0x1647   :  { %v7020_v28 = vrot.slane %v7019_v4, 2 }
0x1648   :  { %v7029_v57 = vrot.slane %v7028_v10, 2 }
0x1649   :  { %v7021_v24 = vadd.f32 %v7020_v28, %v7019_v4  ;;  %v12781_v4 = vmax.f32 %v11926_v61, 0.0  ;;  %v12782_v28 = vmax.f32 %v11935_v12, 0.0  ;;  %v12787_v61 = vmax.f32 %v11954_v40, 0.0 }
0x164a   :  { %v7030_v29 = vadd.f32 %v7029_v57, %v7028_v10 }
0x164b   :  { %v7022_v53 = vrot.slane %v7021_v24, 1 }
0x164c   :  { %v7031_v42 = vrot.slane %v7030_v29, 1 }
0x164d   :  { %v7023_v43 = vadd.f32 %v7022_v53, %v7021_v24  ;;  %v12780_v53 = vmax.f32 %v11932_v44, 0.0  ;;  %v12786_v44 = vmax.f32 %v11948_v60, 0.0  ;;  %v12126_v60 = vld [vmem:[%s12204_s5 + $0x8] sm:$0xff]  }
0x164e   :  { %v7032_v26 = vadd.f32 %v7031_v42, %v7030_v29  ;;  %v12783_v42 = vmax.f32 %v11929_v58, 0.0 }
0x164f   :  { %v7055_v63 = vadd.f32 %v12093_v7, %v7023_v43 }
0x1650   :  { %v7056_v11 = vadd.f32 %v12093_v7, %v7032_v26  ;;  %v12784_v26 = vmax.f32 %v11951_v20, 0.0  ;;  %v12118_v20 = vld [vmem:[%s12204_s5] sm:$0xff]   ;;  %s8743_s5 = smov [#allocation6]  }
0x1651   :  { %v7495_v25 = vmul.f32 -1.442695, %v7055_v63  ;;  %s7303_s1 = sshll.u32 %s8743_s5, 4  ;;  %s7304_s1 = int_to_ptr.vmem [resolvable:$true] %s7303_s1 }
0x1652   :  { %v7496_v15 = vmul.f32 -1.442695, %v7056_v11  ;;  %v12785_v11 = vmax.f32 %v11961_v1, 0.0  ;;  %s8702_s3 = scalar_lea.vmem %s7304_s1, 2048  ;;  %p8707_p9 = scmp.lt.s32.totalorder %s7304_s1, %s7304_s1 }
0x1653   :  { %8637 = vpow2.f32 %v7495_v25  ;;  %p8703_p8 = scmp.ne.s32.totalorder %s7304_s1, %s8702_s3  ;;  %p8708_p10 = scmp.lt.s32.totalorder %s8702_s3, %s8702_s3 }
0x1654   :  { %8639 = vpow2.f32 %v7496_v15 }
0x1655   :  { %p8709_p11 = por %p8708_p10, %p8707_p9 }
0x1657   :  { %p8710_p12 = pnand %p8709_p11, %p8703_p8 }
0x165d   :  { %v8638_v18 = vpop.eup %8637 }
0x165e   :  { %v8640_v50 = vpop.eup %8639  ;;  %v7071_v23 = vadd.f32 1.0, %v8638_v18 }
0x165f   :  { %v7072_v17 = vadd.f32 1.0, %v8640_v50 }
0x1660   :  { %8641 = vrcp.f32 %v7071_v23 }
0x1661   :  { %8643 = vrcp.f32 %v7072_v17 }
0x166a   :  { %v8642_v57 = vpop.eup %8641 }
0x166b   :  { %v8644_v9 = vpop.eup %8643  ;;  %v7090_v35 = vrot.slane %v8642_v57, %v12777_v2 }
0x166c   :  { %v7094_v29 = vrot.slane %v8644_v9, %v12777_v2 }
0x166d   :  { %v7103_v54 = vmul.f32 %v7090_v35, %v12780_v53  ;;  %v7107_v10 = vmul.f32 %v7090_v35, %v12781_v4  ;;  %v7111_v50 = vmul.f32 %v7090_v35, %v12786_v44  ;;  %v7115_v23 = vmul.f32 %v7090_v35, %v12787_v61 }
0x166e   :  { %v7104_v24 = vmul.f32 %v7094_v29, %v12782_v28  ;;  %v7108_v43 = vmul.f32 %v7094_v29, %v12783_v42  ;;  %v7112_v63 = vmul.f32 %v7094_v29, %v12784_v26  ;;  %v7116_v25 = vmul.f32 %v7094_v29, %v12785_v11 }
0x166f   :  { %v7119_v18 = vpack.c.bf16 %v7107_v10, %v7103_v54  ;;  %v7123_v58 = vpack.c.bf16 %v7115_v23, %v7111_v50 }
0x1670   :  { %v7120_v15 = vpack.c.bf16 %v7108_v43, %v7104_v24  ;;  %v7124_v12 = vpack.c.bf16 %v7116_v25, %v7112_v63 }
0x1672   :  { %7159 = vmatprep.subr.bf16.mxu1 %v7120_v15 }
0x1673   :  { %7160 = vmatpush1.bf16.msra.mxu1 %v7119_v18 }
0x1674   :  { %7161 = vmatprep.subr.bf16.mxu1 %v7124_v12 }
0x1677   :  { %7162 = vmatpush1.bf16.msra.mxu1 %v7123_v58 }
0x167a   :  { %7501 = vmatmul.mubr.msk.bf16.vlgmr.msra.gmra.mrb[44].mxu1 %vm382_vm0, %v12118_v20 }
0x167b   :  { %7201 = vmatprep.mubr.bf16.mxu1 %v12764_v56 }
0x1682   :  { %7502 = vmatmul.mubr.msk.bf16.gmra.mrb[48].mxu1 %vm382_vm0, %v12126_v60 }
0x1709   :  { %v6948_v40 = vpop.f32.mrb[76].mxu0 }
0x170a   :  { %v6949_v1 = vadd.f32 %v6948_v40, %v12010_v37  ;;  %v6950_v17 = vpop.f32.mrb[77].mxu0 }
0x170b   :  { %v6951_v57 = vadd.f32 %v6950_v17, %v12010_v37  ;;  %v6952_v9 = vpop.f32.mrb[78].mxu0 }
0x170c   :  { %v6969_v35 = vmax.f32 %v6949_v1, 0.0  ;;  %v6953_v29 = vadd.f32 %v6952_v9, %v12047_v47  ;;  %v6954_v53 = vpop.f32.mrb[79].mxu0 }
0x170d   :  { %v6970_v54 = vmax.f32 %v6951_v57, 0.0  ;;  %v6955_v4 = vadd.f32 %v6954_v53, %v12047_v47 }
0x170e   :  { %v6973_v10 = vmax.f32 %v6953_v29, 0.0  ;;  %v7001_v24 = vmul.f32 %v12065_v22, %v6969_v35 }
0x170f   :  { %v6974_v28 = vmax.f32 %v6955_v4, 0.0  ;;  %v7002_v43 = vmul.f32 %v12065_v22, %v6970_v54 }
0x1710   :  { %v7005_v42 = vmul.f32 %v12069_v38, %v6973_v10 }
0x1711   :  { %v7006_v26 = vmul.f32 %v12069_v38, %v6974_v28  ;;  %v6958_v63 = vpop.f32.mrb[80].mxu0 }
0x1712   :  { %v7033_v37 = vadd.f32 %v7005_v42, %v7001_v24  ;;  %v6959_v11 = vadd.f32 %v6958_v63, %v12029_v46  ;;  %v6960_v25 = vpop.f32.mrb[81].mxu0 }
0x1713   :  { %v7042_v15 = vadd.f32 %v7006_v26, %v7002_v43  ;;  %v6961_v18 = vadd.f32 %v6960_v25, %v12029_v46  ;;  %v6962_v44 = vpop.f32.mrb[82].mxu0 }
0x1714   :  { %v6977_v47 = vmax.f32 %v6959_v11, 0.0  ;;  %v6963_v50 = vadd.f32 %v6962_v44, %v12052_v16  ;;  %v6964_v61 = vpop.f32.mrb[83].mxu0 }
0x1715   :  { %v6978_v23 = vmax.f32 %v6961_v18, 0.0  ;;  %v6965_v12 = vadd.f32 %v6964_v61, %v12052_v16 }
0x1716   :  { %v7009_v22 = vmul.f32 %v12080_v48, %v6977_v47  ;;  %v6981_v58 = vmax.f32 %v6963_v50, 0.0 }
0x1717   :  { %v7010_v38 = vmul.f32 %v12080_v48, %v6978_v23  ;;  %v6982_v40 = vmax.f32 %v6965_v12, 0.0  ;;  %v12788_v12 = vmax.f32 %v12013_v6, 0.0  ;;  %v12794_v6 = vmax.f32 %v12039_v21, 0.0 }
0x1718   :  { %v7034_v1 = vadd.f32 %v7033_v37, %v7009_v22  ;;  %v7013_v17 = vmul.f32 %v12084_v33, %v6981_v58 }
0x1719   :  { %v7043_v57 = vadd.f32 %v7042_v15, %v7010_v38  ;;  %v7014_v46 = vmul.f32 %v12084_v33, %v6982_v40  ;;  %v12790_v38 = vmax.f32 %v12008_v36, 0.0 }
0x171a   :  { %v7035_v9 = vadd.f32 %v7034_v1, %v7013_v17  ;;  %v12791_v1 = vmax.f32 %v12019_v39, 0.0 }
0x171b   :  { %v7044_v35 = vadd.f32 %v7043_v57, %v7014_v46  ;;  %v12792_v57 = vmax.f32 %v12036_v32, 0.0 }
0x171c   :  { %v7036_v29 = vrot.slane %v7035_v9, 4 }
0x171d   :  { %v7045_v53 = vrot.slane %v7044_v35, 4 }
0x171e   :  { %v7037_v54 = vadd.f32 %v7036_v29, %v7035_v9  ;;  %v12793_v9 = vmax.f32 %v12045_v0, 0.0 }
0x171f   :  { %v7046_v4 = vadd.f32 %v7045_v53, %v7044_v35 }
0x1720   :  { %v7038_v10 = vrot.slane %v7037_v54, 2 }
0x1721   :  { %v7047_v16 = vrot.slane %v7046_v4, 2 }
0x1722   :  { %v7039_v28 = vadd.f32 %v7038_v10, %v7037_v54  ;;  %v7133_v10 = vpop.permute.xlu1 %7132 }
0x1723   :  { %v7048_v24 = vadd.f32 %v7047_v16, %v7046_v4  ;;  %v7129_v4 = vpop.permute.xlu0 %7128 }
0x1724   :  { %v7040_v42 = vrot.slane %v7039_v28, 1 }
0x1725   :  { %v7049_v43 = vrot.slane %v7048_v24, 1 }
0x1726   :  { %v7041_v48 = vadd.f32 %v7040_v42, %v7039_v28 }
0x1727   :  { %v7050_v26 = vadd.f32 %v7049_v43, %v7048_v24 }
0x1728   :  { %v7057_v63 = vadd.f32 %v12093_v7, %v7041_v48 }
0x1729   :  { %v7058_v37 = vadd.f32 %v12093_v7, %v7050_v26  ;;  %v12789_v7 = vmax.f32 %v12016_v31, 0.0  ;;  %v12795_v31 = vmax.f32 %v12042_v45, 0.0 }
0x172a   :  { %v7497_v11 = vmul.f32 -1.442695, %v7057_v63 }
0x172b   :  { %v7498_v33 = vmul.f32 -1.442695, %v7058_v37  ;;  %v7137_v37 = vpop.permute.xlu1 %7136 }
0x172c   :  { %8645 = vpow2.f32 %v7497_v11  ;;  %v7141_v11 = vpop.permute.xlu0 %7140 }
0x172d   :  { %8647 = vpow2.f32 %v7498_v33 }
0x1736   :  { %v8646_v25 = vpop.eup %8645 }
0x1737   :  { %v8648_v15 = vpop.eup %8647  ;;  %v7073_v18 = vadd.f32 1.0, %v8646_v25 }
0x1738   :  { %v7074_v44 = vadd.f32 1.0, %v8648_v15 }
0x1739   :  { %8649 = vrcp.f32 %v7073_v18 }
0x173a   :  { %8651 = vrcp.f32 %v7074_v44 }
0x1743   :  { %v8650_v47 = vpop.eup %8649 }
0x1744   :  { %v8652_v50 = vpop.eup %8651  ;;  %v7098_v61 = vrot.slane %v8650_v47, %v12777_v2 }
0x1745   :  { %v7102_v23 = vrot.slane %v8652_v50, %v12777_v2 }
0x1746   :  { %v7105_v22 = vmul.f32 %v7098_v61, %v12788_v12  ;;  %v7109_v58 = vmul.f32 %v7098_v61, %v12789_v7  ;;  %v7113_v53 = vmul.f32 %v7098_v61, %v12794_v6  ;;  %v7117_v54 = vmul.f32 %v7098_v61, %v12795_v31 }
0x1747   :  { %v7106_v40 = vmul.f32 %v7102_v23, %v12790_v38  ;;  %v7110_v17 = vmul.f32 %v7102_v23, %v12791_v1  ;;  %v7114_v46 = vmul.f32 %v7102_v23, %v12792_v57  ;;  %v7118_v35 = vmul.f32 %v7102_v23, %v12793_v9 }
0x1748   :  { %v7121_v2 = vpack.c.bf16 %v7109_v58, %v7105_v22  ;;  %v7125_v28 = vpack.c.bf16 %v7117_v54, %v7113_v53 }
0x1749   :  { %v7122_v29 = vpack.c.bf16 %v7110_v17, %v7106_v40  ;;  %v7126_v36 = vpack.c.bf16 %v7118_v35, %v7114_v46 }
0x174b   :  { %7212 = vmatprep.subr.bf16.mxu0 %v7122_v29 }
0x174c   :  { %7213 = vmatpush1.bf16.msra.mxu0 %v7121_v2 }
0x174d   :  { %v7193_v39 = vpop.f32.mrb[44].mxu1  ;;  %7214 = vmatprep.subr.bf16.mxu0 %v7126_v36 }
0x174e   :  { %v7194_v32 = vadd.f32 %v7193_v39, %v7129_v4  ;;  %v7195_v16 = vpop.f32.mrb[45].mxu1 }
0x174f   :  { %v7196_v0 = vadd.f32 %v7195_v16, %v7129_v4  ;;  %v7197_v24 = vpop.f32.mrb[46].mxu1 }
0x1750   :  { %v7265_v42 = vadd.f32 %v7194_v32, %v11722_v8  ;;  %v7198_v43 = vadd.f32 %v7197_v24, %v7133_v10  ;;  %v7199_v21 = vpop.f32.mrb[47].mxu1  ;;  %7215 = vmatpush1.bf16.msra.mxu0 %v7125_v28 }
0x1751   :  { %v7266_v45 = vadd.f32 %v7196_v0, %v11733_v55  ;;  %v7200_v48 = vadd.f32 %v7199_v21, %v7133_v10 }
0x1752   :  { %7281 = vst [vmem:[#allocation6] sm:$0xff] %v7265_v42  ;;  %v7269_v26 = vadd.f32 %v7198_v43, %v11717_v34 }
0x1753   :  { %7282 = vst [vmem:[#allocation6 + $0x8] sm:$0xff] %v7266_v45  ;;  %v7270_v63 = vadd.f32 %v7200_v48, %v11728_v51  ;;  %7503 = vmatmul.mubr.msk.bf16.vlgmr.msra.gmra.mrb[84].mxu0 %vm382_vm0, %v12118_v20 }
0x1754   :  { %7283 = vst [vmem:[#allocation6 + $0x10] sm:$0xff] %v7269_v26  ;;  %7254 = vmatprep.mubr.bf16.mxu0 %v12764_v56 }
0x1755   :  { %7284 = vst [vmem:[#allocation6 + $0x18] sm:$0xff] %v7270_v63  ;;  %v7203_v8 = vpop.f32.mrb[48].mxu1 }
0x1756   :  { %v7204_v33 = vadd.f32 %v7203_v8, %v7137_v37  ;;  %v7205_v25 = vpop.f32.mrb[49].mxu1 }
0x1757   :  { %v7206_v55 = vadd.f32 %v7205_v25, %v7137_v37  ;;  %v7207_v15 = vpop.f32.mrb[50].mxu1 }
0x1758   :  { %v7273_v18 = vadd.f32 %v7204_v33, %v11749_v13  ;;  %v7208_v34 = vadd.f32 %v7207_v15, %v7141_v11  ;;  %v7209_v44 = vpop.f32.mrb[51].mxu1 }
0x1759   :  { %v7274_v51 = vadd.f32 %v7206_v55, %v11755_v3  ;;  %v7210_v47 = vadd.f32 %v7209_v44, %v7141_v11 }
0x175a   :  { %7285 = vst [vmem:[#allocation6 + $0x20] sm:$0xff] %v7273_v18  ;;  %v7277_v20 = vadd.f32 %v7208_v34, %v11762_v27 }
0x175b   :  { %7286 = vst [vmem:[#allocation6 + $0x28] sm:$0xff] %v7274_v51  ;;  %v7278_v56 = vadd.f32 %v7210_v47, %v11768_v30  ;;  %7504 = vmatmul.mubr.msk.bf16.gmra.mrb[88].mxu0 %vm382_vm0, %v12126_v60 }
0x175c   :  { %7287 = vst [vmem:[#allocation6 + $0x30] sm:$0xff] %v7277_v20 }
0x175d   :  { %7288 = vst [vmem:[#allocation6 + $0x38] sm:$0xff] %v7278_v56 }
0x1826   :  { %v7246_v50 = vpop.f32.mrb[84].mxu0 }
0x1827   :  { %v7247_v61 = vadd.f32 %v7246_v50, %v7129_v4  ;;  %v7248_v23 = vpop.f32.mrb[85].mxu0 }
0x1828   :  { %v7249_v13 = vadd.f32 %v7248_v23, %v7129_v4  ;;  %v7250_v12 = vpop.f32.mrb[86].mxu0 }
0x1829   :  { %v7267_v22 = vadd.f32 %v7247_v61, %v11860_v52  ;;  %v7251_v3 = vadd.f32 %v7250_v12, %v7133_v10  ;;  %v7252_v7 = vpop.f32.mrb[87].mxu0 }
0x182a   :  { %v7268_v58 = vadd.f32 %v7249_v13, %v11866_v5  ;;  %v7253_v27 = vadd.f32 %v7252_v7, %v7133_v10 }
0x182b   :  { %7290 = vst [vmem:[#allocation6 + $0x40] sm:$0xff] %v7267_v22  ;;  %v7271_v30 = vadd.f32 %v7251_v3, %v11850_v19 }
0x182c   :  { %7291 = vst [vmem:[#allocation6 + $0x48] sm:$0xff] %v7268_v58  ;;  %v7272_v60 = vadd.f32 %v7253_v27, %v11855_v14 }
0x182d   :  { %7292 = vst [vmem:[#allocation6 + $0x50] sm:$0xff] %v7271_v30 }
0x182e   :  { %7293 = vst [vmem:[#allocation6 + $0x58] sm:$0xff] %v7272_v60  ;;  %v7256_v38 = vpop.f32.mrb[88].mxu0 }
0x182f   :  { %v7257_v40 = vadd.f32 %v7256_v38, %v7137_v37  ;;  %v7258_v1 = vpop.f32.mrb[89].mxu0 }
0x1830   :  { %v7259_v17 = vadd.f32 %v7258_v1, %v7137_v37  ;;  %v7260_v57 = vpop.f32.mrb[90].mxu0 }
0x1831   :  { %v7275_v52 = vadd.f32 %v7257_v40, %v11874_v62  ;;  %v7261_v46 = vadd.f32 %v7260_v57, %v7141_v11  ;;  %v7262_v9 = vpop.f32.mrb[91].mxu0 }
0x1832   :  { %v7276_v5 = vadd.f32 %v7259_v17, %v11882_v49  ;;  %v7263_v35 = vadd.f32 %v7262_v9, %v7141_v11 }
0x1833   :  { %7294 = vst [vmem:[#allocation6 + $0x60] sm:$0xff] %v7275_v52  ;;  %v7279_v19 = vadd.f32 %v7261_v46, %v11889_v41 }
0x1834   :  { %7295 = vst [vmem:[#allocation6 + $0x68] sm:$0xff] %v7276_v5  ;;  %v7280_v14 = vadd.f32 %v7263_v35, %v11895_v59 }
0x1835   :  { %7296 = vst [vmem:[#allocation6 + $0x70] sm:$0xff] %v7279_v19 }
0x1836   :  { %7297 = vst [vmem:[#allocation6 + $0x78] sm:$0xff] %v7280_v14 }
0x1837   :  { %8713 = shalt.err (!%p8710_p12)
}
0x1838   :  { %s8714_s22 = scalar_lea.hbm %s12206_s7, 2048 }
0x1839   :  { %p8715_p13 = scmp.ne.s32.totalorder %s12206_s7, %s8714_s22  ;;  %p8718_p0 = scmp.lt.u32.totalorder %s8714_s22, %s12206_s7 }
0x183b   :  { %p8720_p1 = pnand %p8718_p0, %p8715_p13 }
0x183d   :  { %8723 = shalt.err (!%p8720_p1)
}
0x183e   :  { %s8744_s26 = smov 256   ;;  %s8745_s27 = smov 16  }
0x183f   :  { %7309 = dma.vmem_to_hbm [thread:$0]  %s7304_s1, 2048, %s12206_s7, [#allocation5], %s8744_s26, %s8744_s26, %s8745_s27  }
0x1840   :  { %8726 = dma.done.wait [#allocation5], 2048  }
0x1841   :  { %8727 = vsyncadd [#allocation5], 4294965248 }
0x1842   :  { %7313 = vsyncpa [#allocation4], 1 }
0x1843   :  { %7314 = vsyncpa [#allocation5], 1 }

</bundles_post_ra>
